<compile_context>
chip_gen: v7x
topology: tpu7x:2x2x1
jax: 0.10.0
libtpu: 0.0.40
codegen_flags: <defaults>
</compile_context>

<pallas_src>
import functools
import math

import jax
import jax.numpy as jnp
from jax.experimental import pallas as pl
from jax.experimental.pallas import tpu as pltpu

_GELU_C = math.sqrt(2.0 / math.pi)
_MiB = 1024 * 1024


def _vmem_budget_bytes():
    """Scoped-VMEM limit derived from this chip's physical VMEM."""
    try:
        cap = getattr(pltpu.get_tpu_info(), "vmem_capacity_bytes", None)
    except Exception:  # pragma: no cover - not on TPU / interpret mode
        cap = None
    if cap is None:
        return 64 * _MiB
    if cap >= 100 * _MiB:            # v5e / v6e: 128 MiB physical
        return 100 * _MiB
    return int(cap * 3 // 4)         # v7x: 64 MiB physical -> ~48 MiB scoped


_VMEM_LIMIT = _vmem_budget_bytes()
_BIG_VMEM = _VMEM_LIMIT >= 80 * _MiB

# GEMM output tiles: v6e ridge ~650 FLOP/byte -> 1024x1024; v7x ridge ~310 but
# half the VMEM -> 1024x512; v5e needs >=512x512.
_GEMM_TM = 1024
_GEMM_TN = 1024 if _BIG_VMEM else 512
_GEMM_TK = 512
_LN_TM = 1024 if _BIG_VMEM else 512   # f32 LN intermediates are (tm, K)
_LN_TN = 1024 if _BIG_VMEM else 512
_ADA_TN = 1024 if _BIG_VMEM else 512
_FLASH_TQ = 512
_FLASH_TKV = 1024


# ------------------------------ tiling helpers ------------------------------


def _pick_tile(dim, target, mult):
    """Largest tile <= target that is a multiple of `mult` and divides `dim`.

    Returns `dim` (full extent, no tiling) when dim <= target or no divisor
    exists -- full-extent blocks always satisfy the (8,128) BlockSpec rule.
    """
    if dim <= target:
        return dim
    t = (target // mult) * mult
    while t >= mult:
        if dim % t == 0:
            return t
        t -= mult
    return dim


def _pick_head_batch(bh, cap=8):
    """Heads per grid step; prefer an even head-group count (megacore balance)."""
    best = 1
    best_even = None
    for hb in range(1, min(bh, cap) + 1):
        if bh % hb == 0:
            best = hb
            if (bh // hb) % 2 == 0:
                best_even = hb
    if best_even is not None and best_even * 2 >= best:
        return best_even
    return best


# ------------------------------- Pallas kernels -----------------------------


def _ada_dual_kernel(x_ref, w1_ref, b1_ref, w2_ref, b2_ref, o1_ref, o2_ref):
    # ada / ada_ctx = silu(temb) @ w{1,2} + b{1,2}; one launch, SiLU computed
    # once per N tile, each weight streamed exactly once.
    x = x_ref[...].astype(jnp.float32)
    x = x / (1.0 + jnp.exp(-x))                       # SiLU in f32 (EUP exp)
    xb = x.astype(w1_ref.dtype)
    o1_ref[...] = (jnp.dot(xb, w1_ref[...], preferred_element_type=jnp.float32)
                   + b1_ref[...].astype(jnp.float32)).astype(o1_ref.dtype)
    o2_ref[...] = (jnp.dot(xb, w2_ref[...], preferred_element_type=jnp.float32)
                   + b2_ref[...].astype(jnp.float32)).astype(o2_ref.dtype)


def ada_dual_matmul(x, w1, b1, w2, b2):
    """x: (B, K); w1/w2: (K, N); b1/b2: (N,) -> two (B, N) outputs."""
    B, K = x.shape
    N = w1.shape[1]
    tn = _pick_tile(N, _ADA_TN, 128)
    grid = (N // tn,)
    out_sd = jax.ShapeDtypeStruct((B, N), jnp.bfloat16)
    return pl.pallas_call(
        _ada_dual_kernel,
        out_shape=(out_sd, out_sd),
        grid=grid,
        in_specs=[
            pl.BlockSpec((B, K), lambda j: (0, 0)),
            pl.BlockSpec((K, tn), lambda j: (0, j)),
            pl.BlockSpec((1, tn), lambda j: (0, j)),
            pl.BlockSpec((K, tn), lambda j: (0, j)),
            pl.BlockSpec((1, tn), lambda j: (0, j)),
        ],
        out_specs=(pl.BlockSpec((B, tn), lambda j: (0, j)),
                   pl.BlockSpec((B, tn), lambda j: (0, j))),
        compiler_params=pltpu.CompilerParams(
            dimension_semantics=("parallel",),
            vmem_limit_bytes=_VMEM_LIMIT),
    )(x, w1, b1.reshape(1, N), w2, b2.reshape(1, N))


def _ln_mod_matmul_kernel(x_ref, shift_ref, scale_ref, w_ref, b_ref, o_ref,
                          xn_ref, *, activation):
    # out = act( (LayerNorm(x)*(1+scale)+shift) @ w + b )
    # LN+modulation prologue runs once per row tile (j == 0) and is cached as
    # bf16 in VMEM scratch; remaining N tiles (innermost grid axis) reuse it.
    j = pl.program_id(2)

    @pl.when(j == 0)
    def _():
        x = x_ref[0].astype(jnp.float32)              # (tm, K)
        mu = jnp.mean(x, axis=-1, keepdims=True)
        var = jnp.mean(jnp.square(x - mu), axis=-1, keepdims=True)
        xn = (x - mu) * jax.lax.rsqrt(var + 1e-6)
        xn = (xn * (1.0 + scale_ref[0].astype(jnp.float32))
              + shift_ref[0].astype(jnp.float32))
        xn_ref[...] = xn.astype(xn_ref.dtype)

    acc = jnp.dot(xn_ref[...], w_ref[...],            # bf16 x bf16 -> f32 MXU
                  preferred_element_type=jnp.float32)
    acc = acc + b_ref[...].astype(jnp.float32)
    if activation == "gelu_tanh":
        acc = 0.5 * acc * (1.0 + jnp.tanh(_GELU_C * (acc + 0.044715 * acc * acc * acc)))
    o_ref[0] = acc.astype(o_ref.dtype)


def ln_mod_matmul(x, shift, scale, w, b, activation="none"):
    """x: (B, M, K); shift/scale: (B, K); w: (K, N); b: (N,) -> (B, M, N)."""
    B, M, K = x.shape
    N = w.shape[1]
    tm = _pick_tile(M, _LN_TM, 8)
    tn = _pick_tile(N, _LN_TN, 128)
    grid = (B, M // tm, N // tn)
    return pl.pallas_call(
        functools.partial(_ln_mod_matmul_kernel, activation=activation),
        out_shape=jax.ShapeDtypeStruct((B, M, N), jnp.bfloat16),
        grid=grid,
        in_specs=[
            pl.BlockSpec((1, tm, K), lambda b_, i, j: (b_, i, 0)),
            pl.BlockSpec((1, 1, K), lambda b_, i, j: (b_, 0, 0)),
            pl.BlockSpec((1, 1, K), lambda b_, i, j: (b_, 0, 0)),
            pl.BlockSpec((K, tn), lambda b_, i, j: (0, j)),
            pl.BlockSpec((1, tn), lambda b_, i, j: (0, j)),
        ],
        out_specs=pl.BlockSpec((1, tm, tn), lambda b_, i, j: (b_, i, j)),
        scratch_shapes=[pltpu.VMEM((tm, K), jnp.bfloat16)],
        compiler_params=pltpu.CompilerParams(
            dimension_semantics=("parallel", "parallel", "arbitrary"),
            vmem_limit_bytes=_VMEM_LIMIT),
    )(x, shift.reshape(B, 1, K), scale.reshape(B, 1, K), w, b.reshape(1, N))


def _matmul_gated_res_kernel(x_ref, w_ref, b_ref, gate_ref, res_ref, o_ref,
                             acc_ref):
    # out = res + gate * (x @ w + b), K-axis accumulation in f32 VMEM scratch.
    k = pl.program_id(3)

    @pl.when(k == 0)
    def _():
        acc_ref[...] = jnp.zeros(acc_ref.shape, acc_ref.dtype)

    acc_ref[...] += jnp.dot(x_ref[0], w_ref[...],
                            preferred_element_type=jnp.float32)

    @pl.when(k == pl.num_programs(3) - 1)
    def _():
        y = acc_ref[...] + b_ref[...].astype(jnp.float32)
        out = res_ref[0].astype(jnp.float32) + gate_ref[0].astype(jnp.float32) * y
        o_ref[0] = out.astype(o_ref.dtype)


def matmul_gated_res(x, w, b, gate, res):
    """x: (B, M, K); w: (K, N); b: (N,); gate: (B, N); res: (B, M, N)."""
    B, M, K = x.shape
    N = w.shape[1]
    tm = _pick_tile(M, _GEMM_TM, 8)
    tn = _pick_tile(N, _GEMM_TN, 128)
    tk = _pick_tile(K, _GEMM_TK, 128)
    grid = (B, M // tm, N // tn, K // tk)
    return pl.pallas_call(
        _matmul_gated_res_kernel,
        out_shape=jax.ShapeDtypeStruct((B, M, N), jnp.bfloat16),
        grid=grid,
        in_specs=[
            pl.BlockSpec((1, tm, tk), lambda b_, i, j, k: (b_, i, k)),
            pl.BlockSpec((tk, tn), lambda b_, i, j, k: (k, j)),
            pl.BlockSpec((1, tn), lambda b_, i, j, k: (0, j)),
            pl.BlockSpec((1, 1, tn), lambda b_, i, j, k: (b_, 0, j)),
            pl.BlockSpec((1, tm, tn), lambda b_, i, j, k: (b_, i, j)),
        ],
        out_specs=pl.BlockSpec((1, tm, tn), lambda b_, i, j, k: (b_, i, j)),
        scratch_shapes=[pltpu.VMEM((tm, tn), jnp.float32)],
        compiler_params=pltpu.CompilerParams(
            dimension_semantics=("parallel", "parallel", "parallel", "arbitrary"),
            vmem_limit_bytes=_VMEM_LIMIT),
    )(x, w, b.reshape(1, N), gate.reshape(B, 1, N), res)


def _qk_norm_rope_kernel(q_ref, k_ref, wq_ref, wk_ref, cos_ref, sa_ref, sb_ref,
                         oq_ref, ok_ref, *, q_scale):
    # Per-head RMSNorm (eps 1e-6) + interleaved-pair RoPE for Q and K.
    # Pair swap via two XLU rolls; the +/- sign and the even/odd selection are
    # folded into the precomputed sin_a / sin_b streams.  The attention
    # 1/sqrt(D) scale is folded into Q here (not per kv step in attention).
    cos = cos_ref[...].astype(jnp.float32)            # (1, tq, D)
    sa = sa_ref[...].astype(jnp.float32)
    sb = sb_ref[...].astype(jnp.float32)
    d = cos.shape[-1]

    def norm_rope(x_ref_, w_ref_, o_ref_, scale):
        x = x_ref_[...].astype(jnp.float32)           # (Hb, tq, D)
        ms = jnp.mean(x * x, axis=-1, keepdims=True)
        xn = x * jax.lax.rsqrt(ms + 1e-6) * w_ref_[...].astype(jnp.float32)
        x_next = pltpu.roll(xn, d - 1, axis=2)        # x[j+1]  (used at even j)
        x_prev = pltpu.roll(xn, 1, axis=2)            # x[j-1]  (used at odd j)
        out = xn * cos + x_next * sa + x_prev * sb
        if scale != 1.0:
            out = out * scale
        o_ref_[...] = out.astype(o_ref_.dtype)

    norm_rope(q_ref, wq_ref, oq_ref, q_scale)
    norm_rope(k_ref, wk_ref, ok_ref, 1.0)


def qk_norm_rope(q, k, wq, wk, cos, sin_a, sin_b, num_heads, q_scale):
    """q/k: (B*H, S, D); wq/wk: (D,); cos/sin_a/sin_b: (B, S, D)."""
    BH, S, D = q.shape
    B = BH // num_heads
    tq = _pick_tile(S, 512, 8)
    grid = (B, S // tq)
    spec_x = pl.BlockSpec((num_heads, tq, D), lambda b_, s: (b_, s, 0))
    spec_cs = pl.BlockSpec((1, tq, D), lambda b_, s: (b_, s, 0))
    spec_w = pl.BlockSpec((1, 1, D), lambda b_, s: (0, 0, 0))
    out_sd = jax.ShapeDtypeStruct((BH, S, D), jnp.bfloat16)
    return pl.pallas_call(
        functools.partial(_qk_norm_rope_kernel, q_scale=q_scale),
        out_shape=(out_sd, out_sd),
        grid=grid,
        in_specs=[spec_x, spec_x, spec_w, spec_w, spec_cs, spec_cs, spec_cs],
        out_specs=(spec_x, spec_x),
        compiler_params=pltpu.CompilerParams(
            dimension_semantics=("parallel", "parallel"),
            vmem_limit_bytes=_VMEM_LIMIT),
    )(q, k, wq.reshape(1, 1, D), wk.reshape(1, 1, D), cos, sin_a, sin_b)


def _flash_attn_kernel(q_ref, k_ref, v_ref, o_ref, m_sc, l_sc, acc_sc):
    # Online-softmax attention; q is pre-scaled by 1/sqrt(D) upstream.
    kv = pl.program_id(2)

    @pl.when(kv == 0)
    def _():
        m_sc[...] = jnp.full(m_sc.shape, -jnp.inf, m_sc.dtype)
        l_sc[...] = jnp.zeros(l_sc.shape, l_sc.dtype)
        acc_sc[...] = jnp.zeros(acc_sc.shape, acc_sc.dtype)

    q = q_ref[...]                                    # (Hb, tq, D) bf16
    k = k_ref[...]                                    # (Hb, tkv, D) bf16
    v = v_ref[...]
    # contract last dims directly (no explicit transpose), bf16 -> f32 acc
    s = jnp.einsum("hqd,hkd->hqk", q, k, preferred_element_type=jnp.float32)
    m_prev = m_sc[...]
    m_new = jnp.maximum(m_prev, jnp.max(s, axis=-1, keepdims=True))
    alpha = jnp.exp(m_prev - m_new)
    p = jnp.exp(s - m_new)
    l_sc[...] = alpha * l_sc[...] + jnp.sum(p, axis=-1, keepdims=True)
    acc_sc[...] = alpha * acc_sc[...] + jnp.einsum(
        "hqk,hkd->hqd", p.astype(v.dtype), v, preferred_element_type=jnp.float32)
    m_sc[...] = m_new

    @pl.when(kv == pl.num_programs(2) - 1)
    def _():
        inv = pl.reciprocal(l_sc[...], approx=True)
        o_ref[...] = (acc_sc[...] * inv).astype(o_ref.dtype)


def flash_attention(q, k, v):
    """q/k/v: (B*H, T, D) bf16 -> (B*H, T, D) bf16 (q pre-scaled)."""
    BH, S, D = q.shape
    hb = _pick_head_batch(BH, 8)                      # heads per grid step
    tq = _pick_tile(S, _FLASH_TQ, 8)
    tkv = _pick_tile(S, _FLASH_TKV, 8)
    grid = (BH // hb, S // tq, S // tkv)
    return pl.pallas_call(
        _flash_attn_kernel,
        out_shape=jax.ShapeDtypeStruct((BH, S, D), jnp.bfloat16),
        grid=grid,
        in_specs=[
            pl.BlockSpec((hb, tq, D), lambda h, qi, kv: (h, qi, 0)),
            pl.BlockSpec((hb, tkv, D), lambda h, qi, kv: (h, kv, 0)),
            pl.BlockSpec((hb, tkv, D), lambda h, qi, kv: (h, kv, 0)),
        ],
        out_specs=pl.BlockSpec((hb, tq, D), lambda h, qi, kv: (h, qi, 0)),
        scratch_shapes=[
            pltpu.VMEM((hb, tq, 1), jnp.float32),
            pltpu.VMEM((hb, tq, 1), jnp.float32),
            pltpu.VMEM((hb, tq, D), jnp.float32),
        ],
        compiler_params=pltpu.CompilerParams(
            dimension_semantics=("parallel", "parallel", "arbitrary"),
            vmem_limit_bytes=_VMEM_LIMIT),
    )(q, k, v)


# -------------------------------- Forward pass -------------------------------


def flux_transformer_block(hidden_states, temb, encoder_hidden_states,
                           image_rotary_emb, params, num_heads):
    B, T_img, C = hidden_states.shape
    T_txt = encoder_hidden_states.shape[1]
    T = T_txt + T_img
    H = num_heads
    D = C // H
    orig_dtype = hidden_states.dtype

    h = hidden_states.astype(jnp.bfloat16)
    e = encoder_hidden_states.astype(jnp.bfloat16)
    t = temb.astype(jnp.bfloat16)

    assert image_rotary_emb.ndim == 6
    assert image_rotary_emb.shape[0] == 1
    assert image_rotary_emb.shape[1] == 1
    assert image_rotary_emb.shape[2] == B * T

    # rotary emb: (B, T, D/2, 2, 2) rotation matrices -> cos / signed sin lanes
    rot = image_rotary_emb.reshape(B, T, *image_rotary_emb.shape[3:])
    cos_full = jnp.repeat(rot[..., 0, 0], 2, axis=-1).astype(jnp.float32)  # (B,T,D)
    sin_full = jnp.repeat(rot[..., 1, 0], 2, axis=-1).astype(jnp.float32)
    parity = (jnp.arange(D) % 2).astype(jnp.float32)          # 0 even, 1 odd
    sin_a = (-sin_full) * (1.0 - parity)   # even lanes: -sin, odd lanes: 0
    sin_b = sin_full * parity              # odd lanes:  sin, even lanes: 0
    cos_b = cos_full.astype(jnp.bfloat16)
    sin_a = sin_a.astype(jnp.bfloat16)
    sin_b = sin_b.astype(jnp.bfloat16)
    cos_txt, cos_img = cos_b[:, :T_txt], cos_b[:, T_txt:]
    sa_txt, sa_img = sin_a[:, :T_txt], sin_a[:, T_txt:]
    sb_txt, sb_img = sin_b[:, :T_txt], sin_b[:, T_txt:]

    # ----- AdaLayerNormZero modulation vectors (kept as (B, C), never broadcast);
    # img and ctx projections share one kernel launch -----
    ada, ada_c = ada_dual_matmul(t, params["ada_w"], params["ada_b"],
                                 params["ada_ctx_w"], params["ada_ctx_b"])
    shift_msa, scale_msa, gate_msa, shift_mlp, scale_mlp, gate_mlp = \
        jnp.split(ada, 6, axis=-1)
    (c_shift_msa, c_scale_msa, c_gate_msa,
     c_shift_mlp, c_scale_mlp, c_gate_mlp) = jnp.split(ada_c, 6, axis=-1)

    # ----- fused LayerNorm+modulate prologue -> fused QKV projection -----
    qkv_img = ln_mod_matmul(h, shift_msa, scale_msa,
                            params["wqkv"], params["bqkv"])             # (B,Timg,3C)
    qkv_txt = ln_mod_matmul(e, c_shift_msa, c_scale_msa,
                            params["wqkv_ctx"], params["bqkv_ctx"])     # (B,Ttxt,3C)

    # TODO(synk): head split/merge + txt/img concat stay in XLA; at production
    # D=128 they could be addressed directly via BlockSpec column index_maps.
    def split_heads(qkv, Tn):
        q, k, v = jnp.split(qkv, 3, axis=-1)
        def th(x):
            return x.reshape(B, Tn, H, D).transpose(0, 2, 1, 3).reshape(B * H, Tn, D)
        return th(q), th(k), th(v)

    q_img, k_img, v_img = split_heads(qkv_img, T_img)
    q_txt, k_txt, v_txt = split_heads(qkv_txt, T_txt)

    # per-head RMSNorm + RoPE (Q and K fused per stream); attention scale
    # folded into Q here so the flash kernel never rescales the score matrix.
    q_scale = 1.0 / math.sqrt(D)
    q_img, k_img = qk_norm_rope(q_img, k_img, params["norm_q"], params["norm_k"],
                                cos_img, sa_img, sb_img, H, q_scale)
    q_txt, k_txt = qk_norm_rope(q_txt, k_txt, params["norm_q_ctx"], params["norm_k_ctx"],
                                cos_txt, sa_txt, sb_txt, H, q_scale)

    # joint attention over [txt ; img] with online softmax
    q = jnp.concatenate([q_txt, q_img], axis=1)                         # (BH, T, D)
    k = jnp.concatenate([k_txt, k_img], axis=1)
    v = jnp.concatenate([v_txt, v_img], axis=1)
    attn = flash_attention(q, k, v)                                     # (BH, T, D)
    attn = attn.reshape(B, H, T, D).transpose(0, 2, 1, 3).reshape(B, T, C)
    attn_txt = attn[:, :T_txt]
    attn_img = attn[:, T_txt:]

    # output projection with fused gated residual add
    h = matmul_gated_res(attn_img, params["wo"], params["bo"], gate_msa, h)
    e = matmul_gated_res(attn_txt, params["wo_ctx"], params["bo_ctx"], c_gate_msa, e)

    # MLP: fused LN+modulate prologue + GELU(tanh), then fused gated residual
    ff_h = ln_mod_matmul(h, shift_mlp, scale_mlp,
                         params["ff1_w"], params["ff1_b"], activation="gelu_tanh")
    h = matmul_gated_res(ff_h, params["ff2_w"], params["ff2_b"], gate_mlp, h)

    ff_e = ln_mod_matmul(e, c_shift_mlp, c_scale_mlp,
                         params["ff1_ctx_w"], params["ff1_ctx_b"], activation="gelu_tanh")
    e = matmul_gated_res(ff_e, params["ff2_ctx_w"], params["ff2_ctx_b"], c_gate_mlp, e)

    return e.astype(orig_dtype), h.astype(orig_dtype)


# --------------------------- deterministic parameters ------------------------


def init_params(key, dim, num_heads, mlp_ratio=4):
    hidden = mlp_ratio * dim
    head_dim = dim // num_heads
    shapes = dict(
        ada_w=(dim, 6 * dim), ada_b=(6 * dim,),
        ada_ctx_w=(dim, 6 * dim), ada_ctx_b=(6 * dim,),
        wqkv=(dim, 3 * dim), bqkv=(3 * dim,),
        wqkv_ctx=(dim, 3 * dim), bqkv_ctx=(3 * dim,),
        wo=(dim, dim), bo=(dim,),
        wo_ctx=(dim, dim), bo_ctx=(dim,),
        ff1_w=(dim, hidden), ff1_b=(hidden,),
        ff2_w=(hidden, dim), ff2_b=(dim,),
        ff1_ctx_w=(dim, hidden), ff1_ctx_b=(hidden,),
        ff2_ctx_w=(hidden, dim), ff2_ctx_b=(dim,),
        norm_q=(head_dim,), norm_k=(head_dim,),
        norm_q_ctx=(head_dim,), norm_k_ctx=(head_dim,),
    )
    params = {}
    names = sorted(shapes)
    keys = jax.random.split(key, len(names))
    for k_i, name in zip(keys, names):
        shp = shapes[name]
        if name.startswith("norm"):
            params[name] = jnp.ones(shp, jnp.bfloat16)
        elif name.startswith("b") or name.endswith("_b"):
            params[name] = jnp.zeros(shp, jnp.bfloat16)
        else:
            params[name] = (0.02 * jax.random.normal(k_i, shp, jnp.float32)
                            ).astype(jnp.bfloat16)
    return params


# ------------------------------------ main -----------------------------------


if __name__ == "__main__":
    key = jax.random.PRNGKey(0)
    B, T_txt, T_img = 2, 8, 24
    C, H = 64, 2
    D = C // H
    keys = jax.random.split(key, 5)

    hidden_states = jax.random.normal(keys[0], (B, T_img, C), dtype=jnp.float32)
    encoder_hidden_states = jax.random.normal(keys[1], (B, T_txt, C), dtype=jnp.float32)
    temb = jax.random.normal(keys[2], (B, C), dtype=jnp.float32)

    # rotary emb in nunchaku's packed 2x2 rotation-matrix format:
    # shape (1, 1, B*(T_txt+T_img), head_dim//2, 2, 2), ndim == 6
    theta = jax.random.uniform(keys[3], (1, 1, B * (T_txt + T_img), D // 2),
                               minval=0.0, maxval=2.0 * math.pi)
    cos_t, sin_t = jnp.cos(theta), jnp.sin(theta)
    image_rotary_emb = jnp.stack(
        [jnp.stack([cos_t, -sin_t], axis=-1),
         jnp.stack([sin_t, cos_t], axis=-1)], axis=-2)

    params = init_params(keys[4], C, H)

    fwd = jax.jit(functools.partial(flux_transformer_block, num_heads=H))
    enc_out, img_out = fwd(hidden_states, temb, encoder_hidden_states,
                           image_rotary_emb, params)
    jax.block_until_ready((enc_out, img_out))

    assert enc_out.shape == (B, T_txt, C) and enc_out.dtype == hidden_states.dtype
    assert img_out.shape == (B, T_img, C) and img_out.dtype == hidden_states.dtype
    assert bool(jnp.isfinite(enc_out).all()) and bool(jnp.isfinite(img_out).all())
    print("KERNEL_OK")
</pallas_src>

<mosaic_0001>
module attributes {stable_mosaic.version = 11 : i64} {
  func.func @_ada_dual_kernel(%arg0: i32, %arg1: memref<2x64xbf16, #tpu.memory_space<vmem>>, %arg2: memref<64x384xbf16, #tpu.memory_space<vmem>>, %arg3: memref<1x384xbf16, #tpu.memory_space<vmem>>, %arg4: memref<64x384xbf16, #tpu.memory_space<vmem>>, %arg5: memref<1x384xbf16, #tpu.memory_space<vmem>>, %arg6: memref<2x384xbf16, #tpu.memory_space<vmem>>, %arg7: memref<2x384xbf16, #tpu.memory_space<vmem>>) attributes {dimension_semantics = [#tpu.dimension_semantics<parallel>], iteration_bounds = array<i64: 1>, scalar_prefetch = 0 : i64, scratch_operands = 0 : i64, tpu.core_type = #tpu.core_type<tc>, window_params = [{pipeline_mode = #tpu.pipeline_mode<synchronous>, transform_indices = @transform_0, window_bounds = array<i64: 2, 64>}, {transform_indices = @transform_1, window_bounds = array<i64: 64, 384>}, {transform_indices = @transform_2, window_bounds = array<i64: 1, 384>}, {transform_indices = @transform_3, window_bounds = array<i64: 64, 384>}, {transform_indices = @transform_4, window_bounds = array<i64: 1, 384>}, {transform_indices = @transform_5, window_bounds = array<i64: 2, 384>}, {transform_indices = @transform_6, window_bounds = array<i64: 2, 384>}]} {
    %c0 = arith.constant 0 : index
    %c0_0 = arith.constant 0 : index
    %0 = vector.load %arg1[%c0, %c0_0] : memref<2x64xbf16, #tpu.memory_space<vmem>>, vector<2x64xbf16>
    %1 = arith.extf %0 : vector<2x64xbf16> to vector<2x64xf32>
    %cst = arith.constant 0.000000e+00 : f32
    %2 = vector.broadcast %cst : f32 to vector<2x64xf32>
    %3 = arith.subf %2, %1 : vector<2x64xf32>
    %4 = math.exp %3 : vector<2x64xf32>
    %cst_1 = arith.constant 1.000000e+00 : f32
    %5 = vector.broadcast %cst_1 : f32 to vector<2x64xf32>
    %6 = arith.addf %5, %4 : vector<2x64xf32>
    %7 = arith.divf %1, %6 : vector<2x64xf32>
    %8 = arith.truncf %7 : vector<2x64xf32> to vector<2x64xbf16>
    %c0_2 = arith.constant 0 : index
    %c0_3 = arith.constant 0 : index
    %9 = vector.load %arg2[%c0_2, %c0_3] : memref<64x384xbf16, #tpu.memory_space<vmem>>, vector<64x384xbf16>
    %cst_4 = arith.constant dense<0.000000e+00> : vector<2x384xf32>
    %10 = tpu.matmul %8, %9, %cst_4 {dimension_numbers = #tpu.dot_dimension_numbers<[1], [0], [0], [1], [0, 0, 1, 1], [], []>} : vector<2x64xbf16>, vector<64x384xbf16>, vector<2x384xf32> -> vector<2x384xf32>
    %c0_5 = arith.constant 0 : index
    %c0_6 = arith.constant 0 : index
    %11 = vector.load %arg3[%c0_5, %c0_6] : memref<1x384xbf16, #tpu.memory_space<vmem>>, vector<1x384xbf16>
    %12 = arith.extf %11 : vector<1x384xbf16> to vector<1x384xf32>
    %13 = vector.broadcast %12 : vector<1x384xf32> to vector<2x384xf32>
    %14 = arith.addf %10, %13 : vector<2x384xf32>
    %15 = arith.truncf %14 : vector<2x384xf32> to vector<2x384xbf16>
    %c0_7 = arith.constant 0 : index
    %c0_8 = arith.constant 0 : index
    %16 = vector.load %arg6[%c0_7, %c0_8] : memref<2x384xbf16, #tpu.memory_space<vmem>>, vector<2x384xbf16>
    tpu.vector_store %arg6[%c0_7, %c0_8], %15 {strides = array<i32>} : memref<2x384xbf16, #tpu.memory_space<vmem>>, vector<2x384xbf16>,
    %c0_9 = arith.constant 0 : index
    %c0_10 = arith.constant 0 : index
    %17 = vector.load %arg4[%c0_9, %c0_10] : memref<64x384xbf16, #tpu.memory_space<vmem>>, vector<64x384xbf16>
    %cst_11 = arith.constant dense<0.000000e+00> : vector<2x384xf32>
    %18 = tpu.matmul %8, %17, %cst_11 {dimension_numbers = #tpu.dot_dimension_numbers<[1], [0], [0], [1], [0, 0, 1, 1], [], []>} : vector<2x64xbf16>, vector<64x384xbf16>, vector<2x384xf32> -> vector<2x384xf32>
    %c0_12 = arith.constant 0 : index
    %c0_13 = arith.constant 0 : index
    %19 = vector.load %arg5[%c0_12, %c0_13] : memref<1x384xbf16, #tpu.memory_space<vmem>>, vector<1x384xbf16>
    %20 = arith.extf %19 : vector<1x384xbf16> to vector<1x384xf32>
    %21 = vector.broadcast %20 : vector<1x384xf32> to vector<2x384xf32>
    %22 = arith.addf %18, %21 : vector<2x384xf32>
    %23 = arith.truncf %22 : vector<2x384xf32> to vector<2x384xbf16>
    %c0_14 = arith.constant 0 : index
    %c0_15 = arith.constant 0 : index
    %24 = vector.load %arg7[%c0_14, %c0_15] : memref<2x384xbf16, #tpu.memory_space<vmem>>, vector<2x384xbf16>
    tpu.vector_store %arg7[%c0_14, %c0_15], %23 {strides = array<i32>} : memref<2x384xbf16, #tpu.memory_space<vmem>>, vector<2x384xbf16>,
    return
  }
  func.func @transform_0(%arg0: i32) -> (i32, i32) {
    %c0_i32 = arith.constant 0 : i32
    %c0_i32_0 = arith.constant 0 : i32
    %c0_i32_1 = arith.constant 0 : i32
    return %c0_i32, %c0_i32_0 : i32, i32
  }
  func.func @transform_1(%arg0: i32) -> (i32, i32) {
    %c0_i32 = arith.constant 0 : i32
    %c0_i32_0 = arith.constant 0 : i32
    return %c0_i32, %arg0 : i32, i32
  }
  func.func @transform_2(%arg0: i32) -> (i32, i32) {
    %c0_i32 = arith.constant 0 : i32
    %c0_i32_0 = arith.constant 0 : i32
    return %c0_i32, %arg0 : i32, i32
  }
  func.func @transform_3(%arg0: i32) -> (i32, i32) {
    %c0_i32 = arith.constant 0 : i32
    %c0_i32_0 = arith.constant 0 : i32
    return %c0_i32, %arg0 : i32, i32
  }
  func.func @transform_4(%arg0: i32) -> (i32, i32) {
    %c0_i32 = arith.constant 0 : i32
    %c0_i32_0 = arith.constant 0 : i32
    return %c0_i32, %arg0 : i32, i32
  }
  func.func @transform_5(%arg0: i32) -> (i32, i32) {
    %c0_i32 = arith.constant 0 : i32
    %c0_i32_0 = arith.constant 0 : i32
    return %c0_i32, %arg0 : i32, i32
  }
  func.func @transform_6(%arg0: i32) -> (i32, i32) {
    %c0_i32 = arith.constant 0 : i32
    %c0_i32_0 = arith.constant 0 : i32
    return %c0_i32, %arg0 : i32, i32
  }
}

module attributes {stable_mosaic.version = 11 : i64} {
  func.func @_ln_mod_matmul_kernel(%arg0: i32, %arg1: i32, %arg2: i32, %arg3: memref<1x8x64xbf16, #tpu.memory_space<vmem>>, %arg4: memref<1x1x64xbf16, #tpu.memory_space<vmem>>, %arg5: memref<1x1x64xbf16, #tpu.memory_space<vmem>>, %arg6: memref<64x192xbf16, #tpu.memory_space<vmem>>, %arg7: memref<1x192xbf16, #tpu.memory_space<vmem>>, %arg8: memref<1x8x192xbf16, #tpu.memory_space<vmem>>, %arg9: memref<8x64xbf16, #tpu.memory_space<vmem>>) attributes {dimension_semantics = [#tpu.dimension_semantics<parallel>, #tpu.dimension_semantics<parallel>, #tpu.dimension_semantics<arbitrary>], iteration_bounds = array<i64: 2, 1, 1>, scalar_prefetch = 0 : i64, scratch_operands = 1 : i64, tpu.core_type = #tpu.core_type<tc>, window_params = [{transform_indices = @transform_0, window_bounds = array<i64: 1, 8, 64>}, {transform_indices = @transform_1, window_bounds = array<i64: 1, 1, 64>}, {transform_indices = @transform_2, window_bounds = array<i64: 1, 1, 64>}, {transform_indices = @transform_3, window_bounds = array<i64: 64, 192>}, {transform_indices = @transform_4, window_bounds = array<i64: 1, 192>}, {transform_indices = @transform_5, window_bounds = array<i64: 1, 8, 192>}]} {
    %c0_i32 = arith.constant 0 : i32
    %0 = arith.cmpi eq, %arg2, %c0_i32 : i32
    %1 = arith.extui %0 : i1 to i32
    %c0_i32_0 = arith.constant 0 : i32
    %2 = arith.cmpi ne, %1, %c0_i32_0 : i32
    scf.if %2 {
      %c0_9 = arith.constant 0 : index
      %c0_10 = arith.constant 0 : index
      %c0_11 = arith.constant 0 : index
      %14 = vector.load %arg3[%c0_9, %c0_10, %c0_11] : memref<1x8x64xbf16, #tpu.memory_space<vmem>>, vector<1x8x64xbf16>
      %15 = vector.shape_cast %14 : vector<1x8x64xbf16> to vector<8x64xbf16>
      %16 = arith.extf %15 : vector<8x64xbf16> to vector<8x64xf32>
      %cst_12 = arith.constant dense<0.000000e+00> : vector<8xf32>
      %17 = vector.multi_reduction <add>, %16, %cst_12 [1] : vector<8x64xf32> to vector<8xf32>
      %18 = vector.shape_cast %17 : vector<8xf32> to vector<8x1xf32>
      %cst_13 = arith.constant 6.400000e+01 : f32
      %19 = vector.broadcast %cst_13 : f32 to vector<8x1xf32>
      %20 = arith.divf %18, %19 : vector<8x1xf32>
      %21 = vector.broadcast %20 : vector<8x1xf32> to vector<8x64xf32>
      %22 = arith.subf %16, %21 : vector<8x64xf32>
      %23 = arith.mulf %22, %22 : vector<8x64xf32>
      %cst_14 = arith.constant dense<0.000000e+00> : vector<8xf32>
      %24 = vector.multi_reduction <add>, %23, %cst_14 [1] : vector<8x64xf32> to vector<8xf32>
      %25 = vector.shape_cast %24 : vector<8xf32> to vector<8x1xf32>
      %cst_15 = arith.constant 6.400000e+01 : f32
      %26 = vector.broadcast %cst_15 : f32 to vector<8x1xf32>
      %27 = arith.divf %25, %26 : vector<8x1xf32>
      %28 = vector.broadcast %20 : vector<8x1xf32> to vector<8x64xf32>
      %29 = arith.subf %16, %28 : vector<8x64xf32>
      %cst_16 = arith.constant 9.99999997E-7 : f32
      %30 = vector.broadcast %cst_16 : f32 to vector<8x1xf32>
      %31 = arith.addf %27, %30 : vector<8x1xf32>
      %32 = math.rsqrt %31 : vector<8x1xf32>
      %33 = vector.broadcast %32 : vector<8x1xf32> to vector<8x64xf32>
      %34 = arith.mulf %29, %33 : vector<8x64xf32>
      %c0_17 = arith.constant 0 : index
      %c0_18 = arith.constant 0 : index
      %c0_19 = arith.constant 0 : index
      %35 = vector.load %arg5[%c0_17, %c0_18, %c0_19] : memref<1x1x64xbf16, #tpu.memory_space<vmem>>, vector<1x1x64xbf16>
      %36 = vector.shape_cast %35 : vector<1x1x64xbf16> to vector<1x64xbf16>
      %37 = arith.extf %36 : vector<1x64xbf16> to vector<1x64xf32>
      %cst_20 = arith.constant 1.000000e+00 : f32
      %38 = vector.broadcast %cst_20 : f32 to vector<1x64xf32>
      %39 = arith.addf %38, %37 : vector<1x64xf32>
      %40 = vector.broadcast %39 : vector<1x64xf32> to vector<8x64xf32>
      %41 = arith.mulf %34, %40 : vector<8x64xf32>
      %c0_21 = arith.constant 0 : index
      %c0_22 = arith.constant 0 : index
      %c0_23 = arith.constant 0 : index
      %42 = vector.load %arg4[%c0_21, %c0_22, %c0_23] : memref<1x1x64xbf16, #tpu.memory_space<vmem>>, vector<1x1x64xbf16>
      %43 = vector.shape_cast %42 : vector<1x1x64xbf16> to vector<1x64xbf16>
      %44 = arith.extf %43 : vector<1x64xbf16> to vector<1x64xf32>
      %45 = vector.broadcast %44 : vector<1x64xf32> to vector<8x64xf32>
      %46 = arith.addf %41, %45 : vector<8x64xf32>
      %47 = arith.truncf %46 : vector<8x64xf32> to vector<8x64xbf16>
      %c0_24 = arith.constant 0 : index
      %c0_25 = arith.constant 0 : index
      %48 = vector.load %arg9[%c0_24, %c0_25] : memref<8x64xbf16, #tpu.memory_space<vmem>>, vector<8x64xbf16>
      tpu.vector_store %arg9[%c0_24, %c0_25], %47 {strides = array<i32>} : memref<8x64xbf16, #tpu.memory_space<vmem>>, vector<8x64xbf16>,
    } else {
    }
    %c0 = arith.constant 0 : index
    %c0_1 = arith.constant 0 : index
    %3 = vector.load %arg9[%c0, %c0_1] : memref<8x64xbf16, #tpu.memory_space<vmem>>, vector<8x64xbf16>
    %c0_2 = arith.constant 0 : index
    %c0_3 = arith.constant 0 : index
    %4 = vector.load %arg6[%c0_2, %c0_3] : memref<64x192xbf16, #tpu.memory_space<vmem>>, vector<64x192xbf16>
    %cst = arith.constant dense<0.000000e+00> : vector<8x192xf32>
    %5 = tpu.matmul %3, %4, %cst {dimension_numbers = #tpu.dot_dimension_numbers<[1], [0], [0], [1], [0, 0, 1, 1], [], []>} : vector<8x64xbf16>, vector<64x192xbf16>, vector<8x192xf32> -> vector<8x192xf32>
    %c0_4 = arith.constant 0 : index
    %c0_5 = arith.constant 0 : index
    %6 = vector.load %arg7[%c0_4, %c0_5] : memref<1x192xbf16, #tpu.memory_space<vmem>>, vector<1x192xbf16>
    %7 = arith.extf %6 : vector<1x192xbf16> to vector<1x192xf32>
    %8 = vector.broadcast %7 : vector<1x192xf32> to vector<8x192xf32>
    %9 = arith.addf %5, %8 : vector<8x192xf32>
    %10 = arith.truncf %9 : vector<8x192xf32> to vector<8x192xbf16>
    %c0_6 = arith.constant 0 : index
    %c0_7 = arith.constant 0 : index
    %c0_8 = arith.constant 0 : index
    %11 = vector.load %arg8[%c0_6, %c0_7, %c0_8] : memref<1x8x192xbf16, #tpu.memory_space<vmem>>, vector<1x8x192xbf16>
    %12 = vector.shape_cast %11 : vector<1x8x192xbf16> to vector<8x192xbf16>
    %13 = vector.shape_cast %10 : vector<8x192xbf16> to vector<1x8x192xbf16>
    tpu.vector_store %arg8[%c0_6, %c0_7, %c0_8], %13 {strides = array<i32>} : memref<1x8x192xbf16, #tpu.memory_space<vmem>>, vector<1x8x192xbf16>,
    return
  }
  func.func @transform_0(%arg0: i32, %arg1: i32, %arg2: i32) -> (i32, i32, i32) {
    %c0_i32 = arith.constant 0 : i32
    %c0_i32_0 = arith.constant 0 : i32
    return %arg0, %arg1, %c0_i32 : i32, i32, i32
  }
  func.func @transform_1(%arg0: i32, %arg1: i32, %arg2: i32) -> (i32, i32, i32) {
    %c0_i32 = arith.constant 0 : i32
    %c0_i32_0 = arith.constant 0 : i32
    %c0_i32_1 = arith.constant 0 : i32
    return %arg0, %c0_i32, %c0_i32_0 : i32, i32, i32
  }
  func.func @transform_2(%arg0: i32, %arg1: i32, %arg2: i32) -> (i32, i32, i32) {
    %c0_i32 = arith.constant 0 : i32
    %c0_i32_0 = arith.constant 0 : i32
    %c0_i32_1 = arith.constant 0 : i32
    return %arg0, %c0_i32, %c0_i32_0 : i32, i32, i32
  }
  func.func @transform_3(%arg0: i32, %arg1: i32, %arg2: i32) -> (i32, i32) {
    %c0_i32 = arith.constant 0 : i32
    %c0_i32_0 = arith.constant 0 : i32
    return %c0_i32, %arg2 : i32, i32
  }
  func.func @transform_4(%arg0: i32, %arg1: i32, %arg2: i32) -> (i32, i32) {
    %c0_i32 = arith.constant 0 : i32
    %c0_i32_0 = arith.constant 0 : i32
    return %c0_i32, %arg2 : i32, i32
  }
  func.func @transform_5(%arg0: i32, %arg1: i32, %arg2: i32) -> (i32, i32, i32) {
    %c0_i32 = arith.constant 0 : i32
    return %arg0, %arg1, %arg2 : i32, i32, i32
  }
}

module attributes {stable_mosaic.version = 11 : i64} {
  func.func @_qk_norm_rope_kernel(%arg0: i32, %arg1: i32, %arg2: memref<2x8x32xbf16, #tpu.memory_space<vmem>>, %arg3: memref<2x8x32xbf16, #tpu.memory_space<vmem>>, %arg4: memref<1x1x32xbf16, #tpu.memory_space<vmem>>, %arg5: memref<1x1x32xbf16, #tpu.memory_space<vmem>>, %arg6: memref<1x8x32xbf16, #tpu.memory_space<vmem>>, %arg7: memref<1x8x32xbf16, #tpu.memory_space<vmem>>, %arg8: memref<1x8x32xbf16, #tpu.memory_space<vmem>>, %arg9: memref<2x8x32xbf16, #tpu.memory_space<vmem>>, %arg10: memref<2x8x32xbf16, #tpu.memory_space<vmem>>) attributes {dimension_semantics = [#tpu.dimension_semantics<parallel>, #tpu.dimension_semantics<parallel>], iteration_bounds = array<i64: 2, 1>, scalar_prefetch = 0 : i64, scratch_operands = 0 : i64, tpu.core_type = #tpu.core_type<tc>, window_params = [{transform_indices = @transform_0, window_bounds = array<i64: 2, 8, 32>}, {transform_indices = @transform_1, window_bounds = array<i64: 2, 8, 32>}, {pipeline_mode = #tpu.pipeline_mode<synchronous>, transform_indices = @transform_2, window_bounds = array<i64: 1, 1, 32>}, {pipeline_mode = #tpu.pipeline_mode<synchronous>, transform_indices = @transform_3, window_bounds = array<i64: 1, 1, 32>}, {transform_indices = @transform_4, window_bounds = array<i64: 1, 8, 32>}, {transform_indices = @transform_5, window_bounds = array<i64: 1, 8, 32>}, {transform_indices = @transform_6, window_bounds = array<i64: 1, 8, 32>}, {transform_indices = @transform_7, window_bounds = array<i64: 2, 8, 32>}, {transform_indices = @transform_8, window_bounds = array<i64: 2, 8, 32>}]} {
    %c0 = arith.constant 0 : index
    %c0_0 = arith.constant 0 : index
    %c0_1 = arith.constant 0 : index
    %0 = vector.load %arg6[%c0, %c0_0, %c0_1] : memref<1x8x32xbf16, #tpu.memory_space<vmem>>, vector<1x8x32xbf16>
    %1 = arith.extf %0 : vector<1x8x32xbf16> to vector<1x8x32xf32>
    %c0_2 = arith.constant 0 : index
    %c0_3 = arith.constant 0 : index
    %c0_4 = arith.constant 0 : index
    %2 = vector.load %arg7[%c0_2, %c0_3, %c0_4] : memref<1x8x32xbf16, #tpu.memory_space<vmem>>, vector<1x8x32xbf16>
    %3 = arith.extf %2 : vector<1x8x32xbf16> to vector<1x8x32xf32>
    %c0_5 = arith.constant 0 : index
    %c0_6 = arith.constant 0 : index
    %c0_7 = arith.constant 0 : index
    %4 = vector.load %arg8[%c0_5, %c0_6, %c0_7] : memref<1x8x32xbf16, #tpu.memory_space<vmem>>, vector<1x8x32xbf16>
    %5 = arith.extf %4 : vector<1x8x32xbf16> to vector<1x8x32xf32>
    %c0_8 = arith.constant 0 : index
    %c0_9 = arith.constant 0 : index
    %c0_10 = arith.constant 0 : index
    %6 = vector.load %arg2[%c0_8, %c0_9, %c0_10] : memref<2x8x32xbf16, #tpu.memory_space<vmem>>, vector<2x8x32xbf16>
    %7 = arith.extf %6 : vector<2x8x32xbf16> to vector<2x8x32xf32>
    %8 = arith.mulf %7, %7 : vector<2x8x32xf32>
    %cst = arith.constant dense<0.000000e+00> : vector<2x8xf32>
    %9 = vector.multi_reduction <add>, %8, %cst [2] : vector<2x8x32xf32> to vector<2x8xf32>
    %10 = vector.shape_cast %9 : vector<2x8xf32> to vector<2x8x1xf32>
    %cst_11 = arith.constant 3.200000e+01 : f32
    %11 = vector.broadcast %cst_11 : f32 to vector<2x8x1xf32>
    %12 = arith.divf %10, %11 : vector<2x8x1xf32>
    %cst_12 = arith.constant 9.99999997E-7 : f32
    %13 = vector.broadcast %cst_12 : f32 to vector<2x8x1xf32>
    %14 = arith.addf %12, %13 : vector<2x8x1xf32>
    %15 = math.rsqrt %14 : vector<2x8x1xf32>
    %16 = vector.broadcast %15 : vector<2x8x1xf32> to vector<2x8x32xf32>
    %17 = arith.mulf %7, %16 : vector<2x8x32xf32>
    %c0_13 = arith.constant 0 : index
    %c0_14 = arith.constant 0 : index
    %c0_15 = arith.constant 0 : index
    %18 = vector.load %arg4[%c0_13, %c0_14, %c0_15] : memref<1x1x32xbf16, #tpu.memory_space<vmem>>, vector<1x1x32xbf16>
    %19 = arith.extf %18 : vector<1x1x32xbf16> to vector<1x1x32xf32>
    %20 = vector.broadcast %19 : vector<1x1x32xf32> to vector<2x8x32xf32>
    %21 = arith.mulf %17, %20 : vector<2x8x32xf32>
    %c31_i32 = arith.constant 31 : i32
    %22 = tpu.dynamic_rotate %21 by %c31_i32 dim 2 : vector<2x8x32xf32>, i32 -> vector<2x8x32xf32>
    %c1_i32 = arith.constant 1 : i32
    %23 = tpu.dynamic_rotate %21 by %c1_i32 dim 2 : vector<2x8x32xf32>, i32 -> vector<2x8x32xf32>
    %24 = vector.broadcast %1 : vector<1x8x32xf32> to vector<2x8x32xf32>
    %25 = arith.mulf %21, %24 : vector<2x8x32xf32>
    %26 = vector.broadcast %3 : vector<1x8x32xf32> to vector<2x8x32xf32>
    %27 = arith.mulf %22, %26 : vector<2x8x32xf32>
    %28 = arith.addf %25, %27 : vector<2x8x32xf32>
    %29 = vector.broadcast %5 : vector<1x8x32xf32> to vector<2x8x32xf32>
    %30 = arith.mulf %23, %29 : vector<2x8x32xf32>
    %31 = arith.addf %28, %30 : vector<2x8x32xf32>
    %cst_16 = arith.constant 0.176776692 : f32
    %32 = vector.broadcast %cst_16 : f32 to vector<2x8x32xf32>
    %33 = arith.mulf %31, %32 : vector<2x8x32xf32>
    %34 = arith.truncf %33 : vector<2x8x32xf32> to vector<2x8x32xbf16>
    %c0_17 = arith.constant 0 : index
    %c0_18 = arith.constant 0 : index
    %c0_19 = arith.constant 0 : index
    %35 = vector.load %arg9[%c0_17, %c0_18, %c0_19] : memref<2x8x32xbf16, #tpu.memory_space<vmem>>, vector<2x8x32xbf16>
    tpu.vector_store %arg9[%c0_17, %c0_18, %c0_19], %34 {strides = array<i32>} : memref<2x8x32xbf16, #tpu.memory_space<vmem>>, vector<2x8x32xbf16>,
    %c0_20 = arith.constant 0 : index
    %c0_21 = arith.constant 0 : index
    %c0_22 = arith.constant 0 : index
    %36 = vector.load %arg3[%c0_20, %c0_21, %c0_22] : memref<2x8x32xbf16, #tpu.memory_space<vmem>>, vector<2x8x32xbf16>
    %37 = arith.extf %36 : vector<2x8x32xbf16> to vector<2x8x32xf32>
    %38 = arith.mulf %37, %37 : vector<2x8x32xf32>
    %cst_23 = arith.constant dense<0.000000e+00> : vector<2x8xf32>
    %39 = vector.multi_reduction <add>, %38, %cst_23 [2] : vector<2x8x32xf32> to vector<2x8xf32>
    %40 = vector.shape_cast %39 : vector<2x8xf32> to vector<2x8x1xf32>
    %cst_24 = arith.constant 3.200000e+01 : f32
    %41 = vector.broadcast %cst_24 : f32 to vector<2x8x1xf32>
    %42 = arith.divf %40, %41 : vector<2x8x1xf32>
    %cst_25 = arith.constant 9.99999997E-7 : f32
    %43 = vector.broadcast %cst_25 : f32 to vector<2x8x1xf32>
    %44 = arith.addf %42, %43 : vector<2x8x1xf32>
    %45 = math.rsqrt %44 : vector<2x8x1xf32>
    %46 = vector.broadcast %45 : vector<2x8x1xf32> to vector<2x8x32xf32>
    %47 = arith.mulf %37, %46 : vector<2x8x32xf32>
    %c0_26 = arith.constant 0 : index
    %c0_27 = arith.constant 0 : index
    %c0_28 = arith.constant 0 : index
    %48 = vector.load %arg5[%c0_26, %c0_27, %c0_28] : memref<1x1x32xbf16, #tpu.memory_space<vmem>>, vector<1x1x32xbf16>
    %49 = arith.extf %48 : vector<1x1x32xbf16> to vector<1x1x32xf32>
    %50 = vector.broadcast %49 : vector<1x1x32xf32> to vector<2x8x32xf32>
    %51 = arith.mulf %47, %50 : vector<2x8x32xf32>
    %c31_i32_29 = arith.constant 31 : i32
    %52 = tpu.dynamic_rotate %51 by %c31_i32_29 dim 2 : vector<2x8x32xf32>, i32 -> vector<2x8x32xf32>
    %c1_i32_30 = arith.constant 1 : i32
    %53 = tpu.dynamic_rotate %51 by %c1_i32_30 dim 2 : vector<2x8x32xf32>, i32 -> vector<2x8x32xf32>
    %54 = vector.broadcast %1 : vector<1x8x32xf32> to vector<2x8x32xf32>
    %55 = arith.mulf %51, %54 : vector<2x8x32xf32>
    %56 = vector.broadcast %3 : vector<1x8x32xf32> to vector<2x8x32xf32>
    %57 = arith.mulf %52, %56 : vector<2x8x32xf32>
    %58 = arith.addf %55, %57 : vector<2x8x32xf32>
    %59 = vector.broadcast %5 : vector<1x8x32xf32> to vector<2x8x32xf32>
    %60 = arith.mulf %53, %59 : vector<2x8x32xf32>
    %61 = arith.addf %58, %60 : vector<2x8x32xf32>
    %62 = arith.truncf %61 : vector<2x8x32xf32> to vector<2x8x32xbf16>
    %c0_31 = arith.constant 0 : index
    %c0_32 = arith.constant 0 : index
    %c0_33 = arith.constant 0 : index
    %63 = vector.load %arg10[%c0_31, %c0_32, %c0_33] : memref<2x8x32xbf16, #tpu.memory_space<vmem>>, vector<2x8x32xbf16>
    tpu.vector_store %arg10[%c0_31, %c0_32, %c0_33], %62 {strides = array<i32>} : memref<2x8x32xbf16, #tpu.memory_space<vmem>>, vector<2x8x32xbf16>,
    return
  }
  func.func @transform_0(%arg0: i32, %arg1: i32) -> (i32, i32, i32) {
    %c0_i32 = arith.constant 0 : i32
    %c0_i32_0 = arith.constant 0 : i32
    return %arg0, %arg1, %c0_i32 : i32, i32, i32
  }
  func.func @transform_1(%arg0: i32, %arg1: i32) -> (i32, i32, i32) {
    %c0_i32 = arith.constant 0 : i32
    %c0_i32_0 = arith.constant 0 : i32
    return %arg0, %arg1, %c0_i32 : i32, i32, i32
  }
  func.func @transform_2(%arg0: i32, %arg1: i32) -> (i32, i32, i32) {
    %c0_i32 = arith.constant 0 : i32
    %c0_i32_0 = arith.constant 0 : i32
    %c0_i32_1 = arith.constant 0 : i32
    %c0_i32_2 = arith.constant 0 : i32
    return %c0_i32, %c0_i32_0, %c0_i32_1 : i32, i32, i32
  }
  func.func @transform_3(%arg0: i32, %arg1: i32) -> (i32, i32, i32) {
    %c0_i32 = arith.constant 0 : i32
    %c0_i32_0 = arith.constant 0 : i32
    %c0_i32_1 = arith.constant 0 : i32
    %c0_i32_2 = arith.constant 0 : i32
    return %c0_i32, %c0_i32_0, %c0_i32_1 : i32, i32, i32
  }
  func.func @transform_4(%arg0: i32, %arg1: i32) -> (i32, i32, i32) {
    %c0_i32 = arith.constant 0 : i32
    %c0_i32_0 = arith.constant 0 : i32
    return %arg0, %arg1, %c0_i32 : i32, i32, i32
  }
  func.func @transform_5(%arg0: i32, %arg1: i32) -> (i32, i32, i32) {
    %c0_i32 = arith.constant 0 : i32
    %c0_i32_0 = arith.constant 0 : i32
    return %arg0, %arg1, %c0_i32 : i32, i32, i32
  }
  func.func @transform_6(%arg0: i32, %arg1: i32) -> (i32, i32, i32) {
    %c0_i32 = arith.constant 0 : i32
    %c0_i32_0 = arith.constant 0 : i32
    return %arg0, %arg1, %c0_i32 : i32, i32, i32
  }
  func.func @transform_7(%arg0: i32, %arg1: i32) -> (i32, i32, i32) {
    %c0_i32 = arith.constant 0 : i32
    %c0_i32_0 = arith.constant 0 : i32
    return %arg0, %arg1, %c0_i32 : i32, i32, i32
  }
  func.func @transform_8(%arg0: i32, %arg1: i32) -> (i32, i32, i32) {
    %c0_i32 = arith.constant 0 : i32
    %c0_i32_0 = arith.constant 0 : i32
    return %arg0, %arg1, %c0_i32 : i32, i32, i32
  }
}

module attributes {stable_mosaic.version = 11 : i64} {
  func.func @_ln_mod_matmul_kernel(%arg0: i32, %arg1: i32, %arg2: i32, %arg3: memref<1x24x64xbf16, #tpu.memory_space<vmem>>, %arg4: memref<1x1x64xbf16, #tpu.memory_space<vmem>>, %arg5: memref<1x1x64xbf16, #tpu.memory_space<vmem>>, %arg6: memref<64x192xbf16, #tpu.memory_space<vmem>>, %arg7: memref<1x192xbf16, #tpu.memory_space<vmem>>, %arg8: memref<1x24x192xbf16, #tpu.memory_space<vmem>>, %arg9: memref<24x64xbf16, #tpu.memory_space<vmem>>) attributes {dimension_semantics = [#tpu.dimension_semantics<parallel>, #tpu.dimension_semantics<parallel>, #tpu.dimension_semantics<arbitrary>], iteration_bounds = array<i64: 2, 1, 1>, scalar_prefetch = 0 : i64, scratch_operands = 1 : i64, tpu.core_type = #tpu.core_type<tc>, window_params = [{transform_indices = @transform_0, window_bounds = array<i64: 1, 24, 64>}, {transform_indices = @transform_1, window_bounds = array<i64: 1, 1, 64>}, {transform_indices = @transform_2, window_bounds = array<i64: 1, 1, 64>}, {transform_indices = @transform_3, window_bounds = array<i64: 64, 192>}, {transform_indices = @transform_4, window_bounds = array<i64: 1, 192>}, {transform_indices = @transform_5, window_bounds = array<i64: 1, 24, 192>}]} {
    %c0_i32 = arith.constant 0 : i32
    %0 = arith.cmpi eq, %arg2, %c0_i32 : i32
    %1 = arith.extui %0 : i1 to i32
    %c0_i32_0 = arith.constant 0 : i32
    %2 = arith.cmpi ne, %1, %c0_i32_0 : i32
    scf.if %2 {
      %c0_9 = arith.constant 0 : index
      %c0_10 = arith.constant 0 : index
      %c0_11 = arith.constant 0 : index
      %14 = vector.load %arg3[%c0_9, %c0_10, %c0_11] : memref<1x24x64xbf16, #tpu.memory_space<vmem>>, vector<1x24x64xbf16>
      %15 = vector.shape_cast %14 : vector<1x24x64xbf16> to vector<24x64xbf16>
      %16 = arith.extf %15 : vector<24x64xbf16> to vector<24x64xf32>
      %cst_12 = arith.constant dense<0.000000e+00> : vector<24xf32>
      %17 = vector.multi_reduction <add>, %16, %cst_12 [1] : vector<24x64xf32> to vector<24xf32>
      %18 = vector.shape_cast %17 : vector<24xf32> to vector<24x1xf32>
      %cst_13 = arith.constant 6.400000e+01 : f32
      %19 = vector.broadcast %cst_13 : f32 to vector<24x1xf32>
      %20 = arith.divf %18, %19 : vector<24x1xf32>
      %21 = vector.broadcast %20 : vector<24x1xf32> to vector<24x64xf32>
      %22 = arith.subf %16, %21 : vector<24x64xf32>
      %23 = arith.mulf %22, %22 : vector<24x64xf32>
      %cst_14 = arith.constant dense<0.000000e+00> : vector<24xf32>
      %24 = vector.multi_reduction <add>, %23, %cst_14 [1] : vector<24x64xf32> to vector<24xf32>
      %25 = vector.shape_cast %24 : vector<24xf32> to vector<24x1xf32>
      %cst_15 = arith.constant 6.400000e+01 : f32
      %26 = vector.broadcast %cst_15 : f32 to vector<24x1xf32>
      %27 = arith.divf %25, %26 : vector<24x1xf32>
      %28 = vector.broadcast %20 : vector<24x1xf32> to vector<24x64xf32>
      %29 = arith.subf %16, %28 : vector<24x64xf32>
      %cst_16 = arith.constant 9.99999997E-7 : f32
      %30 = vector.broadcast %cst_16 : f32 to vector<24x1xf32>
      %31 = arith.addf %27, %30 : vector<24x1xf32>
      %32 = math.rsqrt %31 : vector<24x1xf32>
      %33 = vector.broadcast %32 : vector<24x1xf32> to vector<24x64xf32>
      %34 = arith.mulf %29, %33 : vector<24x64xf32>
      %c0_17 = arith.constant 0 : index
      %c0_18 = arith.constant 0 : index
      %c0_19 = arith.constant 0 : index
      %35 = vector.load %arg5[%c0_17, %c0_18, %c0_19] : memref<1x1x64xbf16, #tpu.memory_space<vmem>>, vector<1x1x64xbf16>
      %36 = vector.shape_cast %35 : vector<1x1x64xbf16> to vector<1x64xbf16>
      %37 = arith.extf %36 : vector<1x64xbf16> to vector<1x64xf32>
      %cst_20 = arith.constant 1.000000e+00 : f32
      %38 = vector.broadcast %cst_20 : f32 to vector<1x64xf32>
      %39 = arith.addf %38, %37 : vector<1x64xf32>
      %40 = vector.broadcast %39 : vector<1x64xf32> to vector<24x64xf32>
      %41 = arith.mulf %34, %40 : vector<24x64xf32>
      %c0_21 = arith.constant 0 : index
      %c0_22 = arith.constant 0 : index
      %c0_23 = arith.constant 0 : index
      %42 = vector.load %arg4[%c0_21, %c0_22, %c0_23] : memref<1x1x64xbf16, #tpu.memory_space<vmem>>, vector<1x1x64xbf16>
      %43 = vector.shape_cast %42 : vector<1x1x64xbf16> to vector<1x64xbf16>
      %44 = arith.extf %43 : vector<1x64xbf16> to vector<1x64xf32>
      %45 = vector.broadcast %44 : vector<1x64xf32> to vector<24x64xf32>
      %46 = arith.addf %41, %45 : vector<24x64xf32>
      %47 = arith.truncf %46 : vector<24x64xf32> to vector<24x64xbf16>
      %c0_24 = arith.constant 0 : index
      %c0_25 = arith.constant 0 : index
      %48 = vector.load %arg9[%c0_24, %c0_25] : memref<24x64xbf16, #tpu.memory_space<vmem>>, vector<24x64xbf16>
      tpu.vector_store %arg9[%c0_24, %c0_25], %47 {strides = array<i32>} : memref<24x64xbf16, #tpu.memory_space<vmem>>, vector<24x64xbf16>,
    } else {
    }
    %c0 = arith.constant 0 : index
    %c0_1 = arith.constant 0 : index
    %3 = vector.load %arg9[%c0, %c0_1] : memref<24x64xbf16, #tpu.memory_space<vmem>>, vector<24x64xbf16>
    %c0_2 = arith.constant 0 : index
    %c0_3 = arith.constant 0 : index
    %4 = vector.load %arg6[%c0_2, %c0_3] : memref<64x192xbf16, #tpu.memory_space<vmem>>, vector<64x192xbf16>
    %cst = arith.constant dense<0.000000e+00> : vector<24x192xf32>
    %5 = tpu.matmul %3, %4, %cst {dimension_numbers = #tpu.dot_dimension_numbers<[1], [0], [0], [1], [0, 0, 1, 1], [], []>} : vector<24x64xbf16>, vector<64x192xbf16>, vector<24x192xf32> -> vector<24x192xf32>
    %c0_4 = arith.constant 0 : index
    %c0_5 = arith.constant 0 : index
    %6 = vector.load %arg7[%c0_4, %c0_5] : memref<1x192xbf16, #tpu.memory_space<vmem>>, vector<1x192xbf16>
    %7 = arith.extf %6 : vector<1x192xbf16> to vector<1x192xf32>
    %8 = vector.broadcast %7 : vector<1x192xf32> to vector<24x192xf32>
    %9 = arith.addf %5, %8 : vector<24x192xf32>
    %10 = arith.truncf %9 : vector<24x192xf32> to vector<24x192xbf16>
    %c0_6 = arith.constant 0 : index
    %c0_7 = arith.constant 0 : index
    %c0_8 = arith.constant 0 : index
    %11 = vector.load %arg8[%c0_6, %c0_7, %c0_8] : memref<1x24x192xbf16, #tpu.memory_space<vmem>>, vector<1x24x192xbf16>
    %12 = vector.shape_cast %11 : vector<1x24x192xbf16> to vector<24x192xbf16>
    %13 = vector.shape_cast %10 : vector<24x192xbf16> to vector<1x24x192xbf16>
    tpu.vector_store %arg8[%c0_6, %c0_7, %c0_8], %13 {strides = array<i32>} : memref<1x24x192xbf16, #tpu.memory_space<vmem>>, vector<1x24x192xbf16>,
    return
  }
  func.func @transform_0(%arg0: i32, %arg1: i32, %arg2: i32) -> (i32, i32, i32) {
    %c0_i32 = arith.constant 0 : i32
    %c0_i32_0 = arith.constant 0 : i32
    return %arg0, %arg1, %c0_i32 : i32, i32, i32
  }
  func.func @transform_1(%arg0: i32, %arg1: i32, %arg2: i32) -> (i32, i32, i32) {
    %c0_i32 = arith.constant 0 : i32
    %c0_i32_0 = arith.constant 0 : i32
    %c0_i32_1 = arith.constant 0 : i32
    return %arg0, %c0_i32, %c0_i32_0 : i32, i32, i32
  }
  func.func @transform_2(%arg0: i32, %arg1: i32, %arg2: i32) -> (i32, i32, i32) {
    %c0_i32 = arith.constant 0 : i32
    %c0_i32_0 = arith.constant 0 : i32
    %c0_i32_1 = arith.constant 0 : i32
    return %arg0, %c0_i32, %c0_i32_0 : i32, i32, i32
  }
  func.func @transform_3(%arg0: i32, %arg1: i32, %arg2: i32) -> (i32, i32) {
    %c0_i32 = arith.constant 0 : i32
    %c0_i32_0 = arith.constant 0 : i32
    return %c0_i32, %arg2 : i32, i32
  }
  func.func @transform_4(%arg0: i32, %arg1: i32, %arg2: i32) -> (i32, i32) {
    %c0_i32 = arith.constant 0 : i32
    %c0_i32_0 = arith.constant 0 : i32
    return %c0_i32, %arg2 : i32, i32
  }
  func.func @transform_5(%arg0: i32, %arg1: i32, %arg2: i32) -> (i32, i32, i32) {
    %c0_i32 = arith.constant 0 : i32
    return %arg0, %arg1, %arg2 : i32, i32, i32
  }
}

module attributes {stable_mosaic.version = 11 : i64} {
  func.func @_qk_norm_rope_kernel(%arg0: i32, %arg1: i32, %arg2: memref<2x24x32xbf16, #tpu.memory_space<vmem>>, %arg3: memref<2x24x32xbf16, #tpu.memory_space<vmem>>, %arg4: memref<1x1x32xbf16, #tpu.memory_space<vmem>>, %arg5: memref<1x1x32xbf16, #tpu.memory_space<vmem>>, %arg6: memref<1x24x32xbf16, #tpu.memory_space<vmem>>, %arg7: memref<1x24x32xbf16, #tpu.memory_space<vmem>>, %arg8: memref<1x24x32xbf16, #tpu.memory_space<vmem>>, %arg9: memref<2x24x32xbf16, #tpu.memory_space<vmem>>, %arg10: memref<2x24x32xbf16, #tpu.memory_space<vmem>>) attributes {dimension_semantics = [#tpu.dimension_semantics<parallel>, #tpu.dimension_semantics<parallel>], iteration_bounds = array<i64: 2, 1>, scalar_prefetch = 0 : i64, scratch_operands = 0 : i64, tpu.core_type = #tpu.core_type<tc>, window_params = [{transform_indices = @transform_0, window_bounds = array<i64: 2, 24, 32>}, {transform_indices = @transform_1, window_bounds = array<i64: 2, 24, 32>}, {pipeline_mode = #tpu.pipeline_mode<synchronous>, transform_indices = @transform_2, window_bounds = array<i64: 1, 1, 32>}, {pipeline_mode = #tpu.pipeline_mode<synchronous>, transform_indices = @transform_3, window_bounds = array<i64: 1, 1, 32>}, {transform_indices = @transform_4, window_bounds = array<i64: 1, 24, 32>}, {transform_indices = @transform_5, window_bounds = array<i64: 1, 24, 32>}, {transform_indices = @transform_6, window_bounds = array<i64: 1, 24, 32>}, {transform_indices = @transform_7, window_bounds = array<i64: 2, 24, 32>}, {transform_indices = @transform_8, window_bounds = array<i64: 2, 24, 32>}]} {
    %c0 = arith.constant 0 : index
    %c0_0 = arith.constant 0 : index
    %c0_1 = arith.constant 0 : index
    %0 = vector.load %arg6[%c0, %c0_0, %c0_1] : memref<1x24x32xbf16, #tpu.memory_space<vmem>>, vector<1x24x32xbf16>
    %1 = arith.extf %0 : vector<1x24x32xbf16> to vector<1x24x32xf32>
    %c0_2 = arith.constant 0 : index
    %c0_3 = arith.constant 0 : index
    %c0_4 = arith.constant 0 : index
    %2 = vector.load %arg7[%c0_2, %c0_3, %c0_4] : memref<1x24x32xbf16, #tpu.memory_space<vmem>>, vector<1x24x32xbf16>
    %3 = arith.extf %2 : vector<1x24x32xbf16> to vector<1x24x32xf32>
    %c0_5 = arith.constant 0 : index
    %c0_6 = arith.constant 0 : index
    %c0_7 = arith.constant 0 : index
    %4 = vector.load %arg8[%c0_5, %c0_6, %c0_7] : memref<1x24x32xbf16, #tpu.memory_space<vmem>>, vector<1x24x32xbf16>
    %5 = arith.extf %4 : vector<1x24x32xbf16> to vector<1x24x32xf32>
    %c0_8 = arith.constant 0 : index
    %c0_9 = arith.constant 0 : index
    %c0_10 = arith.constant 0 : index
    %6 = vector.load %arg2[%c0_8, %c0_9, %c0_10] : memref<2x24x32xbf16, #tpu.memory_space<vmem>>, vector<2x24x32xbf16>
    %7 = arith.extf %6 : vector<2x24x32xbf16> to vector<2x24x32xf32>
    %8 = arith.mulf %7, %7 : vector<2x24x32xf32>
    %cst = arith.constant dense<0.000000e+00> : vector<2x24xf32>
    %9 = vector.multi_reduction <add>, %8, %cst [2] : vector<2x24x32xf32> to vector<2x24xf32>
    %10 = vector.shape_cast %9 : vector<2x24xf32> to vector<2x24x1xf32>
    %cst_11 = arith.constant 3.200000e+01 : f32
    %11 = vector.broadcast %cst_11 : f32 to vector<2x24x1xf32>
    %12 = arith.divf %10, %11 : vector<2x24x1xf32>
    %cst_12 = arith.constant 9.99999997E-7 : f32
    %13 = vector.broadcast %cst_12 : f32 to vector<2x24x1xf32>
    %14 = arith.addf %12, %13 : vector<2x24x1xf32>
    %15 = math.rsqrt %14 : vector<2x24x1xf32>
    %16 = vector.broadcast %15 : vector<2x24x1xf32> to vector<2x24x32xf32>
    %17 = arith.mulf %7, %16 : vector<2x24x32xf32>
    %c0_13 = arith.constant 0 : index
    %c0_14 = arith.constant 0 : index
    %c0_15 = arith.constant 0 : index
    %18 = vector.load %arg4[%c0_13, %c0_14, %c0_15] : memref<1x1x32xbf16, #tpu.memory_space<vmem>>, vector<1x1x32xbf16>
    %19 = arith.extf %18 : vector<1x1x32xbf16> to vector<1x1x32xf32>
    %20 = vector.broadcast %19 : vector<1x1x32xf32> to vector<2x24x32xf32>
    %21 = arith.mulf %17, %20 : vector<2x24x32xf32>
    %c31_i32 = arith.constant 31 : i32
    %22 = tpu.dynamic_rotate %21 by %c31_i32 dim 2 : vector<2x24x32xf32>, i32 -> vector<2x24x32xf32>
    %c1_i32 = arith.constant 1 : i32
    %23 = tpu.dynamic_rotate %21 by %c1_i32 dim 2 : vector<2x24x32xf32>, i32 -> vector<2x24x32xf32>
    %24 = vector.broadcast %1 : vector<1x24x32xf32> to vector<2x24x32xf32>
    %25 = arith.mulf %21, %24 : vector<2x24x32xf32>
    %26 = vector.broadcast %3 : vector<1x24x32xf32> to vector<2x24x32xf32>
    %27 = arith.mulf %22, %26 : vector<2x24x32xf32>
    %28 = arith.addf %25, %27 : vector<2x24x32xf32>
    %29 = vector.broadcast %5 : vector<1x24x32xf32> to vector<2x24x32xf32>
    %30 = arith.mulf %23, %29 : vector<2x24x32xf32>
    %31 = arith.addf %28, %30 : vector<2x24x32xf32>
    %cst_16 = arith.constant 0.176776692 : f32
    %32 = vector.broadcast %cst_16 : f32 to vector<2x24x32xf32>
    %33 = arith.mulf %31, %32 : vector<2x24x32xf32>
    %34 = arith.truncf %33 : vector<2x24x32xf32> to vector<2x24x32xbf16>
    %c0_17 = arith.constant 0 : index
    %c0_18 = arith.constant 0 : index
    %c0_19 = arith.constant 0 : index
    %35 = vector.load %arg9[%c0_17, %c0_18, %c0_19] : memref<2x24x32xbf16, #tpu.memory_space<vmem>>, vector<2x24x32xbf16>
    tpu.vector_store %arg9[%c0_17, %c0_18, %c0_19], %34 {strides = array<i32>} : memref<2x24x32xbf16, #tpu.memory_space<vmem>>, vector<2x24x32xbf16>,
    %c0_20 = arith.constant 0 : index
    %c0_21 = arith.constant 0 : index
    %c0_22 = arith.constant 0 : index
    %36 = vector.load %arg3[%c0_20, %c0_21, %c0_22] : memref<2x24x32xbf16, #tpu.memory_space<vmem>>, vector<2x24x32xbf16>
    %37 = arith.extf %36 : vector<2x24x32xbf16> to vector<2x24x32xf32>
    %38 = arith.mulf %37, %37 : vector<2x24x32xf32>
    %cst_23 = arith.constant dense<0.000000e+00> : vector<2x24xf32>
    %39 = vector.multi_reduction <add>, %38, %cst_23 [2] : vector<2x24x32xf32> to vector<2x24xf32>
    %40 = vector.shape_cast %39 : vector<2x24xf32> to vector<2x24x1xf32>
    %cst_24 = arith.constant 3.200000e+01 : f32
    %41 = vector.broadcast %cst_24 : f32 to vector<2x24x1xf32>
    %42 = arith.divf %40, %41 : vector<2x24x1xf32>
    %cst_25 = arith.constant 9.99999997E-7 : f32
    %43 = vector.broadcast %cst_25 : f32 to vector<2x24x1xf32>
    %44 = arith.addf %42, %43 : vector<2x24x1xf32>
    %45 = math.rsqrt %44 : vector<2x24x1xf32>
    %46 = vector.broadcast %45 : vector<2x24x1xf32> to vector<2x24x32xf32>
    %47 = arith.mulf %37, %46 : vector<2x24x32xf32>
    %c0_26 = arith.constant 0 : index
    %c0_27 = arith.constant 0 : index
    %c0_28 = arith.constant 0 : index
    %48 = vector.load %arg5[%c0_26, %c0_27, %c0_28] : memref<1x1x32xbf16, #tpu.memory_space<vmem>>, vector<1x1x32xbf16>
    %49 = arith.extf %48 : vector<1x1x32xbf16> to vector<1x1x32xf32>
    %50 = vector.broadcast %49 : vector<1x1x32xf32> to vector<2x24x32xf32>
    %51 = arith.mulf %47, %50 : vector<2x24x32xf32>
    %c31_i32_29 = arith.constant 31 : i32
    %52 = tpu.dynamic_rotate %51 by %c31_i32_29 dim 2 : vector<2x24x32xf32>, i32 -> vector<2x24x32xf32>
    %c1_i32_30 = arith.constant 1 : i32
    %53 = tpu.dynamic_rotate %51 by %c1_i32_30 dim 2 : vector<2x24x32xf32>, i32 -> vector<2x24x32xf32>
    %54 = vector.broadcast %1 : vector<1x24x32xf32> to vector<2x24x32xf32>
    %55 = arith.mulf %51, %54 : vector<2x24x32xf32>
    %56 = vector.broadcast %3 : vector<1x24x32xf32> to vector<2x24x32xf32>
    %57 = arith.mulf %52, %56 : vector<2x24x32xf32>
    %58 = arith.addf %55, %57 : vector<2x24x32xf32>
    %59 = vector.broadcast %5 : vector<1x24x32xf32> to vector<2x24x32xf32>
    %60 = arith.mulf %53, %59 : vector<2x24x32xf32>
    %61 = arith.addf %58, %60 : vector<2x24x32xf32>
    %62 = arith.truncf %61 : vector<2x24x32xf32> to vector<2x24x32xbf16>
    %c0_31 = arith.constant 0 : index
    %c0_32 = arith.constant 0 : index
    %c0_33 = arith.constant 0 : index
    %63 = vector.load %arg10[%c0_31, %c0_32, %c0_33] : memref<2x24x32xbf16, #tpu.memory_space<vmem>>, vector<2x24x32xbf16>
    tpu.vector_store %arg10[%c0_31, %c0_32, %c0_33], %62 {strides = array<i32>} : memref<2x24x32xbf16, #tpu.memory_space<vmem>>, vector<2x24x32xbf16>,
    return
  }
  func.func @transform_0(%arg0: i32, %arg1: i32) -> (i32, i32, i32) {
    %c0_i32 = arith.constant 0 : i32
    %c0_i32_0 = arith.constant 0 : i32
    return %arg0, %arg1, %c0_i32 : i32, i32, i32
  }
  func.func @transform_1(%arg0: i32, %arg1: i32) -> (i32, i32, i32) {
    %c0_i32 = arith.constant 0 : i32
    %c0_i32_0 = arith.constant 0 : i32
    return %arg0, %arg1, %c0_i32 : i32, i32, i32
  }
  func.func @transform_2(%arg0: i32, %arg1: i32) -> (i32, i32, i32) {
    %c0_i32 = arith.constant 0 : i32
    %c0_i32_0 = arith.constant 0 : i32
    %c0_i32_1 = arith.constant 0 : i32
    %c0_i32_2 = arith.constant 0 : i32
    return %c0_i32, %c0_i32_0, %c0_i32_1 : i32, i32, i32
  }
  func.func @transform_3(%arg0: i32, %arg1: i32) -> (i32, i32, i32) {
    %c0_i32 = arith.constant 0 : i32
    %c0_i32_0 = arith.constant 0 : i32
    %c0_i32_1 = arith.constant 0 : i32
    %c0_i32_2 = arith.constant 0 : i32
    return %c0_i32, %c0_i32_0, %c0_i32_1 : i32, i32, i32
  }
  func.func @transform_4(%arg0: i32, %arg1: i32) -> (i32, i32, i32) {
    %c0_i32 = arith.constant 0 : i32
    %c0_i32_0 = arith.constant 0 : i32
    return %arg0, %arg1, %c0_i32 : i32, i32, i32
  }
  func.func @transform_5(%arg0: i32, %arg1: i32) -> (i32, i32, i32) {
    %c0_i32 = arith.constant 0 : i32
    %c0_i32_0 = arith.constant 0 : i32
    return %arg0, %arg1, %c0_i32 : i32, i32, i32
  }
  func.func @transform_6(%arg0: i32, %arg1: i32) -> (i32, i32, i32) {
    %c0_i32 = arith.constant 0 : i32
    %c0_i32_0 = arith.constant 0 : i32
    return %arg0, %arg1, %c0_i32 : i32, i32, i32
  }
  func.func @transform_7(%arg0: i32, %arg1: i32) -> (i32, i32, i32) {
    %c0_i32 = arith.constant 0 : i32
    %c0_i32_0 = arith.constant 0 : i32
    return %arg0, %arg1, %c0_i32 : i32, i32, i32
  }
  func.func @transform_8(%arg0: i32, %arg1: i32) -> (i32, i32, i32) {
    %c0_i32 = arith.constant 0 : i32
    %c0_i32_0 = arith.constant 0 : i32
    return %arg0, %arg1, %c0_i32 : i32, i32, i32
  }
}

module attributes {stable_mosaic.version = 11 : i64} {
  func.func @_flash_attn_kernel(%arg0: i32, %arg1: i32, %arg2: i32, %arg3: memref<2x32x32xbf16, #tpu.memory_space<vmem>>, %arg4: memref<2x32x32xbf16, #tpu.memory_space<vmem>>, %arg5: memref<2x32x32xbf16, #tpu.memory_space<vmem>>, %arg6: memref<2x32x32xbf16, #tpu.memory_space<vmem>>, %arg7: memref<2x32x1xf32, #tpu.memory_space<vmem>>, %arg8: memref<2x32x1xf32, #tpu.memory_space<vmem>>, %arg9: memref<2x32x32xf32, #tpu.memory_space<vmem>>) attributes {dimension_semantics = [#tpu.dimension_semantics<parallel>, #tpu.dimension_semantics<parallel>, #tpu.dimension_semantics<arbitrary>], iteration_bounds = array<i64: 2, 1, 1>, scalar_prefetch = 0 : i64, scratch_operands = 3 : i64, tpu.core_type = #tpu.core_type<tc>, window_params = [{transform_indices = @transform_0, window_bounds = array<i64: 2, 32, 32>}, {transform_indices = @transform_1, window_bounds = array<i64: 2, 32, 32>}, {transform_indices = @transform_2, window_bounds = array<i64: 2, 32, 32>}, {transform_indices = @transform_3, window_bounds = array<i64: 2, 32, 32>}]} {
    %c0_i32 = arith.constant 0 : i32
    %0 = arith.cmpi eq, %arg2, %c0_i32 : i32
    %1 = arith.extui %0 : i1 to i32
    %c0_i32_0 = arith.constant 0 : i32
    %2 = arith.cmpi ne, %1, %c0_i32_0 : i32
    scf.if %2 {
      %cst_32 = arith.constant 0xFF800000 : f32
      %33 = vector.broadcast %cst_32 : f32 to vector<2x32x1xf32>
      %c0_33 = arith.constant 0 : index
      %c0_34 = arith.constant 0 : index
      %c0_35 = arith.constant 0 : index
      %34 = vector.load %arg7[%c0_33, %c0_34, %c0_35] : memref<2x32x1xf32, #tpu.memory_space<vmem>>, vector<2x32x1xf32>
      tpu.vector_store %arg7[%c0_33, %c0_34, %c0_35], %33 {strides = array<i32>} : memref<2x32x1xf32, #tpu.memory_space<vmem>>, vector<2x32x1xf32>,
      %cst_36 = arith.constant 0.000000e+00 : f32
      %35 = vector.broadcast %cst_36 : f32 to vector<2x32x1xf32>
      %c0_37 = arith.constant 0 : index
      %c0_38 = arith.constant 0 : index
      %c0_39 = arith.constant 0 : index
      %36 = vector.load %arg8[%c0_37, %c0_38, %c0_39] : memref<2x32x1xf32, #tpu.memory_space<vmem>>, vector<2x32x1xf32>
      tpu.vector_store %arg8[%c0_37, %c0_38, %c0_39], %35 {strides = array<i32>} : memref<2x32x1xf32, #tpu.memory_space<vmem>>, vector<2x32x1xf32>,
      %cst_40 = arith.constant 0.000000e+00 : f32
      %37 = vector.broadcast %cst_40 : f32 to vector<2x32x32xf32>
      %c0_41 = arith.constant 0 : index
      %c0_42 = arith.constant 0 : index
      %c0_43 = arith.constant 0 : index
      %38 = vector.load %arg9[%c0_41, %c0_42, %c0_43] : memref<2x32x32xf32, #tpu.memory_space<vmem>>, vector<2x32x32xf32>
      tpu.vector_store %arg9[%c0_41, %c0_42, %c0_43], %37 {strides = array<i32>} : memref<2x32x32xf32, #tpu.memory_space<vmem>>, vector<2x32x32xf32>,
    } else {
    }
    %c0 = arith.constant 0 : index
    %c0_1 = arith.constant 0 : index
    %c0_2 = arith.constant 0 : index
    %3 = vector.load %arg3[%c0, %c0_1, %c0_2] : memref<2x32x32xbf16, #tpu.memory_space<vmem>>, vector<2x32x32xbf16>
    %c0_3 = arith.constant 0 : index
    %c0_4 = arith.constant 0 : index
    %c0_5 = arith.constant 0 : index
    %4 = vector.load %arg4[%c0_3, %c0_4, %c0_5] : memref<2x32x32xbf16, #tpu.memory_space<vmem>>, vector<2x32x32xbf16>
    %c0_6 = arith.constant 0 : index
    %c0_7 = arith.constant 0 : index
    %c0_8 = arith.constant 0 : index
    %5 = vector.load %arg5[%c0_6, %c0_7, %c0_8] : memref<2x32x32xbf16, #tpu.memory_space<vmem>>, vector<2x32x32xbf16>
    "tpu.trace_start"() <{level = 10 : i32, message = "hqd,hkd->hqk"}> : () -> ()
    %cst = arith.constant dense<0.000000e+00> : vector<2x32x32xf32>
    %6 = tpu.matmul %3, %4, %cst {dimension_numbers = #tpu.dot_dimension_numbers<[2], [2], [1], [1], [0, 0, 0, 1, 1, 1], [0], [0]>} : vector<2x32x32xbf16>, vector<2x32x32xbf16>, vector<2x32x32xf32> -> vector<2x32x32xf32>
    "tpu.trace_stop"() : () -> ()
    %c0_9 = arith.constant 0 : index
    %c0_10 = arith.constant 0 : index
    %c0_11 = arith.constant 0 : index
    %7 = vector.load %arg7[%c0_9, %c0_10, %c0_11] : memref<2x32x1xf32, #tpu.memory_space<vmem>>, vector<2x32x1xf32>
    %cst_12 = arith.constant dense<0xFF800000> : vector<2x32xf32>
    %8 = vector.multi_reduction <maximumf>, %6, %cst_12 [2] : vector<2x32x32xf32> to vector<2x32xf32>
    %9 = vector.shape_cast %8 : vector<2x32xf32> to vector<2x32x1xf32>
    %10 = arith.maximumf %7, %9 : vector<2x32x1xf32>
    %11 = arith.subf %7, %10 : vector<2x32x1xf32>
    %12 = math.exp %11 : vector<2x32x1xf32>
    %13 = vector.broadcast %10 : vector<2x32x1xf32> to vector<2x32x32xf32>
    %14 = arith.subf %6, %13 : vector<2x32x32xf32>
    %15 = math.exp %14 : vector<2x32x32xf32>
    %c0_13 = arith.constant 0 : index
    %c0_14 = arith.constant 0 : index
    %c0_15 = arith.constant 0 : index
    %16 = vector.load %arg8[%c0_13, %c0_14, %c0_15] : memref<2x32x1xf32, #tpu.memory_space<vmem>>, vector<2x32x1xf32>
    %17 = arith.mulf %12, %16 : vector<2x32x1xf32>
    %cst_16 = arith.constant dense<0.000000e+00> : vector<2x32xf32>
    %18 = vector.multi_reduction <add>, %15, %cst_16 [2] : vector<2x32x32xf32> to vector<2x32xf32>
    %19 = vector.shape_cast %18 : vector<2x32xf32> to vector<2x32x1xf32>
    %20 = arith.addf %17, %19 : vector<2x32x1xf32>
    %c0_17 = arith.constant 0 : index
    %c0_18 = arith.constant 0 : index
    %c0_19 = arith.constant 0 : index
    %21 = vector.load %arg8[%c0_17, %c0_18, %c0_19] : memref<2x32x1xf32, #tpu.memory_space<vmem>>, vector<2x32x1xf32>
    tpu.vector_store %arg8[%c0_17, %c0_18, %c0_19], %20 {strides = array<i32>} : memref<2x32x1xf32, #tpu.memory_space<vmem>>, vector<2x32x1xf32>,
    %c0_20 = arith.constant 0 : index
    %c0_21 = arith.constant 0 : index
    %c0_22 = arith.constant 0 : index
    %22 = vector.load %arg9[%c0_20, %c0_21, %c0_22] : memref<2x32x32xf32, #tpu.memory_space<vmem>>, vector<2x32x32xf32>
    %23 = vector.broadcast %12 : vector<2x32x1xf32> to vector<2x32x32xf32>
    %24 = arith.mulf %23, %22 : vector<2x32x32xf32>
    %25 = arith.truncf %15 : vector<2x32x32xf32> to vector<2x32x32xbf16>
    "tpu.trace_start"() <{level = 10 : i32, message = "hqk,hkd->hqd"}> : () -> ()
    %cst_23 = arith.constant dense<0.000000e+00> : vector<2x32x32xf32>
    %26 = tpu.matmul %25, %5, %cst_23 {dimension_numbers = #tpu.dot_dimension_numbers<[2], [1], [1], [2], [0, 0, 0, 1, 1, 2], [0], [0]>} : vector<2x32x32xbf16>, vector<2x32x32xbf16>, vector<2x32x32xf32> -> vector<2x32x32xf32>
    "tpu.trace_stop"() : () -> ()
    %27 = arith.addf %24, %26 : vector<2x32x32xf32>
    %c0_24 = arith.constant 0 : index
    %c0_25 = arith.constant 0 : index
    %c0_26 = arith.constant 0 : index
    %28 = vector.load %arg9[%c0_24, %c0_25, %c0_26] : memref<2x32x32xf32, #tpu.memory_space<vmem>>, vector<2x32x32xf32>
    tpu.vector_store %arg9[%c0_24, %c0_25, %c0_26], %27 {strides = array<i32>} : memref<2x32x32xf32, #tpu.memory_space<vmem>>, vector<2x32x32xf32>,
    %c0_27 = arith.constant 0 : index
    %c0_28 = arith.constant 0 : index
    %c0_29 = arith.constant 0 : index
    %29 = vector.load %arg7[%c0_27, %c0_28, %c0_29] : memref<2x32x1xf32, #tpu.memory_space<vmem>>, vector<2x32x1xf32>
    tpu.vector_store %arg7[%c0_27, %c0_28, %c0_29], %10 {strides = array<i32>} : memref<2x32x1xf32, #tpu.memory_space<vmem>>, vector<2x32x1xf32>,
    %c0_i32_30 = arith.constant 0 : i32
    %30 = arith.cmpi eq, %arg2, %c0_i32_30 : i32
    %31 = arith.extui %30 : i1 to i32
    %c0_i32_31 = arith.constant 0 : i32
    %32 = arith.cmpi ne, %31, %c0_i32_31 : i32
    scf.if %32 {
      %c0_32 = arith.constant 0 : index
      %c0_33 = arith.constant 0 : index
      %c0_34 = arith.constant 0 : index
      %33 = vector.load %arg8[%c0_32, %c0_33, %c0_34] : memref<2x32x1xf32, #tpu.memory_space<vmem>>, vector<2x32x1xf32>
      %34 = tpu.reciprocal %33 {approx = true} : vector<2x32x1xf32> -> vector<2x32x1xf32>
      %c0_35 = arith.constant 0 : index
      %c0_36 = arith.constant 0 : index
      %c0_37 = arith.constant 0 : index
      %35 = vector.load %arg9[%c0_35, %c0_36, %c0_37] : memref<2x32x32xf32, #tpu.memory_space<vmem>>, vector<2x32x32xf32>
      %36 = vector.broadcast %34 : vector<2x32x1xf32> to vector<2x32x32xf32>
      %37 = arith.mulf %35, %36 : vector<2x32x32xf32>
      %38 = arith.truncf %37 : vector<2x32x32xf32> to vector<2x32x32xbf16>
      %c0_38 = arith.constant 0 : index
      %c0_39 = arith.constant 0 : index
      %c0_40 = arith.constant 0 : index
      %39 = vector.load %arg6[%c0_38, %c0_39, %c0_40] : memref<2x32x32xbf16, #tpu.memory_space<vmem>>, vector<2x32x32xbf16>
      tpu.vector_store %arg6[%c0_38, %c0_39, %c0_40], %38 {strides = array<i32>} : memref<2x32x32xbf16, #tpu.memory_space<vmem>>, vector<2x32x32xbf16>,
    } else {
    }
    return
  }
  func.func @transform_0(%arg0: i32, %arg1: i32, %arg2: i32) -> (i32, i32, i32) {
    %c0_i32 = arith.constant 0 : i32
    %c0_i32_0 = arith.constant 0 : i32
    return %arg0, %arg1, %c0_i32 : i32, i32, i32
  }
  func.func @transform_1(%arg0: i32, %arg1: i32, %arg2: i32) -> (i32, i32, i32) {
    %c0_i32 = arith.constant 0 : i32
    %c0_i32_0 = arith.constant 0 : i32
    return %arg0, %arg2, %c0_i32 : i32, i32, i32
  }
  func.func @transform_2(%arg0: i32, %arg1: i32, %arg2: i32) -> (i32, i32, i32) {
    %c0_i32 = arith.constant 0 : i32
    %c0_i32_0 = arith.constant 0 : i32
    return %arg0, %arg2, %c0_i32 : i32, i32, i32
  }
  func.func @transform_3(%arg0: i32, %arg1: i32, %arg2: i32) -> (i32, i32, i32) {
    %c0_i32 = arith.constant 0 : i32
    %c0_i32_0 = arith.constant 0 : i32
    return %arg0, %arg1, %c0_i32 : i32, i32, i32
  }
}

module attributes {stable_mosaic.version = 11 : i64} {
  func.func @_matmul_gated_res_kernel(%arg0: i32, %arg1: i32, %arg2: i32, %arg3: i32, %arg4: memref<1x24x64xbf16, #tpu.memory_space<vmem>>, %arg5: memref<64x64xbf16, #tpu.memory_space<vmem>>, %arg6: memref<1x64xbf16, #tpu.memory_space<vmem>>, %arg7: memref<1x1x64xbf16, #tpu.memory_space<vmem>>, %arg8: memref<1x24x64xbf16, #tpu.memory_space<vmem>>, %arg9: memref<1x24x64xbf16, #tpu.memory_space<vmem>>, %arg10: memref<24x64xf32, #tpu.memory_space<vmem>>) attributes {dimension_semantics = [#tpu.dimension_semantics<parallel>, #tpu.dimension_semantics<parallel>, #tpu.dimension_semantics<parallel>, #tpu.dimension_semantics<arbitrary>], iteration_bounds = array<i64: 2, 1, 1, 1>, scalar_prefetch = 0 : i64, scratch_operands = 1 : i64, tpu.core_type = #tpu.core_type<tc>, window_params = [{transform_indices = @transform_0, window_bounds = array<i64: 1, 24, 64>}, {transform_indices = @transform_1, window_bounds = array<i64: 64, 64>}, {transform_indices = @transform_2, window_bounds = array<i64: 1, 64>}, {transform_indices = @transform_3, window_bounds = array<i64: 1, 1, 64>}, {transform_indices = @transform_4, window_bounds = array<i64: 1, 24, 64>}, {transform_indices = @transform_5, window_bounds = array<i64: 1, 24, 64>}]} {
    %c0_i32 = arith.constant 0 : i32
    %0 = arith.cmpi eq, %arg3, %c0_i32 : i32
    %1 = arith.extui %0 : i1 to i32
    %c0_i32_0 = arith.constant 0 : i32
    %2 = arith.cmpi ne, %1, %c0_i32_0 : i32
    scf.if %2 {
      %cst_11 = arith.constant 0.000000e+00 : f32
      %13 = vector.broadcast %cst_11 : f32 to vector<24x64xf32>
      %c0_12 = arith.constant 0 : index
      %c0_13 = arith.constant 0 : index
      %14 = vector.load %arg10[%c0_12, %c0_13] : memref<24x64xf32, #tpu.memory_space<vmem>>, vector<24x64xf32>
      tpu.vector_store %arg10[%c0_12, %c0_13], %13 {strides = array<i32>} : memref<24x64xf32, #tpu.memory_space<vmem>>, vector<24x64xf32>,
    } else {
    }
    %c0 = arith.constant 0 : index
    %c0_1 = arith.constant 0 : index
    %3 = vector.load %arg10[%c0, %c0_1] : memref<24x64xf32, #tpu.memory_space<vmem>>, vector<24x64xf32>
    %c0_2 = arith.constant 0 : index
    %c0_3 = arith.constant 0 : index
    %c0_4 = arith.constant 0 : index
    %4 = vector.load %arg4[%c0_2, %c0_3, %c0_4] : memref<1x24x64xbf16, #tpu.memory_space<vmem>>, vector<1x24x64xbf16>
    %5 = vector.shape_cast %4 : vector<1x24x64xbf16> to vector<24x64xbf16>
    %c0_5 = arith.constant 0 : index
    %c0_6 = arith.constant 0 : index
    %6 = vector.load %arg5[%c0_5, %c0_6] : memref<64x64xbf16, #tpu.memory_space<vmem>>, vector<64x64xbf16>
    %cst = arith.constant dense<0.000000e+00> : vector<24x64xf32>
    %7 = tpu.matmul %5, %6, %cst {dimension_numbers = #tpu.dot_dimension_numbers<[1], [0], [0], [1], [0, 0, 1, 1], [], []>} : vector<24x64xbf16>, vector<64x64xbf16>, vector<24x64xf32> -> vector<24x64xf32>
    %8 = arith.addf %3, %7 : vector<24x64xf32>
    %c0_7 = arith.constant 0 : index
    %c0_8 = arith.constant 0 : index
    %9 = vector.load %arg10[%c0_7, %c0_8] : memref<24x64xf32, #tpu.memory_space<vmem>>, vector<24x64xf32>
    tpu.vector_store %arg10[%c0_7, %c0_8], %8 {strides = array<i32>} : memref<24x64xf32, #tpu.memory_space<vmem>>, vector<24x64xf32>,
    %c0_i32_9 = arith.constant 0 : i32
    %10 = arith.cmpi eq, %arg3, %c0_i32_9 : i32
    %11 = arith.extui %10 : i1 to i32
    %c0_i32_10 = arith.constant 0 : i32
    %12 = arith.cmpi ne, %11, %c0_i32_10 : i32
    scf.if %12 {
      %c0_11 = arith.constant 0 : index
      %c0_12 = arith.constant 0 : index
      %13 = vector.load %arg10[%c0_11, %c0_12] : memref<24x64xf32, #tpu.memory_space<vmem>>, vector<24x64xf32>
      %c0_13 = arith.constant 0 : index
      %c0_14 = arith.constant 0 : index
      %14 = vector.load %arg6[%c0_13, %c0_14] : memref<1x64xbf16, #tpu.memory_space<vmem>>, vector<1x64xbf16>
      %15 = arith.extf %14 : vector<1x64xbf16> to vector<1x64xf32>
      %16 = vector.broadcast %15 : vector<1x64xf32> to vector<24x64xf32>
      %17 = arith.addf %13, %16 : vector<24x64xf32>
      %c0_15 = arith.constant 0 : index
      %c0_16 = arith.constant 0 : index
      %c0_17 = arith.constant 0 : index
      %18 = vector.load %arg8[%c0_15, %c0_16, %c0_17] : memref<1x24x64xbf16, #tpu.memory_space<vmem>>, vector<1x24x64xbf16>
      %19 = vector.shape_cast %18 : vector<1x24x64xbf16> to vector<24x64xbf16>
      %20 = arith.extf %19 : vector<24x64xbf16> to vector<24x64xf32>
      %c0_18 = arith.constant 0 : index
      %c0_19 = arith.constant 0 : index
      %c0_20 = arith.constant 0 : index
      %21 = vector.load %arg7[%c0_18, %c0_19, %c0_20] : memref<1x1x64xbf16, #tpu.memory_space<vmem>>, vector<1x1x64xbf16>
      %22 = vector.shape_cast %21 : vector<1x1x64xbf16> to vector<1x64xbf16>
      %23 = arith.extf %22 : vector<1x64xbf16> to vector<1x64xf32>
      %24 = vector.broadcast %23 : vector<1x64xf32> to vector<24x64xf32>
      %25 = arith.mulf %24, %17 : vector<24x64xf32>
      %26 = arith.addf %20, %25 : vector<24x64xf32>
      %27 = arith.truncf %26 : vector<24x64xf32> to vector<24x64xbf16>
      %c0_21 = arith.constant 0 : index
      %c0_22 = arith.constant 0 : index
      %c0_23 = arith.constant 0 : index
      %28 = vector.load %arg9[%c0_21, %c0_22, %c0_23] : memref<1x24x64xbf16, #tpu.memory_space<vmem>>, vector<1x24x64xbf16>
      %29 = vector.shape_cast %28 : vector<1x24x64xbf16> to vector<24x64xbf16>
      %30 = vector.shape_cast %27 : vector<24x64xbf16> to vector<1x24x64xbf16>
      tpu.vector_store %arg9[%c0_21, %c0_22, %c0_23], %30 {strides = array<i32>} : memref<1x24x64xbf16, #tpu.memory_space<vmem>>, vector<1x24x64xbf16>,
    } else {
    }
    return
  }
  func.func @transform_0(%arg0: i32, %arg1: i32, %arg2: i32, %arg3: i32) -> (i32, i32, i32) {
    %c0_i32 = arith.constant 0 : i32
    return %arg0, %arg1, %arg3 : i32, i32, i32
  }
  func.func @transform_1(%arg0: i32, %arg1: i32, %arg2: i32, %arg3: i32) -> (i32, i32) {
    %c0_i32 = arith.constant 0 : i32
    return %arg3, %arg2 : i32, i32
  }
  func.func @transform_2(%arg0: i32, %arg1: i32, %arg2: i32, %arg3: i32) -> (i32, i32) {
    %c0_i32 = arith.constant 0 : i32
    %c0_i32_0 = arith.constant 0 : i32
    return %c0_i32, %arg2 : i32, i32
  }
  func.func @transform_3(%arg0: i32, %arg1: i32, %arg2: i32, %arg3: i32) -> (i32, i32, i32) {
    %c0_i32 = arith.constant 0 : i32
    %c0_i32_0 = arith.constant 0 : i32
    return %arg0, %c0_i32, %arg2 : i32, i32, i32
  }
  func.func @transform_4(%arg0: i32, %arg1: i32, %arg2: i32, %arg3: i32) -> (i32, i32, i32) {
    %c0_i32 = arith.constant 0 : i32
    return %arg0, %arg1, %arg2 : i32, i32, i32
  }
  func.func @transform_5(%arg0: i32, %arg1: i32, %arg2: i32, %arg3: i32) -> (i32, i32, i32) {
    %c0_i32 = arith.constant 0 : i32
    return %arg0, %arg1, %arg2 : i32, i32, i32
  }
}

module attributes {stable_mosaic.version = 11 : i64} {
  func.func @_ln_mod_matmul_kernel(%arg0: i32, %arg1: i32, %arg2: i32, %arg3: memref<1x24x64xbf16, #tpu.memory_space<vmem>>, %arg4: memref<1x1x64xbf16, #tpu.memory_space<vmem>>, %arg5: memref<1x1x64xbf16, #tpu.memory_space<vmem>>, %arg6: memref<64x256xbf16, #tpu.memory_space<vmem>>, %arg7: memref<1x256xbf16, #tpu.memory_space<vmem>>, %arg8: memref<1x24x256xbf16, #tpu.memory_space<vmem>>, %arg9: memref<24x64xbf16, #tpu.memory_space<vmem>>) attributes {dimension_semantics = [#tpu.dimension_semantics<parallel>, #tpu.dimension_semantics<parallel>, #tpu.dimension_semantics<arbitrary>], iteration_bounds = array<i64: 2, 1, 1>, scalar_prefetch = 0 : i64, scratch_operands = 1 : i64, tpu.core_type = #tpu.core_type<tc>, window_params = [{transform_indices = @transform_0, window_bounds = array<i64: 1, 24, 64>}, {transform_indices = @transform_1, window_bounds = array<i64: 1, 1, 64>}, {transform_indices = @transform_2, window_bounds = array<i64: 1, 1, 64>}, {transform_indices = @transform_3, window_bounds = array<i64: 64, 256>}, {transform_indices = @transform_4, window_bounds = array<i64: 1, 256>}, {transform_indices = @transform_5, window_bounds = array<i64: 1, 24, 256>}]} {
    %c0_i32 = arith.constant 0 : i32
    %0 = arith.cmpi eq, %arg2, %c0_i32 : i32
    %1 = arith.extui %0 : i1 to i32
    %c0_i32_0 = arith.constant 0 : i32
    %2 = arith.cmpi ne, %1, %c0_i32_0 : i32
    scf.if %2 {
      %c0_13 = arith.constant 0 : index
      %c0_14 = arith.constant 0 : index
      %c0_15 = arith.constant 0 : index
      %27 = vector.load %arg3[%c0_13, %c0_14, %c0_15] : memref<1x24x64xbf16, #tpu.memory_space<vmem>>, vector<1x24x64xbf16>
      %28 = vector.shape_cast %27 : vector<1x24x64xbf16> to vector<24x64xbf16>
      %29 = arith.extf %28 : vector<24x64xbf16> to vector<24x64xf32>
      %cst_16 = arith.constant dense<0.000000e+00> : vector<24xf32>
      %30 = vector.multi_reduction <add>, %29, %cst_16 [1] : vector<24x64xf32> to vector<24xf32>
      %31 = vector.shape_cast %30 : vector<24xf32> to vector<24x1xf32>
      %cst_17 = arith.constant 6.400000e+01 : f32
      %32 = vector.broadcast %cst_17 : f32 to vector<24x1xf32>
      %33 = arith.divf %31, %32 : vector<24x1xf32>
      %34 = vector.broadcast %33 : vector<24x1xf32> to vector<24x64xf32>
      %35 = arith.subf %29, %34 : vector<24x64xf32>
      %36 = arith.mulf %35, %35 : vector<24x64xf32>
      %cst_18 = arith.constant dense<0.000000e+00> : vector<24xf32>
      %37 = vector.multi_reduction <add>, %36, %cst_18 [1] : vector<24x64xf32> to vector<24xf32>
      %38 = vector.shape_cast %37 : vector<24xf32> to vector<24x1xf32>
      %cst_19 = arith.constant 6.400000e+01 : f32
      %39 = vector.broadcast %cst_19 : f32 to vector<24x1xf32>
      %40 = arith.divf %38, %39 : vector<24x1xf32>
      %41 = vector.broadcast %33 : vector<24x1xf32> to vector<24x64xf32>
      %42 = arith.subf %29, %41 : vector<24x64xf32>
      %cst_20 = arith.constant 9.99999997E-7 : f32
      %43 = vector.broadcast %cst_20 : f32 to vector<24x1xf32>
      %44 = arith.addf %40, %43 : vector<24x1xf32>
      %45 = math.rsqrt %44 : vector<24x1xf32>
      %46 = vector.broadcast %45 : vector<24x1xf32> to vector<24x64xf32>
      %47 = arith.mulf %42, %46 : vector<24x64xf32>
      %c0_21 = arith.constant 0 : index
      %c0_22 = arith.constant 0 : index
      %c0_23 = arith.constant 0 : index
      %48 = vector.load %arg5[%c0_21, %c0_22, %c0_23] : memref<1x1x64xbf16, #tpu.memory_space<vmem>>, vector<1x1x64xbf16>
      %49 = vector.shape_cast %48 : vector<1x1x64xbf16> to vector<1x64xbf16>
      %50 = arith.extf %49 : vector<1x64xbf16> to vector<1x64xf32>
      %cst_24 = arith.constant 1.000000e+00 : f32
      %51 = vector.broadcast %cst_24 : f32 to vector<1x64xf32>
      %52 = arith.addf %51, %50 : vector<1x64xf32>
      %53 = vector.broadcast %52 : vector<1x64xf32> to vector<24x64xf32>
      %54 = arith.mulf %47, %53 : vector<24x64xf32>
      %c0_25 = arith.constant 0 : index
      %c0_26 = arith.constant 0 : index
      %c0_27 = arith.constant 0 : index
      %55 = vector.load %arg4[%c0_25, %c0_26, %c0_27] : memref<1x1x64xbf16, #tpu.memory_space<vmem>>, vector<1x1x64xbf16>
      %56 = vector.shape_cast %55 : vector<1x1x64xbf16> to vector<1x64xbf16>
      %57 = arith.extf %56 : vector<1x64xbf16> to vector<1x64xf32>
      %58 = vector.broadcast %57 : vector<1x64xf32> to vector<24x64xf32>
      %59 = arith.addf %54, %58 : vector<24x64xf32>
      %60 = arith.truncf %59 : vector<24x64xf32> to vector<24x64xbf16>
      %c0_28 = arith.constant 0 : index
      %c0_29 = arith.constant 0 : index
      %61 = vector.load %arg9[%c0_28, %c0_29] : memref<24x64xbf16, #tpu.memory_space<vmem>>, vector<24x64xbf16>
      tpu.vector_store %arg9[%c0_28, %c0_29], %60 {strides = array<i32>} : memref<24x64xbf16, #tpu.memory_space<vmem>>, vector<24x64xbf16>,
    } else {
    }
    %c0 = arith.constant 0 : index
    %c0_1 = arith.constant 0 : index
    %3 = vector.load %arg9[%c0, %c0_1] : memref<24x64xbf16, #tpu.memory_space<vmem>>, vector<24x64xbf16>
    %c0_2 = arith.constant 0 : index
    %c0_3 = arith.constant 0 : index
    %4 = vector.load %arg6[%c0_2, %c0_3] : memref<64x256xbf16, #tpu.memory_space<vmem>>, vector<64x256xbf16>
    %cst = arith.constant dense<0.000000e+00> : vector<24x256xf32>
    %5 = tpu.matmul %3, %4, %cst {dimension_numbers = #tpu.dot_dimension_numbers<[1], [0], [0], [1], [0, 0, 1, 1], [], []>} : vector<24x64xbf16>, vector<64x256xbf16>, vector<24x256xf32> -> vector<24x256xf32>
    %c0_4 = arith.constant 0 : index
    %c0_5 = arith.constant 0 : index
    %6 = vector.load %arg7[%c0_4, %c0_5] : memref<1x256xbf16, #tpu.memory_space<vmem>>, vector<1x256xbf16>
    %7 = arith.extf %6 : vector<1x256xbf16> to vector<1x256xf32>
    %8 = vector.broadcast %7 : vector<1x256xf32> to vector<24x256xf32>
    %9 = arith.addf %5, %8 : vector<24x256xf32>
    %cst_6 = arith.constant 5.000000e-01 : f32
    %10 = vector.broadcast %cst_6 : f32 to vector<24x256xf32>
    %11 = arith.mulf %10, %9 : vector<24x256xf32>
    %cst_7 = arith.constant 4.471500e-02 : f32
    %12 = vector.broadcast %cst_7 : f32 to vector<24x256xf32>
    %13 = arith.mulf %12, %9 : vector<24x256xf32>
    %14 = arith.mulf %13, %9 : vector<24x256xf32>
    %15 = arith.mulf %14, %9 : vector<24x256xf32>
    %16 = arith.addf %9, %15 : vector<24x256xf32>
    %cst_8 = arith.constant 0.797884583 : f32
    %17 = vector.broadcast %cst_8 : f32 to vector<24x256xf32>
    %18 = arith.mulf %17, %16 : vector<24x256xf32>
    %19 = math.tanh %18 : vector<24x256xf32>
    %cst_9 = arith.constant 1.000000e+00 : f32
    %20 = vector.broadcast %cst_9 : f32 to vector<24x256xf32>
    %21 = arith.addf %20, %19 : vector<24x256xf32>
    %22 = arith.mulf %11, %21 : vector<24x256xf32>
    %23 = arith.truncf %22 : vector<24x256xf32> to vector<24x256xbf16>
    %c0_10 = arith.constant 0 : index
    %c0_11 = arith.constant 0 : index
    %c0_12 = arith.constant 0 : index
    %24 = vector.load %arg8[%c0_10, %c0_11, %c0_12] : memref<1x24x256xbf16, #tpu.memory_space<vmem>>, vector<1x24x256xbf16>
    %25 = vector.shape_cast %24 : vector<1x24x256xbf16> to vector<24x256xbf16>
    %26 = vector.shape_cast %23 : vector<24x256xbf16> to vector<1x24x256xbf16>
    tpu.vector_store %arg8[%c0_10, %c0_11, %c0_12], %26 {strides = array<i32>} : memref<1x24x256xbf16, #tpu.memory_space<vmem>>, vector<1x24x256xbf16>,
    return
  }
  func.func @transform_0(%arg0: i32, %arg1: i32, %arg2: i32) -> (i32, i32, i32) {
    %c0_i32 = arith.constant 0 : i32
    %c0_i32_0 = arith.constant 0 : i32
    return %arg0, %arg1, %c0_i32 : i32, i32, i32
  }
  func.func @transform_1(%arg0: i32, %arg1: i32, %arg2: i32) -> (i32, i32, i32) {
    %c0_i32 = arith.constant 0 : i32
    %c0_i32_0 = arith.constant 0 : i32
    %c0_i32_1 = arith.constant 0 : i32
    return %arg0, %c0_i32, %c0_i32_0 : i32, i32, i32
  }
  func.func @transform_2(%arg0: i32, %arg1: i32, %arg2: i32) -> (i32, i32, i32) {
    %c0_i32 = arith.constant 0 : i32
    %c0_i32_0 = arith.constant 0 : i32
    %c0_i32_1 = arith.constant 0 : i32
    return %arg0, %c0_i32, %c0_i32_0 : i32, i32, i32
  }
  func.func @transform_3(%arg0: i32, %arg1: i32, %arg2: i32) -> (i32, i32) {
    %c0_i32 = arith.constant 0 : i32
    %c0_i32_0 = arith.constant 0 : i32
    return %c0_i32, %arg2 : i32, i32
  }
  func.func @transform_4(%arg0: i32, %arg1: i32, %arg2: i32) -> (i32, i32) {
    %c0_i32 = arith.constant 0 : i32
    %c0_i32_0 = arith.constant 0 : i32
    return %c0_i32, %arg2 : i32, i32
  }
  func.func @transform_5(%arg0: i32, %arg1: i32, %arg2: i32) -> (i32, i32, i32) {
    %c0_i32 = arith.constant 0 : i32
    return %arg0, %arg1, %arg2 : i32, i32, i32
  }
}

module attributes {stable_mosaic.version = 11 : i64} {
  func.func @_matmul_gated_res_kernel(%arg0: i32, %arg1: i32, %arg2: i32, %arg3: i32, %arg4: memref<1x24x256xbf16, #tpu.memory_space<vmem>>, %arg5: memref<256x64xbf16, #tpu.memory_space<vmem>>, %arg6: memref<1x64xbf16, #tpu.memory_space<vmem>>, %arg7: memref<1x1x64xbf16, #tpu.memory_space<vmem>>, %arg8: memref<1x24x64xbf16, #tpu.memory_space<vmem>>, %arg9: memref<1x24x64xbf16, #tpu.memory_space<vmem>>, %arg10: memref<24x64xf32, #tpu.memory_space<vmem>>) attributes {dimension_semantics = [#tpu.dimension_semantics<parallel>, #tpu.dimension_semantics<parallel>, #tpu.dimension_semantics<parallel>, #tpu.dimension_semantics<arbitrary>], iteration_bounds = array<i64: 2, 1, 1, 1>, scalar_prefetch = 0 : i64, scratch_operands = 1 : i64, tpu.core_type = #tpu.core_type<tc>, window_params = [{transform_indices = @transform_0, window_bounds = array<i64: 1, 24, 256>}, {transform_indices = @transform_1, window_bounds = array<i64: 256, 64>}, {transform_indices = @transform_2, window_bounds = array<i64: 1, 64>}, {transform_indices = @transform_3, window_bounds = array<i64: 1, 1, 64>}, {transform_indices = @transform_4, window_bounds = array<i64: 1, 24, 64>}, {transform_indices = @transform_5, window_bounds = array<i64: 1, 24, 64>}]} {
    %c0_i32 = arith.constant 0 : i32
    %0 = arith.cmpi eq, %arg3, %c0_i32 : i32
    %1 = arith.extui %0 : i1 to i32
    %c0_i32_0 = arith.constant 0 : i32
    %2 = arith.cmpi ne, %1, %c0_i32_0 : i32
    scf.if %2 {
      %cst_11 = arith.constant 0.000000e+00 : f32
      %13 = vector.broadcast %cst_11 : f32 to vector<24x64xf32>
      %c0_12 = arith.constant 0 : index
      %c0_13 = arith.constant 0 : index
      %14 = vector.load %arg10[%c0_12, %c0_13] : memref<24x64xf32, #tpu.memory_space<vmem>>, vector<24x64xf32>
      tpu.vector_store %arg10[%c0_12, %c0_13], %13 {strides = array<i32>} : memref<24x64xf32, #tpu.memory_space<vmem>>, vector<24x64xf32>,
    } else {
    }
    %c0 = arith.constant 0 : index
    %c0_1 = arith.constant 0 : index
    %3 = vector.load %arg10[%c0, %c0_1] : memref<24x64xf32, #tpu.memory_space<vmem>>, vector<24x64xf32>
    %c0_2 = arith.constant 0 : index
    %c0_3 = arith.constant 0 : index
    %c0_4 = arith.constant 0 : index
    %4 = vector.load %arg4[%c0_2, %c0_3, %c0_4] : memref<1x24x256xbf16, #tpu.memory_space<vmem>>, vector<1x24x256xbf16>
    %5 = vector.shape_cast %4 : vector<1x24x256xbf16> to vector<24x256xbf16>
    %c0_5 = arith.constant 0 : index
    %c0_6 = arith.constant 0 : index
    %6 = vector.load %arg5[%c0_5, %c0_6] : memref<256x64xbf16, #tpu.memory_space<vmem>>, vector<256x64xbf16>
    %cst = arith.constant dense<0.000000e+00> : vector<24x64xf32>
    %7 = tpu.matmul %5, %6, %cst {dimension_numbers = #tpu.dot_dimension_numbers<[1], [0], [0], [1], [0, 0, 1, 1], [], []>} : vector<24x256xbf16>, vector<256x64xbf16>, vector<24x64xf32> -> vector<24x64xf32>
    %8 = arith.addf %3, %7 : vector<24x64xf32>
    %c0_7 = arith.constant 0 : index
    %c0_8 = arith.constant 0 : index
    %9 = vector.load %arg10[%c0_7, %c0_8] : memref<24x64xf32, #tpu.memory_space<vmem>>, vector<24x64xf32>
    tpu.vector_store %arg10[%c0_7, %c0_8], %8 {strides = array<i32>} : memref<24x64xf32, #tpu.memory_space<vmem>>, vector<24x64xf32>,
    %c0_i32_9 = arith.constant 0 : i32
    %10 = arith.cmpi eq, %arg3, %c0_i32_9 : i32
    %11 = arith.extui %10 : i1 to i32
    %c0_i32_10 = arith.constant 0 : i32
    %12 = arith.cmpi ne, %11, %c0_i32_10 : i32
    scf.if %12 {
      %c0_11 = arith.constant 0 : index
      %c0_12 = arith.constant 0 : index
      %13 = vector.load %arg10[%c0_11, %c0_12] : memref<24x64xf32, #tpu.memory_space<vmem>>, vector<24x64xf32>
      %c0_13 = arith.constant 0 : index
      %c0_14 = arith.constant 0 : index
      %14 = vector.load %arg6[%c0_13, %c0_14] : memref<1x64xbf16, #tpu.memory_space<vmem>>, vector<1x64xbf16>
      %15 = arith.extf %14 : vector<1x64xbf16> to vector<1x64xf32>
      %16 = vector.broadcast %15 : vector<1x64xf32> to vector<24x64xf32>
      %17 = arith.addf %13, %16 : vector<24x64xf32>
      %c0_15 = arith.constant 0 : index
      %c0_16 = arith.constant 0 : index
      %c0_17 = arith.constant 0 : index
      %18 = vector.load %arg8[%c0_15, %c0_16, %c0_17] : memref<1x24x64xbf16, #tpu.memory_space<vmem>>, vector<1x24x64xbf16>
      %19 = vector.shape_cast %18 : vector<1x24x64xbf16> to vector<24x64xbf16>
      %20 = arith.extf %19 : vector<24x64xbf16> to vector<24x64xf32>
      %c0_18 = arith.constant 0 : index
      %c0_19 = arith.constant 0 : index
      %c0_20 = arith.constant 0 : index
      %21 = vector.load %arg7[%c0_18, %c0_19, %c0_20] : memref<1x1x64xbf16, #tpu.memory_space<vmem>>, vector<1x1x64xbf16>
      %22 = vector.shape_cast %21 : vector<1x1x64xbf16> to vector<1x64xbf16>
      %23 = arith.extf %22 : vector<1x64xbf16> to vector<1x64xf32>
      %24 = vector.broadcast %23 : vector<1x64xf32> to vector<24x64xf32>
      %25 = arith.mulf %24, %17 : vector<24x64xf32>
      %26 = arith.addf %20, %25 : vector<24x64xf32>
      %27 = arith.truncf %26 : vector<24x64xf32> to vector<24x64xbf16>
      %c0_21 = arith.constant 0 : index
      %c0_22 = arith.constant 0 : index
      %c0_23 = arith.constant 0 : index
      %28 = vector.load %arg9[%c0_21, %c0_22, %c0_23] : memref<1x24x64xbf16, #tpu.memory_space<vmem>>, vector<1x24x64xbf16>
      %29 = vector.shape_cast %28 : vector<1x24x64xbf16> to vector<24x64xbf16>
      %30 = vector.shape_cast %27 : vector<24x64xbf16> to vector<1x24x64xbf16>
      tpu.vector_store %arg9[%c0_21, %c0_22, %c0_23], %30 {strides = array<i32>} : memref<1x24x64xbf16, #tpu.memory_space<vmem>>, vector<1x24x64xbf16>,
    } else {
    }
    return
  }
  func.func @transform_0(%arg0: i32, %arg1: i32, %arg2: i32, %arg3: i32) -> (i32, i32, i32) {
    %c0_i32 = arith.constant 0 : i32
    return %arg0, %arg1, %arg3 : i32, i32, i32
  }
  func.func @transform_1(%arg0: i32, %arg1: i32, %arg2: i32, %arg3: i32) -> (i32, i32) {
    %c0_i32 = arith.constant 0 : i32
    return %arg3, %arg2 : i32, i32
  }
  func.func @transform_2(%arg0: i32, %arg1: i32, %arg2: i32, %arg3: i32) -> (i32, i32) {
    %c0_i32 = arith.constant 0 : i32
    %c0_i32_0 = arith.constant 0 : i32
    return %c0_i32, %arg2 : i32, i32
  }
  func.func @transform_3(%arg0: i32, %arg1: i32, %arg2: i32, %arg3: i32) -> (i32, i32, i32) {
    %c0_i32 = arith.constant 0 : i32
    %c0_i32_0 = arith.constant 0 : i32
    return %arg0, %c0_i32, %arg2 : i32, i32, i32
  }
  func.func @transform_4(%arg0: i32, %arg1: i32, %arg2: i32, %arg3: i32) -> (i32, i32, i32) {
    %c0_i32 = arith.constant 0 : i32
    return %arg0, %arg1, %arg2 : i32, i32, i32
  }
  func.func @transform_5(%arg0: i32, %arg1: i32, %arg2: i32, %arg3: i32) -> (i32, i32, i32) {
    %c0_i32 = arith.constant 0 : i32
    return %arg0, %arg1, %arg2 : i32, i32, i32
  }
}

module attributes {stable_mosaic.version = 11 : i64} {
  func.func @_ln_mod_matmul_kernel(%arg0: i32, %arg1: i32, %arg2: i32, %arg3: memref<1x8x64xbf16, #tpu.memory_space<vmem>>, %arg4: memref<1x1x64xbf16, #tpu.memory_space<vmem>>, %arg5: memref<1x1x64xbf16, #tpu.memory_space<vmem>>, %arg6: memref<64x256xbf16, #tpu.memory_space<vmem>>, %arg7: memref<1x256xbf16, #tpu.memory_space<vmem>>, %arg8: memref<1x8x256xbf16, #tpu.memory_space<vmem>>, %arg9: memref<8x64xbf16, #tpu.memory_space<vmem>>) attributes {dimension_semantics = [#tpu.dimension_semantics<parallel>, #tpu.dimension_semantics<parallel>, #tpu.dimension_semantics<arbitrary>], iteration_bounds = array<i64: 2, 1, 1>, scalar_prefetch = 0 : i64, scratch_operands = 1 : i64, tpu.core_type = #tpu.core_type<tc>, window_params = [{transform_indices = @transform_0, window_bounds = array<i64: 1, 8, 64>}, {transform_indices = @transform_1, window_bounds = array<i64: 1, 1, 64>}, {transform_indices = @transform_2, window_bounds = array<i64: 1, 1, 64>}, {transform_indices = @transform_3, window_bounds = array<i64: 64, 256>}, {transform_indices = @transform_4, window_bounds = array<i64: 1, 256>}, {transform_indices = @transform_5, window_bounds = array<i64: 1, 8, 256>}]} {
    %c0_i32 = arith.constant 0 : i32
    %0 = arith.cmpi eq, %arg2, %c0_i32 : i32
    %1 = arith.extui %0 : i1 to i32
    %c0_i32_0 = arith.constant 0 : i32
    %2 = arith.cmpi ne, %1, %c0_i32_0 : i32
    scf.if %2 {
      %c0_13 = arith.constant 0 : index
      %c0_14 = arith.constant 0 : index
      %c0_15 = arith.constant 0 : index
      %27 = vector.load %arg3[%c0_13, %c0_14, %c0_15] : memref<1x8x64xbf16, #tpu.memory_space<vmem>>, vector<1x8x64xbf16>
      %28 = vector.shape_cast %27 : vector<1x8x64xbf16> to vector<8x64xbf16>
      %29 = arith.extf %28 : vector<8x64xbf16> to vector<8x64xf32>
      %cst_16 = arith.constant dense<0.000000e+00> : vector<8xf32>
      %30 = vector.multi_reduction <add>, %29, %cst_16 [1] : vector<8x64xf32> to vector<8xf32>
      %31 = vector.shape_cast %30 : vector<8xf32> to vector<8x1xf32>
      %cst_17 = arith.constant 6.400000e+01 : f32
      %32 = vector.broadcast %cst_17 : f32 to vector<8x1xf32>
      %33 = arith.divf %31, %32 : vector<8x1xf32>
      %34 = vector.broadcast %33 : vector<8x1xf32> to vector<8x64xf32>
      %35 = arith.subf %29, %34 : vector<8x64xf32>
      %36 = arith.mulf %35, %35 : vector<8x64xf32>
      %cst_18 = arith.constant dense<0.000000e+00> : vector<8xf32>
      %37 = vector.multi_reduction <add>, %36, %cst_18 [1] : vector<8x64xf32> to vector<8xf32>
      %38 = vector.shape_cast %37 : vector<8xf32> to vector<8x1xf32>
      %cst_19 = arith.constant 6.400000e+01 : f32
      %39 = vector.broadcast %cst_19 : f32 to vector<8x1xf32>
      %40 = arith.divf %38, %39 : vector<8x1xf32>
      %41 = vector.broadcast %33 : vector<8x1xf32> to vector<8x64xf32>
      %42 = arith.subf %29, %41 : vector<8x64xf32>
      %cst_20 = arith.constant 9.99999997E-7 : f32
      %43 = vector.broadcast %cst_20 : f32 to vector<8x1xf32>
      %44 = arith.addf %40, %43 : vector<8x1xf32>
      %45 = math.rsqrt %44 : vector<8x1xf32>
      %46 = vector.broadcast %45 : vector<8x1xf32> to vector<8x64xf32>
      %47 = arith.mulf %42, %46 : vector<8x64xf32>
      %c0_21 = arith.constant 0 : index
      %c0_22 = arith.constant 0 : index
      %c0_23 = arith.constant 0 : index
      %48 = vector.load %arg5[%c0_21, %c0_22, %c0_23] : memref<1x1x64xbf16, #tpu.memory_space<vmem>>, vector<1x1x64xbf16>
      %49 = vector.shape_cast %48 : vector<1x1x64xbf16> to vector<1x64xbf16>
      %50 = arith.extf %49 : vector<1x64xbf16> to vector<1x64xf32>
      %cst_24 = arith.constant 1.000000e+00 : f32
      %51 = vector.broadcast %cst_24 : f32 to vector<1x64xf32>
      %52 = arith.addf %51, %50 : vector<1x64xf32>
      %53 = vector.broadcast %52 : vector<1x64xf32> to vector<8x64xf32>
      %54 = arith.mulf %47, %53 : vector<8x64xf32>
      %c0_25 = arith.constant 0 : index
      %c0_26 = arith.constant 0 : index
      %c0_27 = arith.constant 0 : index
      %55 = vector.load %arg4[%c0_25, %c0_26, %c0_27] : memref<1x1x64xbf16, #tpu.memory_space<vmem>>, vector<1x1x64xbf16>
      %56 = vector.shape_cast %55 : vector<1x1x64xbf16> to vector<1x64xbf16>
      %57 = arith.extf %56 : vector<1x64xbf16> to vector<1x64xf32>
      %58 = vector.broadcast %57 : vector<1x64xf32> to vector<8x64xf32>
      %59 = arith.addf %54, %58 : vector<8x64xf32>
      %60 = arith.truncf %59 : vector<8x64xf32> to vector<8x64xbf16>
      %c0_28 = arith.constant 0 : index
      %c0_29 = arith.constant 0 : index
      %61 = vector.load %arg9[%c0_28, %c0_29] : memref<8x64xbf16, #tpu.memory_space<vmem>>, vector<8x64xbf16>
      tpu.vector_store %arg9[%c0_28, %c0_29], %60 {strides = array<i32>} : memref<8x64xbf16, #tpu.memory_space<vmem>>, vector<8x64xbf16>,
    } else {
    }
    %c0 = arith.constant 0 : index
    %c0_1 = arith.constant 0 : index
    %3 = vector.load %arg9[%c0, %c0_1] : memref<8x64xbf16, #tpu.memory_space<vmem>>, vector<8x64xbf16>
    %c0_2 = arith.constant 0 : index
    %c0_3 = arith.constant 0 : index
    %4 = vector.load %arg6[%c0_2, %c0_3] : memref<64x256xbf16, #tpu.memory_space<vmem>>, vector<64x256xbf16>
    %cst = arith.constant dense<0.000000e+00> : vector<8x256xf32>
    %5 = tpu.matmul %3, %4, %cst {dimension_numbers = #tpu.dot_dimension_numbers<[1], [0], [0], [1], [0, 0, 1, 1], [], []>} : vector<8x64xbf16>, vector<64x256xbf16>, vector<8x256xf32> -> vector<8x256xf32>
    %c0_4 = arith.constant 0 : index
    %c0_5 = arith.constant 0 : index
    %6 = vector.load %arg7[%c0_4, %c0_5] : memref<1x256xbf16, #tpu.memory_space<vmem>>, vector<1x256xbf16>
    %7 = arith.extf %6 : vector<1x256xbf16> to vector<1x256xf32>
    %8 = vector.broadcast %7 : vector<1x256xf32> to vector<8x256xf32>
    %9 = arith.addf %5, %8 : vector<8x256xf32>
    %cst_6 = arith.constant 5.000000e-01 : f32
    %10 = vector.broadcast %cst_6 : f32 to vector<8x256xf32>
    %11 = arith.mulf %10, %9 : vector<8x256xf32>
    %cst_7 = arith.constant 4.471500e-02 : f32
    %12 = vector.broadcast %cst_7 : f32 to vector<8x256xf32>
    %13 = arith.mulf %12, %9 : vector<8x256xf32>
    %14 = arith.mulf %13, %9 : vector<8x256xf32>
    %15 = arith.mulf %14, %9 : vector<8x256xf32>
    %16 = arith.addf %9, %15 : vector<8x256xf32>
    %cst_8 = arith.constant 0.797884583 : f32
    %17 = vector.broadcast %cst_8 : f32 to vector<8x256xf32>
    %18 = arith.mulf %17, %16 : vector<8x256xf32>
    %19 = math.tanh %18 : vector<8x256xf32>
    %cst_9 = arith.constant 1.000000e+00 : f32
    %20 = vector.broadcast %cst_9 : f32 to vector<8x256xf32>
    %21 = arith.addf %20, %19 : vector<8x256xf32>
    %22 = arith.mulf %11, %21 : vector<8x256xf32>
    %23 = arith.truncf %22 : vector<8x256xf32> to vector<8x256xbf16>
    %c0_10 = arith.constant 0 : index
    %c0_11 = arith.constant 0 : index
    %c0_12 = arith.constant 0 : index
    %24 = vector.load %arg8[%c0_10, %c0_11, %c0_12] : memref<1x8x256xbf16, #tpu.memory_space<vmem>>, vector<1x8x256xbf16>
    %25 = vector.shape_cast %24 : vector<1x8x256xbf16> to vector<8x256xbf16>
    %26 = vector.shape_cast %23 : vector<8x256xbf16> to vector<1x8x256xbf16>
    tpu.vector_store %arg8[%c0_10, %c0_11, %c0_12], %26 {strides = array<i32>} : memref<1x8x256xbf16, #tpu.memory_space<vmem>>, vector<1x8x256xbf16>,
    return
  }
  func.func @transform_0(%arg0: i32, %arg1: i32, %arg2: i32) -> (i32, i32, i32) {
    %c0_i32 = arith.constant 0 : i32
    %c0_i32_0 = arith.constant 0 : i32
    return %arg0, %arg1, %c0_i32 : i32, i32, i32
  }
  func.func @transform_1(%arg0: i32, %arg1: i32, %arg2: i32) -> (i32, i32, i32) {
    %c0_i32 = arith.constant 0 : i32
    %c0_i32_0 = arith.constant 0 : i32
    %c0_i32_1 = arith.constant 0 : i32
    return %arg0, %c0_i32, %c0_i32_0 : i32, i32, i32
  }
  func.func @transform_2(%arg0: i32, %arg1: i32, %arg2: i32) -> (i32, i32, i32) {
    %c0_i32 = arith.constant 0 : i32
    %c0_i32_0 = arith.constant 0 : i32
    %c0_i32_1 = arith.constant 0 : i32
    return %arg0, %c0_i32, %c0_i32_0 : i32, i32, i32
  }
  func.func @transform_3(%arg0: i32, %arg1: i32, %arg2: i32) -> (i32, i32) {
    %c0_i32 = arith.constant 0 : i32
    %c0_i32_0 = arith.constant 0 : i32
    return %c0_i32, %arg2 : i32, i32
  }
  func.func @transform_4(%arg0: i32, %arg1: i32, %arg2: i32) -> (i32, i32) {
    %c0_i32 = arith.constant 0 : i32
    %c0_i32_0 = arith.constant 0 : i32
    return %c0_i32, %arg2 : i32, i32
  }
  func.func @transform_5(%arg0: i32, %arg1: i32, %arg2: i32) -> (i32, i32, i32) {
    %c0_i32 = arith.constant 0 : i32
    return %arg0, %arg1, %arg2 : i32, i32, i32
  }
}

module attributes {stable_mosaic.version = 11 : i64} {
  func.func @_matmul_gated_res_kernel(%arg0: i32, %arg1: i32, %arg2: i32, %arg3: i32, %arg4: memref<1x8x64xbf16, #tpu.memory_space<vmem>>, %arg5: memref<64x64xbf16, #tpu.memory_space<vmem>>, %arg6: memref<1x64xbf16, #tpu.memory_space<vmem>>, %arg7: memref<1x1x64xbf16, #tpu.memory_space<vmem>>, %arg8: memref<1x8x64xbf16, #tpu.memory_space<vmem>>, %arg9: memref<1x8x64xbf16, #tpu.memory_space<vmem>>, %arg10: memref<8x64xf32, #tpu.memory_space<vmem>>) attributes {dimension_semantics = [#tpu.dimension_semantics<parallel>, #tpu.dimension_semantics<parallel>, #tpu.dimension_semantics<parallel>, #tpu.dimension_semantics<arbitrary>], iteration_bounds = array<i64: 2, 1, 1, 1>, scalar_prefetch = 0 : i64, scratch_operands = 1 : i64, tpu.core_type = #tpu.core_type<tc>, window_params = [{transform_indices = @transform_0, window_bounds = array<i64: 1, 8, 64>}, {transform_indices = @transform_1, window_bounds = array<i64: 64, 64>}, {transform_indices = @transform_2, window_bounds = array<i64: 1, 64>}, {transform_indices = @transform_3, window_bounds = array<i64: 1, 1, 64>}, {transform_indices = @transform_4, window_bounds = array<i64: 1, 8, 64>}, {transform_indices = @transform_5, window_bounds = array<i64: 1, 8, 64>}]} {
    %c0_i32 = arith.constant 0 : i32
    %0 = arith.cmpi eq, %arg3, %c0_i32 : i32
    %1 = arith.extui %0 : i1 to i32
    %c0_i32_0 = arith.constant 0 : i32
    %2 = arith.cmpi ne, %1, %c0_i32_0 : i32
    scf.if %2 {
      %cst_11 = arith.constant 0.000000e+00 : f32
      %13 = vector.broadcast %cst_11 : f32 to vector<8x64xf32>
      %c0_12 = arith.constant 0 : index
      %c0_13 = arith.constant 0 : index
      %14 = vector.load %arg10[%c0_12, %c0_13] : memref<8x64xf32, #tpu.memory_space<vmem>>, vector<8x64xf32>
      tpu.vector_store %arg10[%c0_12, %c0_13], %13 {strides = array<i32>} : memref<8x64xf32, #tpu.memory_space<vmem>>, vector<8x64xf32>,
    } else {
    }
    %c0 = arith.constant 0 : index
    %c0_1 = arith.constant 0 : index
    %3 = vector.load %arg10[%c0, %c0_1] : memref<8x64xf32, #tpu.memory_space<vmem>>, vector<8x64xf32>
    %c0_2 = arith.constant 0 : index
    %c0_3 = arith.constant 0 : index
    %c0_4 = arith.constant 0 : index
    %4 = vector.load %arg4[%c0_2, %c0_3, %c0_4] : memref<1x8x64xbf16, #tpu.memory_space<vmem>>, vector<1x8x64xbf16>
    %5 = vector.shape_cast %4 : vector<1x8x64xbf16> to vector<8x64xbf16>
    %c0_5 = arith.constant 0 : index
    %c0_6 = arith.constant 0 : index
    %6 = vector.load %arg5[%c0_5, %c0_6] : memref<64x64xbf16, #tpu.memory_space<vmem>>, vector<64x64xbf16>
    %cst = arith.constant dense<0.000000e+00> : vector<8x64xf32>
    %7 = tpu.matmul %5, %6, %cst {dimension_numbers = #tpu.dot_dimension_numbers<[1], [0], [0], [1], [0, 0, 1, 1], [], []>} : vector<8x64xbf16>, vector<64x64xbf16>, vector<8x64xf32> -> vector<8x64xf32>
    %8 = arith.addf %3, %7 : vector<8x64xf32>
    %c0_7 = arith.constant 0 : index
    %c0_8 = arith.constant 0 : index
    %9 = vector.load %arg10[%c0_7, %c0_8] : memref<8x64xf32, #tpu.memory_space<vmem>>, vector<8x64xf32>
    tpu.vector_store %arg10[%c0_7, %c0_8], %8 {strides = array<i32>} : memref<8x64xf32, #tpu.memory_space<vmem>>, vector<8x64xf32>,
    %c0_i32_9 = arith.constant 0 : i32
    %10 = arith.cmpi eq, %arg3, %c0_i32_9 : i32
    %11 = arith.extui %10 : i1 to i32
    %c0_i32_10 = arith.constant 0 : i32
    %12 = arith.cmpi ne, %11, %c0_i32_10 : i32
    scf.if %12 {
      %c0_11 = arith.constant 0 : index
      %c0_12 = arith.constant 0 : index
      %13 = vector.load %arg10[%c0_11, %c0_12] : memref<8x64xf32, #tpu.memory_space<vmem>>, vector<8x64xf32>
      %c0_13 = arith.constant 0 : index
      %c0_14 = arith.constant 0 : index
      %14 = vector.load %arg6[%c0_13, %c0_14] : memref<1x64xbf16, #tpu.memory_space<vmem>>, vector<1x64xbf16>
      %15 = arith.extf %14 : vector<1x64xbf16> to vector<1x64xf32>
      %16 = vector.broadcast %15 : vector<1x64xf32> to vector<8x64xf32>
      %17 = arith.addf %13, %16 : vector<8x64xf32>
      %c0_15 = arith.constant 0 : index
      %c0_16 = arith.constant 0 : index
      %c0_17 = arith.constant 0 : index
      %18 = vector.load %arg8[%c0_15, %c0_16, %c0_17] : memref<1x8x64xbf16, #tpu.memory_space<vmem>>, vector<1x8x64xbf16>
      %19 = vector.shape_cast %18 : vector<1x8x64xbf16> to vector<8x64xbf16>
      %20 = arith.extf %19 : vector<8x64xbf16> to vector<8x64xf32>
      %c0_18 = arith.constant 0 : index
      %c0_19 = arith.constant 0 : index
      %c0_20 = arith.constant 0 : index
      %21 = vector.load %arg7[%c0_18, %c0_19, %c0_20] : memref<1x1x64xbf16, #tpu.memory_space<vmem>>, vector<1x1x64xbf16>
      %22 = vector.shape_cast %21 : vector<1x1x64xbf16> to vector<1x64xbf16>
      %23 = arith.extf %22 : vector<1x64xbf16> to vector<1x64xf32>
      %24 = vector.broadcast %23 : vector<1x64xf32> to vector<8x64xf32>
      %25 = arith.mulf %24, %17 : vector<8x64xf32>
      %26 = arith.addf %20, %25 : vector<8x64xf32>
      %27 = arith.truncf %26 : vector<8x64xf32> to vector<8x64xbf16>
      %c0_21 = arith.constant 0 : index
      %c0_22 = arith.constant 0 : index
      %c0_23 = arith.constant 0 : index
      %28 = vector.load %arg9[%c0_21, %c0_22, %c0_23] : memref<1x8x64xbf16, #tpu.memory_space<vmem>>, vector<1x8x64xbf16>
      %29 = vector.shape_cast %28 : vector<1x8x64xbf16> to vector<8x64xbf16>
      %30 = vector.shape_cast %27 : vector<8x64xbf16> to vector<1x8x64xbf16>
      tpu.vector_store %arg9[%c0_21, %c0_22, %c0_23], %30 {strides = array<i32>} : memref<1x8x64xbf16, #tpu.memory_space<vmem>>, vector<1x8x64xbf16>,
    } else {
    }
    return
  }
  func.func @transform_0(%arg0: i32, %arg1: i32, %arg2: i32, %arg3: i32) -> (i32, i32, i32) {
    %c0_i32 = arith.constant 0 : i32
    return %arg0, %arg1, %arg3 : i32, i32, i32
  }
  func.func @transform_1(%arg0: i32, %arg1: i32, %arg2: i32, %arg3: i32) -> (i32, i32) {
    %c0_i32 = arith.constant 0 : i32
    return %arg3, %arg2 : i32, i32
  }
  func.func @transform_2(%arg0: i32, %arg1: i32, %arg2: i32, %arg3: i32) -> (i32, i32) {
    %c0_i32 = arith.constant 0 : i32
    %c0_i32_0 = arith.constant 0 : i32
    return %c0_i32, %arg2 : i32, i32
  }
  func.func @transform_3(%arg0: i32, %arg1: i32, %arg2: i32, %arg3: i32) -> (i32, i32, i32) {
    %c0_i32 = arith.constant 0 : i32
    %c0_i32_0 = arith.constant 0 : i32
    return %arg0, %c0_i32, %arg2 : i32, i32, i32
  }
  func.func @transform_4(%arg0: i32, %arg1: i32, %arg2: i32, %arg3: i32) -> (i32, i32, i32) {
    %c0_i32 = arith.constant 0 : i32
    return %arg0, %arg1, %arg2 : i32, i32, i32
  }
  func.func @transform_5(%arg0: i32, %arg1: i32, %arg2: i32, %arg3: i32) -> (i32, i32, i32) {
    %c0_i32 = arith.constant 0 : i32
    return %arg0, %arg1, %arg2 : i32, i32, i32
  }
}

module attributes {stable_mosaic.version = 11 : i64} {
  func.func @_matmul_gated_res_kernel(%arg0: i32, %arg1: i32, %arg2: i32, %arg3: i32, %arg4: memref<1x8x256xbf16, #tpu.memory_space<vmem>>, %arg5: memref<256x64xbf16, #tpu.memory_space<vmem>>, %arg6: memref<1x64xbf16, #tpu.memory_space<vmem>>, %arg7: memref<1x1x64xbf16, #tpu.memory_space<vmem>>, %arg8: memref<1x8x64xbf16, #tpu.memory_space<vmem>>, %arg9: memref<1x8x64xbf16, #tpu.memory_space<vmem>>, %arg10: memref<8x64xf32, #tpu.memory_space<vmem>>) attributes {dimension_semantics = [#tpu.dimension_semantics<parallel>, #tpu.dimension_semantics<parallel>, #tpu.dimension_semantics<parallel>, #tpu.dimension_semantics<arbitrary>], iteration_bounds = array<i64: 2, 1, 1, 1>, scalar_prefetch = 0 : i64, scratch_operands = 1 : i64, tpu.core_type = #tpu.core_type<tc>, window_params = [{transform_indices = @transform_0, window_bounds = array<i64: 1, 8, 256>}, {transform_indices = @transform_1, window_bounds = array<i64: 256, 64>}, {transform_indices = @transform_2, window_bounds = array<i64: 1, 64>}, {transform_indices = @transform_3, window_bounds = array<i64: 1, 1, 64>}, {transform_indices = @transform_4, window_bounds = array<i64: 1, 8, 64>}, {transform_indices = @transform_5, window_bounds = array<i64: 1, 8, 64>}]} {
    %c0_i32 = arith.constant 0 : i32
    %0 = arith.cmpi eq, %arg3, %c0_i32 : i32
    %1 = arith.extui %0 : i1 to i32
    %c0_i32_0 = arith.constant 0 : i32
    %2 = arith.cmpi ne, %1, %c0_i32_0 : i32
    scf.if %2 {
      %cst_11 = arith.constant 0.000000e+00 : f32
      %13 = vector.broadcast %cst_11 : f32 to vector<8x64xf32>
      %c0_12 = arith.constant 0 : index
      %c0_13 = arith.constant 0 : index
      %14 = vector.load %arg10[%c0_12, %c0_13] : memref<8x64xf32, #tpu.memory_space<vmem>>, vector<8x64xf32>
      tpu.vector_store %arg10[%c0_12, %c0_13], %13 {strides = array<i32>} : memref<8x64xf32, #tpu.memory_space<vmem>>, vector<8x64xf32>,
    } else {
    }
    %c0 = arith.constant 0 : index
    %c0_1 = arith.constant 0 : index
    %3 = vector.load %arg10[%c0, %c0_1] : memref<8x64xf32, #tpu.memory_space<vmem>>, vector<8x64xf32>
    %c0_2 = arith.constant 0 : index
    %c0_3 = arith.constant 0 : index
    %c0_4 = arith.constant 0 : index
    %4 = vector.load %arg4[%c0_2, %c0_3, %c0_4] : memref<1x8x256xbf16, #tpu.memory_space<vmem>>, vector<1x8x256xbf16>
    %5 = vector.shape_cast %4 : vector<1x8x256xbf16> to vector<8x256xbf16>
    %c0_5 = arith.constant 0 : index
    %c0_6 = arith.constant 0 : index
    %6 = vector.load %arg5[%c0_5, %c0_6] : memref<256x64xbf16, #tpu.memory_space<vmem>>, vector<256x64xbf16>
    %cst = arith.constant dense<0.000000e+00> : vector<8x64xf32>
    %7 = tpu.matmul %5, %6, %cst {dimension_numbers = #tpu.dot_dimension_numbers<[1], [0], [0], [1], [0, 0, 1, 1], [], []>} : vector<8x256xbf16>, vector<256x64xbf16>, vector<8x64xf32> -> vector<8x64xf32>
    %8 = arith.addf %3, %7 : vector<8x64xf32>
    %c0_7 = arith.constant 0 : index
    %c0_8 = arith.constant 0 : index
    %9 = vector.load %arg10[%c0_7, %c0_8] : memref<8x64xf32, #tpu.memory_space<vmem>>, vector<8x64xf32>
    tpu.vector_store %arg10[%c0_7, %c0_8], %8 {strides = array<i32>} : memref<8x64xf32, #tpu.memory_space<vmem>>, vector<8x64xf32>,
    %c0_i32_9 = arith.constant 0 : i32
    %10 = arith.cmpi eq, %arg3, %c0_i32_9 : i32
    %11 = arith.extui %10 : i1 to i32
    %c0_i32_10 = arith.constant 0 : i32
    %12 = arith.cmpi ne, %11, %c0_i32_10 : i32
    scf.if %12 {
      %c0_11 = arith.constant 0 : index
      %c0_12 = arith.constant 0 : index
      %13 = vector.load %arg10[%c0_11, %c0_12] : memref<8x64xf32, #tpu.memory_space<vmem>>, vector<8x64xf32>
      %c0_13 = arith.constant 0 : index
      %c0_14 = arith.constant 0 : index
      %14 = vector.load %arg6[%c0_13, %c0_14] : memref<1x64xbf16, #tpu.memory_space<vmem>>, vector<1x64xbf16>
      %15 = arith.extf %14 : vector<1x64xbf16> to vector<1x64xf32>
      %16 = vector.broadcast %15 : vector<1x64xf32> to vector<8x64xf32>
      %17 = arith.addf %13, %16 : vector<8x64xf32>
      %c0_15 = arith.constant 0 : index
      %c0_16 = arith.constant 0 : index
      %c0_17 = arith.constant 0 : index
      %18 = vector.load %arg8[%c0_15, %c0_16, %c0_17] : memref<1x8x64xbf16, #tpu.memory_space<vmem>>, vector<1x8x64xbf16>
      %19 = vector.shape_cast %18 : vector<1x8x64xbf16> to vector<8x64xbf16>
      %20 = arith.extf %19 : vector<8x64xbf16> to vector<8x64xf32>
      %c0_18 = arith.constant 0 : index
      %c0_19 = arith.constant 0 : index
      %c0_20 = arith.constant 0 : index
      %21 = vector.load %arg7[%c0_18, %c0_19, %c0_20] : memref<1x1x64xbf16, #tpu.memory_space<vmem>>, vector<1x1x64xbf16>
      %22 = vector.shape_cast %21 : vector<1x1x64xbf16> to vector<1x64xbf16>
      %23 = arith.extf %22 : vector<1x64xbf16> to vector<1x64xf32>
      %24 = vector.broadcast %23 : vector<1x64xf32> to vector<8x64xf32>
      %25 = arith.mulf %24, %17 : vector<8x64xf32>
      %26 = arith.addf %20, %25 : vector<8x64xf32>
      %27 = arith.truncf %26 : vector<8x64xf32> to vector<8x64xbf16>
      %c0_21 = arith.constant 0 : index
      %c0_22 = arith.constant 0 : index
      %c0_23 = arith.constant 0 : index
      %28 = vector.load %arg9[%c0_21, %c0_22, %c0_23] : memref<1x8x64xbf16, #tpu.memory_space<vmem>>, vector<1x8x64xbf16>
      %29 = vector.shape_cast %28 : vector<1x8x64xbf16> to vector<8x64xbf16>
      %30 = vector.shape_cast %27 : vector<8x64xbf16> to vector<1x8x64xbf16>
      tpu.vector_store %arg9[%c0_21, %c0_22, %c0_23], %30 {strides = array<i32>} : memref<1x8x64xbf16, #tpu.memory_space<vmem>>, vector<1x8x64xbf16>,
    } else {
    }
    return
  }
  func.func @transform_0(%arg0: i32, %arg1: i32, %arg2: i32, %arg3: i32) -> (i32, i32, i32) {
    %c0_i32 = arith.constant 0 : i32
    return %arg0, %arg1, %arg3 : i32, i32, i32
  }
  func.func @transform_1(%arg0: i32, %arg1: i32, %arg2: i32, %arg3: i32) -> (i32, i32) {
    %c0_i32 = arith.constant 0 : i32
    return %arg3, %arg2 : i32, i32
  }
  func.func @transform_2(%arg0: i32, %arg1: i32, %arg2: i32, %arg3: i32) -> (i32, i32) {
    %c0_i32 = arith.constant 0 : i32
    %c0_i32_0 = arith.constant 0 : i32
    return %c0_i32, %arg2 : i32, i32
  }
  func.func @transform_3(%arg0: i32, %arg1: i32, %arg2: i32, %arg3: i32) -> (i32, i32, i32) {
    %c0_i32 = arith.constant 0 : i32
    %c0_i32_0 = arith.constant 0 : i32
    return %arg0, %c0_i32, %arg2 : i32, i32, i32
  }
  func.func @transform_4(%arg0: i32, %arg1: i32, %arg2: i32, %arg3: i32) -> (i32, i32, i32) {
    %c0_i32 = arith.constant 0 : i32
    return %arg0, %arg1, %arg2 : i32, i32, i32
  }
  func.func @transform_5(%arg0: i32, %arg1: i32, %arg2: i32, %arg3: i32) -> (i32, i32, i32) {
    %c0_i32 = arith.constant 0 : i32
    return %arg0, %arg1, %arg2 : i32, i32, i32
  }
}

</mosaic_0001>

<bundles_post_ra>
// kernel: flux_transformer_block.14
= control target key start
LH: loop header
LB: loop body
LE: loop exit
PB: predicated region body
PF: predicated region fallthrough
CT: control target
= control target key end

     0   :  { %s1436_s0 = inlined_call_operand.hbm [shape: bf16[2,8,64], index: 0, kind: input, shape index: {}]   ;;  %s1437_s1 = inlined_call_operand.hbm [shape: bf16[2,1,64], index: 1, kind: input, shape index: {}]   ;;  %s1438_s2 = inlined_call_operand.hbm [shape: bf16[2,1,64], index: 2, kind: input, shape index: {}]   ;;  %s1439_s3 = inlined_call_operand.hbm [shape: bf16[64,192], index: 3, kind: input, shape index: {}]   ;;  %s1440_s4 = inlined_call_operand.hbm [shape: bf16[1,192], index: 4, kind: input, shape index: {}]   ;;  %s1441_s5 = inlined_call_operand.hbm [shape: bf16[2,8,192], index: 5, kind: output, shape index: {}]  }
   0x1   :  { %1456 = sst [smem:[#allocation20_spill]] %s1437_s1 }
   0x2   :  { %1457 = sst [smem:[#allocation21_spill]] %s1439_s3 }
   0x3   :  { %10 = vsyncpa [#allocation4], 0 }
   0x4   :  { %12 = vsyncpa [#allocation4 + $0x1], 0 }
   0x5   :  { %13 = vsyncpa [#allocation7], 0 }
   0x6   :  { %15 = vsyncpa [#allocation7 + $0x1], 0 }
   0x7   :  { %16 = vsyncpa [#allocation10], 0 }
   0x8   :  { %17 = vsyncpa [#allocation5], 0 }
   0x9   :  { %19 = vsyncpa [#allocation5 + $0x1], 0  ;;  %s1129_s18 = smov 0   ;;  %s1131_s19 = smov 0  }
   0xa   :  { %s1133_s20 = smov 0   ;;  %s1135_s21 = smov 0  }
   0xb   :  { %s1137_s22 = smov 0   ;;  %s1139_s23 = smov 0  }
   0xc LB: > { %1458 = sst [smem:[#allocation17_spill]] %s1076_s20  ;;  %s1160_s24 = sadd.s32 4294967295, %s1088_s23   ;;  %s1088_s23 = sphi %s1139_s23, %s25_s23   ;;  %s1084_s22 = sphi %s1137_s22, %s1491_s22   ;;  %s1080_s21 = sphi %s1135_s21, %s1490_s21   ;;  %s1076_s20 = sphi %s1133_s20, %s1486_s20   ;;  %s1072_s19 = sphi %s1131_s19, %s1489_s19   ;;  %s1068_s18 = sphi %s1129_s18, %s1488_s18  }
   0xd   : > { %s711_s25 = sadd.s32 4294967294, %s1088_s23   ;;  %p66_p0 = scmp.ne.s32.totalorder %s1072_s19, %s1068_s18 }
   0xe   : > { %p1442_p1 = scmp.eq.s32.totalorder %s1160_s24, 0  ;;  %p204_p3 = scmp.eq.s32.totalorder %s711_s25, 1 }
   0xf   : > { %p712_p5 = scmp.ge.s32.totalorder %s1088_s23, 1  ;;  %p211_p7 = scmp.lt.s32.totalorder %s1088_s23, 3 }
  0x10   : > { %p1169_p4 = por %p1442_p1, %p66_p0  ;;  %p1174_p6 = por %p204_p3, %p66_p0 }
  0x11   : > { %p1179_p8 = pnand %p712_p5, %p211_p7  ;;  %s1090_s29 = smov [#allocation9]  }
  0x12   : > { %s1459_s26 = scalar_select %p1169_p4, 1, 0 }
  0x13   : > { %s1460_s27 = scalar_select %p1174_p6, 1, 0 }
  0x14   : > { %s1461_s28 = scalar_select %p1179_p8, 1, 0 }
  0x15   : > { %s226_s30 = sshll.u32 %s1090_s29, 4  ;;  %p758_p9 = pneg %p1179_p8  ;;  %s227_s30 = int_to_ptr.vmem [resolvable:$true] %s226_s30 }
  0x16   : > { %s44_s7 = sadd.s32 1, %s1084_s22  ;;  %s1463_s3 = sld [smem:[#allocation21_spill]] }
  0x17   : > { %p1188_p11 = pnand %p758_p9, %p1442_p1 }
  0x19   : > { %s1462_s6 = scalar_select %p1188_p11, 1, 0 }
  0x1a   : > { %p1447_p13 = pneg %p1188_p11 }
  0x1c   : > { %s852_s10 = scalar_lea.hbm %s1463_s3, 1024 }
  0x1d   : > { %p853_p12 = scmp.ne.s32.totalorder %s1463_s3, %s852_s10  ;;  %p859_p5 = scmp.lt.u32.totalorder %s852_s10, %s1463_s3 }
  0x1f   : > { %p855_p0 = pnand %p1447_p13, %p853_p12 }
  0x21   : > { %p856_p3 = pneg %p855_p0 }
  0x23   : > { %p861_p7 = pnand %p859_p5, %p856_p3 }
  0x25   : > { %864 = shalt.err (!%p861_p7)
}
  0x26   : > { %s865_s15 = scalar_lea.vmem %s227_s30, 1024  ;;  %p873_p2 = scmp.lt.s32.totalorder %s227_s30, %s227_s30 }
  0x27   : > { %p866_p9 = scmp.ne.s32.totalorder %s227_s30, %s865_s15  ;;  %p874_p6 = scmp.lt.s32.totalorder %s865_s15, %s865_s15 }
  0x29   : > { %p868_p10 = pnand %p866_p9, %p1447_p13  ;;  %p875_p4 = por %p874_p6, %p873_p2 }
  0x2b   : > { %p869_p1 = pneg %p868_p10 }
  0x2d   : > { %p876_p8 = pnand %p875_p4, %p869_p1 }
  0x2f   : > { %879 = shalt.err (!%p876_p8)
}
  0x30   : > { %s1091_s16 = smov 128   ;;  %s1092_s17 = smov 8  }
  0x31   : > { %761 = dma.hbm_to_vmem [thread:$0]  (!%p1188_p11), %s1463_s3, 1024, %s227_s30, [#allocation10], %s1091_s16, %s1091_s16, %s1092_s17  }
  0x32   : > { %p46_p1 = scmp.ge.s32.totalorder %s44_s7, 2  ;;  %s53_s8 = sadd.s32 1, %s1076_s20 }
  0x33   : > { %p60_p2 = scmp.ne.s32.totalorder %s1076_s20, %s1072_s19  ;;  %p61_p4 = scmp.eq.s32.totalorder %s1088_s23, 0 }
  0x34   : > { %s1493_s7 = smov (%p46_p1, %s44_s7), 0  ;;  %p1465_p8 = scmp.eq.s32.totalorder %s1160_s24, 1 }
  0x35   : > { %1464 = sst [smem:[#allocation18_spill]] %s1493_s7  ;;  %p62_p6 = por %p61_p4, %p60_p2 }
  0x36   : > { %p1223_p10 = por %p1465_p8, %p60_p2  ;;  %s48_s10 = ssub.s32 %s1084_s22, %s1493_s7 }
  0x37   : > { %p781_p12 = scmp.lt.s32.totalorder %s1088_s23, 2  ;;  %p51_p0 = scmp.eq.s32.totalorder %s48_s10, 0 }
  0x38   : > { %s1466_s9 = scalar_select %p1223_p10, 1, 0 }
  0x39   : > { %s1231_s11 = sand.u32 1, %s1076_s20   ;;  %p1233_p3 = pnand %p781_p12, %p62_p6 }
  0x3a   : > { %s273_s12 = sand.u32 1, %s1088_s23   ;;  %s1445_s14 = sshll.u32 %s1084_s22, 4 }
  0x3b   : > { %s1467_s30 = scalar_select %p1233_p3, 1, 0 }
  0x3c   : > { %s1239_s13 = scalar_select %p51_p0, %s1076_s20, %s53_s8  }
  0x3d   : > { %s1469_s1 = sld [smem:[#allocation20_spill]]  ;;  %s276_s25 = scalar_lea.vmem [#allocation6], %s1231_s11 }
  0x3e   : > { %1468 = sst [smem:[#allocation19_spill]] %s1239_s13  ;;  %s283_s29 = sshll.u32 %s276_s25, 4  ;;  %s1250_s29 = int_to_ptr.vmem [resolvable:$true] %s283_s29 }
  0x3f   : > { %s1252_s10 = scalar_lea.sflag [#allocation7], %s273_s12  ;;  %p1258_p7 = pneg %p1233_p3 }
  0x41   : > { %s1470_s8 = scalar_select %p1258_p7, 1, 0 }
  0x43   : > { %s1247_s17 = scalar_lea.hbm %s1469_s1, %s1445_s14  ;;  %s885_s14 = scalar_lea.hbm %s1469_s1, 32 }
  0x44   : > { %s880_s3 = scalar_lea.hbm %s1247_s17, 16  ;;  %p886_p2 = scmp.lt.u32.totalorder %s1247_s17, %s1469_s1 }
  0x45   : > { %p881_p5 = scmp.ne.s32.totalorder %s1247_s17, %s880_s3  ;;  %p887_p4 = scmp.lt.u32.totalorder %s885_s14, %s880_s3 }
  0x46   : > { %p889_p8 = scmp.lt.u32.totalorder %s880_s3, %s1247_s17 }
  0x47   : > { %p883_p9 = pnand %p1258_p7, %p881_p5  ;;  %p888_p6 = por %p887_p4, %p886_p2 }
  0x49   : > { %p884_p1 = pneg %p883_p9  ;;  %p890_p12 = por %p889_p8, %p888_p6 }
  0x4b   : > { %p891_p0 = pnand %p890_p12, %p884_p1 }
  0x4d   : > { %894 = shalt.err (!%p891_p0)
}
  0x4e   : > { %s895_s12 = scalar_lea.vmem %s1250_s29, 16  ;;  %s1093_s15 = smov [#allocation6]  }
  0x4f   : > { %p896_p5 = scmp.ne.s32.totalorder %s1250_s29, %s895_s12  ;;  %s900_s16 = sshll.u32 %s1093_s15, 4  ;;  %s901_s16 = int_to_ptr.vmem [resolvable:$false] %s900_s16 }
  0x50   : > { %s902_s7 = scalar_lea.vmem %s901_s16, 32  ;;  %p903_p10 = scmp.lt.s32.totalorder %s1250_s29, %s901_s16 }
  0x51   : > { %p898_p9 = pnand %p896_p5, %p1258_p7  ;;  %p904_p11 = scmp.lt.s32.totalorder %s902_s7, %s895_s12 }
  0x53   : > { %p899_p13 = pneg %p898_p9  ;;  %p905_p2 = por %p904_p11, %p903_p10 }
  0x55   : > { %p906_p4 = pnand %p905_p2, %p899_p13 }
  0x57   : > { %909 = shalt.err (!%p906_p4)
}
  0x58   : > { %771 = dma.hbm_to_vmem [thread:$0]  (!%p1233_p3), %s1247_s17, 16, %s1250_s29, %s1252_s10  }
  0x59   : > { %s1094_s3 = smov [#allocation11]   ;;  %s716_s25 = sshll.u32 %s1231_s11, 2 }
  0x5a   : > { %s243_s14 = sshll.u32 %s1094_s3, 4  ;;  %s910_s16 = scalar_lea.hbm %s1440_s4, 32  ;;  %s244_s14 = int_to_ptr.vmem [resolvable:$true] %s243_s14 }
  0x5b   : > { %p911_p11 = scmp.ne.s32.totalorder %s1440_s4, %s910_s16  ;;  %p1471_p13 = scmp.ne.s32.totalorder %s1462_s6, 0 }
  0x5c   : > { %p917_p8 = scmp.lt.u32.totalorder %s910_s16, %s1440_s4 }
  0x5d   : > { %p1472_p10 = pneg %p1471_p13 }
  0x5f   : > { %p913_p1 = pnand %p911_p11, %p1472_p10 }
  0x61   : > { %p914_p6 = pneg %p913_p1 }
  0x63   : > { %p919_p12 = pnand %p917_p8, %p914_p6 }
  0x65   : > { %922 = shalt.err (!%p919_p12)
}
  0x66   : > { %s923_s17 = scalar_lea.vmem %s244_s14, 32  ;;  %p1473_p5 = pmov %p1472_p10 }
  0x67   : > { %p924_p0 = scmp.ne.s32.totalorder %s244_s14, %s923_s17  ;;  %p931_p4 = scmp.lt.s32.totalorder %s244_s14, %s244_s14 }
  0x68   : > { %p932_p3 = scmp.lt.s32.totalorder %s923_s17, %s923_s17 }
  0x69   : > { %p926_p9 = pnand %p924_p0, %p1473_p5 }
  0x6a   : > { %p933_p7 = por %p932_p3, %p931_p4 }
  0x6b   : > { %p927_p2 = pneg %p926_p9 }
  0x6d   : > { %p934_p10 = pnand %p933_p7, %p927_p2 }
  0x6f   : > { %937 = shalt.err (!%p934_p10)
}
  0x70   : > { %764 = dma.hbm_to_vmem [thread:$0]  (!%p1471_p13), %s1440_s4, 32, %s244_s14, [#allocation10]  }
  0x71   : > { %s717_s20 = sshll.u32 %s1084_s22, 6  ;;  %s258_s13 = scalar_lea.vmem [#allocation3], %s716_s25 }
  0x72   : > { %s266_s3 = sshll.u32 %s258_s13, 4  ;;  %s1307_s12 = scalar_lea.hbm %s1436_s0, %s717_s20  ;;  %s267_s3 = int_to_ptr.vmem [resolvable:$true] %s266_s3 }
  0x73   : > { %s255_s6 = scalar_lea.sflag [#allocation4], %s1231_s11  ;;  %s938_s7 = scalar_lea.hbm %s1307_s12, 64 }
  0x74   : > { %p939_p3 = scmp.ne.s32.totalorder %s1307_s12, %s938_s7  ;;  %p1474_p7 = scmp.ne.s32.totalorder %s1470_s8, 0 }
  0x75   : > { %s943_s25 = scalar_lea.hbm %s1436_s0, 128  ;;  %p944_p13 = scmp.lt.u32.totalorder %s1307_s12, %s1436_s0 }
  0x76   : > { %p941_p11 = pnand %p939_p3, %p1474_p7  ;;  %p945_p6 = scmp.lt.u32.totalorder %s943_s25, %s938_s7 }
  0x77   : > { %p947_p12 = scmp.lt.u32.totalorder %s938_s7, %s1307_s12 }
  0x78   : > { %p942_p1 = pneg %p941_p11  ;;  %p946_p8 = por %p945_p6, %p944_p13 }
  0x7a   : > { %p948_p0 = por %p947_p12, %p946_p8 }
  0x7c   : > { %p949_p5 = pnand %p948_p0, %p942_p1 }
  0x7e   : > { %952 = shalt.err (!%p949_p5)
}
  0x7f   : > { %s953_s20 = scalar_lea.vmem %s267_s3, 64  ;;  %s1095_s13 = smov [#allocation3]  }
  0x80   : > { %p954_p9 = scmp.ne.s32.totalorder %s267_s3, %s953_s20  ;;  %s958_s15 = sshll.u32 %s1095_s13, 4  ;;  %s959_s15 = int_to_ptr.vmem [resolvable:$false] %s958_s15 }
  0x81   : > { %s960_s16 = scalar_lea.vmem %s959_s15, 128  ;;  %p961_p10 = scmp.lt.s32.totalorder %s267_s3, %s959_s15 }
  0x82   : > { %p956_p2 = pnand %p954_p9, %p1474_p7  ;;  %p962_p3 = scmp.lt.s32.totalorder %s960_s16, %s953_s20 }
  0x84   : > { %p957_p4 = pneg %p956_p2  ;;  %p963_p11 = por %p962_p3, %p961_p10 }
  0x86   : > { %p964_p6 = pnand %p963_p11, %p957_p4 }
  0x88   : > { %967 = shalt.err (!%p964_p6)
}
  0x89   : > { %p1475_p13 = scmp.ne.s32.totalorder %s1467_s30, 0  ;;  %s1476_s7 = sshll.u32 %s1084_s22, 4 }
  0x8a   : > { %s1332_s25 = scalar_lea.hbm %s1438_s2, %s1476_s7  ;;  %s293_s1 = scalar_lea.vmem [#allocation8], %s1231_s11 }
  0x8b   : > { %768 = dma.hbm_to_vmem [thread:$0]  (!%p1475_p13), %s1307_s12, 64, %s267_s3, %s255_s6  }
  0x8c   : > { %s300_s29 = sshll.u32 %s293_s1, 4  ;;  %s968_s20 = scalar_lea.hbm %s1332_s25, 16  ;;  %s301_s29 = int_to_ptr.vmem [resolvable:$true] %s300_s29 }
  0x8d   : > { %p969_p1 = scmp.ne.s32.totalorder %s1332_s25, %s968_s20  ;;  %s973_s12 = scalar_lea.hbm %s1438_s2, 32 }
  0x8e   : > { %p974_p0 = scmp.lt.u32.totalorder %s1332_s25, %s1438_s2  ;;  %p975_p5 = scmp.lt.u32.totalorder %s973_s12, %s968_s20 }
  0x8f   : > { %p971_p8 = pnand %p969_p1, %p1474_p7  ;;  %p977_p2 = scmp.lt.u32.totalorder %s968_s20, %s1332_s25 }
  0x90   : > { %p976_p9 = por %p975_p5, %p974_p0 }
  0x91   : > { %p972_p12 = pneg %p971_p8 }
  0x92   : > { %p978_p4 = por %p977_p2, %p976_p9 }
  0x94   : > { %p979_p10 = pnand %p978_p4, %p972_p12 }
  0x96   : > { %982 = shalt.err (!%p979_p10)
}
  0x97   : > { %s983_s11 = scalar_lea.vmem %s301_s29, 16  ;;  %s1096_s16 = smov [#allocation8]  }
  0x98   : > { %p984_p3 = scmp.ne.s32.totalorder %s301_s29, %s983_s11  ;;  %s988_s7 = sshll.u32 %s1096_s16, 4  ;;  %s989_s7 = int_to_ptr.vmem [resolvable:$false] %s988_s7 }
  0x99   : > { %s990_s14 = scalar_lea.vmem %s989_s7, 32  ;;  %p991_p1 = scmp.lt.s32.totalorder %s301_s29, %s989_s7 }
  0x9a   : > { %p986_p11 = pnand %p984_p3, %p1474_p7  ;;  %p992_p8 = scmp.lt.s32.totalorder %s990_s14, %s983_s11 }
  0x9c   : > { %p987_p6 = pneg %p986_p11  ;;  %p993_p13 = por %p992_p8, %p991_p1 }
  0x9e   : > { %p994_p0 = pnand %p993_p13, %p987_p6 }
  0xa0   : > { %997 = shalt.err (!%p994_p0)
}
  0xa1   : > { %p1477_p5 = scmp.ne.s32.totalorder %s1467_s30, 0  ;;  %p1478_p12 = scmp.ne.s32.totalorder %s1461_s28, 0 }
  0xa2   : > { %s1356_s8 = sand.u32 (!%p1478_p12), 1, %s1072_s19   ;;  %p1479_p7 = scmp.ne.s32.totalorder (!%p1478_p12), %s1459_s26, 0 }
  0xa3   : > { %774 = dma.hbm_to_vmem [thread:$0]  (!%p1477_p5), %s1332_s25, 16, %s301_s29, %s1252_s10  }
  0xa4   : > { %309 = sbr.rel (%p1478_p12) target bundleno = 735 (0x2df), region = 40  ;;  %s721_s17 = sshll.u32 (!%p1478_p12), %s1356_s8, 2 }
  0xa5   : > { %s312_s1 = scalar_lea.sflag (!%p1478_p12), [#allocation4], %s1356_s8  ;;  %s315_s20 = scalar_lea.vmem (!%p1478_p12), [#allocation3], %s721_s17 }
  0xab   : > { %1051 = dma.done.wait (%p1479_p7), %s312_s1, 64  }
  0xac   : > { %1053 = vsyncadd (%p1479_p7), %s312_s1, 4294967232  ;;  %s320_s30 = sand.u32 1, %s1160_s24   ;;  %s323_s10 = scalar_lea.vmem [#allocation6], %s1356_s8 }
  0xad   : > { %s321_s28 = scalar_lea.sflag [#allocation7], %s320_s30 }
  0xae   : > { %1055 = dma.done.wait (%p1479_p7), %s321_s28, 32  }
  0xaf   : > { %1057 = vsyncadd (%p1479_p7), %s321_s28, 4294967264  ;;  %s331_s25 = scalar_lea.vmem [#allocation8], %s1356_s8  ;;  %p1480_p13 = scmp.eq.s32.totalorder %s1160_s24, 0 }
  0xb1   : > { %1059 = dma.done.wait (%p1480_p13), [#allocation10], 1056   ;;  %p1481_p9 = pmov %p1480_p13 }
  0xb2   : > { %v382_v0 = vld [vmem:[%s315_s20] sm:$0xf]  ;;  %vm384_vm0 = vcmask 523264   ;;  %v838_v8 = vld [vmem:[#allocation9 + $0x4] ss:$8 sps:$4 sm:$0xff]   ;;  %v1097_v16 = vmov 0   ;;  %v402_v19 = vlaneseq }
  0xb3   : > { %1061 = vsyncadd (%p1481_p9), [#allocation10], 4294966240  ;;  %v383_v1 = vunpack.c.l.bf16 %v382_v0  ;;  %v840_v9 = vld [vmem:[#allocation9] ss:$8 sps:$4 sm:$0xff]   ;;  %491 = vmatprep.subr.bf16.mxu0 %v838_v8  ;;  %v841_v10 = vld [vmem:[#allocation9 + $0x14] ss:$8 sps:$4 sm:$0xff]   ;;  %523 = vmatprep.mubr.bf16.mxu0 %v1097_v16 }
  0xb4   : > { %492 = vmatpush1.bf16.msra.mxu0 %v840_v9  ;;  %v843_v11 = vld [vmem:[#allocation9 + $0x10] ss:$8 sps:$4 sm:$0xff]   ;;  %v844_v12 = vld [vmem:[#allocation9 + $0x24] ss:$8 sps:$4 sm:$0xff]   ;;  %v846_v13 = vld [vmem:[#allocation9 + $0x20] ss:$8 sps:$4 sm:$0xff]  }
  0xb5   : > { %v385_v2 = vsel %vm384_vm0, %v383_v1, 0.0  ;;  %493 = vmatprep.subr.bf16.mxu0 %v841_v10  ;;  %v847_v14 = vld [vmem:[#allocation9 + $0x34] ss:$8 sps:$4 sm:$0xff]   ;;  %v849_v15 = vld [vmem:[#allocation9 + $0x30] ss:$8 sps:$4 sm:$0xff]   ;;  %v403_v23 = vshrl.u32 %v402_v19, 7 }
  0xb6   : > { %386 = vadd.xlane.f32.xlu0 %v385_v2  ;;  %v399_v20 = vld [vmem:[%s331_s25] sm:$0x1]  ;;  %vm415_vm1 = vcmask 519168   ;;  %v426_v36 = vld [vmem:[#allocation11] sm:$0x3]  ;;  %s724_s24 = sshll.u32 %s1356_s8, 3 }
  0xb7   : > { %v400_v22 = vunpack.c.l.bf16 %v399_v20  ;;  %v407_v24 = vld [vmem:[%s323_s10] sm:$0x1]  ;;  %v404_v26 = vsub.s32 0, %v403_v23  ;;  %v427_v37 = vunpack.c.l.bf16 %v426_v36  ;;  %v435_v38 = vsub.s32 2, %v403_v23  ;;  %s741_s26 = sshll.u32 %s1080_s21, 7  ;;  %s373_s29 = scalar_lea.vmem [#allocation12], %s724_s24 }
  0xb8   : > { %494 = vmatpush1.bf16.msra.mxu0 %v843_v11  ;;  %v408_v27 = vunpack.c.l.bf16 %v407_v24  ;;  %vm540_vm2 = vcmask 1043456   ;;  %vm541_vm3 = vcmask 523268   ;;  %s563_s13 = sshll.u32 %s373_s29, 4  ;;  %s1387_s6 = scalar_lea.hbm %s1441_s5, %s741_s26  ;;  %s1389_s13 = int_to_ptr.vmem [resolvable:$true] %s563_s13 }
  0xb9   : > { %495 = vmatprep.subr.bf16.mxu0 %v844_v12  ;;  %v401_v25 = vadd.f32 1.0, %v400_v22  ;;  %v432_v39 = vrot.slane %v427_v37, %v404_v26  ;;  %v436_v40 = vrot.slane %v427_v37, %v435_v38  ;;  %vm542_vm4 = vmor %vm541_vm3, %vm540_vm2  ;;  %s545_s15 = scalar_lea.sflag [#allocation5], %s1356_s8  ;;  %s998_s21 = scalar_lea.vmem %s1389_s13, 128 }
  0xba   : > { %v412_v30 = vrot.slane %v408_v27, %v404_v26  ;;  %p999_p2 = scmp.ne.s32.totalorder %s1389_s13, %s998_s21  ;;  %p1482_p4 = scmp.ne.s32.totalorder %s1466_s9, 0 }
  0xbb   : > { %v405_v28 = vrot.slane %v401_v25, %v404_v26  ;;  %v442_v41 = vrot.slane %v432_v39, %v404_v26  ;;  %v446_v42 = vrot.slane %v436_v40, %v404_v26  ;;  %s1098_s11 = smov [#allocation12]  }
  0xbc   : > { %496 = vmatpush1.bf16.msra.mxu0 %v846_v13  ;;  %p1000_p10 = pnand %p999_p2, %p1482_p4  ;;  %s1002_s16 = sshll.u32 %s1098_s11, 4  ;;  %s1003_s16 = int_to_ptr.vmem [resolvable:$false] %s1002_s16 }
  0xbd   : > { %497 = vmatprep.subr.bf16.mxu0 %v847_v14  ;;  %s1004_s7 = scalar_lea.vmem %s1003_s16, 256  ;;  %p1005_p11 = scmp.lt.s32.totalorder %s1389_s13, %s1003_s16 }
  0xbe   : > { %p1001_p3 = pneg %p1000_p10  ;;  %p1006_p6 = scmp.lt.s32.totalorder %s1004_s7, %s998_s21 }
  0xc0   : > { %498 = vmatpush1.bf16.msra.mxu0 %v849_v15  ;;  %p1007_p1 = por %p1006_p6, %p1005_p11 }
  0xc2   : > { %p1008_p8 = pnand %p1007_p1, %p1001_p3 }
 0x143   : > { %v387_v3 = vpop.xlane.xlu0 %386 }
 0x144   : > { %v389_v4 = vmul.f32 0.015625, %v387_v3 }
 0x146   : > { %v390_v5 = vsub.f32 %v383_v1, %v389_v4 }
 0x148   : > { %v391_v6 = vmul.f32 %v390_v5, %v390_v5 }
 0x14a   : > { %v392_v7 = vsel %vm384_vm0, %v391_v6, 0.0 }
 0x14b   : > { %393 = vadd.xlane.f32.xlu0 %v392_v7 }
 0x1d8   : > { %v394_v17 = vpop.xlane.xlu0 %393 }
 0x1d9   : > { %v395_v18 = vmul.f32 0.015625, %v394_v17 }
 0x1db   : > { %v396_v21 = vadd.f32 1e-06, %v395_v18 }
 0x1dd   : > { %850 = vrsqrt.f32 %v396_v21 }
 0x1e7   : > { %v851_v29 = vpop.eup %850 }
 0x1e8   : > { %v398_v31 = vmul.f32 %v851_v29, %v390_v5 }
 0x1ea   : > { %v406_v32 = vmul.f32 %v405_v28, %v398_v31 }
 0x1ec   : > { %v413_v33 = vadd.f32 %v412_v30, %v406_v32 }
 0x1ee   : > { %v414_v34 = vpack.c.bf16 %v413_v33, %v413_v33 }
 0x1f0   : > { %416 = vst.msk [vmem:[#allocation2] sm:$0xf] %vm415_vm1, %v414_v34 }
 0x1f7   : > { %v417_v35 = vld [vmem:[#allocation2] sm:$0xf] }
 0x1f8   : > { %733 = vmatmul.mubr.msk.bf16.vlgmr.msra.gmra.mrb[0].mxu0 %vm384_vm0, %v417_v35 }
 0x2cb   : > { %v525_v43 = vpop.f32.mrb[0].mxu0 }
 0x2cc   : > { %v526_v44 = vadd.f32 %v525_v43, %v442_v41  ;;  %v527_v45 = vpop.f32.mrb[1].mxu0 }
 0x2cd   : > { %v528_v46 = vadd.f32 %v527_v45, %v446_v42  ;;  %v529_v47 = vpop.f32.mrb[2].mxu0 }
 0x2ce   : > { %v530_v48 = vpop.f32.mrb[3].mxu0 }
 0x2cf   : > { %v740_v49 = vpack.c.bf16 %v528_v46, %v526_v44 }
 0x2d1   : > { %543 = vst.msk [vmem:[%s373_s29] sm:$0xff] %vm542_vm4, %v740_v49 }
 0x2d2   : > { %1011 = shalt.err (!%p1008_p8)
}
 0x2d3   : > { %s1012_s14 = scalar_lea.hbm %s1387_s6, 128  ;;  %s1016_s1 = scalar_lea.hbm %s1441_s5, 256 }
 0x2d4   : > { %p1013_p0 = scmp.ne.s32.totalorder %s1387_s6, %s1012_s14  ;;  %p1017_p7 = scmp.lt.u32.totalorder %s1387_s6, %s1441_s5 }
 0x2d5   : > { %p1018_p13 = scmp.lt.u32.totalorder %s1016_s1, %s1012_s14  ;;  %p1020_p2 = scmp.lt.u32.totalorder %s1012_s14, %s1387_s6 }
 0x2d6   : > { %p1014_p5 = pnand %p1013_p0, %p1482_p4 }
 0x2d7   : > { %p1019_p9 = por %p1018_p13, %p1017_p7 }
 0x2d8   : > { %p1015_p12 = pneg %p1014_p5 }
 0x2d9   : > { %p1021_p10 = por %p1020_p2, %p1019_p9 }
 0x2db   : > { %p1022_p3 = pnand %p1021_p10, %p1015_p12 }
 0x2dd   : > { %1025 = shalt.err (!%p1022_p3)
}
 0x2de   : > { %756 = dma.vmem_to_hbm [thread:$0]  (%p1482_p4), %s1389_s13, 128, %s1387_s6, %s545_s15  }
 0x2df PF: > { %s575_s28 = sand.u32 1, %s1068_s18   ;;  %p1483_p11 = scmp.ne.s32.totalorder %s1460_s27, 0 }
 0x2e0   : > { %p1484_p6 = scmp.ge.s32.totalorder %s1088_s23, 2  ;;  %s576_s10 = scalar_lea.sflag [#allocation5], %s575_s28 }
 0x2e2   : > { %p776_p1 = pnand %p1484_p6, %p1483_p11 }
 0x2e4   : > { %1063 = dma.done.wait (!%p776_p1), %s576_s10, 128  }
 0x2e5   : > { %1065 = vsyncadd (!%p776_p1), %s576_s10, 4294967168  ;;  %s25_s23 = sadd.s32 1, %s1088_s23   ;;  %s1485_s25 = sld [smem:[#allocation17_spill]] }
 0x2e6   : > { %p22_p8 = scmp.ge.s32.totalorder %s25_s23, 4   ;;  %s1486_s20 = sld [smem:[#allocation19_spill]] }
 0x2e7   : > { %s1487_s9 = sld [smem:[#allocation18_spill]]  ;;  %s1488_s18 = smov %s1072_s19 }
 0x2e8   : > { %s1490_s21 = smov %s1084_s22  ;;  %24 = sbr.rel (!%p22_p8) target bundleno = 12 (0xc), region = 123 }
 0x2eb   : > { %s1489_s19 = smov %s1485_s25 }
 0x2ed   : > { %s1491_s22 = smov %s1487_s9 }
 0x2ef   :  { %581 = vsyncpa [#allocation4], 1 }
 0x2f0   :  { %583 = vsyncpa [#allocation4 + $0x1], 1 }
 0x2f1   :  { %584 = vsyncpa [#allocation7], 1 }
 0x2f2   :  { %586 = vsyncpa [#allocation7 + $0x1], 1 }
 0x2f3   :  { %587 = vsyncpa [#allocation10], 1 }
 0x2f4   :  { %588 = vsyncpa [#allocation5], 1 }
 0x2f5   :  { %590 = vsyncpa [#allocation5 + $0x1], 1 }

// kernel: flux_transformer_block.12
= control target key start
LH: loop header
LB: loop body
LE: loop exit
PB: predicated region body
PF: predicated region fallthrough
CT: control target
= control target key end

     0   :  { %12 = vsyncpa [#allocation3], 0  ;;  %s1002_s0 = inlined_call_operand.hbm [shape: bf16[2,64], index: 0, kind: input, shape index: {}]   ;;  %s1003_s1 = inlined_call_operand.hbm [shape: bf16[64,384], index: 1, kind: input, shape index: {}]   ;;  %s1004_s2 = inlined_call_operand.hbm [shape: bf16[1,384], index: 2, kind: input, shape index: {}]   ;;  %s1005_s3 = inlined_call_operand.hbm [shape: bf16[64,384], index: 3, kind: input, shape index: {}]   ;;  %s1006_s4 = inlined_call_operand.hbm [shape: bf16[1,384], index: 4, kind: input, shape index: {}]   ;;  %s1007_s5 = inlined_call_operand.hbm [shape: bf16[2,384], index: 5, kind: output, shape index: {0}]   ;;  %s1008_s6 = inlined_call_operand.hbm [shape: bf16[2,384], index: 6, kind: output, shape index: {1}]  }
   0x1   :  { %13 = vsyncpa [#allocation6], 0 }
   0x2   :  { %14 = vsyncpa [#allocation9], 0 }
   0x3   :  { %15 = vsyncpa [#allocation4], 0 }
   0x4   :  { %16 = vsyncpa [#allocation13], 0  ;;  %s854_s21 = smov [#allocation5]   ;;  %s690_s25 = scalar_lea.hbm %s1003_s1, 1536 }
   0x5   :  { %s32_s22 = sshll.u32 %s854_s21, 4  ;;  %p691_p0 = scmp.ne.s32.totalorder %s1003_s1, %s690_s25  ;;  %s33_s22 = int_to_ptr.vmem [resolvable:$true] %s32_s22 }
   0x6   :  { %p694_p1 = scmp.lt.u32.totalorder %s690_s25, %s1003_s1 }
   0x8   :  { %p696_p2 = pnand %p694_p1, %p691_p0 }
   0xa   :  { %699 = shalt.err (!%p696_p2)
}
   0xb   :  { %s700_s30 = scalar_lea.vmem %s33_s22, 1536  ;;  %p705_p4 = scmp.lt.s32.totalorder %s33_s22, %s33_s22 }
   0xc   :  { %p701_p3 = scmp.ne.s32.totalorder %s33_s22, %s700_s30  ;;  %p706_p5 = scmp.lt.s32.totalorder %s700_s30, %s700_s30 }
   0xe   :  { %p707_p6 = por %p706_p5, %p705_p4 }
  0x10   :  { %p708_p7 = pnand %p707_p6, %p701_p3 }
  0x12   :  { %711 = shalt.err (!%p708_p7)
}
  0x13   :  { %s855_s7 = smov 192   ;;  %s856_s8 = smov 12  }
  0x14   :  { %38 = dma.hbm_to_vmem [thread:$0]  %s1003_s1, 1536, %s33_s22, [#allocation6], %s855_s7, %s855_s7, %s856_s8  }
  0x15   :  { %s857_s11 = smov [#allocation8]   ;;  %s858_s13 = smov [#allocation2]  }
  0x16   :  { %s54_s12 = sshll.u32 %s857_s11, 4  ;;  %s23_s14 = sshll.u32 %s858_s13, 4  ;;  %s55_s12 = int_to_ptr.vmem [resolvable:$true] %s54_s12  ;;  %s24_s14 = int_to_ptr.vmem [resolvable:$true] %s23_s14 }
  0x17   :  { %s712_s17 = scalar_lea.hbm %s1005_s3, 1536 }
  0x18   :  { %p713_p8 = scmp.ne.s32.totalorder %s1005_s3, %s712_s17  ;;  %p716_p9 = scmp.lt.u32.totalorder %s712_s17, %s1005_s3 }
  0x1a   :  { %p718_p10 = pnand %p716_p9, %p713_p8 }
  0x1c   :  { %721 = shalt.err (!%p718_p10)
}
  0x1d   :  { %s722_s1 = scalar_lea.vmem %s55_s12, 1536  ;;  %p727_p12 = scmp.lt.s32.totalorder %s55_s12, %s55_s12 }
  0x1e   :  { %p723_p11 = scmp.ne.s32.totalorder %s55_s12, %s722_s1  ;;  %p728_p13 = scmp.lt.s32.totalorder %s722_s1, %s722_s1 }
  0x20   :  { %p729_p0 = por %p728_p13, %p727_p12 }
  0x22   :  { %p730_p1 = pnand %p729_p0, %p723_p11 }
  0x24   :  { %733 = shalt.err (!%p730_p1)
}
  0x25   :  { %60 = dma.hbm_to_vmem [thread:$0]  %s1005_s3, 1536, %s55_s12, [#allocation9], %s855_s7, %s855_s7, %s856_s8  }
  0x26   :  { %s734_s26 = scalar_lea.hbm %s1002_s0, 16 }
  0x27   :  { %p735_p2 = scmp.ne.s32.totalorder %s1002_s0, %s734_s26  ;;  %p738_p3 = scmp.lt.u32.totalorder %s734_s26, %s1002_s0 }
  0x29   :  { %p740_p4 = pnand %p738_p3, %p735_p2 }
  0x2b   :  { %743 = shalt.err (!%p740_p4)
}
  0x2c   :  { %s744_s9 = scalar_lea.vmem %s24_s14, 16  ;;  %s748_s10 = scalar_lea.vmem %s24_s14, 32 }
  0x2d   :  { %p745_p5 = scmp.ne.s32.totalorder %s24_s14, %s744_s9  ;;  %p749_p6 = scmp.lt.s32.totalorder %s24_s14, %s24_s14 }
  0x2e   :  { %p750_p7 = scmp.lt.s32.totalorder %s748_s10, %s744_s9 }
  0x30   :  { %p751_p8 = por %p750_p7, %p749_p6 }
  0x32   :  { %p752_p9 = pnand %p751_p8, %p745_p5 }
  0x34   :  { %755 = shalt.err (!%p752_p9)
}
  0x35   :  { %26 = dma.hbm_to_vmem [thread:$0]  %s1002_s0, 16, %s24_s14, [#allocation3]  }
  0x36   :  { %s859_s8 = smov [#allocation7]   ;;  %s860_s12 = smov [#allocation10]  }
  0x37   :  { %s45_s11 = sshll.u32 %s859_s8, 4  ;;  %s67_s13 = sshll.u32 %s860_s12, 4  ;;  %s46_s11 = int_to_ptr.vmem [resolvable:$true] %s45_s11  ;;  %s68_s13 = int_to_ptr.vmem [resolvable:$true] %s67_s13 }
  0x38   :  { %s756_s17 = scalar_lea.hbm %s1004_s2, 48 }
  0x39   :  { %p757_p10 = scmp.ne.s32.totalorder %s1004_s2, %s756_s17  ;;  %p760_p11 = scmp.lt.u32.totalorder %s756_s17, %s1004_s2 }
  0x3b   :  { %p762_p12 = pnand %p760_p11, %p757_p10 }
  0x3d   :  { %765 = shalt.err (!%p762_p12)
}
  0x3e   :  { %s766_s0 = scalar_lea.vmem %s46_s11, 48  ;;  %s770_s14 = scalar_lea.vmem %s46_s11, 64 }
  0x3f   :  { %p767_p13 = scmp.ne.s32.totalorder %s46_s11, %s766_s0  ;;  %p771_p0 = scmp.lt.s32.totalorder %s46_s11, %s46_s11 }
  0x40   :  { %p772_p1 = scmp.lt.s32.totalorder %s770_s14, %s766_s0 }
  0x42   :  { %p773_p2 = por %p772_p1, %p771_p0 }
  0x44   :  { %p774_p3 = pnand %p773_p2, %p767_p13 }
  0x46   :  { %777 = shalt.err (!%p774_p3)
}
  0x47   :  { %48 = dma.hbm_to_vmem [thread:$0]  %s1004_s2, 48, %s46_s11, [#allocation6]  }
  0x48   :  { %s778_s25 = scalar_lea.hbm %s1006_s4, 48 }
  0x49   :  { %p779_p4 = scmp.ne.s32.totalorder %s1006_s4, %s778_s25  ;;  %p782_p5 = scmp.lt.u32.totalorder %s778_s25, %s1006_s4 }
  0x4b   :  { %p784_p6 = pnand %p782_p5, %p779_p4 }
  0x4d   :  { %787 = shalt.err (!%p784_p6)
}
  0x4e   :  { %s788_s30 = scalar_lea.vmem %s68_s13, 48  ;;  %s792_s9 = scalar_lea.vmem %s68_s13, 64 }
  0x4f   :  { %p789_p7 = scmp.ne.s32.totalorder %s68_s13, %s788_s30  ;;  %p793_p8 = scmp.lt.s32.totalorder %s68_s13, %s68_s13 }
  0x50   :  { %p794_p9 = scmp.lt.s32.totalorder %s792_s9, %s788_s30 }
  0x52   :  { %p795_p10 = por %p794_p9, %p793_p8 }
  0x54   :  { %p796_p11 = pnand %p795_p10, %p789_p7 }
  0x56   :  { %799 = shalt.err (!%p796_p11)
}
  0x57   :  { %70 = dma.hbm_to_vmem [thread:$0]  %s1006_s4, 48, %s68_s13, [#allocation9]  }
  0x58   :  { %844 = dma.done.wait [#allocation3], 16  }
  0x59   :  { %845 = vsyncadd [#allocation3], 4294967280 }
  0x5a   :  { %846 = dma.done.wait [#allocation6], 1584  }
  0x5b   :  { %847 = vsyncadd [#allocation6], 4294965712 }
  0x5c   :  { %848 = dma.done.wait [#allocation9], 1584  }
  0x5d   :  { %849 = vsyncadd [#allocation9], 4294965712  ;;  %v861_v0 = vmov 0.0   ;;  %v862_v1 = vmov 0   ;;  %vm863_vm0 = vmmov 0   ;;  %vm206_vm1 = vcmask 523264  }
  0x5e   :  { %617 = vmatprep.subr.bf16.mxu1 %v861_v0  ;;  %242 = vmatprep.mubr.bf16.mxu0 %v862_v1  ;;  %v654_v2 = vld [vmem:[#allocation5 + $0x4] ss:$12 sps:$4 sm:$0xff]   ;;  %v656_v3 = vld [vmem:[#allocation5] ss:$12 sps:$4 sm:$0xff]   ;;  %v657_v4 = vld [vmem:[#allocation5 + $0x8] ss:$12 sps:$4 sm:$0xff]   ;;  %v115_v35 = vlaneseq }
  0x5f   :  { %625 = vmatprep.mubr.msk.bf16.mxu1 %vm863_vm0, %v861_v0  ;;  %210 = vmatprep.subr.bf16.mxu0 %v654_v2  ;;  %v658_v5 = vld [vmem:[#allocation5 + $0x1c] ss:$12 sps:$4 sm:$0xff]   ;;  %v660_v6 = vld [vmem:[#allocation5 + $0x18] ss:$12 sps:$4 sm:$0xff]   ;;  %v661_v7 = vld [vmem:[#allocation5 + $0x20] ss:$12 sps:$4 sm:$0xff]  }
  0x60   :  { %211 = vmatpush1.bf16.msra.mxu0 %v656_v3  ;;  %618 = vmatpush3.bf16.msra.mxu1 %v657_v4  ;;  %v662_v8 = vld [vmem:[#allocation5 + $0x34] ss:$12 sps:$4 sm:$0xff]   ;;  %v664_v9 = vld [vmem:[#allocation5 + $0x30] ss:$12 sps:$4 sm:$0xff]   ;;  %v665_v10 = vld [vmem:[#allocation5 + $0x38] ss:$12 sps:$4 sm:$0xff]  }
  0x61   :  { %212 = vmatprep.subr.bf16.mxu0 %v658_v5  ;;  %619 = vmatprep.subr.bf16.mxu1 %v861_v0  ;;  %v666_v11 = vld [vmem:[#allocation5 + $0x4c] ss:$12 sps:$4 sm:$0xff]   ;;  %v668_v12 = vld [vmem:[#allocation5 + $0x48] ss:$12 sps:$4 sm:$0xff]   ;;  %v87_v13 = vld [vmem:[#allocation2] sm:$0x1] }
  0x62   :  { %v669_v14 = vld [vmem:[#allocation5 + $0x50] ss:$12 sps:$4 sm:$0xff]   ;;  %v88_v15 = vunpack.c.l.bf16 %v87_v13  ;;  %v672_v16 = vld [vmem:[#allocation8 + $0x4] ss:$12 sps:$4 sm:$0xff]   ;;  %v673_v24 = vld [vmem:[#allocation8 + $0x8] ss:$12 sps:$4 sm:$0xff]  }
  0x63   :  { %v670_v23 = vld [vmem:[#allocation8] ss:$12 sps:$4 sm:$0xff]   ;;  %v676_v26 = vld [vmem:[#allocation8 + $0x1c] ss:$12 sps:$4 sm:$0xff]   ;;  %v674_v27 = vld [vmem:[#allocation8 + $0x18] ss:$12 sps:$4 sm:$0xff]  }
  0x64   :  { %213 = vmatpush1.bf16.msra.mxu0 %v660_v6  ;;  %620 = vmatpush3.bf16.msra.mxu1 %v661_v7  ;;  %v89_v17 = vsub.f32 0.0, %v88_v15  ;;  %v677_v28 = vld [vmem:[#allocation8 + $0x20] ss:$12 sps:$4 sm:$0xff]   ;;  %v678_v30 = vld [vmem:[#allocation8 + $0x30] ss:$12 sps:$4 sm:$0xff]   ;;  %v116_v36 = vshrl.u32 %v115_v35, 7 }
  0x65   :  { %214 = vmatprep.subr.bf16.mxu0 %v662_v8  ;;  %621 = vmatprep.subr.bf16.mxu1 %v861_v0  ;;  %v680_v29 = vld [vmem:[#allocation8 + $0x34] ss:$12 sps:$4 sm:$0xff]   ;;  %v681_v31 = vld [vmem:[#allocation8 + $0x38] ss:$12 sps:$4 sm:$0xff]   ;;  %v685_v34 = vld [vmem:[#allocation8 + $0x50] ss:$12 sps:$4 sm:$0xff]  }
  0x66   :  { %v90_v18 = vmul.f32 1.442695, %v89_v17  ;;  %v684_v32 = vld [vmem:[#allocation8 + $0x4c] ss:$12 sps:$4 sm:$0xff]   ;;  %v682_v33 = vld [vmem:[#allocation8 + $0x48] ss:$12 sps:$4 sm:$0xff]  }
  0x67   :  { %v112_v37 = vld [vmem:[#allocation7] sm:$0x7]  ;;  %v117_v39 = vsub.s32 0, %v116_v36  ;;  %v125_v40 = vsub.s32 4, %v116_v36  ;;  %v121_v41 = vsub.s32 2, %v116_v36  ;;  %s865_s4 = smov [#allocation11]  }
  0x68   :  { %215 = vmatpush1.bf16.msra.mxu0 %v664_v9  ;;  %622 = vmatpush3.bf16.msra.mxu1 %v665_v10  ;;  %686 = vpow2.f32 %v90_v18  ;;  %v113_v38 = vunpack.c.l.bf16 %v112_v37  ;;  %v864_v44 = vmov 1966171168   ;;  %v338_v61 = vld [vmem:[#allocation10] sm:$0x7]  ;;  %s550_s3 = sshll.u32 %s865_s4, 4  ;;  %s551_s3 = int_to_ptr.vmem [resolvable:$true] %s550_s3 }
  0x69   :  { %216 = vmatprep.subr.bf16.mxu0 %v666_v11  ;;  %623 = vmatprep.subr.bf16.mxu1 %v861_v0  ;;  %v299_v45 = vunpack.c.l.s4 %v864_v44  ;;  %v339_v3 = vunpack.c.l.bf16 %v338_v61  ;;  %s800_s7 = scalar_lea.vmem %s551_s3, 48  ;;  %s804_s8 = scalar_lea.vmem %s551_s3, 64 }
  0x6a   :  { %v118_v42 = vrot.slane %v113_v38, %v117_v39  ;;  %v126_v43 = vrot.slane %v113_v38, %v125_v40  ;;  %v122_v46 = vrot.slane %v113_v38, %v121_v41  ;;  %p801_p12 = scmp.ne.s32.totalorder %s551_s3, %s800_s7  ;;  %p805_p13 = scmp.lt.s32.totalorder %s551_s3, %s551_s3 }
  0x6b   :  { %v300_v49 = vunpack.c.0.s8 %v299_v45  ;;  %v344_v6 = vrot.slane %v339_v3, %v117_v39  ;;  %v352_v7 = vrot.slane %v339_v3, %v125_v40  ;;  %v348_v8 = vrot.slane %v339_v3, %v121_v41  ;;  %p806_p0 = scmp.lt.s32.totalorder %s804_s8, %s800_s7 }
  0x6c   :  { %217 = vmatpush1.bf16.msra.mxu0 %v668_v12  ;;  %624 = vmatpush3.bf16.msra.mxu1 %v669_v14  ;;  %v133_v47 = vrot.slane %v118_v42, %v117_v39  ;;  %v141_v48 = vrot.slane %v126_v43, %v117_v39  ;;  %v137_v50 = vrot.slane %v122_v46, %v117_v39 }
  0x6d   :  { %432 = vmatprep.subr.bf16.mxu0 %v672_v16  ;;  %629 = vmatprep.subr.bf16.mxu1 %v861_v0  ;;  %v303_v55 = vsub.s32 %v300_v49, %v116_v36  ;;  %p807_p1 = por %p806_p0, %p805_p13 }
  0x6f   :  { %p808_p2 = pnand %p807_p1, %p801_p12 }
  0x72   :  { %v687_v19 = vpop.eup %686 }
  0x73   :  { %v92_v20 = vadd.f32 1.0, %v687_v19 }
  0x75   :  { %688 = vrcp.f32 %v92_v20 }
  0x7f   :  { %v689_v21 = vpop.eup %688 }
  0x80   :  { %v94_v22 = vmul.f32 %v689_v21, %v88_v15 }
  0x82   :  { %v95_v25 = vpack.c.bf16 %v94_v22, %v94_v22 }
  0x84   :  { %587 = vmatmul.mubr.msk.bf16.vlgmr.msra.gmra.mrb[0].mxu0 %vm206_vm1, %v95_v25  ;;  %626 = vmatmul.mubr.msk.bf16.vlgmr.msra.gmra.mrb[0].mxu1 %vm206_vm1, %v95_v25 }
  0x85   :  { %433 = vmatpush1.bf16.msra.mxu0 %v670_v23  ;;  %630 = vmatpush3.bf16.msra.mxu1 %v673_v24 }
  0x86   :  { %434 = vmatprep.subr.bf16.mxu0 %v676_v26  ;;  %631 = vmatprep.subr.bf16.mxu1 %v861_v0 }
  0x87   :  { %464 = vmatprep.mubr.bf16.mxu0 %v862_v1  ;;  %637 = vmatprep.mubr.msk.bf16.mxu1 %vm863_vm0, %v861_v0 }
  0x89   :  { %435 = vmatpush1.bf16.msra.mxu0 %v674_v27  ;;  %632 = vmatpush3.bf16.msra.mxu1 %v677_v28 }
  0x8a   :  { %436 = vmatprep.subr.bf16.mxu0 %v680_v29  ;;  %633 = vmatprep.subr.bf16.mxu1 %v861_v0 }
  0x8d   :  { %437 = vmatpush1.bf16.msra.mxu0 %v678_v30  ;;  %634 = vmatpush3.bf16.msra.mxu1 %v681_v31 }
  0x8e   :  { %438 = vmatprep.subr.bf16.mxu0 %v684_v32  ;;  %635 = vmatprep.subr.bf16.mxu1 %v861_v0 }
  0x91   :  { %439 = vmatpush1.bf16.msra.mxu0 %v682_v33  ;;  %636 = vmatpush3.bf16.msra.mxu1 %v685_v34 }
  0x94   :  { %603 = vmatmul.mubr.msk.bf16.vlgmr.msra.gmra.mrb[4].mxu0 %vm206_vm1, %v95_v25  ;;  %638 = vmatmul.mubr.msk.bf16.vlgmr.msra.gmra.mrb[4].mxu1 %vm206_vm1, %v95_v25 }
 0x157   :  { %v244_v51 = vpop.f32.mrb[0].mxu0  ;;  %v285_v52 = vpop.f32.mrb[0].mxu1 }
 0x158   :  { %v245_v53 = vadd.f32 %v244_v51, %v133_v47  ;;  %v286_v54 = vadd.f32 %v285_v52, %v141_v48  ;;  %v246_v56 = vpop.f32.mrb[1].mxu0  ;;  %v627_v57 = vpop.f32.mrb[1].mxu1 }
 0x159   :  { %v247_v58 = vadd.f32 %v246_v56, %v137_v50  ;;  %v248_v59 = vpop.f32.mrb[2].mxu0  ;;  %v288_v60 = vpop.f32.mrb[2].mxu1 }
 0x15a   :  { %v293_v62 = vpack.c.bf16 %v286_v54, %v286_v54  ;;  %v249_v63 = vpop.f32.mrb[3].mxu0  ;;  %v628_v0 = vpop.f32.mrb[3].mxu1 }
 0x15b   :  { %v589_v1 = vpack.c.bf16 %v247_v58, %v245_v53 }
 0x15c   :  { %v311_v2 = vrot.slane %v293_v62, %v303_v55 }
 0x15d   :  { %v304_v4 = vrot.slane %v589_v1, %v303_v55 }
 0x15f   :  { %v312_v5 = vcombine.low %v304_v4, %v311_v2 }
 0x161   :  { %590 = vst.sshfl [vmem:[#allocation11] sm:$0x15 pattern:$0x73625140] %v312_v5 }
 0x162   :  { %811 = shalt.err (!%p808_p2)
}
 0x163   :  { %s812_s13 = scalar_lea.hbm %s1007_s5, 48 }
 0x164   :  { %p813_p3 = scmp.ne.s32.totalorder %s1007_s5, %s812_s13  ;;  %p816_p4 = scmp.lt.u32.totalorder %s812_s13, %s1007_s5 }
 0x166   :  { %p818_p5 = pnand %p816_p4, %p813_p3 }
 0x168   :  { %821 = shalt.err (!%p818_p5)
}
 0x169   :  { %553 = dma.vmem_to_hbm [thread:$0]  %s551_s3, 48, %s1007_s5, [#allocation4]   ;;  %v359_v9 = vrot.slane %v344_v6, %v117_v39  ;;  %v367_v10 = vrot.slane %v352_v7, %v117_v39  ;;  %v363_v11 = vrot.slane %v348_v8, %v117_v39  ;;  %v466_v12 = vpop.f32.mrb[4].mxu0  ;;  %v507_v13 = vpop.f32.mrb[4].mxu1 }
 0x16a   :  { %v468_v16 = vpop.f32.mrb[5].mxu0  ;;  %v639_v17 = vpop.f32.mrb[5].mxu1  ;;  %s866_s21 = smov [#allocation12]  }
 0x16b   :  { %v467_v14 = vadd.f32 %v466_v12, %v359_v9  ;;  %v508_v15 = vadd.f32 %v507_v13, %v367_v10  ;;  %v469_v18 = vadd.f32 %v468_v16, %v363_v11  ;;  %v470_v19 = vpop.f32.mrb[6].mxu0  ;;  %v510_v20 = vpop.f32.mrb[6].mxu1  ;;  %s560_s0 = sshll.u32 %s866_s21, 4  ;;  %s561_s0 = int_to_ptr.vmem [resolvable:$true] %s560_s0 }
 0x16c   :  { %v471_v22 = vpop.f32.mrb[7].mxu0  ;;  %v640_v23 = vpop.f32.mrb[7].mxu1  ;;  %s822_s5 = scalar_lea.vmem %s561_s0, 48  ;;  %s826_s14 = scalar_lea.vmem %s561_s0, 64 }
 0x16d   :  { %v515_v21 = vpack.c.bf16 %v508_v15, %v508_v15  ;;  %v605_v24 = vpack.c.bf16 %v469_v18, %v467_v14  ;;  %p823_p6 = scmp.ne.s32.totalorder %s561_s0, %s822_s5  ;;  %p827_p7 = scmp.lt.s32.totalorder %s561_s0, %s561_s0 }
 0x16e   :  { %p828_p8 = scmp.lt.s32.totalorder %s826_s14, %s822_s5 }
 0x16f   :  { %v533_v25 = vrot.slane %v515_v21, %v303_v55  ;;  %v526_v26 = vrot.slane %v605_v24, %v303_v55 }
 0x170   :  { %p829_p9 = por %p828_p8, %p827_p7 }
 0x171   :  { %v534_v27 = vcombine.low %v526_v26, %v533_v25 }
 0x172   :  { %p830_p10 = pnand %p829_p9, %p823_p6 }
 0x173   :  { %606 = vst.sshfl [vmem:[#allocation12] sm:$0x15 pattern:$0x73625140] %v534_v27 }
 0x174   :  { %833 = shalt.err (!%p830_p10)
}
 0x175   :  { %s834_s23 = scalar_lea.hbm %s1008_s6, 48 }
 0x176   :  { %p835_p11 = scmp.ne.s32.totalorder %s1008_s6, %s834_s23  ;;  %p838_p12 = scmp.lt.u32.totalorder %s834_s23, %s1008_s6 }
 0x178   :  { %p840_p13 = pnand %p838_p12, %p835_p11 }
 0x17a   :  { %843 = shalt.err (!%p840_p13)
}
 0x17b   :  { %563 = dma.vmem_to_hbm [thread:$0]  %s561_s0, 48, %s1008_s6, [#allocation13]  }
 0x17c   :  { %850 = dma.done.wait [#allocation4], 48  }
 0x17d   :  { %851 = vsyncadd [#allocation4], 4294967248 }
 0x17e   :  { %852 = dma.done.wait [#allocation13], 48  }
 0x17f   :  { %853 = vsyncadd [#allocation13], 4294967248 }
 0x180   :  { %570 = vsyncpa [#allocation3], 1 }
 0x181   :  { %571 = vsyncpa [#allocation6], 1 }
 0x182   :  { %572 = vsyncpa [#allocation9], 1 }
 0x183   :  { %573 = vsyncpa [#allocation4], 1 }
 0x184   :  { %574 = vsyncpa [#allocation13], 1 }

// kernel: flux_transformer_block.16
= control target key start
LH: loop header
LB: loop body
LE: loop exit
PB: predicated region body
PF: predicated region fallthrough
CT: control target
= control target key end

     0   :  { %s2049_s0 = inlined_call_operand.hbm [shape: bf16[4,8,32], index: 0, kind: input, shape index: {}]   ;;  %s2050_s1 = inlined_call_operand.hbm [shape: bf16[4,8,32], index: 1, kind: input, shape index: {}]   ;;  %s2051_s2 = inlined_call_operand.hbm [shape: bf16[1,1,32], index: 2, kind: input, shape index: {}]   ;;  %s2052_s3 = inlined_call_operand.hbm [shape: bf16[1,1,32], index: 3, kind: input, shape index: {}]   ;;  %s2053_s4 = inlined_call_operand.hbm [shape: bf16[2,8,32], index: 4, kind: input, shape index: {}]   ;;  %s2054_s5 = inlined_call_operand.hbm [shape: bf16[2,8,32], index: 5, kind: input, shape index: {}]   ;;  %s2055_s6 = inlined_call_operand.hbm [shape: bf16[2,8,32], index: 6, kind: input, shape index: {}]   ;;  %s2056_s7 = inlined_call_operand.hbm [shape: bf16[4,8,32], index: 7, kind: output, shape index: {0}]   ;;  %s2057_s8 = inlined_call_operand.hbm [shape: bf16[4,8,32], index: 8, kind: output, shape index: {1}]  }
   0x1   :  { %2079 = sst [smem:[#allocation31_spill]] %s2049_s0 }
   0x2   :  { %2080 = sst [smem:[#allocation32_spill]] %s2051_s2 }
   0x3   :  { %2081 = sst [smem:[#allocation33_spill]] %s2056_s7 }
   0x4   :  { %2082 = sst [smem:[#allocation34_spill]] %s2057_s8 }
   0x5   :  { %14 = vsyncpa [#allocation3], 0 }
   0x6   :  { %16 = vsyncpa [#allocation3 + $0x1], 0 }
   0x7   :  { %17 = vsyncpa [#allocation6], 0 }
   0x8   :  { %19 = vsyncpa [#allocation6 + $0x1], 0 }
   0x9   :  { %20 = vsyncpa [#allocation9], 0 }
   0xa   :  { %21 = vsyncpa [#allocation4], 0 }
   0xb   :  { %23 = vsyncpa [#allocation4 + $0x1], 0 }
   0xc   :  { %24 = vsyncpa [#allocation15], 0 }
   0xd   :  { %26 = vsyncpa [#allocation15 + $0x1], 0  ;;  %s1542_s27 = smov 0   ;;  %s1544_s28 = smov 0  }
   0xe   :  { %s1546_s29 = smov 0   ;;  %s1548_s30 = smov 0  }
   0xf   :  { %s1550_s9 = smov 0   ;;  %s1552_s10 = smov 0  }
  0x10 LB: > { %2083 = sst [smem:[#allocation25_spill]] %s1457_s27  ;;  %s1573_s11 = sadd.s32 4294967295, %s1477_s10   ;;  %s1477_s10 = sphi %s1552_s10, %s32_s10   ;;  %s1473_s9 = sphi %s1550_s9, %s2135_s9   ;;  %s1469_s30 = sphi %s1548_s30, %s2134_s30   ;;  %s1465_s29 = sphi %s1546_s29, %s2133_s29   ;;  %s1461_s28 = sphi %s1544_s28, %s2132_s28   ;;  %s1457_s27 = sphi %s1542_s27, %s2131_s27  }
  0x11   : > { %2084 = sst [smem:[#allocation26_spill]] %s1469_s30  ;;  %s961_s12 = sadd.s32 4294967294, %s1477_s10  }
  0x12   : > { %p60_p0 = scmp.ne.s32.totalorder %s1465_s29, %s1461_s28  ;;  %p61_p1 = scmp.eq.s32.totalorder %s1477_s10, 0 }
  0x13   : > { %p66_p2 = scmp.ne.s32.totalorder %s1461_s28, %s1457_s27  ;;  %p2060_p3 = scmp.eq.s32.totalorder %s1573_s11, 0 }
  0x14   : > { %p246_p4 = scmp.eq.s32.totalorder %s1573_s11, 1  ;;  %p1584_p5 = por %p61_p1, %p60_p0 }
  0x15   : > { %p252_p6 = scmp.eq.s32.totalorder %s961_s12, 1  ;;  %p1590_p7 = por %p2060_p3, %p66_p2 }
  0x16   : > { %p1594_p8 = por %p246_p4, %p60_p0  ;;  %p962_p10 = scmp.ge.s32.totalorder %s1477_s10, 1 }
  0x17   : > { %s2086_s15 = scalar_select %p1590_p7, 1, 0 }
  0x18   : > { %s2087_s16 = scalar_select %p1594_p8, 1, 0 }
  0x19   : > { %p1598_p9 = por %p252_p6, %p66_p2  ;;  %p287_p11 = scmp.lt.s32.totalorder %s1477_s10, 3 }
  0x1a   : > { %2088 = sst [smem:[#allocation27_spill]] %s2087_s16  ;;  %s1479_s19 = smov [#allocation7]  }
  0x1b   : > { %s2089_s17 = scalar_select %p1598_p9, 1, 0 }
  0x1c   : > { %p1605_p13 = pnand %p962_p10, %p287_p11  ;;  %s300_s20 = sshll.u32 %s1479_s19, 4  ;;  %s301_s20 = int_to_ptr.vmem [resolvable:$true] %s300_s20 }
  0x1d   : > { %2090 = sst [smem:[#allocation28_spill]] %s2089_s17  ;;  %p1062_p1 = scmp.lt.s32.totalorder %s1477_s10, 2 }
  0x1e   : > { %s2091_s18 = scalar_select %p1605_p13, 1, 0 }
  0x1f   : > { %p1030_p0 = pneg %p1605_p13  ;;  %p1614_p4 = pnand %p1062_p1, %p1584_p5 }
  0x20   : > { %s44_s23 = sadd.s32 1, %s1473_s9  ;;  %s2095_s2 = sld [smem:[#allocation32_spill]] }
  0x21   : > { %s2092_s21 = scalar_select %p1614_p4, 1, 0 }
  0x22   : > { %p1620_p2 = pnand %p1030_p0, %p2060_p3  ;;  %p1625_p6 = scmp.ge.s32.totalorder %s44_s23, 2 }
  0x24   : > { %s2093_s22 = scalar_select %p1620_p2, 1, 0 }
  0x25   : > { %s2094_s24 = scalar_select %p1625_p6, 1, 0 }
  0x26   : > { %s1133_s14 = scalar_lea.hbm %s2095_s2, 16  ;;  %p2069_p10 = pneg %p1620_p2 }
  0x27   : > { %p1134_p5 = scmp.ne.s32.totalorder %s2095_s2, %s1133_s14  ;;  %p1140_p0 = scmp.lt.u32.totalorder %s1133_s14, %s2095_s2 }
  0x29   : > { %p1136_p11 = pnand %p2069_p10, %p1134_p5 }
  0x2b   : > { %p1137_p1 = pneg %p1136_p11 }
  0x2d   : > { %p1142_p12 = pnand %p1140_p0, %p1137_p1 }
  0x2f   : > { %1145 = shalt.err (!%p1142_p12)
}
  0x30   : > { %s1146_s25 = scalar_lea.vmem %s301_s20, 16  ;;  %s1153_s13 = scalar_lea.vmem %s301_s20, 32 }
  0x31   : > { %p1147_p3 = scmp.ne.s32.totalorder %s301_s20, %s1146_s25  ;;  %p1154_p7 = scmp.lt.s32.totalorder %s301_s20, %s301_s20 }
  0x32   : > { %p1155_p13 = scmp.lt.s32.totalorder %s1153_s13, %s1146_s25 }
  0x33   : > { %p1149_p9 = pnand %p1147_p3, %p2069_p10 }
  0x34   : > { %p1156_p4 = por %p1155_p13, %p1154_p7 }
  0x35   : > { %p1150_p8 = pneg %p1149_p9 }
  0x37   : > { %p1157_p6 = pnand %p1156_p4, %p1150_p8 }
  0x39   : > { %1160 = shalt.err (!%p1157_p6)
}
  0x3a   : > { %1033 = dma.hbm_to_vmem [thread:$0]  (!%p1620_p2), %s2095_s2, 16, %s301_s20, [#allocation6]  }
  0x3b   : > { %p2096_p3 = scmp.ne.s32.totalorder %s2094_s24, 0  ;;  %s2066_s17 = sand.u32 1, %s1465_s29  }
  0x3c   : > { %s1661_s12 = sshll.u32 %s2066_s17, 3  ;;  %s2067_s14 = sshll.u32 %s1473_s9, 7 }
  0x3d   : > { %s2137_s23 = smov (%p2096_p3, %s44_s23), 0  ;;  %s326_s19 = scalar_lea.vmem [#allocation2], %s1661_s12 }
  0x3e   : > { %2097 = sst [smem:[#allocation29_spill]] %s2137_s23  ;;  %s48_s25 = ssub.s32 %s1473_s9, %s2137_s23 }
  0x3f   : > { %p51_p7 = scmp.eq.s32.totalorder %s48_s25, 0  ;;  %s334_s13 = sshll.u32 %s326_s19, 4  ;;  %s1677_s13 = int_to_ptr.vmem [resolvable:$true] %s334_s13 }
  0x40   : > { %s2098_s26 = sadd.s32 1, %s1465_s29  ;;  %s2100_s0 = sld [smem:[#allocation31_spill]] }
  0x41   : > { %s1668_s27 = scalar_select %p51_p7, %s1465_s29, %s2098_s26  }
  0x42   : > { %s2101_s17 = sand.u32 1, %s1477_s10   ;;  %p2102_p9 = scmp.ne.s32.totalorder %s2092_s21, 0 }
  0x43   : > { %2099 = sst [smem:[#allocation30_spill]] %s1668_s27  ;;  %s1681_s25 = scalar_lea.sflag [#allocation3], %s2101_s17 }
  0x44   : > { %p1687_p12 = pneg %p2102_p9 }
  0x46   : > { %s1675_s24 = scalar_lea.hbm %s2100_s0, %s2067_s14  ;;  %s1166_s20 = scalar_lea.hbm %s2100_s0, 256 }
  0x47   : > { %s1161_s2 = scalar_lea.hbm %s1675_s24, 128  ;;  %p1167_p6 = scmp.lt.u32.totalorder %s1675_s24, %s2100_s0 }
  0x48   : > { %p1162_p8 = scmp.ne.s32.totalorder %s1675_s24, %s1161_s2  ;;  %p1168_p5 = scmp.lt.u32.totalorder %s1166_s20, %s1161_s2 }
  0x49   : > { %s2103_s19 = scalar_select %p1687_p12, 1, 0 }
  0x4a   : > { %p1164_p13 = pnand %p1687_p12, %p1162_p8  ;;  %p1169_p11 = por %p1168_p5, %p1167_p6 }
  0x4b   : > { %p1170_p1 = scmp.lt.u32.totalorder %s1161_s2, %s1675_s24 }
  0x4c   : > { %p1165_p4 = pneg %p1164_p13 }
  0x4d   : > { %p1171_p0 = por %p1170_p1, %p1169_p11 }
  0x4f   : > { %p1172_p3 = pnand %p1171_p0, %p1165_p4 }
  0x51   : > { %1175 = shalt.err (!%p1172_p3)
}
  0x52   : > { %s1176_s17 = scalar_lea.vmem %s1677_s13, 128  ;;  %s1480_s8 = smov [#allocation2]  }
  0x53   : > { %p1177_p7 = scmp.ne.s32.totalorder %s1677_s13, %s1176_s17  ;;  %s1181_s26 = sshll.u32 %s1480_s8, 4  ;;  %s1182_s26 = int_to_ptr.vmem [resolvable:$false] %s1181_s26 }
  0x54   : > { %s1183_s23 = scalar_lea.vmem %s1182_s26, 256  ;;  %p1184_p10 = scmp.lt.s32.totalorder %s1677_s13, %s1182_s26 }
  0x55   : > { %p1179_p8 = pnand %p1177_p7, %p1687_p12  ;;  %p1185_p2 = scmp.lt.s32.totalorder %s1183_s23, %s1176_s17 }
  0x57   : > { %p1180_p13 = pneg %p1179_p8  ;;  %p1186_p6 = por %p1185_p2, %p1184_p10 }
  0x59   : > { %p1187_p5 = pnand %p1186_p6, %p1180_p13 }
  0x5b   : > { %1190 = shalt.err (!%p1187_p5)
}
  0x5c   : > { %s1481_s2 = smov 64   ;;  %s1482_s14 = smov 4  }
  0x5d   : > { %1040 = dma.hbm_to_vmem [thread:$0]  (!%p2102_p9), %s1675_s24, 128, %s1677_s13, %s1681_s25, %s1481_s2, %s1481_s2, %s1482_s14  }
  0x5e   : > { %s2104_s20 = sshll.u32 %s1473_s9, 7  ;;  %s348_s23 = scalar_lea.vmem [#allocation5], %s1661_s12 }
  0x5f   : > { %s1719_s26 = scalar_lea.hbm %s2050_s1, %s2104_s20  ;;  %s356_s0 = sshll.u32 %s348_s23, 4  ;;  %s1722_s0 = int_to_ptr.vmem [resolvable:$true] %s356_s0 }
  0x60   : > { %s2105_s27 = sand.u32 1, %s1465_s29   ;;  %s2106_s7 = sand.u32 1, %s1477_s10  }
  0x61   : > { %s1726_s16 = sshll.u32 %s2105_s27, 2  ;;  %s1730_s30 = scalar_lea.sflag [#allocation6], %s2106_s7 }
  0x62   : > { %s1191_s13 = scalar_lea.hbm %s1719_s26, 128  ;;  %s1196_s17 = scalar_lea.hbm %s2050_s1, 256 }
  0x63   : > { %p1192_p2 = scmp.ne.s32.totalorder %s1719_s26, %s1191_s13  ;;  %p1197_p11 = scmp.lt.u32.totalorder %s1719_s26, %s2050_s1 }
  0x64   : > { %p1198_p1 = scmp.lt.u32.totalorder %s1196_s17, %s1191_s13  ;;  %p1200_p3 = scmp.lt.u32.totalorder %s1191_s13, %s1719_s26 }
  0x65   : > { %p1194_p10 = pnand %p1192_p2, %p1687_p12 }
  0x66   : > { %p1199_p0 = por %p1198_p1, %p1197_p11 }
  0x67   : > { %p1195_p4 = pneg %p1194_p10 }
  0x68   : > { %p1201_p7 = por %p1200_p3, %p1199_p0 }
  0x6a   : > { %p1202_p8 = pnand %p1201_p7, %p1195_p4 }
  0x6c   : > { %1205 = shalt.err (!%p1202_p8)
}
  0x6d   : > { %s1206_s7 = scalar_lea.vmem %s1722_s0, 128  ;;  %s1483_s27 = smov [#allocation5]  }
  0x6e   : > { %p1207_p13 = scmp.ne.s32.totalorder %s1722_s0, %s1206_s7  ;;  %s1211_s23 = sshll.u32 %s1483_s27, 4  ;;  %s1212_s23 = int_to_ptr.vmem [resolvable:$false] %s1211_s23 }
  0x6f   : > { %s1213_s24 = scalar_lea.vmem %s1212_s23, 256  ;;  %p1214_p2 = scmp.lt.s32.totalorder %s1722_s0, %s1212_s23 }
  0x70   : > { %p1209_p6 = pnand %p1207_p13, %p1687_p12  ;;  %p1215_p10 = scmp.lt.s32.totalorder %s1213_s24, %s1206_s7 }
  0x72   : > { %p1210_p5 = pneg %p1209_p6  ;;  %p1216_p11 = por %p1215_p10, %p1214_p2 }
  0x74   : > { %p1217_p1 = pnand %p1216_p11, %p1210_p5 }
  0x76   : > { %1220 = shalt.err (!%p1217_p1)
}
  0x77   : > { %1043 = dma.hbm_to_vmem [thread:$0]  (!%p2102_p9), %s1719_s26, 128, %s1722_s0, %s1730_s30, %s1481_s2, %s1481_s2, %s1482_s14  }
  0x78   : > { %s1758_s13 = sshll.u32 %s1473_s9, 6  ;;  %s370_s12 = scalar_lea.vmem [#allocation10], %s1726_s16 }
  0x79   : > { %s1764_s8 = scalar_lea.hbm %s2053_s4, %s1758_s13  ;;  %s378_s7 = sshll.u32 %s370_s12, 4  ;;  %s379_s7 = int_to_ptr.vmem [resolvable:$true] %s378_s7 }
  0x7a   : > { %s1221_s27 = scalar_lea.hbm %s1764_s8, 64  ;;  %s1226_s14 = scalar_lea.hbm %s2053_s4, 128 }
  0x7b   : > { %p1222_p4 = scmp.ne.s32.totalorder %s1764_s8, %s1221_s27  ;;  %p1227_p7 = scmp.lt.u32.totalorder %s1764_s8, %s2053_s4 }
  0x7c   : > { %p1228_p8 = scmp.lt.u32.totalorder %s1226_s14, %s1221_s27  ;;  %p1230_p6 = scmp.lt.u32.totalorder %s1221_s27, %s1764_s8 }
  0x7d   : > { %p1224_p0 = pnand %p1222_p4, %p1687_p12 }
  0x7e   : > { %p1229_p13 = por %p1228_p8, %p1227_p7 }
  0x7f   : > { %p1225_p3 = pneg %p1224_p0 }
  0x80   : > { %p1231_p5 = por %p1230_p6, %p1229_p13 }
  0x82   : > { %p1232_p2 = pnand %p1231_p5, %p1225_p3 }
  0x84   : > { %1235 = shalt.err (!%p1232_p2)
}
  0x85   : > { %s1236_s24 = scalar_lea.vmem %s379_s7, 64  ;;  %s1484_s20 = smov [#allocation10]  }
  0x86   : > { %p1237_p10 = scmp.ne.s32.totalorder %s379_s7, %s1236_s24  ;;  %s1241_s17 = sshll.u32 %s1484_s20, 4  ;;  %s1242_s17 = int_to_ptr.vmem [resolvable:$false] %s1241_s17 }
  0x87   : > { %s1243_s12 = scalar_lea.vmem %s1242_s17, 128  ;;  %p1244_p4 = scmp.lt.s32.totalorder %s379_s7, %s1242_s17 }
  0x88   : > { %p1239_p11 = pnand %p1237_p10, %p1687_p12  ;;  %p1245_p0 = scmp.lt.s32.totalorder %s1243_s12, %s1236_s24 }
  0x8a   : > { %p1240_p1 = pneg %p1239_p11  ;;  %p1246_p9 = por %p1245_p0, %p1244_p4 }
  0x8c   : > { %p1247_p7 = pnand %p1246_p9, %p1240_p1 }
  0x8e   : > { %1250 = shalt.err (!%p1247_p7)
}
  0x8f   : > { %p2107_p8 = scmp.ne.s32.totalorder %s2092_s21, 0  ;;  %s1485_s27 = smov [#allocation8]  }
  0x90   : > { %s311_s0 = sshll.u32 %s1485_s27, 4  ;;  %s1789_s26 = scalar_lea.hbm %s2054_s5, %s1758_s13  ;;  %s312_s0 = int_to_ptr.vmem [resolvable:$true] %s311_s0 }
  0x91   : > { %1046 = dma.hbm_to_vmem [thread:$0]  (!%p2107_p8), %s1764_s8, 64, %s379_s7, %s1681_s25  }
  0x92   : > { %s1251_s20 = scalar_lea.hbm %s2052_s3, 16  ;;  %p2108_p3 = scmp.ne.s32.totalorder %s2093_s22, 0 }
  0x93   : > { %p1252_p9 = scmp.ne.s32.totalorder %s2052_s3, %s1251_s20  ;;  %p1258_p2 = scmp.lt.u32.totalorder %s1251_s20, %s2052_s3 }
  0x94   : > { %p2109_p13 = pneg %p2108_p3 }
  0x96   : > { %p1254_p6 = pnand %p1252_p9, %p2109_p13 }
  0x98   : > { %p1255_p5 = pneg %p1254_p6 }
  0x9a   : > { %p1260_p10 = pnand %p1258_p2, %p1255_p5 }
  0x9c   : > { %1263 = shalt.err (!%p1260_p10)
}
  0x9d   : > { %s1264_s27 = scalar_lea.vmem %s312_s0, 16  ;;  %p2110_p1 = pmov %p2109_p13 }
  0x9e   : > { %p1265_p11 = scmp.ne.s32.totalorder %s312_s0, %s1264_s27  ;;  %s1271_s2 = scalar_lea.vmem %s312_s0, 32 }
  0x9f   : > { %p1272_p7 = scmp.lt.s32.totalorder %s312_s0, %s312_s0  ;;  %p1273_p8 = scmp.lt.s32.totalorder %s1271_s2, %s1264_s27 }
  0xa0   : > { %p1267_p4 = pnand %p1265_p11, %p2110_p1 }
  0xa1   : > { %p1274_p12 = por %p1273_p8, %p1272_p7 }
  0xa2   : > { %p1268_p0 = pneg %p1267_p4 }
  0xa4   : > { %p1275_p9 = pnand %p1274_p12, %p1268_p0 }
  0xa6   : > { %1278 = shalt.err (!%p1275_p9)
}
  0xa7   : > { %1036 = dma.hbm_to_vmem [thread:$0]  (!%p2108_p3), %s2052_s3, 16, %s312_s0, [#allocation9]  }
  0xa8   : > { %s389_s24 = scalar_lea.vmem [#allocation11], %s1726_s16  ;;  %s1816_s8 = scalar_lea.hbm %s2055_s6, %s1758_s13 }
  0xa9   : > { %s397_s20 = sshll.u32 %s389_s24, 4  ;;  %s1279_s22 = scalar_lea.hbm %s1789_s26, 64  ;;  %s398_s20 = int_to_ptr.vmem [resolvable:$true] %s397_s20 }
  0xaa   : > { %p1280_p12 = scmp.ne.s32.totalorder %s1789_s26, %s1279_s22  ;;  %p2111_p8 = scmp.ne.s32.totalorder %s2103_s19, 0 }
  0xab   : > { %s1284_s2 = scalar_lea.hbm %s2054_s5, 128  ;;  %p1285_p3 = scmp.lt.u32.totalorder %s1789_s26, %s2054_s5 }
  0xac   : > { %p1282_p13 = pnand %p1280_p12, %p2111_p8  ;;  %p1286_p5 = scmp.lt.u32.totalorder %s1284_s2, %s1279_s22 }
  0xad   : > { %p1288_p10 = scmp.lt.u32.totalorder %s1279_s22, %s1789_s26 }
  0xae   : > { %p1283_p6 = pneg %p1282_p13  ;;  %p1287_p2 = por %p1286_p5, %p1285_p3 }
  0xb0   : > { %p1289_p11 = por %p1288_p10, %p1287_p2 }
  0xb2   : > { %p1290_p1 = pnand %p1289_p11, %p1283_p6 }
  0xb4   : > { %1293 = shalt.err (!%p1290_p1)
}
  0xb5   : > { %s1294_s13 = scalar_lea.vmem %s398_s20, 64  ;;  %s1486_s0 = smov [#allocation11]  }
  0xb6   : > { %p1295_p4 = scmp.ne.s32.totalorder %s398_s20, %s1294_s13  ;;  %s1299_s24 = sshll.u32 %s1486_s0, 4  ;;  %s1300_s24 = int_to_ptr.vmem [resolvable:$false] %s1299_s24 }
  0xb7   : > { %s1301_s17 = scalar_lea.vmem %s1300_s24, 128  ;;  %p1302_p9 = scmp.lt.s32.totalorder %s398_s20, %s1300_s24 }
  0xb8   : > { %p1297_p0 = pnand %p1295_p4, %p2111_p8  ;;  %p1303_p12 = scmp.lt.s32.totalorder %s1301_s17, %s1294_s13 }
  0xba   : > { %p1298_p7 = pneg %p1297_p0  ;;  %p1304_p13 = por %p1303_p12, %p1302_p9 }
  0xbc   : > { %p1305_p3 = pnand %p1304_p13, %p1298_p7 }
  0xbe   : > { %1308 = shalt.err (!%p1305_p3)
}
  0xbf   : > { %p2112_p5 = scmp.ne.s32.totalorder %s2092_s21, 0  ;;  %s408_s12 = scalar_lea.vmem [#allocation12], %s1726_s16 }
  0xc0   : > { %s416_s22 = sshll.u32 %s408_s12, 4  ;;  %s1309_s7 = scalar_lea.hbm %s1816_s8, 64  ;;  %s417_s22 = int_to_ptr.vmem [resolvable:$true] %s416_s22 }
  0xc1   : > { %1049 = dma.hbm_to_vmem [thread:$0]  (!%p2112_p5), %s1789_s26, 64, %s398_s20, %s1730_s30  }
  0xc2   : > { %p1310_p6 = scmp.ne.s32.totalorder %s1816_s8, %s1309_s7  ;;  %s1314_s14 = scalar_lea.hbm %s2055_s6, 128 }
  0xc3   : > { %p1315_p11 = scmp.lt.u32.totalorder %s1816_s8, %s2055_s6  ;;  %p1316_p1 = scmp.lt.u32.totalorder %s1314_s14, %s1309_s7 }
  0xc4   : > { %p1312_p2 = pnand %p1310_p6, %p2111_p8  ;;  %p1318_p0 = scmp.lt.u32.totalorder %s1309_s7, %s1816_s8 }
  0xc5   : > { %p1317_p4 = por %p1316_p1, %p1315_p11 }
  0xc6   : > { %p1313_p10 = pneg %p1312_p2 }
  0xc7   : > { %p1319_p7 = por %p1318_p0, %p1317_p4 }
  0xc9   : > { %p1320_p9 = pnand %p1319_p7, %p1313_p10 }
  0xcb   : > { %1323 = shalt.err (!%p1320_p9)
}
  0xcc   : > { %s1324_s30 = scalar_lea.vmem %s417_s22, 64  ;;  %s1487_s16 = smov [#allocation12]  }
  0xcd   : > { %p1325_p12 = scmp.ne.s32.totalorder %s417_s22, %s1324_s30  ;;  %s1329_s26 = sshll.u32 %s1487_s16, 4  ;;  %s1330_s26 = int_to_ptr.vmem [resolvable:$false] %s1329_s26 }
  0xce   : > { %s1331_s20 = scalar_lea.vmem %s1330_s26, 128  ;;  %p1332_p6 = scmp.lt.s32.totalorder %s417_s22, %s1330_s26 }
  0xcf   : > { %p1327_p13 = pnand %p1325_p12, %p2111_p8  ;;  %p1333_p2 = scmp.lt.s32.totalorder %s1331_s20, %s1324_s30 }
  0xd1   : > { %p1328_p3 = pneg %p1327_p13  ;;  %p1334_p5 = por %p1333_p2, %p1332_p6 }
  0xd3   : > { %p1335_p1 = pnand %p1334_p5, %p1328_p3 }
  0xd5   : > { %1338 = shalt.err (!%p1335_p1)
}
  0xd6   : > { %p2113_p11 = scmp.ne.s32.totalorder %s2092_s21, 0  ;;  %p2114_p10 = scmp.ne.s32.totalorder %s2091_s18, 0 }
  0xd7   : > { %s427_s19 = sand.u32 (!%p2114_p10), 1, %s1573_s11   ;;  %s1859_s0 = sand.u32 (!%p2114_p10), 1, %s1461_s28  }
  0xd8   : > { %1052 = dma.hbm_to_vmem [thread:$0]  (!%p2113_p11), %s1816_s8, 64, %s417_s22, %s1681_s25  }
  0xd9   : > { %425 = sbr.rel (%p2114_p10) target bundleno = 817 (0x331), region = 48  ;;  %s1862_s24 = sshll.u32 (!%p2114_p10), %s1859_s0, 3 }
  0xda   : > { %s428_s17 = scalar_lea.sflag (!%p2114_p10), [#allocation3], %s427_s19  ;;  %s431_s12 = scalar_lea.vmem (!%p2114_p10), [#allocation2], %s1862_s24 }
  0xdb   : > { %p2115_p8 = scmp.ne.s32.totalorder (!%p2114_p10), %s2086_s15, 0 }
  0xe0   : > { %1420 = dma.done.wait (%p2115_p8), %s428_s17, 128  }
  0xe1   : > { %1422 = vsyncadd (%p2115_p8), %s428_s17, 4294967168  ;;  %s437_s18 = scalar_lea.sflag [#allocation6], %s427_s19  ;;  %s440_s21 = scalar_lea.vmem [#allocation5], %s1862_s24 }
  0xe2   : > { %1424 = dma.done.wait (%p2115_p8), %s437_s18, 128  }
  0xe3   : > { %1426 = vsyncadd (%p2115_p8), %s437_s18, 4294967168  ;;  %p2116_p5 = scmp.eq.s32.totalorder %s1573_s11, 0 }
  0xe5   : > { %1428 = dma.done.wait (%p2116_p5), [#allocation6], 16   ;;  %p2117_p4 = pmov %p2116_p5 }
  0xe7   : > { %1430 = vsyncadd (%p2117_p4), [#allocation6], 4294967280  ;;  %p2118_p0 = pmov %p2117_p4 }
  0xe9   : > { %1432 = dma.done.wait (%p2118_p0), [#allocation9], 16   ;;  %p2119_p7 = pmov %p2118_p0 }
  0xea   : > { %s1883_s25 = sshll.u32 %s1859_s0, 2 }
  0xeb   : > { %1434 = vsyncadd (%p2119_p7), [#allocation9], 4294967280  ;;  %s457_s8 = scalar_lea.vmem [#allocation10], %s1883_s25 }
  0xec   : > { %1436 = dma.done.wait (%p2115_p8), %s428_s17, 64  }
  0xed   : > { %1438 = vsyncadd (%p2115_p8), %s428_s17, 4294967232  ;;  %s466_s22 = scalar_lea.vmem [#allocation11], %s1883_s25 }
  0xee   : > { %1440 = dma.done.wait (%p2115_p8), %s437_s18, 64  }
  0xef   : > { %1442 = vsyncadd (%p2115_p8), %s437_s18, 4294967232  ;;  %s475_s11 = scalar_lea.vmem [#allocation12], %s1883_s25 }
  0xf0   : > { %1444 = dma.done.wait (%p2115_p8), %s428_s17, 64  }
  0xf1   : > { %1446 = vsyncadd (%p2115_p8), %s428_s17, 4294967232  ;;  %v1001_v0 = vld [vmem:[%s431_s12] sm:$0xff]   ;;  %v1005_v1 = vld [vmem:[%s440_s21] sm:$0xff]   ;;  %vm549_vm0 = vcmask 261120   ;;  %v567_v18 = vlaneseq  ;;  %s1488_s15 = smov 32   ;;  %s1489_s7 = smov 1  }
  0xf2   : > { %v1002_v2 = vunpack.c.l.bf16 %v1001_v0  ;;  %v1003_v3 = vunpack.c.h.bf16 %v1001_v0  ;;  %v1006_v4 = vunpack.c.l.bf16 %v1005_v1  ;;  %v1007_v5 = vunpack.c.h.bf16 %v1005_v1  ;;  %v565_v28 = vld [vmem:[#allocation7] sm:$0x1]  ;;  %v647_v31 = vld [vmem:[#allocation8] sm:$0x1]  ;;  %v539_v37 = vld [vmem:[%s466_s22] sm:$0xf] }
  0xf3   : > { %v568_v25 = vshrl.u32 %v567_v18, 7  ;;  %v566_v29 = vunpack.c.l.bf16 %v565_v28  ;;  %v648_v35 = vunpack.c.l.bf16 %v647_v31  ;;  %v540_v43 = vunpack.c.l.bf16 %v539_v37  ;;  %v541_v53 = vld [vmem:[%s475_s11] sm:$0xf]  ;;  %s1490_s27 = smov 31   ;;  %s1491_s2 = smov 127  }
  0xf4   : > { %v547_v6 = vmul.f32 %v1002_v2, %v1002_v2  ;;  %v548_v7 = vmul.f32 %v1003_v3, %v1003_v3  ;;  %v631_v8 = vmul.f32 %v1006_v4, %v1006_v4  ;;  %v632_v9 = vmul.f32 %v1007_v5, %v1007_v5  ;;  %s1492_s14 = smov 97   ;;  %s2120_s23 = sld [smem:[#allocation26_spill]] }
  0xf5   : > { %v569_v30 = vsub.s32 0, %v568_v25  ;;  %vm573_vm1 = vcmask 1047808   ;;  %v542_v56 = vunpack.c.l.bf16 %v541_v53  ;;  %s525_s30 = scalar_lea.vmem [#allocation13], %s1862_s24  ;;  %vm624_vm2 = vcmask 257024   ;;  %s2121_s19 = sld [smem:[#allocation33_spill]] }
  0xf6   : > { %v550_v10 = vsel %vm549_vm0, %v547_v6, 0.0  ;;  %v633_v11 = vsel %vm549_vm0, %v631_v8, 0.0  ;;  %v553_v12 = vsel %vm549_vm0, %v548_v7, 0.0  ;;  %v636_v13 = vsel %vm549_vm0, %v632_v9, 0.0  ;;  %s717_s16 = sshll.u32 %s525_s30, 4  ;;  %s2122_s12 = sld [smem:[#allocation27_spill]]  ;;  %s1947_s16 = int_to_ptr.vmem [resolvable:$true] %s717_s16 }
  0xf7   : > { %551 = vadd.xlane.f32.xlu0 %v550_v10  ;;  %634 = vadd.xlane.f32.xlu1 %v633_v11  ;;  %v570_v32 = vrot.slane %v566_v29, %v569_v30  ;;  %v652_v42 = vrot.slane %v648_v35, %v569_v30  ;;  %s1954_s18 = scalar_lea.vmem [#allocation14], %s1862_s24  ;;  %s698_s25 = scalar_lea.sflag [#allocation4], %s1859_s0 }
  0xf8   : > { %s734_s21 = sshll.u32 %s1954_s18, 4  ;;  %s1493_s22 = smov [#allocation13]   ;;  %s1993_s21 = int_to_ptr.vmem [resolvable:$true] %s734_s21 }
  0xf9   : > { %s1343_s11 = sshll.u32 %s1493_s22, 4  ;;  %s1344_s11 = int_to_ptr.vmem [resolvable:$false] %s1343_s11 }
  0xfa   : > { %s998_s13 = sshll.u32 %s2120_s23, 7  ;;  %p1346_p6 = scmp.lt.s32.totalorder %s1947_s16, %s1344_s11 }
  0xfb   : > { %554 = vadd.xlane.f32.xlu0 %v553_v12  ;;  %637 = vadd.xlane.f32.xlu1 %v636_v13  ;;  %v537_v13 = vld [vmem:[%s457_s8] sm:$0xf]  ;;  %s1945_s17 = scalar_lea.hbm %s2121_s19, %s998_s13  ;;  %s1339_s8 = scalar_lea.vmem %s1947_s16, 128 }
  0xfc   : > { %p1340_p9 = scmp.ne.s32.totalorder %s1947_s16, %s1339_s8  ;;  %p2123_p12 = scmp.ne.s32.totalorder %s2122_s12, 0 }
  0xfe   : > { %p1341_p13 = pnand %p1340_p9, %p2123_p12 }
 0x100   : > { %p1342_p3 = pneg %p1341_p13 }
 0x184   : > { %v552_v14 = vpop.xlane.xlu0 %551  ;;  %v635_v15 = vpop.xlane.xlu1 %634 }
 0x185   : > { %v557_v16 = vmul.f32 0.03125, %v552_v14  ;;  %v639_v17 = vmul.f32 0.03125, %v635_v15  ;;  %v538_v14 = vunpack.c.l.bf16 %v537_v13 }
 0x187   : > { %v559_v19 = vadd.f32 1e-06, %v557_v16  ;;  %v641_v20 = vadd.f32 1e-06, %v639_v17 }
 0x188   : > { %v555_v21 = vpop.xlane.xlu0 %554  ;;  %v638_v22 = vpop.xlane.xlu1 %637 }
 0x189   : > { %1125 = vrsqrt.f32 %v559_v19  ;;  %v558_v23 = vmul.f32 0.03125, %v555_v21  ;;  %v640_v24 = vmul.f32 0.03125, %v638_v22 }
 0x18a   : > { %1127 = vrsqrt.f32 %v641_v20 }
 0x18b   : > { %v560_v26 = vadd.f32 1e-06, %v558_v23  ;;  %v642_v27 = vadd.f32 1e-06, %v640_v24 }
 0x18d   : > { %1129 = vrsqrt.f32 %v560_v26 }
 0x18e   : > { %1131 = vrsqrt.f32 %v642_v27 }
 0x193   : > { %v1126_v33 = vpop.eup %1125 }
 0x194   : > { %v563_v34 = vmul.f32 %v1126_v33, %v1002_v2  ;;  %v1128_v36 = vpop.eup %1127 }
 0x195   : > { %v645_v41 = vmul.f32 %v1128_v36, %v1006_v4 }
 0x196   : > { %v1902_v38 = vmul.f32 %v570_v32, %v563_v34 }
 0x197   : > { %v1130_v39 = vpop.eup %1129  ;;  %v1907_v46 = vmul.f32 %v652_v42, %v645_v41 }
 0x198   : > { %574 = vrot.lane.b32.xlu0 %v1902_v38, %s1488_s15  ;;  %v564_v40 = vmul.f32 %v1130_v39, %v1003_v3  ;;  %v1132_v44 = vpop.eup %1131  ;;  %v586_v17 = vmul.f32 %v1902_v38, %v538_v14 }
 0x199   : > { %v646_v47 = vmul.f32 %v1132_v44, %v1007_v5 }
 0x19a   : > { %v572_v45 = vmul.f32 %v570_v32, %v564_v40  ;;  %v667_v32 = vmul.f32 %v1907_v46, %v538_v14 }
 0x19b   : > { %v1911_v48 = vmul.f32 %v652_v42, %v646_v47 }
 0x19c   : > { %577 = vrot.lane.b32.xlu1 %v572_v45, %s1488_s15  ;;  %589 = vrot.lane.b32.xlu0 %v540_v43, %s1489_s7  ;;  %v587_v18 = vmul.f32 %v572_v45, %v538_v14 }
 0x19d   : > { %v668_v31 = vmul.f32 %v1911_v48, %v538_v14 }
 0x1a0   : > { %655 = vrot.lane.b32.xlu1 %v1907_v46, %s1488_s15 }
 0x1a4   : > { %658 = vrot.lane.b32.xlu1 %v1911_v48, %s1488_s15 }
 0x20a   : > { %v575_v49 = vpop.permute.xlu0 %574 }
 0x20b   : > { %v576_v50 = vsel %vm573_vm1, %v575_v49, %v1902_v38 }
 0x20c   : > { %580 = vrot.lane.b32.xlu0 %v576_v50, %s1488_s15 }
 0x20e   : > { %v578_v51 = vpop.permute.xlu1 %577  ;;  %v590_v59 = vpop.permute.xlu0 %589 }
 0x20f   : > { %v579_v52 = vsel %vm573_vm1, %v578_v51, %v572_v45 }
 0x210   : > { %582 = vrot.lane.b32.xlu1 %v579_v52, %s1488_s15 }
 0x212   : > { %v656_v54 = vpop.permute.xlu1 %655 }
 0x213   : > { %v657_v55 = vsel %vm573_vm1, %v656_v54, %v1907_v46 }
 0x214   : > { %661 = vrot.lane.b32.xlu1 %v657_v55, %s1488_s15 }
 0x216   : > { %v659_v57 = vpop.permute.xlu1 %658 }
 0x217   : > { %v660_v58 = vsel %vm573_vm1, %v659_v57, %v1911_v48 }
 0x218   : > { %605 = vrot.lane.b32.xlu1 %v542_v56, %s1490_s27  ;;  %663 = vrot.lane.b32.xlu0 %v660_v58, %s1488_s15  ;;  %s1345_s15 = scalar_lea.vmem %s1344_s11, 256 }
 0x219   : > { %p1347_p2 = scmp.lt.s32.totalorder %s1345_s15, %s1339_s8 }
 0x21b   : > { %p1348_p1 = por %p1347_p2, %p1346_p6 }
 0x21d   : > { %p1349_p11 = pnand %p1348_p1, %p1342_p3 }
 0x27e   : > { %v581_v60 = vpop.permute.xlu0 %580 }
 0x27f   : > { %v584_v61 = vsel %vm573_vm1, %v581_v60, %v1902_v38 }
 0x280   : > { %v592_v62 = vmul.f32 %v590_v59, %v584_v61 }
 0x282   : > { %v583_v63 = vpop.permute.xlu1 %582  ;;  %596 = vrot.lane.b32.xlu0 %v592_v62, %s1491_s2 }
 0x283   : > { %v585_v0 = vsel %vm573_vm1, %v583_v63, %v572_v45 }
 0x284   : > { %v593_v1 = vmul.f32 %v590_v59, %v585_v0 }
 0x286   : > { %v662_v2 = vpop.permute.xlu1 %661  ;;  %598 = vrot.lane.b32.xlu1 %v593_v1, %s1491_s2 }
 0x287   : > { %v665_v7 = vsel %vm573_vm1, %v662_v2, %v1907_v46 }
 0x288   : > { %v669_v9 = vmul.f32 %v665_v7, %v590_v59 }
 0x28a   : > { %v606_v3 = vpop.permute.xlu1 %605  ;;  %v664_v4 = vpop.permute.xlu0 %663 }
 0x28b   : > { %v609_v5 = vmul.f32 %v606_v3, %v585_v0  ;;  %v608_v6 = vmul.f32 %v606_v3, %v584_v61  ;;  %v666_v8 = vsel %vm573_vm1, %v664_v4, %v1911_v48  ;;  %v681_v12 = vmul.f32 %v665_v7, %v606_v3 }
 0x28c   : > { %v670_v10 = vmul.f32 %v666_v8, %v590_v59  ;;  %v682_v11 = vmul.f32 %v666_v8, %v606_v3 }
 0x28d   : > { %614 = vrot.lane.b32.xlu1 %v609_v5, %s1492_s14  ;;  %612 = vrot.lane.b32.xlu0 %v608_v6, %s1492_s14 }
 0x291   : > { %673 = vrot.lane.b32.xlu0 %v669_v9, %s1491_s2  ;;  %675 = vrot.lane.b32.xlu1 %v670_v10, %s1491_s2 }
 0x295   : > { %685 = vrot.lane.b32.xlu0 %v681_v12, %s1492_s14  ;;  %687 = vrot.lane.b32.xlu1 %v682_v11, %s1492_s14 }
 0x2f4   : > { %v597_v15 = vpop.permute.xlu0 %596 }
 0x2f5   : > { %v602_v19 = vadd.f32 %v597_v15, %v586_v17 }
 0x2f8   : > { %v599_v16 = vpop.permute.xlu1 %598 }
 0x2f9   : > { %v603_v20 = vadd.f32 %v599_v16, %v587_v18 }
 0x2ff   : > { %v615_v21 = vpop.permute.xlu1 %614  ;;  %v613_v22 = vpop.permute.xlu0 %612 }
 0x300   : > { %v619_v23 = vadd.f32 %v615_v21, %v603_v20  ;;  %v618_v24 = vadd.f32 %v613_v22, %v602_v19 }
 0x302   : > { %v621_v25 = vmul.f32 0.17677669, %v619_v23  ;;  %v620_v26 = vmul.f32 0.17677669, %v618_v24 }
 0x303   : > { %v676_v27 = vpop.permute.xlu1 %675  ;;  %v674_v28 = vpop.permute.xlu0 %673 }
 0x304   : > { %v623_v29 = vpack.c.bf16 %v621_v25, %v621_v25  ;;  %v622_v30 = vpack.c.bf16 %v620_v26, %v620_v26  ;;  %v680_v33 = vadd.f32 %v676_v27, %v668_v31  ;;  %v679_v34 = vadd.f32 %v674_v28, %v667_v32 }
 0x306   : > { %626 = vst.msk [vmem:[%s525_s30 + $0x4] sm:$0xf] %vm624_vm2, %v623_v29  ;;  %625 = vst.msk [vmem:[%s525_s30] sm:$0xf] %vm624_vm2, %v622_v30 }
 0x307   : > { %v688_v35 = vpop.permute.xlu1 %687  ;;  %v686_v36 = vpop.permute.xlu0 %685 }
 0x308   : > { %1352 = shalt.err (!%p1349_p11)
}
 0x309   : > { %s1353_s24 = scalar_lea.hbm %s1945_s17, 128  ;;  %s1357_s2 = scalar_lea.hbm %s2121_s19, 256 }
 0x30a   : > { %p1354_p10 = scmp.ne.s32.totalorder %s1945_s17, %s1353_s24  ;;  %p1358_p4 = scmp.lt.u32.totalorder %s1945_s17, %s2121_s19 }
 0x30b   : > { %p1359_p0 = scmp.lt.u32.totalorder %s1357_s2, %s1353_s24  ;;  %p1361_p9 = scmp.lt.u32.totalorder %s1353_s24, %s1945_s17 }
 0x30c   : > { %p1355_p8 = pnand %p1354_p10, %p2123_p12 }
 0x30d   : > { %p1360_p7 = por %p1359_p0, %p1358_p4 }
 0x30e   : > { %p1356_p5 = pneg %p1355_p8 }
 0x30f   : > { %p1362_p13 = por %p1361_p9, %p1360_p7 }
 0x311   : > { %p1363_p3 = pnand %p1362_p13, %p1356_p5 }
 0x313   : > { %1366 = shalt.err (!%p1363_p3)
}
 0x314   : > { %s1494_s26 = smov 64   ;;  %s1495_s20 = smov 4   ;;  %v692_v37 = vadd.f32 %v688_v35, %v680_v33  ;;  %v691_v38 = vadd.f32 %v686_v36, %v679_v34 }
 0x315   : > { %1026 = dma.vmem_to_hbm [thread:$0]  (%p2123_p12), %s1947_s16, 128, %s1945_s17, %s698_s25, %s1494_s26, %s1494_s26, %s1495_s20  }
 0x316   : > { %v694_v39 = vpack.c.bf16 %v692_v37, %v692_v37  ;;  %v693_v40 = vpack.c.bf16 %v691_v38, %v691_v38  ;;  %s2124_s11 = sld [smem:[#allocation34_spill]]  ;;  %s703_s16 = scalar_lea.sflag [#allocation15], %s1859_s0 }
 0x317   : > { %s1367_s17 = scalar_lea.vmem %s1993_s21, 128  ;;  %s1496_s23 = smov [#allocation14]  }
 0x318   : > { %696 = vst.msk [vmem:[%s1954_s18 + $0x4] sm:$0xf] %vm624_vm2, %v694_v39  ;;  %695 = vst.msk [vmem:[%s1954_s18] sm:$0xf] %vm624_vm2, %v693_v40  ;;  %p1368_p6 = scmp.ne.s32.totalorder %s1993_s21, %s1367_s17  ;;  %s1371_s25 = sshll.u32 %s1496_s23, 4  ;;  %s1372_s25 = int_to_ptr.vmem [resolvable:$false] %s1371_s25 }
 0x319   : > { %p1374_p11 = scmp.lt.s32.totalorder %s1993_s21, %s1372_s25 }
 0x31a   : > { %p1369_p2 = pnand %p1368_p6, %p2123_p12 }
 0x31c   : > { %s1989_s15 = scalar_lea.hbm %s2124_s11, %s998_s13  ;;  %p1370_p1 = pneg %p1369_p2 }
 0x31d   : > { %s1373_s13 = scalar_lea.vmem %s1372_s25, 256 }
 0x31e   : > { %p1375_p10 = scmp.lt.s32.totalorder %s1373_s13, %s1367_s17 }
 0x320   : > { %p1376_p8 = por %p1375_p10, %p1374_p11 }
 0x322   : > { %p1377_p5 = pnand %p1376_p8, %p1370_p1 }
 0x324   : > { %1380 = shalt.err (!%p1377_p5)
}
 0x325   : > { %s1381_s18 = scalar_lea.hbm %s1989_s15, 128  ;;  %s1385_s27 = scalar_lea.hbm %s2124_s11, 256 }
 0x326   : > { %p1382_p4 = scmp.ne.s32.totalorder %s1989_s15, %s1381_s18  ;;  %p1386_p9 = scmp.lt.u32.totalorder %s1989_s15, %s2124_s11 }
 0x327   : > { %p1387_p13 = scmp.lt.u32.totalorder %s1385_s27, %s1381_s18  ;;  %p1389_p6 = scmp.lt.u32.totalorder %s1381_s18, %s1989_s15 }
 0x328   : > { %p1383_p0 = pnand %p1382_p4, %p2123_p12 }
 0x329   : > { %p1388_p3 = por %p1387_p13, %p1386_p9 }
 0x32a   : > { %p1384_p7 = pneg %p1383_p0 }
 0x32b   : > { %p1390_p2 = por %p1389_p6, %p1388_p3 }
 0x32d   : > { %p1391_p1 = pnand %p1390_p2, %p1384_p7 }
 0x32f   : > { %1394 = shalt.err (!%p1391_p1)
}
 0x330   : > { %1027 = dma.vmem_to_hbm [thread:$0]  (%p2123_p12), %s1993_s21, 128, %s1989_s15, %s703_s16, %s1494_s26, %s1494_s26, %s1495_s20  }
 0x331 PF: > { %s2125_s30 = sld [smem:[#allocation25_spill]]  ;;  %s2126_s8 = sld [smem:[#allocation28_spill]] }
 0x332   : > { %p2128_p10 = scmp.ge.s32.totalorder %s1477_s10, 2 }
 0x337   : > { %s749_s22 = sand.u32 1, %s2125_s30   ;;  %p2127_p11 = scmp.ne.s32.totalorder %s2126_s8, 0 }
 0x338   : > { %s750_s17 = scalar_lea.sflag [#allocation4], %s749_s22 }
 0x339   : > { %p1054_p8 = pnand %p2128_p10, %p2127_p11 }
 0x33b   : > { %1448 = dma.done.wait (!%p1054_p8), %s750_s17, 128  }
 0x33c   : > { %1450 = vsyncadd (!%p1054_p8), %s750_s17, 4294967168  ;;  %s759_s12 = scalar_lea.sflag [#allocation15], %s749_s22 }
 0x33d   : > { %1452 = dma.done.wait (!%p1054_p8), %s759_s12, 128  }
 0x33e   : > { %1454 = vsyncadd (!%p1054_p8), %s759_s12, 4294967168  ;;  %s32_s10 = sadd.s32 1, %s1477_s10   ;;  %s2129_s0 = sld [smem:[#allocation30_spill]] }
 0x33f   : > { %p29_p5 = scmp.ge.s32.totalorder %s32_s10, 4   ;;  %s2130_s21 = sld [smem:[#allocation29_spill]] }
 0x340   : > { %s2131_s27 = smov %s1461_s28  ;;  %s2132_s28 = smov %s1465_s29 }
 0x341   : > { %s2134_s30 = smov %s1473_s9  ;;  %31 = sbr.rel (!%p29_p5) target bundleno = 16 (0x10), region = 164 }
 0x344   : > { %s2133_s29 = smov %s2129_s0 }
 0x345   : > { %s2135_s9 = smov %s2130_s21 }
 0x348   :  { %764 = vsyncpa [#allocation3], 1 }
 0x349   :  { %766 = vsyncpa [#allocation3 + $0x1], 1 }
 0x34a   :  { %767 = vsyncpa [#allocation6], 1 }
 0x34b   :  { %769 = vsyncpa [#allocation6 + $0x1], 1 }
 0x34c   :  { %770 = vsyncpa [#allocation9], 1 }
 0x34d   :  { %771 = vsyncpa [#allocation4], 1 }
 0x34e   :  { %773 = vsyncpa [#allocation4 + $0x1], 1 }
 0x34f   :  { %774 = vsyncpa [#allocation15], 1 }
 0x350   :  { %776 = vsyncpa [#allocation15 + $0x1], 1 }

// kernel: flux_transformer_block.13
= control target key start
LH: loop header
LB: loop body
LE: loop exit
PB: predicated region body
PF: predicated region fallthrough
CT: control target
= control target key end

     0   :  { %s1600_s0 = inlined_call_operand.hbm [shape: bf16[2,24,64], index: 0, kind: input, shape index: {}]   ;;  %s1601_s1 = inlined_call_operand.hbm [shape: bf16[2,1,64], index: 1, kind: input, shape index: {}]   ;;  %s1602_s2 = inlined_call_operand.hbm [shape: bf16[2,1,64], index: 2, kind: input, shape index: {}]   ;;  %s1603_s3 = inlined_call_operand.hbm [shape: bf16[64,192], index: 3, kind: input, shape index: {}]   ;;  %s1604_s4 = inlined_call_operand.hbm [shape: bf16[1,192], index: 4, kind: input, shape index: {}]   ;;  %s1605_s5 = inlined_call_operand.hbm [shape: bf16[2,24,192], index: 5, kind: output, shape index: {}]  }
   0x1   :  { %1622 = sst [smem:[#allocation21_spill]] %s1601_s1 }
   0x2   :  { %1623 = sst [smem:[#allocation22_spill]] %s1603_s3 }
   0x3   :  { %10 = vsyncpa [#allocation4], 0 }
   0x4   :  { %12 = vsyncpa [#allocation4 + $0x1], 0 }
   0x5   :  { %13 = vsyncpa [#allocation7], 0 }
   0x6   :  { %15 = vsyncpa [#allocation7 + $0x1], 0 }
   0x7   :  { %16 = vsyncpa [#allocation10], 0 }
   0x8   :  { %17 = vsyncpa [#allocation5], 0 }
   0x9   :  { %19 = vsyncpa [#allocation5 + $0x1], 0  ;;  %s1263_s18 = smov 0   ;;  %s1265_s19 = smov 0  }
   0xa   :  { %s1267_s20 = smov 0   ;;  %s1269_s21 = smov 0  }
   0xb   :  { %s1271_s22 = smov 0   ;;  %s1273_s23 = smov 0  }
   0xc LB: > { %1624 = sst [smem:[#allocation17_spill]] %s1206_s20  ;;  %s1294_s24 = sadd.s32 4294967295, %s1218_s23   ;;  %s1218_s23 = sphi %s1273_s23, %s25_s23   ;;  %s1214_s22 = sphi %s1271_s22, %s1659_s22   ;;  %s1210_s21 = sphi %s1269_s21, %s1658_s21   ;;  %s1206_s20 = sphi %s1267_s20, %s1654_s20   ;;  %s1202_s19 = sphi %s1265_s19, %s1657_s19   ;;  %s1198_s18 = sphi %s1263_s18, %s1656_s18  }
   0xd   : > { %1625 = sst [smem:[#allocation18_spill]] %s1218_s23  ;;  %s807_s25 = sadd.s32 4294967294, %s1218_s23  }
   0xe   : > { %p66_p0 = scmp.ne.s32.totalorder %s1202_s19, %s1198_s18  ;;  %p1606_p1 = scmp.eq.s32.totalorder %s1294_s24, 0 }
   0xf   : > { %p204_p3 = scmp.eq.s32.totalorder %s807_s25, 1  ;;  %p808_p5 = scmp.ge.s32.totalorder %s1218_s23, 1 }
  0x10   : > { %p1303_p4 = por %p1606_p1, %p66_p0  ;;  %p211_p7 = scmp.lt.s32.totalorder %s1218_s23, 3 }
  0x11   : > { %p1308_p6 = por %p204_p3, %p66_p0  ;;  %s1220_s29 = smov [#allocation9]  }
  0x12   : > { %s1626_s26 = scalar_select %p1303_p4, 1, 0 }
  0x13   : > { %s1627_s27 = scalar_select %p1308_p6, 1, 0 }
  0x14   : > { %p1313_p8 = pnand %p808_p5, %p211_p7  ;;  %s226_s30 = sshll.u32 %s1220_s29, 4  ;;  %s227_s30 = int_to_ptr.vmem [resolvable:$true] %s226_s30 }
  0x15   : > { %s44_s7 = sadd.s32 1, %s1214_s22  ;;  %s1630_s3 = sld [smem:[#allocation22_spill]] }
  0x16   : > { %s1628_s28 = scalar_select %p1313_p8, 1, 0 }
  0x17   : > { %p878_p9 = pneg %p1313_p8 }
  0x19   : > { %p1322_p11 = pnand %p878_p9, %p1606_p1 }
  0x1b   : > { %s1629_s6 = scalar_select %p1322_p11, 1, 0 }
  0x1c   : > { %s982_s10 = scalar_lea.hbm %s1630_s3, 1024  ;;  %p1611_p13 = pneg %p1322_p11 }
  0x1d   : > { %p983_p12 = scmp.ne.s32.totalorder %s1630_s3, %s982_s10  ;;  %p989_p5 = scmp.lt.u32.totalorder %s982_s10, %s1630_s3 }
  0x1f   : > { %p985_p0 = pnand %p1611_p13, %p983_p12 }
  0x21   : > { %p986_p3 = pneg %p985_p0 }
  0x23   : > { %p991_p7 = pnand %p989_p5, %p986_p3 }
  0x25   : > { %994 = shalt.err (!%p991_p7)
}
  0x26   : > { %s995_s15 = scalar_lea.vmem %s227_s30, 1024  ;;  %p1003_p2 = scmp.lt.s32.totalorder %s227_s30, %s227_s30 }
  0x27   : > { %p996_p9 = scmp.ne.s32.totalorder %s227_s30, %s995_s15  ;;  %p1004_p6 = scmp.lt.s32.totalorder %s995_s15, %s995_s15 }
  0x29   : > { %p998_p10 = pnand %p996_p9, %p1611_p13  ;;  %p1005_p4 = por %p1004_p6, %p1003_p2 }
  0x2b   : > { %p999_p1 = pneg %p998_p10 }
  0x2d   : > { %p1006_p8 = pnand %p1005_p4, %p999_p1 }
  0x2f   : > { %1009 = shalt.err (!%p1006_p8)
}
  0x30   : > { %s1221_s16 = smov 128   ;;  %s1222_s17 = smov 8  }
  0x31   : > { %881 = dma.hbm_to_vmem [thread:$0]  (!%p1322_p11), %s1630_s3, 1024, %s227_s30, [#allocation10], %s1221_s16, %s1221_s16, %s1222_s17  }
  0x32   : > { %p46_p1 = scmp.ge.s32.totalorder %s44_s7, 2  ;;  %s53_s8 = sadd.s32 1, %s1206_s20 }
  0x33   : > { %p60_p2 = scmp.ne.s32.totalorder %s1206_s20, %s1202_s19  ;;  %p61_p4 = scmp.eq.s32.totalorder %s1218_s23, 0 }
  0x34   : > { %s1661_s7 = smov (%p46_p1, %s44_s7), 0  ;;  %p1632_p8 = scmp.eq.s32.totalorder %s1294_s24, 1 }
  0x35   : > { %1631 = sst [smem:[#allocation19_spill]] %s1661_s7  ;;  %p62_p6 = por %p61_p4, %p60_p2 }
  0x36   : > { %p1357_p10 = por %p1632_p8, %p60_p2  ;;  %s48_s10 = ssub.s32 %s1214_s22, %s1661_s7 }
  0x37   : > { %p901_p12 = scmp.lt.s32.totalorder %s1218_s23, 2  ;;  %p51_p0 = scmp.eq.s32.totalorder %s48_s10, 0 }
  0x38   : > { %s1633_s9 = scalar_select %p1357_p10, 1, 0 }
  0x39   : > { %s1365_s11 = sand.u32 1, %s1206_s20   ;;  %p1367_p3 = pnand %p901_p12, %p62_p6 }
  0x3a   : > { %s277_s12 = sand.u32 1, %s1218_s23   ;;  %s1609_s14 = sshll.u32 %s1214_s22, 4 }
  0x3b   : > { %s1634_s30 = scalar_select %p1367_p3, 1, 0 }
  0x3c   : > { %s1373_s13 = scalar_select %p51_p0, %s1206_s20, %s53_s8  }
  0x3d   : > { %s1636_s1 = sld [smem:[#allocation21_spill]]  ;;  %s280_s25 = scalar_lea.vmem [#allocation6], %s1365_s11 }
  0x3e   : > { %1635 = sst [smem:[#allocation20_spill]] %s1373_s13  ;;  %s287_s29 = sshll.u32 %s280_s25, 4  ;;  %s1384_s29 = int_to_ptr.vmem [resolvable:$true] %s287_s29 }
  0x3f   : > { %s1386_s10 = scalar_lea.sflag [#allocation7], %s277_s12  ;;  %p1392_p7 = pneg %p1367_p3 }
  0x41   : > { %s1637_s8 = scalar_select %p1392_p7, 1, 0 }
  0x43   : > { %s1381_s17 = scalar_lea.hbm %s1636_s1, %s1609_s14  ;;  %s1015_s14 = scalar_lea.hbm %s1636_s1, 32 }
  0x44   : > { %s1010_s3 = scalar_lea.hbm %s1381_s17, 16  ;;  %p1016_p2 = scmp.lt.u32.totalorder %s1381_s17, %s1636_s1 }
  0x45   : > { %p1011_p5 = scmp.ne.s32.totalorder %s1381_s17, %s1010_s3  ;;  %p1017_p4 = scmp.lt.u32.totalorder %s1015_s14, %s1010_s3 }
  0x46   : > { %p1019_p8 = scmp.lt.u32.totalorder %s1010_s3, %s1381_s17 }
  0x47   : > { %p1013_p9 = pnand %p1392_p7, %p1011_p5  ;;  %p1018_p6 = por %p1017_p4, %p1016_p2 }
  0x49   : > { %p1014_p1 = pneg %p1013_p9  ;;  %p1020_p12 = por %p1019_p8, %p1018_p6 }
  0x4b   : > { %p1021_p0 = pnand %p1020_p12, %p1014_p1 }
  0x4d   : > { %1024 = shalt.err (!%p1021_p0)
}
  0x4e   : > { %s1025_s12 = scalar_lea.vmem %s1384_s29, 16  ;;  %s1223_s15 = smov [#allocation6]  }
  0x4f   : > { %p1026_p5 = scmp.ne.s32.totalorder %s1384_s29, %s1025_s12  ;;  %s1030_s16 = sshll.u32 %s1223_s15, 4  ;;  %s1031_s16 = int_to_ptr.vmem [resolvable:$false] %s1030_s16 }
  0x50   : > { %s1032_s7 = scalar_lea.vmem %s1031_s16, 32  ;;  %p1033_p10 = scmp.lt.s32.totalorder %s1384_s29, %s1031_s16 }
  0x51   : > { %p1028_p9 = pnand %p1026_p5, %p1392_p7  ;;  %p1034_p11 = scmp.lt.s32.totalorder %s1032_s7, %s1025_s12 }
  0x53   : > { %p1029_p13 = pneg %p1028_p9  ;;  %p1035_p2 = por %p1034_p11, %p1033_p10 }
  0x55   : > { %p1036_p4 = pnand %p1035_p2, %p1029_p13 }
  0x57   : > { %1039 = shalt.err (!%p1036_p4)
}
  0x58   : > { %891 = dma.hbm_to_vmem [thread:$0]  (!%p1367_p3), %s1381_s17, 16, %s1384_s29, %s1386_s10  }
  0x59   : > { %s1224_s3 = smov [#allocation11]   ;;  %s857_s25 = smul.u32 12, %s1365_s11 }
  0x5a   : > { %s243_s14 = sshll.u32 %s1224_s3, 4  ;;  %s858_s15 = smul.u32 192, %s1214_s22  ;;  %s244_s14 = int_to_ptr.vmem [resolvable:$true] %s243_s14 }
  0x5b   : > { %s1040_s12 = scalar_lea.hbm %s1604_s4, 32  ;;  %p1638_p13 = scmp.ne.s32.totalorder %s1629_s6, 0 }
  0x5c   : > { %p1041_p11 = scmp.ne.s32.totalorder %s1604_s4, %s1040_s12  ;;  %p1047_p8 = scmp.lt.u32.totalorder %s1040_s12, %s1604_s4 }
  0x5d   : > { %p1639_p10 = pneg %p1638_p13 }
  0x5f   : > { %p1043_p1 = pnand %p1041_p11, %p1639_p10 }
  0x61   : > { %p1044_p6 = pneg %p1043_p1 }
  0x63   : > { %p1049_p12 = pnand %p1047_p8, %p1044_p6 }
  0x65   : > { %1052 = shalt.err (!%p1049_p12)
}
  0x66   : > { %s1053_s17 = scalar_lea.vmem %s244_s14, 32  ;;  %p1640_p5 = pmov %p1639_p10 }
  0x67   : > { %p1054_p0 = scmp.ne.s32.totalorder %s244_s14, %s1053_s17  ;;  %p1061_p4 = scmp.lt.s32.totalorder %s244_s14, %s244_s14 }
  0x68   : > { %p1062_p3 = scmp.lt.s32.totalorder %s1053_s17, %s1053_s17 }
  0x69   : > { %p1056_p9 = pnand %p1054_p0, %p1640_p5 }
  0x6a   : > { %p1063_p7 = por %p1062_p3, %p1061_p4 }
  0x6b   : > { %p1057_p2 = pneg %p1056_p9 }
  0x6d   : > { %p1064_p10 = pnand %p1063_p7, %p1057_p2 }
  0x6f   : > { %1067 = shalt.err (!%p1064_p10)
}
  0x70   : > { %884 = dma.hbm_to_vmem [thread:$0]  (!%p1638_p13), %s1604_s4, 32, %s244_s14, [#allocation10]  }
  0x71   : > { %s1441_s29 = scalar_lea.hbm %s1600_s0, %s858_s15  ;;  %s258_s3 = scalar_lea.vmem [#allocation3], %s857_s25 }
  0x72   : > { %s267_s16 = sshll.u32 %s258_s3, 4  ;;  %s255_s6 = scalar_lea.sflag [#allocation4], %s1365_s11  ;;  %s1443_s16 = int_to_ptr.vmem [resolvable:$true] %s267_s16 }
  0x73   : > { %s1068_s12 = scalar_lea.hbm %s1441_s29, 192  ;;  %p1641_p7 = scmp.ne.s32.totalorder %s1637_s8, 0 }
  0x74   : > { %p1069_p3 = scmp.ne.s32.totalorder %s1441_s29, %s1068_s12  ;;  %s1073_s17 = scalar_lea.hbm %s1600_s0, 384 }
  0x75   : > { %p1074_p13 = scmp.lt.u32.totalorder %s1441_s29, %s1600_s0  ;;  %p1075_p6 = scmp.lt.u32.totalorder %s1073_s17, %s1068_s12 }
  0x76   : > { %p1071_p11 = pnand %p1069_p3, %p1641_p7  ;;  %p1077_p12 = scmp.lt.u32.totalorder %s1068_s12, %s1441_s29 }
  0x77   : > { %p1076_p8 = por %p1075_p6, %p1074_p13 }
  0x78   : > { %p1072_p1 = pneg %p1071_p11 }
  0x79   : > { %p1078_p0 = por %p1077_p12, %p1076_p8 }
  0x7b   : > { %p1079_p5 = pnand %p1078_p0, %p1072_p1 }
  0x7d   : > { %1082 = shalt.err (!%p1079_p5)
}
  0x7e   : > { %s1083_s25 = scalar_lea.vmem %s1443_s16, 192  ;;  %s1225_s13 = smov [#allocation3]  }
  0x7f   : > { %p1084_p9 = scmp.ne.s32.totalorder %s1443_s16, %s1083_s25  ;;  %s1088_s20 = sshll.u32 %s1225_s13, 4  ;;  %s1089_s20 = int_to_ptr.vmem [resolvable:$false] %s1088_s20 }
  0x80   : > { %s1090_s23 = scalar_lea.vmem %s1089_s20, 384  ;;  %p1091_p10 = scmp.lt.s32.totalorder %s1443_s16, %s1089_s20 }
  0x81   : > { %p1086_p2 = pnand %p1084_p9, %p1641_p7  ;;  %p1092_p3 = scmp.lt.s32.totalorder %s1090_s23, %s1083_s25 }
  0x83   : > { %p1087_p4 = pneg %p1086_p2  ;;  %p1093_p11 = por %p1092_p3, %p1091_p10 }
  0x85   : > { %p1094_p13 = pnand %p1093_p11, %p1087_p4 }
  0x87   : > { %1097 = shalt.err (!%p1094_p13)
}
  0x88   : > { %s1226_s3 = smov 64   ;;  %s1227_s12 = smov 4  }
  0x89   : > { %p1642_p1 = scmp.ne.s32.totalorder %s1634_s30, 0  ;;  %s1643_s14 = sshll.u32 %s1214_s22, 4 }
  0x8a   : > { %s1474_s15 = scalar_lea.hbm %s1602_s2, %s1643_s14  ;;  %s297_s1 = scalar_lea.vmem [#allocation8], %s1365_s11 }
  0x8b   : > { %888 = dma.hbm_to_vmem [thread:$0]  (!%p1642_p1), %s1441_s29, 192, %s1443_s16, %s255_s6, %s1226_s3, %s1226_s3, %s1227_s12  }
  0x8c   : > { %s304_s25 = sshll.u32 %s297_s1, 4  ;;  %s1098_s13 = scalar_lea.hbm %s1474_s15, 16  ;;  %s305_s25 = int_to_ptr.vmem [resolvable:$true] %s304_s25 }
  0x8d   : > { %p1099_p6 = scmp.ne.s32.totalorder %s1474_s15, %s1098_s13  ;;  %s1103_s16 = scalar_lea.hbm %s1602_s2, 32 }
  0x8e   : > { %p1104_p0 = scmp.lt.u32.totalorder %s1474_s15, %s1602_s2  ;;  %p1105_p5 = scmp.lt.u32.totalorder %s1103_s16, %s1098_s13 }
  0x8f   : > { %p1101_p8 = pnand %p1099_p6, %p1641_p7  ;;  %p1107_p2 = scmp.lt.u32.totalorder %s1098_s13, %s1474_s15 }
  0x90   : > { %p1106_p9 = por %p1105_p5, %p1104_p0 }
  0x91   : > { %p1102_p12 = pneg %p1101_p8 }
  0x92   : > { %p1108_p4 = por %p1107_p2, %p1106_p9 }
  0x94   : > { %p1109_p10 = pnand %p1108_p4, %p1102_p12 }
  0x96   : > { %1112 = shalt.err (!%p1109_p10)
}
  0x97   : > { %s1113_s11 = scalar_lea.vmem %s305_s25, 16  ;;  %s1228_s3 = smov [#allocation8]  }
  0x98   : > { %p1114_p3 = scmp.ne.s32.totalorder %s305_s25, %s1113_s11  ;;  %s1118_s12 = sshll.u32 %s1228_s3, 4  ;;  %s1119_s12 = int_to_ptr.vmem [resolvable:$false] %s1118_s12 }
  0x99   : > { %s1120_s14 = scalar_lea.vmem %s1119_s12, 32  ;;  %p1121_p6 = scmp.lt.s32.totalorder %s305_s25, %s1119_s12 }
  0x9a   : > { %p1116_p11 = pnand %p1114_p3, %p1641_p7  ;;  %p1122_p8 = scmp.lt.s32.totalorder %s1120_s14, %s1113_s11 }
  0x9c   : > { %p1117_p13 = pneg %p1116_p11  ;;  %p1123_p1 = por %p1122_p8, %p1121_p6 }
  0x9e   : > { %p1124_p0 = pnand %p1123_p1, %p1117_p13 }
  0xa0   : > { %1127 = shalt.err (!%p1124_p0)
}
  0xa1   : > { %p1644_p5 = scmp.ne.s32.totalorder %s1634_s30, 0  ;;  %p1645_p12 = scmp.ne.s32.totalorder %s1628_s28, 0 }
  0xa2   : > { %s1498_s8 = sand.u32 (!%p1645_p12), 1, %s1202_s19   ;;  %p1646_p7 = scmp.ne.s32.totalorder (!%p1645_p12), %s1626_s26, 0 }
  0xa3   : > { %894 = dma.hbm_to_vmem [thread:$0]  (!%p1644_p5), %s1474_s15, 16, %s305_s25, %s1386_s10  }
  0xa4   : > { %313 = sbr.rel (%p1645_p12) target bundleno = 743 (0x2e7), region = 40  ;;  %s316_s17 = scalar_lea.sflag (!%p1645_p12), [#allocation4], %s1498_s8 }
  0xa5   : > { %s859_s7 = smul.u32 (!%p1645_p12), 12, %s1498_s8 }
  0xa7   : > { %s319_s1 = scalar_lea.vmem (!%p1645_p12), [#allocation3], %s859_s7 }
  0xab   : > { %1181 = dma.done.wait (%p1646_p7), %s316_s17, 192  }
  0xac   : > { %1183 = vsyncadd (%p1646_p7), %s316_s17, 4294967104  ;;  %s324_s30 = sand.u32 1, %s1294_s24   ;;  %s327_s10 = scalar_lea.vmem [#allocation6], %s1498_s8 }
  0xad   : > { %s325_s28 = scalar_lea.sflag [#allocation7], %s324_s30 }
  0xae   : > { %1185 = dma.done.wait (%p1646_p7), %s325_s28, 32  }
  0xaf   : > { %1187 = vsyncadd (%p1646_p7), %s325_s28, 4294967264  ;;  %s335_s15 = scalar_lea.vmem [#allocation8], %s1498_s8  ;;  %p1647_p1 = scmp.eq.s32.totalorder %s1294_s24, 0 }
  0xb1   : > { %1189 = dma.done.wait (%p1647_p1), [#allocation10], 1056   ;;  %p1648_p9 = pmov %p1647_p1 }
  0xb2   : > { %v846_v0 = vld [vmem:[%s319_s1] sm:$0xff]   ;;  %vm394_vm0 = vcmask 523264   ;;  %v390_v1 = vld [vmem:[%s319_s1 + $0x8] sm:$0xf]  ;;  %v1229_v31 = vmov 0   ;;  %v438_v34 = vlaneseq  ;;  %vm467_vm1 = vcmask 519168  }
  0xb3   : > { %1191 = vsyncadd (%p1648_p9), [#allocation10], 4294966240  ;;  %v847_v2 = vunpack.c.l.bf16 %v846_v0  ;;  %v393_v3 = vunpack.c.l.bf16 %v390_v1  ;;  %v848_v4 = vunpack.c.h.bf16 %v846_v0  ;;  %v962_v23 = vld [vmem:[#allocation9 + $0x4] ss:$8 sps:$4 sm:$0xff]   ;;  %v964_v24 = vld [vmem:[#allocation9] ss:$8 sps:$4 sm:$0xff]   ;;  %590 = vmatprep.mubr.bf16.mxu0 %v1229_v31  ;;  %600 = vmatprep.mubr.bf16.mxu1 %v1229_v31 }
  0xb4   : > { %558 = vmatprep.subr.bf16.mxu0 %v962_v23  ;;  %849 = vmatprep.subr.bf16.mxu1 %v962_v23  ;;  %v965_v25 = vld [vmem:[#allocation9 + $0x14] ss:$8 sps:$4 sm:$0xff]   ;;  %v967_v26 = vld [vmem:[#allocation9 + $0x10] ss:$8 sps:$4 sm:$0xff]   ;;  %v968_v27 = vld [vmem:[#allocation9 + $0x24] ss:$8 sps:$4 sm:$0xff]  }
  0xb5   : > { %v395_v5 = vsel %vm394_vm0, %v847_v2, 0.0  ;;  %v401_v6 = vsel %vm394_vm0, %v393_v3, 0.0  ;;  %v398_v7 = vsel %vm394_vm0, %v848_v4, 0.0  ;;  %559 = vmatpush1.bf16.msra.mxu0 %v964_v24  ;;  %853 = vmatpush1.bf16.msra.mxu1 %v964_v24  ;;  %v970_v28 = vld [vmem:[#allocation9 + $0x20] ss:$8 sps:$4 sm:$0xff]   ;;  %v439_v42 = vshrl.u32 %v438_v34, 7 }
  0xb6   : > { %396 = vadd.xlane.f32.xlu0 %v395_v5  ;;  %402 = vadd.xlane.f32.xlu1 %v401_v6  ;;  %v971_v29 = vld [vmem:[#allocation9 + $0x34] ss:$8 sps:$4 sm:$0xff]   ;;  %v973_v30 = vld [vmem:[#allocation9 + $0x30] ss:$8 sps:$4 sm:$0xff]   ;;  %s860_s24 = smul.u32 24, %s1498_s8  ;;  %vm629_vm2 = vcmask 1043456  }
  0xb7   : > { %560 = vmatprep.subr.bf16.mxu0 %v965_v25  ;;  %850 = vmatprep.subr.bf16.mxu1 %v965_v25  ;;  %v435_v35 = vld [vmem:[%s335_s15] sm:$0x1]  ;;  %v440_v47 = vsub.s32 0, %v439_v42  ;;  %v491_v6 = vsub.s32 2, %v439_v42  ;;  %vm630_vm3 = vcmask 523268   ;;  %s861_s13 = smul.u32 384, %s1210_s21 }
  0xb8   : > { %v436_v41 = vunpack.c.l.bf16 %v435_v35  ;;  %v445_v45 = vld [vmem:[%s327_s10] sm:$0x1]  ;;  %s377_s26 = scalar_lea.vmem [#allocation12], %s860_s24  ;;  %vm631_vm4 = vmor %vm630_vm3, %vm629_vm2  ;;  %s636_s16 = scalar_lea.sflag [#allocation5], %s1498_s8 }
  0xb9   : > { %561 = vmatpush1.bf16.msra.mxu0 %v967_v26  ;;  %854 = vmatpush1.bf16.msra.mxu1 %v967_v26  ;;  %v446_v48 = vunpack.c.l.bf16 %v445_v45  ;;  %s654_s25 = sshll.u32 %s377_s26, 4  ;;  %s1551_s21 = scalar_lea.hbm %s1605_s5, %s861_s13  ;;  %s1546_s25 = int_to_ptr.vmem [resolvable:$true] %s654_s25 }
  0xba   : > { %399 = vadd.xlane.f32.xlu0 %v398_v7  ;;  %562 = vmatprep.subr.bf16.mxu0 %v968_v27  ;;  %v437_v46 = vadd.f32 1.0, %v436_v41  ;;  %s1128_s6 = scalar_lea.vmem %s1546_s25, 384  ;;  %p1649_p4 = scmp.ne.s32.totalorder %s1633_s9, 0 }
  0xbb   : > { %851 = vmatprep.subr.bf16.mxu1 %v968_v27  ;;  %v450_v51 = vrot.slane %v446_v48, %v440_v47  ;;  %p1129_p2 = scmp.ne.s32.totalorder %s1546_s25, %s1128_s6  ;;  %s1230_s23 = smov [#allocation12]  }
  0xbc   : > { %v441_v49 = vrot.slane %v437_v46, %v440_v47  ;;  %s1132_s11 = sshll.u32 %s1230_s23, 4  ;;  %s1133_s11 = int_to_ptr.vmem [resolvable:$false] %s1132_s11 }
  0xbd   : > { %563 = vmatpush1.bf16.msra.mxu0 %v970_v28  ;;  %855 = vmatpush1.bf16.msra.mxu1 %v970_v28  ;;  %p1130_p10 = pnand %p1129_p2, %p1649_p4  ;;  %s1134_s3 = scalar_lea.vmem %s1133_s11, 768 }
  0xbe   : > { %564 = vmatprep.subr.bf16.mxu0 %v971_v29  ;;  %852 = vmatprep.subr.bf16.mxu1 %v971_v29  ;;  %p1135_p11 = scmp.lt.s32.totalorder %s1546_s25, %s1133_s11  ;;  %p1136_p13 = scmp.lt.s32.totalorder %s1134_s3, %s1128_s6 }
  0xbf   : > { %p1131_p3 = pneg %p1130_p10 }
  0xc0   : > { %p1137_p6 = por %p1136_p13, %p1135_p11 }
  0xc1   : > { %565 = vmatpush1.bf16.msra.mxu0 %v973_v30  ;;  %856 = vmatpush1.bf16.msra.mxu1 %v973_v30 }
  0xc2   : > { %p1138_p8 = pnand %p1137_p6, %p1131_p3 }
 0x143   : > { %v397_v8 = vpop.xlane.xlu0 %396  ;;  %v403_v9 = vpop.xlane.xlu1 %402 }
 0x144   : > { %v405_v10 = vmul.f32 0.015625, %v397_v8  ;;  %v407_v11 = vmul.f32 0.015625, %v403_v9 }
 0x146   : > { %v1520_v12 = vsub.f32 %v847_v2, %v405_v10  ;;  %v1522_v13 = vsub.f32 %v393_v3, %v407_v11 }
 0x147   : > { %v400_v14 = vpop.xlane.xlu0 %399 }
 0x148   : > { %v406_v15 = vmul.f32 0.015625, %v400_v14  ;;  %v411_v16 = vmul.f32 %v1520_v12, %v1520_v12  ;;  %v413_v17 = vmul.f32 %v1522_v13, %v1522_v13 }
 0x14a   : > { %v1528_v18 = vsub.f32 %v848_v4, %v406_v15  ;;  %v414_v19 = vsel %vm394_vm0, %v411_v16, 0.0  ;;  %v420_v20 = vsel %vm394_vm0, %v413_v17, 0.0  ;;  %v482_v4 = vld [vmem:[#allocation11] sm:$0x3] }
 0x14b   : > { %415 = vadd.xlane.f32.xlu1 %v414_v19  ;;  %v483_v5 = vunpack.c.l.bf16 %v482_v4 }
 0x14c   : > { %v412_v21 = vmul.f32 %v1528_v18, %v1528_v18 }
 0x14d   : > { %v488_v7 = vrot.slane %v483_v5, %v440_v47  ;;  %v492_v8 = vrot.slane %v483_v5, %v491_v6 }
 0x14e   : > { %v417_v22 = vsel %vm394_vm0, %v412_v21, 0.0 }
 0x14f   : > { %421 = vadd.xlane.f32.xlu1 %v420_v20  ;;  %418 = vadd.xlane.f32.xlu0 %v417_v22  ;;  %v498_v9 = vrot.slane %v488_v7, %v440_v47  ;;  %v502_v10 = vrot.slane %v492_v8, %v440_v47 }
 0x1d8   : > { %v416_v32 = vpop.xlane.xlu1 %415 }
 0x1d9   : > { %v423_v33 = vmul.f32 0.015625, %v416_v32 }
 0x1db   : > { %v426_v36 = vadd.f32 1e-06, %v423_v33 }
 0x1dc   : > { %v422_v37 = vpop.xlane.xlu1 %421  ;;  %v419_v38 = vpop.xlane.xlu0 %418 }
 0x1dd   : > { %976 = vrsqrt.f32 %v426_v36  ;;  %v425_v39 = vmul.f32 0.015625, %v422_v37  ;;  %v424_v40 = vmul.f32 0.015625, %v419_v38 }
 0x1df   : > { %v428_v43 = vadd.f32 1e-06, %v425_v39  ;;  %v427_v44 = vadd.f32 1e-06, %v424_v40 }
 0x1e1   : > { %978 = vrsqrt.f32 %v428_v43 }
 0x1e2   : > { %980 = vrsqrt.f32 %v427_v44 }
 0x1e7   : > { %v977_v50 = vpop.eup %976 }
 0x1e8   : > { %v432_v52 = vmul.f32 %v977_v50, %v1520_v12 }
 0x1ea   : > { %v442_v53 = vmul.f32 %v441_v49, %v432_v52 }
 0x1eb   : > { %v979_v54 = vpop.eup %978 }
 0x1ec   : > { %v981_v55 = vpop.eup %980  ;;  %v451_v56 = vadd.f32 %v450_v51, %v442_v53  ;;  %v434_v57 = vmul.f32 %v979_v54, %v1522_v13 }
 0x1ed   : > { %v433_v58 = vmul.f32 %v981_v55, %v1528_v18 }
 0x1ee   : > { %v839_v59 = vpack.c.bf16 %v451_v56, %v451_v56  ;;  %v444_v60 = vmul.f32 %v441_v49, %v434_v57 }
 0x1ef   : > { %v443_v61 = vmul.f32 %v441_v49, %v433_v58 }
 0x1f0   : > { %468 = vst.msk [vmem:[#allocation2] sm:$0xf] %vm467_vm1, %v839_v59  ;;  %v453_v62 = vadd.f32 %v450_v51, %v444_v60 }
 0x1f1   : > { %v452_v63 = vadd.f32 %v450_v51, %v443_v61 }
 0x1f2   : > { %v841_v0 = vpack.c.bf16 %v453_v62, %v453_v62 }
 0x1f3   : > { %v840_v1 = vpack.c.bf16 %v452_v63, %v452_v63 }
 0x1f4   : > { %470 = vst.msk [vmem:[#allocation2 + $0x8] sm:$0xf] %vm467_vm1, %v841_v0 }
 0x1f5   : > { %469 = vst.msk [vmem:[#allocation2 + $0x4] sm:$0xf] %vm467_vm1, %v840_v1 }
 0x1fb   : > { %v975_v2 = vld [vmem:[#allocation2 + $0x8] ss:$0 sps:$4 sm:$0xff]  }
 0x1fc   : > { %v974_v3 = vld [vmem:[#allocation2] sm:$0xff]   ;;  %832 = vmatmul.mubr.msk.bf16.vlgmr.msra.gmra.mrb[0].mxu1 %vm394_vm0, %v975_v2 }
 0x1fd   : > { %831 = vmatmul.mubr.msk.bf16.vlgmr.msra.gmra.mrb[0].mxu0 %vm394_vm0, %v974_v3 }
 0x2cf   : > { %v602_v11 = vpop.f32.mrb[0].mxu1 }
 0x2d0   : > { %v592_v12 = vpop.f32.mrb[0].mxu0  ;;  %v603_v13 = vadd.f32 %v602_v11, %v498_v9  ;;  %v604_v14 = vpop.f32.mrb[1].mxu1 }
 0x2d1   : > { %v593_v15 = vadd.f32 %v592_v12, %v498_v9  ;;  %v594_v16 = vpop.f32.mrb[1].mxu0  ;;  %v605_v17 = vadd.f32 %v604_v14, %v502_v10  ;;  %v606_v18 = vpop.f32.mrb[2].mxu1 }
 0x2d2   : > { %v595_v19 = vadd.f32 %v594_v16, %v502_v10  ;;  %v596_v20 = vpop.f32.mrb[2].mxu0  ;;  %v607_v21 = vpop.f32.mrb[3].mxu1 }
 0x2d3   : > { %v844_v22 = vpack.c.bf16 %v605_v17, %v603_v13  ;;  %v597_v23 = vadd.f32 %v596_v20, %v498_v9  ;;  %v598_v24 = vpop.f32.mrb[3].mxu0 }
 0x2d4   : > { %v842_v25 = vpack.c.bf16 %v595_v19, %v593_v15  ;;  %v599_v26 = vadd.f32 %v598_v24, %v502_v10 }
 0x2d5   : > { %634 = vst.msk [vmem:[%s377_s26 + $0x10] sm:$0xff] %vm631_vm4, %v844_v22 }
 0x2d6   : > { %632 = vst.msk [vmem:[%s377_s26] sm:$0xff] %vm631_vm4, %v842_v25  ;;  %v843_v27 = vpack.c.bf16 %v599_v26, %v597_v23 }
 0x2d8   : > { %633 = vst.msk [vmem:[%s377_s26 + $0x8] sm:$0xff] %vm631_vm4, %v843_v27 }
 0x2d9   : > { %1141 = shalt.err (!%p1138_p8)
}
 0x2da   : > { %s1142_s12 = scalar_lea.hbm %s1551_s21, 384  ;;  %s1146_s17 = scalar_lea.hbm %s1605_s5, 768 }
 0x2db   : > { %p1143_p0 = scmp.ne.s32.totalorder %s1551_s21, %s1142_s12  ;;  %p1147_p7 = scmp.lt.u32.totalorder %s1551_s21, %s1605_s5 }
 0x2dc   : > { %p1148_p1 = scmp.lt.u32.totalorder %s1146_s17, %s1142_s12  ;;  %p1150_p2 = scmp.lt.u32.totalorder %s1142_s12, %s1551_s21 }
 0x2dd   : > { %p1144_p5 = pnand %p1143_p0, %p1649_p4 }
 0x2de   : > { %p1149_p9 = por %p1148_p1, %p1147_p7 }
 0x2df   : > { %p1145_p12 = pneg %p1144_p5 }
 0x2e0   : > { %p1151_p10 = por %p1150_p2, %p1149_p9 }
 0x2e2   : > { %p1152_p3 = pnand %p1151_p10, %p1145_p12 }
 0x2e4   : > { %1155 = shalt.err (!%p1152_p3)
}
 0x2e5   : > { %s1231_s28 = smov 128   ;;  %s1232_s10 = smov 8  }
 0x2e6   : > { %876 = dma.vmem_to_hbm [thread:$0]  (%p1649_p4), %s1546_s25, 384, %s1551_s21, %s636_s16, %s1231_s28, %s1231_s28, %s1232_s10  }
 0x2e7 PF: > { %s1650_s15 = sld [smem:[#allocation18_spill]]  ;;  %s669_s24 = sand.u32 1, %s1198_s18  }
 0x2e8   : > { %p1651_p11 = scmp.ne.s32.totalorder %s1627_s27, 0  ;;  %s670_s26 = scalar_lea.sflag [#allocation5], %s669_s24 }
 0x2ed   : > { %p1652_p13 = scmp.ge.s32.totalorder %s1650_s15, 2 }
 0x2ef   : > { %p896_p6 = pnand %p1652_p13, %p1651_p11 }
 0x2f1   : > { %1193 = dma.done.wait (!%p896_p6), %s670_s26, 384  }
 0x2f2   : > { %1195 = vsyncadd (!%p896_p6), %s670_s26, 4294966912  ;;  %s25_s23 = sadd.s32 1, %s1650_s15   ;;  %s1653_s13 = sld [smem:[#allocation17_spill]] }
 0x2f3   : > { %p22_p8 = scmp.ge.s32.totalorder %s25_s23, 4   ;;  %s1654_s20 = sld [smem:[#allocation20_spill]] }
 0x2f4   : > { %s1655_s9 = sld [smem:[#allocation19_spill]]  ;;  %s1656_s18 = smov %s1202_s19 }
 0x2f5   : > { %s1658_s21 = smov %s1214_s22  ;;  %24 = sbr.rel (!%p22_p8) target bundleno = 12 (0xc), region = 123 }
 0x2f8   : > { %s1657_s19 = smov %s1653_s13 }
 0x2fa   : > { %s1659_s22 = smov %s1655_s9 }
 0x2fc   :  { %675 = vsyncpa [#allocation4], 1 }
 0x2fd   :  { %677 = vsyncpa [#allocation4 + $0x1], 1 }
 0x2fe   :  { %678 = vsyncpa [#allocation7], 1 }
 0x2ff   :  { %680 = vsyncpa [#allocation7 + $0x1], 1 }
 0x300   :  { %681 = vsyncpa [#allocation10], 1 }
 0x301   :  { %682 = vsyncpa [#allocation5], 1 }
 0x302   :  { %684 = vsyncpa [#allocation5 + $0x1], 1 }

// kernel: flux_transformer_block.15
= control target key start
LH: loop header
LB: loop body
LE: loop exit
PB: predicated region body
PF: predicated region fallthrough
CT: control target
= control target key end

     0   :  { %s2741_s0 = inlined_call_operand.hbm [shape: bf16[4,24,32], index: 0, kind: input, shape index: {}]   ;;  %s2742_s1 = inlined_call_operand.hbm [shape: bf16[4,24,32], index: 1, kind: input, shape index: {}]   ;;  %s2743_s2 = inlined_call_operand.hbm [shape: bf16[1,1,32], index: 2, kind: input, shape index: {}]   ;;  %s2744_s3 = inlined_call_operand.hbm [shape: bf16[1,1,32], index: 3, kind: input, shape index: {}]   ;;  %s2745_s4 = inlined_call_operand.hbm [shape: bf16[2,24,32], index: 4, kind: input, shape index: {}]   ;;  %s2746_s5 = inlined_call_operand.hbm [shape: bf16[2,24,32], index: 5, kind: input, shape index: {}]   ;;  %s2747_s6 = inlined_call_operand.hbm [shape: bf16[2,24,32], index: 6, kind: input, shape index: {}]   ;;  %s2748_s7 = inlined_call_operand.hbm [shape: bf16[4,24,32], index: 7, kind: output, shape index: {0}]   ;;  %s2749_s8 = inlined_call_operand.hbm [shape: bf16[4,24,32], index: 8, kind: output, shape index: {1}]  }
   0x1   :  { %2775 = sst [smem:[#allocation31_spill]] %s2741_s0 }
   0x2   :  { %2776 = sst [smem:[#allocation32_spill]] %s2742_s1 }
   0x3   :  { %2777 = sst [smem:[#allocation33_spill]] %s2743_s2 }
   0x4   :  { %2778 = sst [smem:[#allocation34_spill]] %s2745_s4 }
   0x5   :  { %2779 = sst [smem:[#allocation35_spill]] %s2748_s7 }
   0x6   :  { %2780 = sst [smem:[#allocation36_spill]] %s2749_s8 }
   0x7   :  { %14 = vsyncpa [#allocation3], 0 }
   0x8   :  { %16 = vsyncpa [#allocation3 + $0x1], 0 }
   0x9   :  { %17 = vsyncpa [#allocation6], 0 }
   0xa   :  { %19 = vsyncpa [#allocation6 + $0x1], 0 }
   0xb   :  { %20 = vsyncpa [#allocation9], 0 }
   0xc   :  { %21 = vsyncpa [#allocation4], 0 }
   0xd   :  { %23 = vsyncpa [#allocation4 + $0x1], 0 }
   0xe   :  { %24 = vsyncpa [#allocation15], 0 }
   0xf   :  { %26 = vsyncpa [#allocation15 + $0x1], 0  ;;  %s1989_s27 = smov 0   ;;  %s1991_s28 = smov 0  }
  0x10   :  { %s1993_s29 = smov 0   ;;  %s1995_s30 = smov 0  }
  0x11   :  { %s1997_s9 = smov 0   ;;  %s1999_s10 = smov 0  }
  0x12 LB: > { %2781 = sst [smem:[#allocation25_spill]] %s1904_s27  ;;  %s2020_s11 = sadd.s32 4294967295, %s1924_s10   ;;  %s1924_s10 = sphi %s1999_s10, %s32_s10   ;;  %s1920_s9 = sphi %s1997_s9, %s2834_s9   ;;  %s1916_s30 = sphi %s1995_s30, %s2829_s30   ;;  %s1912_s29 = sphi %s1993_s29, %s2833_s29   ;;  %s1908_s28 = sphi %s1991_s28, %s2832_s28   ;;  %s1904_s27 = sphi %s1989_s27, %s2831_s27  }
  0x13   : > { %2782 = sst [smem:[#allocation26_spill]] %s1920_s9  ;;  %s1326_s12 = sadd.s32 4294967294, %s1924_s10  }
  0x14   : > { %p60_p0 = scmp.ne.s32.totalorder %s1912_s29, %s1908_s28  ;;  %p61_p1 = scmp.eq.s32.totalorder %s1924_s10, 0 }
  0x15   : > { %p66_p2 = scmp.ne.s32.totalorder %s1908_s28, %s1904_s27  ;;  %p2752_p3 = scmp.eq.s32.totalorder %s2020_s11, 0 }
  0x16   : > { %p246_p4 = scmp.eq.s32.totalorder %s2020_s11, 1  ;;  %p2031_p5 = por %p61_p1, %p60_p0 }
  0x17   : > { %p252_p6 = scmp.eq.s32.totalorder %s1326_s12, 1  ;;  %p2037_p7 = por %p2752_p3, %p66_p2 }
  0x18   : > { %p2041_p8 = por %p246_p4, %p60_p0  ;;  %p1327_p10 = scmp.ge.s32.totalorder %s1924_s10, 1 }
  0x19   : > { %s2784_s15 = scalar_select %p2037_p7, 1, 0 }
  0x1a   : > { %s2785_s16 = scalar_select %p2041_p8, 1, 0 }
  0x1b   : > { %p2045_p9 = por %p252_p6, %p66_p2  ;;  %p287_p11 = scmp.lt.s32.totalorder %s1924_s10, 3 }
  0x1c   : > { %2786 = sst [smem:[#allocation27_spill]] %s2785_s16  ;;  %s1926_s19 = smov [#allocation7]  }
  0x1d   : > { %s2787_s17 = scalar_select %p2045_p9, 1, 0 }
  0x1e   : > { %p2052_p13 = pnand %p1327_p10, %p287_p11  ;;  %s300_s20 = sshll.u32 %s1926_s19, 4  ;;  %s301_s20 = int_to_ptr.vmem [resolvable:$true] %s300_s20 }
  0x1f   : > { %2788 = sst [smem:[#allocation28_spill]] %s2787_s17  ;;  %p1483_p1 = scmp.lt.s32.totalorder %s1924_s10, 2 }
  0x20   : > { %s2789_s18 = scalar_select %p2052_p13, 1, 0 }
  0x21   : > { %p1451_p0 = pneg %p2052_p13  ;;  %p2061_p4 = pnand %p1483_p1, %p2031_p5 }
  0x22   : > { %s44_s23 = sadd.s32 1, %s1920_s9  ;;  %s2793_s2 = sld [smem:[#allocation33_spill]] }
  0x23   : > { %s2790_s21 = scalar_select %p2061_p4, 1, 0 }
  0x24   : > { %p2067_p2 = pnand %p1451_p0, %p2752_p3  ;;  %p2072_p6 = scmp.ge.s32.totalorder %s44_s23, 2 }
  0x26   : > { %s2791_s22 = scalar_select %p2067_p2, 1, 0 }
  0x27   : > { %s2792_s24 = scalar_select %p2072_p6, 1, 0 }
  0x28   : > { %s1580_s14 = scalar_lea.hbm %s2793_s2, 16  ;;  %p2760_p10 = pneg %p2067_p2 }
  0x29   : > { %p1581_p5 = scmp.ne.s32.totalorder %s2793_s2, %s1580_s14  ;;  %p1587_p0 = scmp.lt.u32.totalorder %s1580_s14, %s2793_s2 }
  0x2b   : > { %p1583_p11 = pnand %p2760_p10, %p1581_p5 }
  0x2d   : > { %p1584_p1 = pneg %p1583_p11 }
  0x2f   : > { %p1589_p12 = pnand %p1587_p0, %p1584_p1 }
  0x31   : > { %1592 = shalt.err (!%p1589_p12)
}
  0x32   : > { %s1593_s25 = scalar_lea.vmem %s301_s20, 16  ;;  %s1600_s13 = scalar_lea.vmem %s301_s20, 32 }
  0x33   : > { %p1594_p3 = scmp.ne.s32.totalorder %s301_s20, %s1593_s25  ;;  %p1601_p7 = scmp.lt.s32.totalorder %s301_s20, %s301_s20 }
  0x34   : > { %p1602_p13 = scmp.lt.s32.totalorder %s1600_s13, %s1593_s25 }
  0x35   : > { %p1596_p9 = pnand %p1594_p3, %p2760_p10 }
  0x36   : > { %p1603_p4 = por %p1602_p13, %p1601_p7 }
  0x37   : > { %p1597_p8 = pneg %p1596_p9 }
  0x39   : > { %p1604_p6 = pnand %p1603_p4, %p1597_p8 }
  0x3b   : > { %1607 = shalt.err (!%p1604_p6)
}
  0x3c   : > { %1454 = dma.hbm_to_vmem [thread:$0]  (!%p2067_p2), %s2793_s2, 16, %s301_s20, [#allocation6]  }
  0x3d   : > { %p2794_p3 = scmp.ne.s32.totalorder %s2792_s24, 0  ;;  %s2757_s17 = sand.u32 1, %s1912_s29  }
  0x3e   : > { %s2108_s12 = smul.u32 24, %s2757_s17  ;;  %s2796_s19 = sadd.s32 1, %s1912_s29 }
  0x3f   : > { %s2836_s23 = smov (%p2794_p3, %s44_s23), 0  ;;  %s2759_s14 = smul.u32 384, %s1920_s9 }
  0x40   : > { %2795 = sst [smem:[#allocation29_spill]] %s2836_s23  ;;  %s48_s25 = ssub.s32 %s1920_s9, %s2836_s23 }
  0x41   : > { %p51_p7 = scmp.eq.s32.totalorder %s48_s25, 0  ;;  %s2798_s0 = sld [smem:[#allocation31_spill]] }
  0x42   : > { %s326_s24 = scalar_lea.vmem [#allocation2], %s2108_s12  ;;  %s2799_s17 = sand.u32 1, %s1924_s10  }
  0x43   : > { %s2114_s13 = scalar_select %p51_p7, %s1912_s29, %s2796_s19  }
  0x44   : > { %s336_s2 = sshll.u32 %s326_s24, 4  ;;  %s2128_s25 = scalar_lea.sflag [#allocation3], %s2799_s17  ;;  %s2124_s2 = int_to_ptr.vmem [resolvable:$true] %s336_s2 }
  0x45   : > { %2797 = sst [smem:[#allocation30_spill]] %s2114_s13  ;;  %p2800_p9 = scmp.ne.s32.totalorder %s2790_s21, 0 }
  0x47   : > { %s2121_s20 = scalar_lea.hbm %s2798_s0, %s2759_s14  ;;  %p2134_p12 = pneg %p2800_p9 }
  0x48   : > { %s1608_s23 = scalar_lea.hbm %s2121_s20, 384  ;;  %s1613_s24 = scalar_lea.hbm %s2798_s0, 768 }
  0x49   : > { %p1609_p8 = scmp.ne.s32.totalorder %s2121_s20, %s1608_s23  ;;  %p1614_p6 = scmp.lt.u32.totalorder %s2121_s20, %s2798_s0 }
  0x4a   : > { %s2801_s19 = scalar_select %p2134_p12, 1, 0 }
  0x4b   : > { %p1611_p13 = pnand %p2134_p12, %p1609_p8  ;;  %p1615_p5 = scmp.lt.u32.totalorder %s1613_s24, %s1608_s23 }
  0x4c   : > { %p1617_p1 = scmp.lt.u32.totalorder %s1608_s23, %s2121_s20 }
  0x4d   : > { %p1612_p4 = pneg %p1611_p13  ;;  %p1616_p11 = por %p1615_p5, %p1614_p6 }
  0x4f   : > { %p1618_p0 = por %p1617_p1, %p1616_p11 }
  0x51   : > { %p1619_p3 = pnand %p1618_p0, %p1612_p4 }
  0x53   : > { %1622 = shalt.err (!%p1619_p3)
}
  0x54   : > { %s1623_s17 = scalar_lea.vmem %s2124_s2, 384  ;;  %s1927_s26 = smov [#allocation2]  }
  0x55   : > { %p1624_p7 = scmp.ne.s32.totalorder %s2124_s2, %s1623_s17  ;;  %s1628_s27 = sshll.u32 %s1927_s26, 4  ;;  %s1629_s27 = int_to_ptr.vmem [resolvable:$false] %s1628_s27 }
  0x56   : > { %s1630_s14 = scalar_lea.vmem %s1629_s27, 768  ;;  %p1631_p10 = scmp.lt.s32.totalorder %s2124_s2, %s1629_s27 }
  0x57   : > { %p1626_p8 = pnand %p1624_p7, %p2134_p12  ;;  %p1632_p2 = scmp.lt.s32.totalorder %s1630_s14, %s1623_s17 }
  0x59   : > { %p1627_p13 = pneg %p1626_p8  ;;  %p1633_p6 = por %p1632_p2, %p1631_p10 }
  0x5b   : > { %p1634_p5 = pnand %p1633_p6, %p1627_p13 }
  0x5d   : > { %1637 = shalt.err (!%p1634_p5)
}
  0x5e   : > { %s2767_s23 = smov 64   ;;  %s2769_s13 = smov 4  }
  0x5f   : > { %1461 = dma.hbm_to_vmem [thread:$0]  (!%p2800_p9), %s2121_s20, 384, %s2124_s2, %s2128_s25, %s2767_s23, %s2767_s23, %s2769_s13  }
  0x60   : > { %s2802_s24 = sand.u32 1, %s1912_s29   ;;  %s2803_s26 = smul.u32 384, %s1920_s9 }
  0x61   : > { %s2163_s17 = smul.u32 12, %s2802_s24  ;;  %s2804_s1 = sld [smem:[#allocation32_spill]] }
  0x62   : > { %s350_s8 = scalar_lea.vmem [#allocation5], %s2108_s12  ;;  %s2176_s16 = smul.u32 192, %s1920_s9 }
  0x63   : > { %s360_s7 = sshll.u32 %s350_s8, 4  ;;  %s2805_s2 = sand.u32 1, %s1924_s10   ;;  %s2173_s7 = int_to_ptr.vmem [resolvable:$true] %s360_s7 }
  0x64   : > { %s2180_s20 = scalar_lea.sflag [#allocation6], %s2805_s2 }
  0x67   : > { %s2170_s0 = scalar_lea.hbm %s2804_s1, %s2803_s26  ;;  %s1643_s14 = scalar_lea.hbm %s2804_s1, 768 }
  0x68   : > { %s1638_s24 = scalar_lea.hbm %s2170_s0, 384  ;;  %p1644_p11 = scmp.lt.u32.totalorder %s2170_s0, %s2804_s1 }
  0x69   : > { %p1639_p2 = scmp.ne.s32.totalorder %s2170_s0, %s1638_s24  ;;  %p1645_p1 = scmp.lt.u32.totalorder %s1643_s14, %s1638_s24 }
  0x6a   : > { %p1647_p3 = scmp.lt.u32.totalorder %s1638_s24, %s2170_s0 }
  0x6b   : > { %p1641_p10 = pnand %p1639_p2, %p2134_p12  ;;  %p1646_p0 = por %p1645_p1, %p1644_p11 }
  0x6d   : > { %p1642_p4 = pneg %p1641_p10  ;;  %p1648_p7 = por %p1647_p3, %p1646_p0 }
  0x6f   : > { %p1649_p8 = pnand %p1648_p7, %p1642_p4 }
  0x71   : > { %1652 = shalt.err (!%p1649_p8)
}
  0x72   : > { %s1653_s8 = scalar_lea.vmem %s2173_s7, 384  ;;  %s1930_s12 = smov [#allocation5]  }
  0x73   : > { %p1654_p13 = scmp.ne.s32.totalorder %s2173_s7, %s1653_s8  ;;  %s1658_s2 = sshll.u32 %s1930_s12, 4  ;;  %s1659_s2 = int_to_ptr.vmem [resolvable:$false] %s1658_s2 }
  0x74   : > { %s1660_s23 = scalar_lea.vmem %s1659_s2, 768  ;;  %p1661_p2 = scmp.lt.s32.totalorder %s2173_s7, %s1659_s2 }
  0x75   : > { %p1656_p6 = pnand %p1654_p13, %p2134_p12  ;;  %p1662_p10 = scmp.lt.s32.totalorder %s1660_s23, %s1653_s8 }
  0x77   : > { %p1657_p5 = pneg %p1656_p6  ;;  %p1663_p11 = por %p1662_p10, %p1661_p2 }
  0x79   : > { %p1664_p1 = pnand %p1663_p11, %p1657_p5 }
  0x7b   : > { %1667 = shalt.err (!%p1664_p1)
}
  0x7c   : > { %s2806_s13 = smov 4   ;;  %s2807_s24 = smov 64  }
  0x7d   : > { %1464 = dma.hbm_to_vmem [thread:$0]  (!%p2800_p9), %s2170_s0, 384, %s2173_s7, %s2180_s20, %s2807_s24, %s2807_s24, %s2806_s13  }
  0x7e   : > { %s2808_s4 = sld [smem:[#allocation34_spill]]  ;;  %s374_s8 = scalar_lea.vmem [#allocation10], %s2163_s17 }
  0x7f   : > { %s383_s12 = sshll.u32 %s374_s8, 4  ;;  %s2214_s12 = int_to_ptr.vmem [resolvable:$true] %s383_s12 }
  0x84   : > { %s2211_s14 = scalar_lea.hbm %s2808_s4, %s2176_s16  ;;  %s1673_s7 = scalar_lea.hbm %s2808_s4, 384 }
  0x85   : > { %s1668_s2 = scalar_lea.hbm %s2211_s14, 192  ;;  %p1674_p7 = scmp.lt.u32.totalorder %s2211_s14, %s2808_s4 }
  0x86   : > { %p1669_p4 = scmp.ne.s32.totalorder %s2211_s14, %s1668_s2  ;;  %p1675_p8 = scmp.lt.u32.totalorder %s1673_s7, %s1668_s2 }
  0x87   : > { %p1677_p6 = scmp.lt.u32.totalorder %s1668_s2, %s2211_s14 }
  0x88   : > { %p1671_p0 = pnand %p1669_p4, %p2134_p12  ;;  %p1676_p13 = por %p1675_p8, %p1674_p7 }
  0x8a   : > { %p1672_p3 = pneg %p1671_p0  ;;  %p1678_p5 = por %p1677_p6, %p1676_p13 }
  0x8c   : > { %p1679_p2 = pnand %p1678_p5, %p1672_p3 }
  0x8e   : > { %1682 = shalt.err (!%p1679_p2)
}
  0x8f   : > { %s1683_s8 = scalar_lea.vmem %s2214_s12, 192  ;;  %s1931_s23 = smov [#allocation10]  }
  0x90   : > { %p1684_p10 = scmp.ne.s32.totalorder %s2214_s12, %s1683_s8  ;;  %s1688_s0 = sshll.u32 %s1931_s23, 4  ;;  %s1689_s0 = int_to_ptr.vmem [resolvable:$false] %s1688_s0 }
  0x91   : > { %s1690_s26 = scalar_lea.vmem %s1689_s0, 384  ;;  %p1691_p4 = scmp.lt.s32.totalorder %s2214_s12, %s1689_s0 }
  0x92   : > { %p1686_p11 = pnand %p1684_p10, %p2134_p12  ;;  %p1692_p0 = scmp.lt.s32.totalorder %s1690_s26, %s1683_s8 }
  0x94   : > { %p1687_p1 = pneg %p1686_p11  ;;  %p1693_p7 = por %p1692_p0, %p1691_p4 }
  0x96   : > { %p1694_p8 = pnand %p1693_p7, %p1687_p1 }
  0x98   : > { %1697 = shalt.err (!%p1694_p8)
}
  0x99   : > { %1467 = dma.hbm_to_vmem [thread:$0]  (!%p2800_p9), %s2211_s14, 192, %s2214_s12, %s2128_s25, %s2807_s24, %s2807_s24, %s2806_s13  }
  0x9a   : > { %s1932_s2 = smov [#allocation8]   ;;  %s2245_s8 = scalar_lea.hbm %s2746_s5, %s2176_s16 }
  0x9b   : > { %s311_s7 = sshll.u32 %s1932_s2, 4  ;;  %s1698_s1 = scalar_lea.hbm %s2744_s3, 16  ;;  %s312_s7 = int_to_ptr.vmem [resolvable:$true] %s311_s7 }
  0x9c   : > { %p1699_p3 = scmp.ne.s32.totalorder %s2744_s3, %s1698_s1  ;;  %p2809_p13 = scmp.ne.s32.totalorder %s2791_s22, 0 }
  0x9d   : > { %p1705_p10 = scmp.lt.u32.totalorder %s1698_s1, %s2744_s3 }
  0x9e   : > { %p2810_p6 = pneg %p2809_p13 }
  0xa0   : > { %p1701_p5 = pnand %p1699_p3, %p2810_p6 }
  0xa2   : > { %p1702_p2 = pneg %p1701_p5 }
  0xa4   : > { %p1707_p11 = pnand %p1705_p10, %p1702_p2 }
  0xa6   : > { %1710 = shalt.err (!%p1707_p11)
}
  0xa7   : > { %s1711_s2 = scalar_lea.vmem %s312_s7, 16  ;;  %p2811_p4 = pmov %p2810_p6 }
  0xa8   : > { %p1712_p1 = scmp.ne.s32.totalorder %s312_s7, %s1711_s2  ;;  %s1718_s27 = scalar_lea.vmem %s312_s7, 32 }
  0xa9   : > { %p1719_p8 = scmp.lt.s32.totalorder %s312_s7, %s312_s7  ;;  %p1720_p9 = scmp.lt.s32.totalorder %s1718_s27, %s1711_s2 }
  0xaa   : > { %p1714_p0 = pnand %p1712_p1, %p2811_p4 }
  0xab   : > { %p1721_p12 = por %p1720_p9, %p1719_p8 }
  0xac   : > { %p1715_p7 = pneg %p1714_p0 }
  0xae   : > { %p1722_p3 = pnand %p1721_p12, %p1715_p7 }
  0xb0   : > { %1725 = shalt.err (!%p1722_p3)
}
  0xb1   : > { %1457 = dma.hbm_to_vmem [thread:$0]  (!%p2809_p13), %s2744_s3, 16, %s312_s7, [#allocation9]  }
  0xb2   : > { %s397_s1 = scalar_lea.vmem [#allocation11], %s2163_s17  ;;  %s2274_s14 = scalar_lea.hbm %s2747_s6, %s2176_s16 }
  0xb3   : > { %s406_s23 = sshll.u32 %s397_s1, 4  ;;  %s1726_s22 = scalar_lea.hbm %s2245_s8, 192  ;;  %s2268_s23 = int_to_ptr.vmem [resolvable:$true] %s406_s23 }
  0xb4   : > { %p1727_p9 = scmp.ne.s32.totalorder %s2245_s8, %s1726_s22  ;;  %p2812_p12 = scmp.ne.s32.totalorder %s2801_s19, 0 }
  0xb5   : > { %s1731_s27 = scalar_lea.hbm %s2746_s5, 384  ;;  %p1732_p13 = scmp.lt.u32.totalorder %s2245_s8, %s2746_s5 }
  0xb6   : > { %p1729_p6 = pnand %p1727_p9, %p2812_p12  ;;  %p1733_p2 = scmp.lt.u32.totalorder %s1731_s27, %s1726_s22 }
  0xb7   : > { %p1735_p11 = scmp.lt.u32.totalorder %s1726_s22, %s2245_s8 }
  0xb8   : > { %p1730_p5 = pneg %p1729_p6  ;;  %p1734_p10 = por %p1733_p2, %p1732_p13 }
  0xba   : > { %p1736_p1 = por %p1735_p11, %p1734_p10 }
  0xbc   : > { %p1737_p4 = pnand %p1736_p1, %p1730_p5 }
  0xbe   : > { %1740 = shalt.err (!%p1737_p4)
}
  0xbf   : > { %s1741_s16 = scalar_lea.vmem %s2268_s23, 192  ;;  %s1933_s9 = smov [#allocation11]  }
  0xc0   : > { %p1742_p0 = scmp.ne.s32.totalorder %s2268_s23, %s1741_s16  ;;  %s1746_s1 = sshll.u32 %s1933_s9, 4  ;;  %s1747_s1 = int_to_ptr.vmem [resolvable:$false] %s1746_s1 }
  0xc1   : > { %s1748_s0 = scalar_lea.vmem %s1747_s1, 384  ;;  %p1749_p3 = scmp.lt.s32.totalorder %s2268_s23, %s1747_s1 }
  0xc2   : > { %p1744_p7 = pnand %p1742_p0, %p2812_p12  ;;  %p1750_p9 = scmp.lt.s32.totalorder %s1748_s0, %s1741_s16 }
  0xc4   : > { %p1745_p8 = pneg %p1744_p7  ;;  %p1751_p6 = por %p1750_p9, %p1749_p3 }
  0xc6   : > { %p1752_p13 = pnand %p1751_p6, %p1745_p8 }
  0xc8   : > { %1755 = shalt.err (!%p1752_p13)
}
  0xc9   : > { %p2813_p5 = scmp.ne.s32.totalorder %s2790_s21, 0  ;;  %s420_s26 = scalar_lea.vmem [#allocation12], %s2163_s17 }
  0xca   : > { %s429_s22 = sshll.u32 %s420_s26, 4  ;;  %s1756_s12 = scalar_lea.hbm %s2274_s14, 192  ;;  %s2302_s22 = int_to_ptr.vmem [resolvable:$true] %s429_s22 }
  0xcb   : > { %1470 = dma.hbm_to_vmem [thread:$0]  (!%p2813_p5), %s2245_s8, 192, %s2268_s23, %s2180_s20, %s2807_s24, %s2807_s24, %s2806_s13  }
  0xcc   : > { %p1757_p2 = scmp.ne.s32.totalorder %s2274_s14, %s1756_s12  ;;  %s1761_s4 = scalar_lea.hbm %s2747_s6, 384 }
  0xcd   : > { %p1762_p1 = scmp.lt.u32.totalorder %s2274_s14, %s2747_s6  ;;  %p1763_p4 = scmp.lt.u32.totalorder %s1761_s4, %s1756_s12 }
  0xce   : > { %p1759_p10 = pnand %p1757_p2, %p2812_p12  ;;  %p1765_p7 = scmp.lt.u32.totalorder %s1756_s12, %s2274_s14 }
  0xcf   : > { %p1764_p0 = por %p1763_p4, %p1762_p1 }
  0xd0   : > { %p1760_p11 = pneg %p1759_p10 }
  0xd1   : > { %p1766_p8 = por %p1765_p7, %p1764_p0 }
  0xd3   : > { %p1767_p3 = pnand %p1766_p8, %p1760_p11 }
  0xd5   : > { %1770 = shalt.err (!%p1767_p3)
}
  0xd6   : > { %s1771_s17 = scalar_lea.vmem %s2302_s22, 192  ;;  %s1934_s20 = smov [#allocation12]  }
  0xd7   : > { %p1772_p9 = scmp.ne.s32.totalorder %s2302_s22, %s1771_s17  ;;  %s1776_s8 = sshll.u32 %s1934_s20, 4  ;;  %s1777_s8 = int_to_ptr.vmem [resolvable:$false] %s1776_s8 }
  0xd8   : > { %s1778_s23 = scalar_lea.vmem %s1777_s8, 384  ;;  %p1779_p2 = scmp.lt.s32.totalorder %s2302_s22, %s1777_s8 }
  0xd9   : > { %p1774_p6 = pnand %p1772_p9, %p2812_p12  ;;  %p1780_p10 = scmp.lt.s32.totalorder %s1778_s23, %s1771_s17 }
  0xdb   : > { %p1775_p13 = pneg %p1774_p6  ;;  %p1781_p1 = por %p1780_p10, %p1779_p2 }
  0xdd   : > { %p1782_p4 = pnand %p1781_p1, %p1775_p13 }
  0xdf   : > { %1785 = shalt.err (!%p1782_p4)
}
  0xe0   : > { %1473 = dma.hbm_to_vmem [thread:$0]  (!%p2813_p5), %s2274_s14, 192, %s2302_s22, %s2128_s25, %s2807_s24, %s2807_s24, %s2806_s13  }
  0xe1   : > { %p2814_p12 = scmp.ne.s32.totalorder %s2789_s18, 0 }
  0xe2   : > { %s443_s19 = sand.u32 (!%p2814_p12), 1, %s2020_s11   ;;  %s2333_s9 = sand.u32 (!%p2814_p12), 1, %s1908_s28  }
  0xe3   : > { %441 = sbr.rel (%p2814_p12) target bundleno = 856 (0x358), region = 48  ;;  %s444_s21 = scalar_lea.sflag (!%p2814_p12), [#allocation3], %s443_s19 }
  0xe4   : > { %s2336_s1 = smul.u32 (!%p2814_p12), 24, %s2333_s9  ;;  %p2815_p11 = scmp.ne.s32.totalorder (!%p2814_p12), %s2784_s15, 0 }
  0xe6   : > { %s447_s0 = scalar_lea.vmem (!%p2814_p12), [#allocation2], %s2336_s1 }
  0xea   : > { %1867 = dma.done.wait (%p2815_p11), %s444_s21, 384  }
  0xeb   : > { %1869 = vsyncadd (%p2815_p11), %s444_s21, 4294966912  ;;  %s453_s18 = scalar_lea.sflag [#allocation6], %s443_s19  ;;  %s2344_s25 = scalar_lea.vmem [#allocation5], %s2336_s1 }
  0xec   : > { %1871 = dma.done.wait (%p2815_p11), %s453_s18, 384  }
  0xed   : > { %1873 = vsyncadd (%p2815_p11), %s453_s18, 4294966912  ;;  %p2816_p5 = scmp.eq.s32.totalorder %s2020_s11, 0 }
  0xef   : > { %1875 = dma.done.wait (%p2816_p5), [#allocation6], 16   ;;  %p2817_p0 = pmov %p2816_p5 }
  0xf1   : > { %1877 = vsyncadd (%p2817_p0), [#allocation6], 4294967280  ;;  %p2818_p7 = pmov %p2817_p0 }
  0xf2   : > { %p2819_p8 = pmov %p2817_p0 }
  0xf3   : > { %1879 = dma.done.wait (%p2818_p7), [#allocation9], 16  }
  0xf4   : > { %1881 = vsyncadd (%p2819_p8), [#allocation9], 4294967280  ;;  %s2359_s13 = smul.u32 12, %s2333_s9 }
  0xf6   : > { %s473_s24 = scalar_lea.vmem [#allocation10], %s2359_s13 }
  0xf7   : > { %1883 = dma.done.wait (%p2815_p11), %s444_s21, 192  }
  0xf8   : > { %1885 = vsyncadd (%p2815_p11), %s444_s21, 4294967104  ;;  %s482_s14 = scalar_lea.vmem [#allocation11], %s2359_s13 }
  0xf9   : > { %1887 = dma.done.wait (%p2815_p11), %s453_s18, 192  }
  0xfa   : > { %1889 = vsyncadd (%p2815_p11), %s453_s18, 4294967104  ;;  %s491_s11 = scalar_lea.vmem [#allocation12], %s2359_s13 }
  0xfb   : > { %1891 = dma.done.wait (%p2815_p11), %s444_s21, 192  }
  0xfc   : > { %1893 = vsyncadd (%p2815_p11), %s444_s21, 4294967104  ;;  %v1388_v0 = vld [vmem:[%s447_s0] sm:$0xff]   ;;  %v1411_v1 = vld [vmem:[%s447_s0 + $0x8] sm:$0xff]   ;;  %vm596_vm0 = vcmask 261120   ;;  %v642_v46 = vlaneseq  ;;  %s1935_s15 = smov 32   ;;  %s1936_s26 = smov 1  }
  0xfd   : > { %v1412_v2 = vld [vmem:[%s447_s0 + $0x10] sm:$0xff]   ;;  %v2376_v3 = vunpack.c.l.bf16 %v1388_v0  ;;  %v2378_v4 = vunpack.c.h.bf16 %v1388_v0  ;;  %v2380_v5 = vunpack.c.l.bf16 %v1411_v1  ;;  %v2384_v7 = vunpack.c.h.bf16 %v1411_v1  ;;  %v1413_v21 = vld [vmem:[%s2344_s25 + $0x8] sm:$0xff]   ;;  %v1414_v29 = vld [vmem:[%s2344_s25 + $0x10] sm:$0xff]   ;;  %s1937_s22 = smov 31   ;;  %s1938_s12 = smov 127  }
  0xfe   : > { %v2382_v6 = vunpack.c.l.bf16 %v1412_v2  ;;  %v1400_v11 = vld [vmem:[%s2344_s25] sm:$0xff]   ;;  %v2393_v12 = vunpack.c.h.bf16 %v1412_v2  ;;  %v2412_v24 = vunpack.c.l.bf16 %v1413_v21  ;;  %v2418_v28 = vunpack.c.h.bf16 %v1413_v21  ;;  %v640_v56 = vld [vmem:[#allocation7] sm:$0x1]  ;;  %s1939_s2 = smov 97   ;;  %s541_s27 = scalar_lea.vmem [#allocation13], %s2336_s1 }
  0xff   : > { %v590_v8 = vmul.f32 %v2376_v3, %v2376_v3  ;;  %v591_v9 = vmul.f32 %v2378_v4, %v2378_v4  ;;  %v592_v10 = vmul.f32 %v2380_v5, %v2380_v5  ;;  %v593_v13 = vmul.f32 %v2384_v7, %v2384_v7  ;;  %s1070_s4 = sshll.u32 %s541_s27, 4  ;;  %s1427_s7 = smul.u32 384, %s1916_s30  ;;  %s2623_s4 = int_to_ptr.vmem [resolvable:$true] %s1070_s4 }
 0x100   : > { %v594_v16 = vmul.f32 %v2382_v6, %v2382_v6  ;;  %v2401_v17 = vunpack.c.l.bf16 %v1400_v11  ;;  %v595_v20 = vmul.f32 %v2393_v12, %v2393_v12  ;;  %v2408_v22 = vunpack.c.h.bf16 %v1400_v11  ;;  %s2820_s16 = sld [smem:[#allocation27_spill]]  ;;  %s2821_s8 = sld [smem:[#allocation35_spill]] }
 0x101   : > { %v597_v14 = vsel %vm596_vm0, %v590_v8, 0.0  ;;  %v603_v15 = vsel %vm596_vm0, %v592_v10, 0.0  ;;  %v600_v18 = vsel %vm596_vm0, %v591_v9, 0.0  ;;  %v606_v19 = vsel %vm596_vm0, %v593_v13, 0.0  ;;  %s1049_s19 = scalar_lea.sflag [#allocation4], %s2333_s9  ;;  %s1786_s21 = scalar_lea.vmem %s2623_s4, 384 }
 0x102   : > { %598 = vadd.xlane.f32.xlu0 %v597_v14  ;;  %604 = vadd.xlane.f32.xlu1 %v603_v15  ;;  %v842_v23 = vmul.f32 %v2401_v17, %v2401_v17  ;;  %v609_v25 = vsel %vm596_vm0, %v594_v16, 0.0  ;;  %v612_v26 = vsel %vm596_vm0, %v595_v20, 0.0  ;;  %v843_v27 = vmul.f32 %v2408_v22, %v2408_v22  ;;  %p1787_p3 = scmp.ne.s32.totalorder %s2623_s4, %s1786_s21  ;;  %s1940_s0 = smov [#allocation13]  }
 0x103   : > { %v844_v31 = vmul.f32 %v2412_v24, %v2412_v24  ;;  %v2425_v33 = vunpack.c.l.bf16 %v1414_v29  ;;  %v845_v34 = vmul.f32 %v2418_v28, %v2418_v28  ;;  %v2429_v35 = vunpack.c.h.bf16 %v1414_v29  ;;  %v890_v29 = vld [vmem:[#allocation8] sm:$0x1]  ;;  %s1790_s18 = sshll.u32 %s1940_s0, 4  ;;  %s1791_s18 = int_to_ptr.vmem [resolvable:$false] %s1790_s18 }
 0x104   : > { %v848_v30 = vsel %vm596_vm0, %v842_v23, 0.0  ;;  %v851_v32 = vsel %vm596_vm0, %v843_v27, 0.0  ;;  %v643_v53 = vshrl.u32 %v642_v46, 7  ;;  %v641_v61 = vunpack.c.l.bf16 %v640_v56  ;;  %s1792_s25 = scalar_lea.vmem %s1791_s18, 768  ;;  %p1793_p2 = scmp.lt.s32.totalorder %s2623_s4, %s1791_s18 }
 0x105   : > { %v854_v36 = vsel %vm596_vm0, %v844_v31, 0.0  ;;  %v846_v37 = vmul.f32 %v2425_v33, %v2425_v33  ;;  %v857_v38 = vsel %vm596_vm0, %v845_v34, 0.0  ;;  %v847_v39 = vmul.f32 %v2429_v35, %v2429_v35  ;;  %p1794_p10 = scmp.lt.s32.totalorder %s1792_s25, %s1786_s21 }
 0x106   : > { %601 = vadd.xlane.f32.xlu0 %v600_v18  ;;  %607 = vadd.xlane.f32.xlu1 %v606_v19  ;;  %v644_v62 = vsub.s32 0, %v643_v53  ;;  %vm652_vm1 = vcmask 1047808   ;;  %vm823_vm2 = vcmask 257024   ;;  %s2632_s23 = scalar_lea.hbm %s2821_s8, %s1427_s7  ;;  %p2822_p9 = scmp.ne.s32.totalorder %s2820_s16, 0 }
 0x107   : > { %v860_v40 = vsel %vm596_vm0, %v846_v37, 0.0  ;;  %v863_v41 = vsel %vm596_vm0, %v847_v39, 0.0  ;;  %v891_v39 = vunpack.c.l.bf16 %v890_v29  ;;  %p1795_p1 = por %p1794_p10, %p1793_p2 }
 0x108   : > { %v645_v10 = vrot.slane %v641_v61, %v644_v62  ;;  %p1788_p6 = pnand %p1787_p3, %p2822_p9 }
 0x109   : > { %v895_v46 = vrot.slane %v891_v39, %v644_v62 }
 0x10a   : > { %610 = vadd.xlane.f32.xlu0 %v609_v25  ;;  %613 = vadd.xlane.f32.xlu1 %v612_v26  ;;  %p1789_p13 = pneg %p1788_p6 }
 0x10c   : > { %p1796_p4 = pnand %p1795_p1, %p1789_p13 }
 0x10e   : > { %849 = vadd.xlane.f32.xlu0 %v848_v30  ;;  %852 = vadd.xlane.f32.xlu1 %v851_v32 }
 0x112   : > { %855 = vadd.xlane.f32.xlu0 %v854_v36  ;;  %858 = vadd.xlane.f32.xlu1 %v857_v38 }
 0x116   : > { %861 = vadd.xlane.f32.xlu0 %v860_v40  ;;  %864 = vadd.xlane.f32.xlu1 %v863_v41 }
 0x18f   : > { %v599_v42 = vpop.xlane.xlu0 %598  ;;  %v605_v43 = vpop.xlane.xlu1 %604 }
 0x190   : > { %v616_v44 = vmul.f32 0.03125, %v599_v42  ;;  %v618_v45 = vmul.f32 0.03125, %v605_v43 }
 0x192   : > { %v622_v47 = vadd.f32 1e-06, %v616_v44  ;;  %v624_v48 = vadd.f32 1e-06, %v618_v45 }
 0x193   : > { %v602_v49 = vpop.xlane.xlu0 %601  ;;  %v608_v50 = vpop.xlane.xlu1 %607 }
 0x194   : > { %1556 = vrsqrt.f32 %v622_v47  ;;  %v617_v51 = vmul.f32 0.03125, %v602_v49  ;;  %v619_v52 = vmul.f32 0.03125, %v608_v50 }
 0x195   : > { %1558 = vrsqrt.f32 %v624_v48 }
 0x196   : > { %v623_v54 = vadd.f32 1e-06, %v617_v51  ;;  %v625_v55 = vadd.f32 1e-06, %v619_v52 }
 0x197   : > { %v611_v57 = vpop.xlane.xlu0 %610  ;;  %v614_v58 = vpop.xlane.xlu1 %613 }
 0x198   : > { %1560 = vrsqrt.f32 %v623_v54  ;;  %v620_v59 = vmul.f32 0.03125, %v611_v57  ;;  %v621_v60 = vmul.f32 0.03125, %v614_v58 }
 0x199   : > { %1562 = vrsqrt.f32 %v625_v55 }
 0x19a   : > { %v626_v63 = vadd.f32 1e-06, %v620_v59  ;;  %v627_v0 = vadd.f32 1e-06, %v621_v60 }
 0x19b   : > { %v850_v1 = vpop.xlane.xlu0 %849  ;;  %v853_v2 = vpop.xlane.xlu1 %852 }
 0x19c   : > { %1564 = vrsqrt.f32 %v626_v63  ;;  %v866_v8 = vmul.f32 0.03125, %v850_v1  ;;  %v867_v9 = vmul.f32 0.03125, %v853_v2 }
 0x19d   : > { %1566 = vrsqrt.f32 %v627_v0 }
 0x19e   : > { %v1557_v11 = vpop.eup %1556  ;;  %v872_v13 = vadd.f32 1e-06, %v866_v8  ;;  %v873_v14 = vadd.f32 1e-06, %v867_v9 }
 0x19f   : > { %v856_v15 = vpop.xlane.xlu0 %855  ;;  %v634_v16 = vmul.f32 %v1557_v11, %v2376_v3  ;;  %v859_v18 = vpop.xlane.xlu1 %858 }
 0x1a0   : > { %v1559_v19 = vpop.eup %1558  ;;  %1568 = vrsqrt.f32 %v872_v13  ;;  %v868_v20 = vmul.f32 0.03125, %v856_v15  ;;  %v869_v21 = vmul.f32 0.03125, %v859_v18 }
 0x1a1   : > { %v2440_v23 = vmul.f32 %v645_v10, %v634_v16  ;;  %1570 = vrsqrt.f32 %v873_v14  ;;  %v636_v32 = vmul.f32 %v1559_v19, %v2380_v5 }
 0x1a2   : > { %v1561_v25 = vpop.eup %1560  ;;  %v874_v26 = vadd.f32 1e-06, %v868_v20  ;;  %v875_v27 = vadd.f32 1e-06, %v869_v21 }
 0x1a3   : > { %653 = vrot.lane.b32.xlu0 %v2440_v23, %s1935_s15  ;;  %v862_v30 = vpop.xlane.xlu0 %861  ;;  %v635_v31 = vmul.f32 %v1561_v25, %v2378_v4  ;;  %v865_v3 = vpop.xlane.xlu1 %864  ;;  %v2450_v43 = vmul.f32 %v645_v10, %v636_v32 }
 0x1a4   : > { %v1563_v34 = vpop.eup %1562  ;;  %1572 = vrsqrt.f32 %v874_v26  ;;  %v870_v36 = vmul.f32 0.03125, %v862_v30  ;;  %v871_v37 = vmul.f32 0.03125, %v865_v3  ;;  %v1384_v26 = vld [vmem:[%s491_s11] sm:$0xff]  }
 0x1a5   : > { %v2446_v38 = vmul.f32 %v645_v10, %v635_v31  ;;  %1574 = vrsqrt.f32 %v875_v27  ;;  %v637_v5 = vmul.f32 %v1563_v34, %v2384_v7  ;;  %v1385_v3 = vunpack.c.l.bf16 %v1384_v26 }
 0x1a6   : > { %v1565_v40 = vpop.eup %1564  ;;  %v876_v41 = vadd.f32 1e-06, %v870_v36  ;;  %v877_v42 = vadd.f32 1e-06, %v871_v37  ;;  %v1386_v32 = vunpack.c.h.bf16 %v1384_v26 }
 0x1a7   : > { %656 = vrot.lane.b32.xlu1 %v2446_v38, %s1935_s15  ;;  %v638_v4 = vmul.f32 %v1565_v40, %v2382_v6  ;;  %v1567_v44 = vpop.eup %1566  ;;  %v2460_v48 = vmul.f32 %v645_v10, %v637_v5  ;;  %v574_v40 = vld [vmem:[%s491_s11 + $0x8] sm:$0xf] }
 0x1a8   : > { %1576 = vrsqrt.f32 %v876_v41  ;;  %v639_v7 = vmul.f32 %v1567_v44, %v2393_v12  ;;  %v1551_v39 = vpack.i.bf16 %v1386_v32, %v1385_v3 }
 0x1a9   : > { %v2454_v45 = vmul.f32 %v645_v10, %v638_v4  ;;  %1578 = vrsqrt.f32 %v877_v42  ;;  %v577_v4 = vunpack.c.l.bf16 %v574_v40 }
 0x1aa   : > { %v1569_v47 = vpop.eup %1568  ;;  %v2470_v52 = vmul.f32 %v645_v10, %v639_v7 }
 0x1ab   : > { %659 = vrot.lane.b32.xlu1 %v2450_v43, %s1935_s15  ;;  %665 = vrot.lane.b32.xlu0 %v2454_v45, %s1935_s15  ;;  %v884_v6 = vmul.f32 %v1569_v47, %v2401_v17  ;;  %v1571_v49 = vpop.eup %1570  ;;  %v1380_v17 = vld [vmem:[%s482_s14] sm:$0xff]  }
 0x1ac   : > { %v885_v54 = vmul.f32 %v1571_v49, %v2408_v22  ;;  %v1381_v57 = vunpack.c.l.bf16 %v1380_v17  ;;  %v1382_v59 = vunpack.c.h.bf16 %v1380_v17 }
 0x1ad   : > { %v2464_v50 = vmul.f32 %v895_v46, %v884_v6 }
 0x1ae   : > { %v1573_v51 = vpop.eup %1572  ;;  %v2482_v58 = vmul.f32 %v895_v46, %v885_v54  ;;  %v1546_v0 = vpack.i.bf16 %v1382_v59, %v1381_v57 }
 0x1af   : > { %662 = vrot.lane.b32.xlu1 %v2460_v48, %s1935_s15  ;;  %902 = vrot.lane.b32.xlu0 %v2464_v50, %s1935_s15  ;;  %v886_v53 = vmul.f32 %v1573_v51, %v2412_v24  ;;  %v1575_v55 = vpop.eup %1574 }
 0x1b0   : > { %v887_v22 = vmul.f32 %v1575_v55, %v2418_v28  ;;  %v568_v28 = vld [vmem:[%s482_s14 + $0x8] sm:$0xf] }
 0x1b1   : > { %v2476_v12 = vmul.f32 %v895_v46, %v886_v53  ;;  %v571_v1 = vunpack.c.l.bf16 %v568_v28 }
 0x1b2   : > { %v1577_v56 = vpop.eup %1576  ;;  %v2492_v62 = vmul.f32 %v895_v46, %v887_v22 }
 0x1b3   : > { %668 = vrot.lane.b32.xlu1 %v2470_v52, %s1935_s15  ;;  %908 = vrot.lane.b32.xlu0 %v2476_v12, %s1935_s15  ;;  %v888_v24 = vmul.f32 %v1577_v56, %v2425_v33  ;;  %v1579_v60 = vpop.eup %1578 }
 0x1b4   : > { %v889_v63 = vmul.f32 %v1579_v60, %v2429_v35 }
 0x1b5   : > { %v2486_v61 = vmul.f32 %v895_v46, %v888_v24 }
 0x1b6   : > { %v2497_v33 = vmul.f32 %v895_v46, %v889_v63 }
 0x1b7   : > { %905 = vrot.lane.b32.xlu1 %v2482_v58, %s1935_s15  ;;  %914 = vrot.lane.b32.xlu0 %v2486_v61, %s1935_s15 }
 0x1bb   : > { %911 = vrot.lane.b32.xlu1 %v2492_v62, %s1935_s15  ;;  %1547 = vrot.lane.b32.xlu0 %v1546_v0, %s1936_s26 }
 0x1bf   : > { %917 = vrot.lane.b32.xlu1 %v2497_v33, %s1935_s15 }
 0x1c3   : > { %702 = vrot.lane.b32.xlu1 %v571_v1, %s1936_s26 }
 0x215   : > { %v654_v2 = vpop.permute.xlu0 %653 }
 0x216   : > { %v655_v35 = vsel %vm652_vm1, %v654_v2, %v2440_v23 }
 0x217   : > { %671 = vrot.lane.b32.xlu0 %v655_v35, %s1935_s15 }
 0x219   : > { %v657_v8 = vpop.permute.xlu1 %656 }
 0x21a   : > { %v658_v9 = vsel %vm652_vm1, %v657_v8, %v2446_v38 }
 0x21b   : > { %673 = vrot.lane.b32.xlu1 %v658_v9, %s1935_s15 }
 0x21d   : > { %v660_v10 = vpop.permute.xlu1 %659  ;;  %v666_v11 = vpop.permute.xlu0 %665 }
 0x21e   : > { %v661_v13 = vsel %vm652_vm1, %v660_v10, %v2450_v43  ;;  %v667_v18 = vsel %vm652_vm1, %v666_v11, %v2454_v45 }
 0x21f   : > { %675 = vrot.lane.b32.xlu0 %v661_v13, %s1935_s15 }
 0x221   : > { %v663_v14 = vpop.permute.xlu1 %662  ;;  %v903_v15 = vpop.permute.xlu0 %902 }
 0x222   : > { %v664_v16 = vsel %vm652_vm1, %v663_v14, %v2460_v48  ;;  %v904_v25 = vsel %vm652_vm1, %v903_v15, %v2464_v50 }
 0x223   : > { %677 = vrot.lane.b32.xlu1 %v664_v16, %s1935_s15  ;;  %679 = vrot.lane.b32.xlu0 %v667_v18, %s1935_s15 }
 0x225   : > { %v669_v19 = vpop.permute.xlu1 %668  ;;  %v909_v20 = vpop.permute.xlu0 %908 }
 0x226   : > { %v670_v21 = vsel %vm652_vm1, %v669_v19, %v2470_v52  ;;  %v910_v30 = vsel %vm652_vm1, %v909_v20, %v2476_v12 }
 0x227   : > { %681 = vrot.lane.b32.xlu1 %v670_v21, %s1935_s15  ;;  %920 = vrot.lane.b32.xlu0 %v904_v25, %s1935_s15 }
 0x229   : > { %v906_v27 = vpop.permute.xlu1 %905  ;;  %v915_v31 = vpop.permute.xlu0 %914 }
 0x22a   : > { %v907_v29 = vsel %vm652_vm1, %v906_v27, %v2482_v58  ;;  %v916_v37 = vsel %vm652_vm1, %v915_v31, %v2486_v61 }
 0x22b   : > { %922 = vrot.lane.b32.xlu1 %v907_v29, %s1935_s15  ;;  %924 = vrot.lane.b32.xlu0 %v910_v30, %s1935_s15 }
 0x22d   : > { %v912_v34 = vpop.permute.xlu1 %911  ;;  %v1548_v5 = vpop.permute.xlu0 %1547 }
 0x22e   : > { %v913_v36 = vsel %vm652_vm1, %v912_v34, %v2492_v62  ;;  %v1549_v44 = vunpack.i.l.bf16 %v1548_v5  ;;  %v1550_v49 = vunpack.i.h.bf16 %v1548_v5 }
 0x22f   : > { %926 = vrot.lane.b32.xlu1 %v913_v36, %s1935_s15  ;;  %928 = vrot.lane.b32.xlu0 %v916_v37, %s1935_s15 }
 0x231   : > { %v918_v41 = vpop.permute.xlu1 %917 }
 0x232   : > { %v919_v42 = vsel %vm652_vm1, %v918_v41, %v2497_v33 }
 0x233   : > { %930 = vrot.lane.b32.xlu1 %v919_v42, %s1935_s15  ;;  %1552 = vrot.lane.b32.xlu0 %v1551_v39, %s1937_s22 }
 0x235   : > { %v2543_v46 = vpop.permute.xlu1 %702 }
 0x237   : > { %750 = vrot.lane.b32.xlu1 %v577_v4, %s1937_s22 }
 0x289   : > { %v672_v47 = vpop.permute.xlu0 %671 }
 0x28a   : > { %v683_v6 = vsel %vm652_vm1, %v672_v47, %v2440_v23 }
 0x28b   : > { %v707_v7 = vmul.f32 %v1549_v44, %v683_v6 }
 0x28d   : > { %v674_v51 = vpop.permute.xlu1 %673  ;;  %719 = vrot.lane.b32.xlu0 %v707_v7, %s1938_s12 }
 0x28e   : > { %v684_v53 = vsel %vm652_vm1, %v674_v51, %v2446_v38 }
 0x28f   : > { %v708_v54 = vmul.f32 %v1550_v49, %v684_v53 }
 0x291   : > { %v676_v17 = vpop.permute.xlu0 %675  ;;  %721 = vrot.lane.b32.xlu1 %v708_v54, %s1938_s12 }
 0x292   : > { %v685_v55 = vsel %vm652_vm1, %v676_v17, %v2450_v43 }
 0x293   : > { %v709_v56 = vmul.f32 %v2543_v46, %v685_v55 }
 0x295   : > { %v678_v57 = vpop.permute.xlu1 %677  ;;  %v680_v24 = vpop.permute.xlu0 %679  ;;  %723 = vrot.lane.b32.xlu0 %v709_v56, %s1938_s12 }
 0x296   : > { %v686_v22 = vsel %vm652_vm1, %v678_v57, %v2460_v48  ;;  %v687_v59 = vsel %vm652_vm1, %v680_v24, %v2454_v45 }
 0x297   : > { %v710_v60 = vmul.f32 %v1549_v44, %v686_v22  ;;  %v711_v63 = vmul.f32 %v1550_v49, %v687_v59 }
 0x299   : > { %v682_v0 = vpop.permute.xlu1 %681  ;;  %v921_v28 = vpop.permute.xlu0 %920  ;;  %725 = vrot.lane.b32.xlu1 %v710_v60, %s1938_s12  ;;  %727 = vrot.lane.b32.xlu0 %v711_v63, %s1938_s12 }
 0x29a   : > { %v688_v1 = vsel %vm652_vm1, %v682_v0, %v2470_v52  ;;  %v932_v27 = vsel %vm652_vm1, %v921_v28, %v2464_v50 }
 0x29b   : > { %v712_v2 = vmul.f32 %v2543_v46, %v688_v1  ;;  %v944_v30 = vmul.f32 %v1549_v44, %v932_v27 }
 0x29d   : > { %v923_v35 = vpop.permute.xlu1 %922  ;;  %v925_v8 = vpop.permute.xlu0 %924  ;;  %729 = vrot.lane.b32.xlu1 %v712_v2, %s1938_s12 }
 0x29e   : > { %v933_v29 = vsel %vm652_vm1, %v923_v35, %v2482_v58  ;;  %v934_v3 = vsel %vm652_vm1, %v925_v8, %v2476_v12 }
 0x29f   : > { %v945_v31 = vmul.f32 %v1550_v49, %v933_v29  ;;  %v946_v34 = vmul.f32 %v934_v3, %v2543_v46 }
 0x2a1   : > { %v927_v9 = vpop.permute.xlu1 %926  ;;  %v929_v10 = vpop.permute.xlu0 %928 }
 0x2a2   : > { %v935_v32 = vsel %vm652_vm1, %v927_v9, %v2492_v62  ;;  %v936_v37 = vsel %vm652_vm1, %v929_v10, %v2486_v61 }
 0x2a3   : > { %v947_v36 = vmul.f32 %v1549_v44, %v935_v32  ;;  %v948_v40 = vmul.f32 %v1550_v49, %v936_v37  ;;  %v1376_v49 = vld [vmem:[%s473_s24] sm:$0xff]  }
 0x2a4   : > { %v2599_v54 = vunpack.c.l.bf16 %v1376_v49  ;;  %v2601_v17 = vunpack.c.h.bf16 %v1376_v49 }
 0x2a5   : > { %v931_v11 = vpop.permute.xlu1 %930  ;;  %v1553_v13 = vpop.permute.xlu0 %1552 }
 0x2a6   : > { %v1555_v14 = vunpack.i.h.bf16 %v1553_v13  ;;  %v1554_v15 = vunpack.i.l.bf16 %v1553_v13  ;;  %v937_v39 = vsel %vm652_vm1, %v931_v11, %v2497_v33  ;;  %v689_v24 = vmul.f32 %v2599_v54, %v2440_v23 }
 0x2a7   : > { %v949_v41 = vmul.f32 %v937_v39, %v2543_v46  ;;  %v692_v2 = vmul.f32 %v2599_v54, %v2460_v48 }
 0x2a8   : > { %v756_v16 = vmul.f32 %v1555_v14, %v684_v53  ;;  %v755_v18 = vmul.f32 %v1554_v15, %v683_v6  ;;  %v758_v20 = vmul.f32 %v1554_v15, %v686_v22  ;;  %v759_v26 = vmul.f32 %v1555_v14, %v687_v59 }
 0x2a9   : > { %v751_v19 = vpop.permute.xlu1 %750  ;;  %v981_v42 = vmul.f32 %v1555_v14, %v933_v29  ;;  %v980_v4 = vmul.f32 %v1554_v15, %v932_v27  ;;  %v983_v5 = vmul.f32 %v1554_v15, %v935_v32  ;;  %v984_v46 = vmul.f32 %v1555_v14, %v936_v37 }
 0x2aa   : > { %769 = vrot.lane.b32.xlu1 %v756_v16, %s1939_s2  ;;  %767 = vrot.lane.b32.xlu0 %v755_v18, %s1939_s2  ;;  %v757_v21 = vmul.f32 %v751_v19, %v685_v55  ;;  %v760_v25 = vmul.f32 %v751_v19, %v688_v1  ;;  %v982_v44 = vmul.f32 %v934_v3, %v751_v19  ;;  %v562_v55 = vld [vmem:[%s473_s24 + $0x8] sm:$0xf] }
 0x2ab   : > { %v985_v47 = vmul.f32 %v937_v39, %v751_v19  ;;  %v690_v22 = vmul.f32 %v2601_v17, %v2446_v38  ;;  %v2609_v59 = vunpack.c.l.bf16 %v562_v55  ;;  %v693_v38 = vmul.f32 %v2601_v17, %v2454_v45 }
 0x2ad   : > { %v691_v1 = vmul.f32 %v2450_v43, %v2609_v59  ;;  %v694_v13 = vmul.f32 %v2470_v52, %v2609_v59 }
 0x2ae   : > { %773 = vrot.lane.b32.xlu1 %v758_v20, %s1939_s2  ;;  %771 = vrot.lane.b32.xlu0 %v757_v21, %s1939_s2 }
 0x2b2   : > { %777 = vrot.lane.b32.xlu1 %v760_v25, %s1939_s2  ;;  %775 = vrot.lane.b32.xlu0 %v759_v26, %s1939_s2 }
 0x2b6   : > { %958 = vrot.lane.b32.xlu1 %v945_v31, %s1938_s12  ;;  %956 = vrot.lane.b32.xlu0 %v944_v30, %s1938_s12 }
 0x2ba   : > { %962 = vrot.lane.b32.xlu1 %v947_v36, %s1938_s12  ;;  %960 = vrot.lane.b32.xlu0 %v946_v34, %s1938_s12 }
 0x2be   : > { %966 = vrot.lane.b32.xlu1 %v949_v41, %s1938_s12  ;;  %964 = vrot.lane.b32.xlu0 %v948_v40, %s1938_s12 }
 0x2c2   : > { %994 = vrot.lane.b32.xlu1 %v981_v42, %s1939_s2  ;;  %992 = vrot.lane.b32.xlu0 %v980_v4, %s1939_s2 }
 0x2c6   : > { %998 = vrot.lane.b32.xlu1 %v983_v5, %s1939_s2  ;;  %996 = vrot.lane.b32.xlu0 %v982_v44, %s1939_s2 }
 0x2ca   : > { %1002 = vrot.lane.b32.xlu1 %v985_v47, %s1939_s2  ;;  %1000 = vrot.lane.b32.xlu0 %v984_v46, %s1939_s2 }
 0x2ff   : > { %v720_v6 = vpop.permute.xlu0 %719 }
 0x300   : > { %v737_v60 = vadd.f32 %v720_v6, %v689_v24 }
 0x303   : > { %v722_v7 = vpop.permute.xlu1 %721 }
 0x304   : > { %v738_v63 = vadd.f32 %v722_v7, %v690_v22 }
 0x307   : > { %v724_v51 = vpop.permute.xlu0 %723 }
 0x308   : > { %v739_v9 = vadd.f32 %v724_v51, %v691_v1 }
 0x30b   : > { %v726_v53 = vpop.permute.xlu1 %725  ;;  %v728_v56 = vpop.permute.xlu0 %727 }
 0x30c   : > { %v740_v23 = vadd.f32 %v726_v53, %v692_v2  ;;  %v741_v19 = vadd.f32 %v728_v56, %v693_v38 }
 0x30f   : > { %v730_v57 = vpop.permute.xlu1 %729 }
 0x310   : > { %v742_v20 = vadd.f32 %v730_v57, %v694_v13 }
 0x31c   : > { %v770_v0 = vpop.permute.xlu1 %769  ;;  %v768_v28 = vpop.permute.xlu0 %767 }
 0x31d   : > { %v786_v35 = vadd.f32 %v770_v0, %v738_v63  ;;  %v785_v8 = vadd.f32 %v768_v28, %v737_v60 }
 0x31f   : > { %v792_v10 = vmul.f32 0.17677669, %v786_v35  ;;  %v791_v11 = vmul.f32 0.17677669, %v785_v8 }
 0x320   : > { %v774_v14 = vpop.permute.xlu1 %773  ;;  %v772_v15 = vpop.permute.xlu0 %771 }
 0x321   : > { %v1364_v43 = vpack.c.bf16 %v792_v10, %v792_v10  ;;  %v1363_v16 = vpack.c.bf16 %v791_v11, %v791_v11  ;;  %v788_v18 = vadd.f32 %v774_v14, %v740_v23  ;;  %v787_v48 = vadd.f32 %v772_v15, %v739_v9 }
 0x323   : > { %825 = vst.msk [vmem:[%s541_s27 + $0x4] sm:$0xf] %vm823_vm2, %v1364_v43  ;;  %824 = vst.msk [vmem:[%s541_s27] sm:$0xf] %vm823_vm2, %v1363_v16  ;;  %v794_v21 = vmul.f32 0.17677669, %v788_v18 }
 0x324   : > { %v793_v45 = vmul.f32 0.17677669, %v787_v48  ;;  %v778_v25 = vpop.permute.xlu1 %777  ;;  %v776_v52 = vpop.permute.xlu0 %775 }
 0x325   : > { %v1366_v26 = vpack.c.bf16 %v794_v21, %v794_v21  ;;  %v790_v29 = vadd.f32 %v778_v25, %v742_v20  ;;  %v789_v30 = vadd.f32 %v776_v52, %v741_v19 }
 0x326   : > { %v1365_v27 = vpack.c.bf16 %v793_v45, %v793_v45 }
 0x327   : > { %827 = vst.msk [vmem:[%s541_s27 + $0xc] sm:$0xf] %vm823_vm2, %v1366_v26  ;;  %v796_v31 = vmul.f32 0.17677669, %v790_v29  ;;  %v795_v3 = vmul.f32 0.17677669, %v789_v30 }
 0x328   : > { %826 = vst.msk [vmem:[%s541_s27 + $0x8] sm:$0xf] %vm823_vm2, %v1365_v27  ;;  %v959_v32 = vpop.permute.xlu1 %958  ;;  %v957_v34 = vpop.permute.xlu0 %956 }
 0x329   : > { %v1368_v36 = vpack.c.bf16 %v796_v31, %v796_v31  ;;  %v1367_v37 = vpack.c.bf16 %v795_v3, %v795_v3 }
 0x32b   : > { %829 = vst.msk [vmem:[%s541_s27 + $0x14] sm:$0xf] %vm823_vm2, %v1368_v36  ;;  %828 = vst.msk [vmem:[%s541_s27 + $0x10] sm:$0xf] %vm823_vm2, %v1367_v37 }
 0x32c   : > { %v963_v39 = vpop.permute.xlu1 %962  ;;  %v961_v40 = vpop.permute.xlu0 %960 }
 0x32d   : > { %1799 = shalt.err (!%p1796_p4)
}
 0x32e   : > { %s1800_s13 = scalar_lea.hbm %s2632_s23, 384  ;;  %s1804_s11 = scalar_lea.hbm %s2821_s8, 768 }
 0x32f   : > { %p1801_p12 = scmp.ne.s32.totalorder %s2632_s23, %s1800_s13  ;;  %p1805_p0 = scmp.lt.u32.totalorder %s2632_s23, %s2821_s8 }
 0x330   : > { %p1806_p7 = scmp.lt.u32.totalorder %s1804_s11, %s1800_s13  ;;  %p1808_p3 = scmp.lt.u32.totalorder %s1800_s13, %s2632_s23 }
 0x331   : > { %p1802_p11 = pnand %p1801_p12, %p2822_p9 }
 0x332   : > { %p1807_p8 = por %p1806_p7, %p1805_p0 }
 0x333   : > { %p1803_p5 = pneg %p1802_p11 }
 0x334   : > { %p1809_p6 = por %p1808_p3, %p1807_p8 }
 0x336   : > { %p1810_p13 = pnand %p1809_p6, %p1803_p5 }
 0x338   : > { %1813 = shalt.err (!%p1810_p13)
}
 0x339   : > { %s1941_s22 = smov 64   ;;  %s1942_s12 = smov 4   ;;  %v967_v41 = vpop.permute.xlu1 %966  ;;  %v965_v42 = vpop.permute.xlu0 %964  ;;  %v939_v4 = vmul.f32 %v2601_v17, %v2482_v58  ;;  %v938_v5 = vmul.f32 %v2599_v54, %v2464_v50  ;;  %v941_v7 = vmul.f32 %v2599_v54, %v2492_v62  ;;  %v940_v49 = vmul.f32 %v2476_v12, %v2609_v59 }
 0x33a   : > { %1447 = dma.vmem_to_hbm [thread:$0]  (%p2822_p9), %s2623_s4, 384, %s2632_s23, %s1049_s19, %s1941_s22, %s1941_s22, %s1942_s12   ;;  %v943_v50 = vmul.f32 %v2497_v33, %v2609_v59  ;;  %v942_v60 = vmul.f32 %v2601_v17, %v2486_v61 }
 0x33b   : > { %v975_v44 = vadd.f32 %v959_v32, %v939_v4  ;;  %v974_v47 = vadd.f32 %v957_v34, %v938_v5  ;;  %v977_v55 = vadd.f32 %v963_v39, %v941_v7  ;;  %v976_v56 = vadd.f32 %v961_v40, %v940_v49  ;;  %s548_s2 = scalar_lea.vmem [#allocation14], %s2336_s1  ;;  %s2823_s17 = sld [smem:[#allocation36_spill]] }
 0x33c   : > { %v979_v54 = vadd.f32 %v967_v41, %v943_v50  ;;  %v978_v63 = vadd.f32 %v965_v42, %v942_v60  ;;  %s1089_s27 = sshll.u32 %s548_s2, 4  ;;  %s1054_s23 = scalar_lea.sflag [#allocation15], %s2333_s9  ;;  %s2680_s27 = int_to_ptr.vmem [resolvable:$true] %s1089_s27 }
 0x33d   : > { %v995_v46 = vpop.permute.xlu1 %994  ;;  %v993_v6 = vpop.permute.xlu0 %992  ;;  %s1814_s19 = scalar_lea.vmem %s2680_s27, 384  ;;  %s1943_s21 = smov [#allocation14]  }
 0x33e   : > { %v1011_v51 = vadd.f32 %v995_v46, %v975_v44  ;;  %v1010_v53 = vadd.f32 %v993_v6, %v974_v47  ;;  %p1815_p2 = scmp.ne.s32.totalorder %s2680_s27, %s1814_s19  ;;  %s1818_s0 = sshll.u32 %s1943_s21, 4  ;;  %s1819_s0 = int_to_ptr.vmem [resolvable:$false] %s1818_s0 }
 0x33f   : > { %s1820_s18 = scalar_lea.vmem %s1819_s0, 768  ;;  %p1821_p4 = scmp.lt.s32.totalorder %s2680_s27, %s1819_s0 }
 0x340   : > { %v1370_v57 = vpack.c.bf16 %v1011_v51, %v1011_v51  ;;  %v1369_v58 = vpack.c.bf16 %v1010_v53, %v1010_v53  ;;  %p1816_p10 = pnand %p1815_p2, %p2822_p9  ;;  %p1822_p12 = scmp.lt.s32.totalorder %s1820_s18, %s1814_s19 }
 0x341   : > { %v999_v24 = vpop.permute.xlu1 %998  ;;  %v997_v22 = vpop.permute.xlu0 %996  ;;  %s2687_s20 = scalar_lea.hbm %s2823_s17, %s1427_s7 }
 0x342   : > { %1043 = vst.msk [vmem:[%s548_s2 + $0x4] sm:$0xf] %vm823_vm2, %v1370_v57  ;;  %1042 = vst.msk [vmem:[%s548_s2] sm:$0xf] %vm823_vm2, %v1369_v58  ;;  %v1013_v12 = vadd.f32 %v999_v24, %v977_v55  ;;  %v1012_v62 = vadd.f32 %v997_v22, %v976_v56  ;;  %p1817_p1 = pneg %p1816_p10  ;;  %p1823_p11 = por %p1822_p12, %p1821_p4 }
 0x344   : > { %v1372_v0 = vpack.c.bf16 %v1013_v12, %v1013_v12  ;;  %v1371_v28 = vpack.c.bf16 %v1012_v62, %v1012_v62  ;;  %p1824_p5 = pnand %p1823_p11, %p1817_p1 }
 0x345   : > { %v1003_v1 = vpop.permute.xlu1 %1002  ;;  %v1001_v33 = vpop.permute.xlu0 %1000 }
 0x346   : > { %1045 = vst.msk [vmem:[%s548_s2 + $0xc] sm:$0xf] %vm823_vm2, %v1372_v0  ;;  %1044 = vst.msk [vmem:[%s548_s2 + $0x8] sm:$0xf] %vm823_vm2, %v1371_v28  ;;  %v1015_v61 = vadd.f32 %v1003_v1, %v979_v54  ;;  %v1014_v17 = vadd.f32 %v1001_v33, %v978_v63 }
 0x348   : > { %v1374_v59 = vpack.c.bf16 %v1015_v61, %v1015_v61  ;;  %v1373_v2 = vpack.c.bf16 %v1014_v17, %v1014_v17 }
 0x34a   : > { %1047 = vst.msk [vmem:[%s548_s2 + $0x14] sm:$0xf] %vm823_vm2, %v1374_v59  ;;  %1046 = vst.msk [vmem:[%s548_s2 + $0x10] sm:$0xf] %vm823_vm2, %v1373_v2 }
 0x34b   : > { %1827 = shalt.err (!%p1824_p5)
}
 0x34c   : > { %s1828_s30 = scalar_lea.hbm %s2687_s20, 384  ;;  %s1832_s13 = scalar_lea.hbm %s2823_s17, 768 }
 0x34d   : > { %p1829_p0 = scmp.ne.s32.totalorder %s2687_s20, %s1828_s30  ;;  %p1833_p3 = scmp.lt.u32.totalorder %s2687_s20, %s2823_s17 }
 0x34e   : > { %p1834_p6 = scmp.lt.u32.totalorder %s1832_s13, %s1828_s30  ;;  %p1836_p2 = scmp.lt.u32.totalorder %s1828_s30, %s2687_s20 }
 0x34f   : > { %p1830_p7 = pnand %p1829_p0, %p2822_p9 }
 0x350   : > { %p1835_p13 = por %p1834_p6, %p1833_p3 }
 0x351   : > { %p1831_p8 = pneg %p1830_p7 }
 0x352   : > { %p1837_p10 = por %p1836_p2, %p1835_p13 }
 0x354   : > { %p1838_p1 = pnand %p1837_p10, %p1831_p8 }
 0x356   : > { %1841 = shalt.err (!%p1838_p1)
}
 0x357   : > { %1448 = dma.vmem_to_hbm [thread:$0]  (%p2822_p9), %s2680_s27, 384, %s2687_s20, %s1054_s23, %s1941_s22, %s1941_s22, %s1942_s12  }
 0x358 PF: > { %s2824_s11 = sld [smem:[#allocation25_spill]]  ;;  %s2825_s15 = sld [smem:[#allocation28_spill]] }
 0x359   : > { %p2827_p12 = scmp.ge.s32.totalorder %s1924_s10, 2 }
 0x35e   : > { %s1104_s26 = sand.u32 1, %s2824_s11   ;;  %p2826_p4 = scmp.ne.s32.totalorder %s2825_s15, 0 }
 0x35f   : > { %s1105_s2 = scalar_lea.sflag [#allocation4], %s1104_s26 }
 0x360   : > { %p1475_p11 = pnand %p2827_p12, %p2826_p4 }
 0x362   : > { %1895 = dma.done.wait (!%p1475_p11), %s1105_s2, 384  }
 0x363   : > { %1897 = vsyncadd (!%p1475_p11), %s1105_s2, 4294966912  ;;  %s1114_s16 = scalar_lea.sflag [#allocation15], %s1104_s26 }
 0x364   : > { %1899 = dma.done.wait (!%p1475_p11), %s1114_s16, 384  }
 0x365   : > { %1901 = vsyncadd (!%p1475_p11), %s1114_s16, 4294966912  ;;  %s32_s10 = sadd.s32 1, %s1924_s10   ;;  %s2828_s9 = sld [smem:[#allocation30_spill]] }
 0x366   : > { %p29_p5 = scmp.ge.s32.totalorder %s32_s10, 4   ;;  %s2829_s30 = sld [smem:[#allocation26_spill]] }
 0x367   : > { %s2830_s22 = sld [smem:[#allocation29_spill]]  ;;  %s2831_s27 = smov %s1908_s28 }
 0x368   : > { %s2832_s28 = smov %s1912_s29  ;;  %31 = sbr.rel (!%p29_p5) target bundleno = 18 (0x12), region = 164 }
 0x36b   : > { %s2833_s29 = smov %s2828_s9 }
 0x36d   : > { %s2834_s9 = smov %s2830_s22 }
 0x36f   :  { %1119 = vsyncpa [#allocation3], 1 }
 0x370   :  { %1121 = vsyncpa [#allocation3 + $0x1], 1 }
 0x371   :  { %1122 = vsyncpa [#allocation6], 1 }
 0x372   :  { %1124 = vsyncpa [#allocation6 + $0x1], 1 }
 0x373   :  { %1125 = vsyncpa [#allocation9], 1 }
 0x374   :  { %1126 = vsyncpa [#allocation4], 1 }
 0x375   :  { %1128 = vsyncpa [#allocation4 + $0x1], 1 }
 0x376   :  { %1129 = vsyncpa [#allocation15], 1 }
 0x377   :  { %1131 = vsyncpa [#allocation15 + $0x1], 1 }

// kernel: flux_transformer_block.17
= control target key start
LH: loop header
LB: loop body
LE: loop exit
PB: predicated region body
PF: predicated region fallthrough
CT: control target
= control target key end

     0   :  { %s2187_s0 = inlined_call_operand.hbm [shape: bf16[4,32,32], index: 0, kind: input, shape index: {}]   ;;  %s2188_s1 = inlined_call_operand.hbm [shape: bf16[4,32,32], index: 1, kind: input, shape index: {}]   ;;  %s2189_s2 = inlined_call_operand.hbm [shape: bf16[4,32,32], index: 2, kind: input, shape index: {}]   ;;  %s2190_s3 = inlined_call_operand.hbm [shape: bf16[4,32,32], index: 3, kind: output, shape index: {}]  }
   0x1   :  { %2200 = sst [smem:[#allocation18_spill]] %s2188_s1 }
   0x2   :  { %8 = vsyncpa [#allocation6], 0 }
   0x3   :  { %10 = vsyncpa [#allocation6 + $0x1], 0 }
   0x4   :  { %11 = vsyncpa [#allocation9], 0 }
   0x5   :  { %13 = vsyncpa [#allocation9 + $0x1], 0 }
   0x6   :  { %14 = vsyncpa [#allocation7], 0 }
   0x7   :  { %16 = vsyncpa [#allocation7 + $0x1], 0  ;;  %s1676_s12 = smov 0   ;;  %s1678_s13 = smov 0  }
   0x8   :  { %s1680_s14 = smov 0   ;;  %s1682_s15 = smov 0  }
   0x9   :  { %s1684_s16 = smov 0   ;;  %s1686_s17 = smov 0  }
   0xa LB: > { %2201 = sst [smem:[#allocation15_spill]] %s1639_s16  ;;  %s1707_s18 = sadd.s32 4294967295, %s1643_s17   ;;  %s1643_s17 = sphi %s1686_s17, %s22_s17   ;;  %s1639_s16 = sphi %s1684_s16, %s2224_s16   ;;  %s1635_s15 = sphi %s1682_s15, %s2223_s15   ;;  %s1631_s14 = sphi %s1680_s14, %s2227_s14   ;;  %s1627_s13 = sphi %s1678_s13, %s2226_s13   ;;  %s1623_s12 = sphi %s1676_s12, %s2225_s12  }
   0xb   : > { %s1204_s19 = sadd.s32 4294967294, %s1643_s17   ;;  %s41_s20 = sadd.s32 1, %s1639_s16 }
   0xc   : > { %s50_s21 = sadd.s32 1, %s1631_s14  ;;  %p43_p0 = scmp.ge.s32.totalorder %s41_s20, 2 }
   0xd   : > { %p57_p1 = scmp.ne.s32.totalorder %s1631_s14, %s1627_s13  ;;  %p58_p2 = scmp.eq.s32.totalorder %s1643_s17, 0 }
   0xe   : > { %p63_p3 = scmp.ne.s32.totalorder %s1627_s13, %s1623_s12  ;;  %s2229_s20 = smov (%p43_p0, %s41_s20), 0 }
   0xf   : > { %2202 = sst [smem:[#allocation16_spill]] %s2229_s20  ;;  %p1719_p4 = por %p58_p2, %p57_p1 }
  0x10   : > { %p64_p5 = scmp.eq.s32.totalorder %s1707_s18, 0  ;;  %s45_s23 = ssub.s32 %s1639_s16, %s2229_s20 }
  0x11   : > { %p145_p6 = scmp.eq.s32.totalorder %s1707_s18, 1  ;;  %p48_p7 = scmp.eq.s32.totalorder %s45_s23, 0 }
  0x12   : > { %p1727_p8 = por %p64_p5, %p63_p3  ;;  %p151_p10 = scmp.eq.s32.totalorder %s1204_s19, 1 }
  0x13   : > { %p1731_p9 = por %p145_p6, %p57_p1  ;;  %p1348_p13 = scmp.lt.s32.totalorder %s1643_s17, 2 }
  0x14   : > { %s2204_s24 = scalar_select %p1727_p8, 1, 0 }
  0x15   : > { %s2205_s25 = scalar_select %p1731_p9, 1, 0 }
  0x16   : > { %s1736_s26 = scalar_select %p48_p7, %s1631_s14, %s50_s21  }
  0x17   : > { %p1738_p11 = por %p151_p10, %p63_p3  ;;  %s2193_s28 = sand.u32 1, %s1631_s14  }
  0x18   : > { %2206 = sst [smem:[#allocation17_spill]] %s1736_s26  ;;  %s1747_s29 = sshll.u32 %s2193_s28, 5 }
  0x19   : > { %s2207_s27 = scalar_select %p1738_p11, 1, 0 }
  0x1a   : > { %s1750_s30 = sshll.u32 %s1639_s16, 9  ;;  %p1754_p0 = pnand %p1348_p13, %p1719_p4 }
  0x1b   : > { %s195_s5 = sand.u32 1, %s1643_s17   ;;  %s2209_s1 = sld [smem:[#allocation18_spill]] }
  0x1c   : > { %s199_s9 = scalar_lea.vmem [#allocation8], %s1747_s29  ;;  %s1770_s11 = scalar_lea.sflag [#allocation9], %s195_s5 }
  0x1d   : > { %s209_s10 = sshll.u32 %s199_s9, 4  ;;  %p1776_p4 = pneg %p1754_p0  ;;  %s1767_s10 = int_to_ptr.vmem [resolvable:$true] %s209_s10 }
  0x21   : > { %s1763_s8 = scalar_lea.hbm %s2209_s1, %s1750_s30  ;;  %s1472_s6 = scalar_lea.hbm %s2209_s1, 1024 }
  0x22   : > { %s1467_s19 = scalar_lea.hbm %s1763_s8, 512  ;;  %p1473_p7 = scmp.lt.u32.totalorder %s1763_s8, %s2209_s1 }
  0x23   : > { %p1468_p3 = scmp.ne.s32.totalorder %s1763_s8, %s1467_s19  ;;  %p1474_p10 = scmp.lt.u32.totalorder %s1472_s6, %s1467_s19 }
  0x24   : > { %p1476_p12 = scmp.lt.u32.totalorder %s1467_s19, %s1763_s8 }
  0x25   : > { %p1470_p5 = pnand %p1776_p4, %p1468_p3  ;;  %p1475_p13 = por %p1474_p10, %p1473_p7 }
  0x27   : > { %p1471_p6 = pneg %p1470_p5  ;;  %p1477_p1 = por %p1476_p12, %p1475_p13 }
  0x29   : > { %p1478_p2 = pnand %p1477_p1, %p1471_p6 }
  0x2b   : > { %1481 = shalt.err (!%p1478_p2)
}
  0x2c   : > { %s1482_s5 = scalar_lea.vmem %s1767_s10, 512  ;;  %s1645_s22 = smov [#allocation8]  }
  0x2d   : > { %p1483_p3 = scmp.ne.s32.totalorder %s1767_s10, %s1482_s5  ;;  %s1487_s23 = sshll.u32 %s1645_s22, 4  ;;  %s1488_s23 = int_to_ptr.vmem [resolvable:$false] %s1487_s23 }
  0x2e   : > { %s1489_s7 = scalar_lea.vmem %s1488_s23, 1024  ;;  %p1490_p9 = scmp.lt.s32.totalorder %s1767_s10, %s1488_s23 }
  0x2f   : > { %p1485_p5 = pnand %p1483_p3, %p1776_p4  ;;  %p1491_p8 = scmp.lt.s32.totalorder %s1489_s7, %s1482_s5 }
  0x31   : > { %p1486_p11 = pneg %p1485_p5  ;;  %p1492_p7 = por %p1491_p8, %p1490_p9 }
  0x33   : > { %p1493_p10 = pnand %p1492_p7, %p1486_p11 }
  0x35   : > { %1496 = shalt.err (!%p1493_p10)
}
  0x36   : > { %s2194_s19 = smov 64   ;;  %s2196_s6 = smov 4  }
  0x37   : > { %1340 = dma.hbm_to_vmem [thread:$0]  (!%p1754_p0), %s1763_s8, 512, %s1767_s10, %s1770_s11, %s2194_s19, %s2194_s19, %s2196_s6  }
  0x38   : > { %p2211_p8 = scmp.lt.s32.totalorder %s1643_s17, 3  ;;  %p2212_p9 = scmp.ge.s32.totalorder %s1643_s17, 1 }
  0x39   : > { %s1815_s23 = scalar_lea.hbm %s2187_s0, %s1750_s30  ;;  %s175_s7 = scalar_lea.vmem [#allocation5], %s1747_s29 }
  0x3a   : > { %p1807_p11 = pnand %p2212_p9, %p2211_p8  ;;  %s185_s28 = sshll.u32 %s175_s7, 4  ;;  %s1818_s28 = int_to_ptr.vmem [resolvable:$true] %s185_s28 }
  0x3b   : > { %s1824_s19 = scalar_lea.hbm %s2189_s2, %s1750_s30  ;;  %s2214_s6 = sand.u32 1, %s1631_s14  }
  0x3c   : > { %s2213_s9 = scalar_select %p1807_p11, 1, 0 }
  0x3d   : > { %s1828_s1 = scalar_lea.sflag [#allocation6], %s2214_s6  ;;  %s1497_s20 = scalar_lea.hbm %s1815_s23, 512 }
  0x3e   : > { %p1498_p12 = scmp.ne.s32.totalorder %s1815_s23, %s1497_s20  ;;  %s1502_s16 = scalar_lea.hbm %s2187_s0, 1024 }
  0x3f   : > { %p1503_p6 = scmp.lt.u32.totalorder %s1815_s23, %s2187_s0  ;;  %p1504_p13 = scmp.lt.u32.totalorder %s1502_s16, %s1497_s20 }
  0x40   : > { %p1500_p1 = pnand %p1498_p12, %p1776_p4  ;;  %p1506_p5 = scmp.lt.u32.totalorder %s1497_s20, %s1815_s23 }
  0x41   : > { %p1505_p3 = por %p1504_p13, %p1503_p6 }
  0x42   : > { %p1501_p2 = pneg %p1500_p1 }
  0x43   : > { %p1507_p7 = por %p1506_p5, %p1505_p3 }
  0x45   : > { %p1508_p10 = pnand %p1507_p7, %p1501_p2 }
  0x47   : > { %1511 = shalt.err (!%p1508_p10)
}
  0x48   : > { %s1512_s30 = scalar_lea.vmem %s1818_s28, 512  ;;  %s1648_s6 = smov [#allocation5]  }
  0x49   : > { %p1513_p8 = scmp.ne.s32.totalorder %s1818_s28, %s1512_s30  ;;  %s1517_s8 = sshll.u32 %s1648_s6, 4  ;;  %s1518_s8 = int_to_ptr.vmem [resolvable:$false] %s1517_s8 }
  0x4a   : > { %s1519_s26 = scalar_lea.vmem %s1518_s8, 1024  ;;  %p1520_p1 = scmp.lt.s32.totalorder %s1818_s28, %s1518_s8 }
  0x4b   : > { %p1515_p9 = pnand %p1513_p8, %p1776_p4  ;;  %p1521_p11 = scmp.lt.s32.totalorder %s1519_s26, %s1512_s30 }
  0x4d   : > { %p1516_p12 = pneg %p1515_p9  ;;  %p1522_p6 = por %p1521_p11, %p1520_p1 }
  0x4f   : > { %p1523_p13 = pnand %p1522_p6, %p1516_p12 }
  0x51   : > { %1526 = shalt.err (!%p1523_p13)
}
  0x52   : > { %s2215_s16 = smov 4   ;;  %s2216_s20 = smov 64  }
  0x53   : > { %1337 = dma.hbm_to_vmem [thread:$0]  (!%p1754_p0), %s1815_s23, 512, %s1818_s28, %s1828_s1, %s2216_s20, %s2216_s20, %s2215_s16  }
  0x54   : > { %s223_s10 = scalar_lea.vmem [#allocation10], %s1747_s29  ;;  %s1527_s22 = scalar_lea.hbm %s1824_s19, 512 }
  0x55   : > { %s233_s5 = sshll.u32 %s223_s10, 4  ;;  %p1528_p11 = scmp.ne.s32.totalorder %s1824_s19, %s1527_s22  ;;  %s1856_s5 = int_to_ptr.vmem [resolvable:$true] %s233_s5 }
  0x56   : > { %s1532_s6 = scalar_lea.hbm %s2189_s2, 1024  ;;  %p1533_p5 = scmp.lt.u32.totalorder %s1824_s19, %s2189_s2 }
  0x57   : > { %p1530_p2 = pnand %p1528_p11, %p1776_p4  ;;  %p1534_p7 = scmp.lt.u32.totalorder %s1532_s6, %s1527_s22 }
  0x58   : > { %p1536_p8 = scmp.lt.u32.totalorder %s1527_s22, %s1824_s19 }
  0x59   : > { %p1531_p3 = pneg %p1530_p2  ;;  %p1535_p10 = por %p1534_p7, %p1533_p5 }
  0x5b   : > { %p1537_p9 = por %p1536_p8, %p1535_p10 }
  0x5d   : > { %p1538_p12 = pnand %p1537_p9, %p1531_p3 }
  0x5f   : > { %1541 = shalt.err (!%p1538_p12)
}
  0x60   : > { %s1542_s1 = scalar_lea.vmem %s1856_s5, 512  ;;  %s1649_s28 = smov [#allocation10]  }
  0x61   : > { %p1543_p1 = scmp.ne.s32.totalorder %s1856_s5, %s1542_s1  ;;  %s1547_s29 = sshll.u32 %s1649_s28, 4  ;;  %s1548_s29 = int_to_ptr.vmem [resolvable:$false] %s1547_s29 }
  0x62   : > { %s1549_s23 = scalar_lea.vmem %s1548_s29, 1024  ;;  %p1550_p11 = scmp.lt.s32.totalorder %s1856_s5, %s1548_s29 }
  0x63   : > { %p1545_p6 = pnand %p1543_p1, %p1776_p4  ;;  %p1551_p2 = scmp.lt.s32.totalorder %s1549_s23, %s1542_s1 }
  0x65   : > { %p1546_p13 = pneg %p1545_p6  ;;  %p1552_p5 = por %p1551_p2, %p1550_p11 }
  0x67   : > { %p1553_p7 = pnand %p1552_p5, %p1546_p13 }
  0x69   : > { %1556 = shalt.err (!%p1553_p7)
}
  0x6a   : > { %1343 = dma.hbm_to_vmem [thread:$0]  (!%p1754_p0), %s1824_s19, 512, %s1856_s5, %s1770_s11, %s2216_s20, %s2216_s20, %s2215_s16  }
  0x6b   : > { %p2217_p4 = scmp.ne.s32.totalorder %s2213_s9, 0 }
  0x6c   : > { %s1886_s21 = sand.u32 (!%p2217_p4), 1, %s1627_s13   ;;  %p2218_p3 = scmp.ne.s32.totalorder (!%p2217_p4), %s2204_s24, 0 }
  0x6d   : > { %245 = sbr.rel (%p2217_p4) target bundleno = 980 (0x3d4), region = 32  ;;  %s1889_s10 = sshll.u32 (!%p2217_p4), %s1886_s21, 5 }
  0x6e   : > { %s248_s4 = scalar_lea.sflag (!%p2217_p4), [#allocation6], %s1886_s21  ;;  %s251_s22 = scalar_lea.vmem (!%p2217_p4), [#allocation5], %s1889_s10 }
  0x74   : > { %1610 = dma.done.wait (%p2218_p3), %s248_s4, 512  }
  0x75   : > { %1612 = vsyncadd (%p2218_p3), %s248_s4, 4294966784  ;;  %s256_s11 = sand.u32 1, %s1707_s18   ;;  %s260_s9 = scalar_lea.vmem [#allocation8], %s1889_s10 }
  0x76   : > { %s257_s19 = scalar_lea.sflag [#allocation9], %s256_s11 }
  0x77   : > { %1614 = dma.done.wait (%p2218_p3), %s257_s19, 1024  }
  0x78   : > { %1616 = vsyncadd (%p2218_p3), %s257_s19, 4294966272  ;;  %vm332_vm0 = vcmask 261120   ;;  %v1407_v0 = vld [vmem:[%s260_s9] sm:$0xff]   ;;  %v1408_v1 = vld [vmem:[%s260_s9 + $0x10] sm:$0xff]   ;;  %vm315_vm1 = vcmask 7168   ;;  %v1650_v12 = vmov -inf  }
  0x79   : > { %1322 = vmatprep.subr.msk.bf16.mxu0 %vm332_vm0, %v1407_v0  ;;  %v393_v2 = vsel %vm332_vm0, %v1407_v0, 0  ;;  %v1409_v3 = vld [vmem:[%s260_s9 + $0x8] sm:$0xff]   ;;  %1324 = vmatprep.subr.msk.bf16.mxu1 %vm332_vm0, %v1408_v1  ;;  %v474_v4 = vsel %vm332_vm0, %v1408_v1, 0  ;;  %v1410_v5 = vld [vmem:[%s260_s9 + $0x18] sm:$0xff]   ;;  %v1411_v6 = vld [vmem:[%s251_s22] sm:$0xff]   ;;  %318 = vst.msk [vmem:[#allocation2 + $0x10] sm:$0xff] %vm315_vm1, %v1650_v12 }
  0x7a   : > { %1291 = vmatpush3.bf16.xpose.msra.mxu0 %v393_v2  ;;  %1299 = vmatpush3.bf16.xpose.msra.mxu1 %v474_v4  ;;  %v1412_v7 = vld [vmem:[%s251_s22 + $0x10] sm:$0xff]   ;;  %v396_v8 = vsel %vm332_vm0, %v1409_v3, 0  ;;  %v477_v9 = vsel %vm332_vm0, %v1410_v5, 0  ;;  %v1413_v10 = vld [vmem:[%s251_s22 + $0x8] sm:$0xff]   ;;  %v1414_v11 = vld [vmem:[%s251_s22 + $0x18] sm:$0xff]   ;;  %316 = vst.msk [vmem:[#allocation2] sm:$0xff] %vm315_vm1, %v1650_v12 }
  0x7b   : > { %1323 = vmatprep.subr.msk.bf16.mxu0 %vm332_vm0, %v1409_v3  ;;  %1325 = vmatprep.subr.msk.bf16.mxu1 %vm332_vm0, %v1410_v5  ;;  %317 = vst.msk [vmem:[#allocation2 + $0x8] sm:$0xff] %vm315_vm1, %v1650_v12  ;;  %319 = vst.msk [vmem:[#allocation2 + $0x18] sm:$0xff] %vm315_vm1, %v1650_v12  ;;  %v1651_v29 = vmov 0   ;;  %v1652_v30 = vmov 0.0   ;;  %s269_s18 = scalar_lea.vmem [#allocation10], %s1889_s10  ;;  %vm1038_vm2 = vcmask 257024  }
  0x7c   : > { %1294 = vmatprep.mubr.msk.bf16.mxu0 %vm332_vm0, %v1411_v6  ;;  %1302 = vmatprep.mubr.msk.bf16.mxu1 %vm332_vm0, %v1412_v7  ;;  %320 = vst.msk [vmem:[#allocation2 + $0x20] sm:$0xff] %vm315_vm1, %v1650_v12  ;;  %321 = vst.msk [vmem:[#allocation2 + $0x28] sm:$0xff] %vm315_vm1, %v1650_v12  ;;  %v1415_v63 = vld [vmem:[%s269_s18] sm:$0xff]   ;;  %v1416_v0 = vld [vmem:[%s269_s18 + $0x8] sm:$0xff]   ;;  %s2113_s24 = scalar_lea.vmem [#allocation11], %s1889_s10  ;;  %s1273_s16 = sshll.u32 %s1635_s15, 9 }
  0x7d   : > { %322 = vst.msk [vmem:[#allocation2 + $0x30] sm:$0xff] %vm315_vm1, %v1650_v12  ;;  %323 = vst.msk [vmem:[#allocation2 + $0x38] sm:$0xff] %vm315_vm1, %v1650_v12  ;;  %1406 = vset.pattern.permute.xlu1 %v1651_v29  ;;  %1405 = vset.pattern.permute.xlu0 %v1651_v29  ;;  %v1417_v1 = vld [vmem:[%s269_s18 + $0x10] sm:$0xff]   ;;  %v1418_v2 = vld [vmem:[%s269_s18 + $0x18] sm:$0xff]   ;;  %s1064_s20 = sshll.u32 %s2113_s24, 4  ;;  %s2134_s30 = scalar_lea.hbm %s2190_s3, %s1273_s16  ;;  %s2136_s20 = int_to_ptr.vmem [resolvable:$true] %s1064_s20 }
  0x7e   : > { %326 = vst.msk [vmem:[#allocation3 + $0x10] sm:$0xff] %vm315_vm1, %v1652_v30  ;;  %324 = vst.msk [vmem:[#allocation3] sm:$0xff] %vm315_vm1, %v1652_v30  ;;  %s1048_s15 = scalar_lea.sflag [#allocation7], %s1886_s21  ;;  %s1557_s6 = scalar_lea.vmem %s2136_s20, 512 }
  0x7f   : > { %325 = vst.msk [vmem:[#allocation3 + $0x8] sm:$0xff] %vm315_vm1, %v1652_v30  ;;  %327 = vst.msk [vmem:[#allocation3 + $0x18] sm:$0xff] %vm315_vm1, %v1652_v30  ;;  %p1558_p0 = scmp.ne.s32.totalorder %s2136_s20, %s1557_s6  ;;  %p2219_p10 = scmp.ne.s32.totalorder %s2205_s25, 0 }
  0x80   : > { %328 = vst.msk [vmem:[#allocation3 + $0x20] sm:$0xff] %vm315_vm1, %v1652_v30  ;;  %329 = vst.msk [vmem:[#allocation3 + $0x28] sm:$0xff] %vm315_vm1, %v1652_v30  ;;  %v1971_v31 = vld [vmem:[#allocation2 + $0x10] sm:$0xff]  ;;  %s1653_s8 = smov [#allocation11]  }
  0x81   : > { %330 = vst.msk [vmem:[#allocation3 + $0x30] sm:$0xff] %vm315_vm1, %v1652_v30  ;;  %331 = vst.msk [vmem:[#allocation3 + $0x38] sm:$0xff] %vm315_vm1, %v1652_v30  ;;  %v1978_v36 = vld [vmem:[#allocation2] sm:$0xff]  ;;  %p1559_p8 = pnand %p1558_p0, %p2219_p10  ;;  %s1561_s26 = sshll.u32 %s1653_s8, 4  ;;  %s1562_s26 = int_to_ptr.vmem [resolvable:$false] %s1561_s26 }
  0x82   : > { %1293 = vmatpush3.bf16.xpose.msra.mxu0 %v396_v8  ;;  %1301 = vmatpush3.bf16.xpose.msra.mxu1 %v477_v9  ;;  %333 = vst.msk [vmem:[#allocation4] sm:$0xff] %vm332_vm0, %v1652_v30  ;;  %334 = vst.msk [vmem:[#allocation4 + $0x8] sm:$0xff] %vm332_vm0, %v1652_v30  ;;  %v1988_v40 = vld [vmem:[#allocation2 + $0x18] sm:$0xff]  ;;  %v1997_v44 = vld [vmem:[#allocation2 + $0x8] sm:$0xff]  ;;  %s1563_s1 = scalar_lea.vmem %s1562_s26, 1024  ;;  %p1564_p12 = scmp.lt.s32.totalorder %s2136_s20, %s1562_s26 }
  0x83   : > { %335 = vst.msk [vmem:[#allocation4 + $0x10] sm:$0xff] %vm332_vm0, %v1652_v30  ;;  %336 = vst.msk [vmem:[#allocation4 + $0x18] sm:$0xff] %vm332_vm0, %v1652_v30  ;;  %v1973_v33 = vld [vmem:[#allocation2 + $0x20] sm:$0xff]  ;;  %v2007_v48 = vld [vmem:[#allocation2 + $0x28] sm:$0xff]  ;;  %1306 = vmatprep.subr.bf16.mxu0 %v1415_v63  ;;  %1314 = vmatprep.subr.bf16.mxu1 %v1417_v1  ;;  %p1560_p9 = pneg %p1559_p8  ;;  %p1565_p1 = scmp.lt.s32.totalorder %s1563_s1, %s1557_s6 }
  0x84   : > { %337 = vst.msk [vmem:[#allocation4 + $0x20] sm:$0xff] %vm332_vm0, %v1652_v30  ;;  %338 = vst.msk [vmem:[#allocation4 + $0x28] sm:$0xff] %vm332_vm0, %v1652_v30  ;;  %v2016_v52 = vld [vmem:[#allocation2 + $0x30] sm:$0xff]  ;;  %v2025_v56 = vld [vmem:[#allocation2 + $0x38] sm:$0xff] }
  0x85   : > { %339 = vst.msk [vmem:[#allocation4 + $0x30] sm:$0xff] %vm332_vm0, %v1652_v30  ;;  %340 = vst.msk [vmem:[#allocation4 + $0x38] sm:$0xff] %vm332_vm0, %v1652_v30  ;;  %p1566_p6 = por %p1565_p1, %p1564_p12 }
  0x87   : > { %p1567_p13 = pnand %p1566_p6, %p1560_p9 }
  0x89   : > { %1295 = vmatmul.mubr.msk.bf16.vlgmr.msra.gmra.mrb[0].mxu0 %vm332_vm0, %v1413_v10  ;;  %1303 = vmatmul.mubr.msk.bf16.vlgmr.msra.gmra.mrb[0].mxu1 %vm332_vm0, %v1414_v11 }
  0x8a   : > { %1307 = vmatpush3.bf16.msra.mxu0 %v1415_v63  ;;  %1315 = vmatpush3.bf16.msra.mxu1 %v1417_v1 }
  0x8b   : > { %1308 = vmatprep.subr.bf16.mxu0 %v1416_v0  ;;  %1316 = vmatprep.subr.bf16.mxu1 %v1418_v2 }
  0x8e   : > { %1309 = vmatpush3.bf16.msra.mxu0 %v1416_v0  ;;  %1317 = vmatpush3.bf16.msra.mxu1 %v1418_v2 }
 0x15c   : > { %v1923_v13 = vpop.f32.mrb[0].mxu0  ;;  %v1925_v14 = vpop.f32.mrb[0].mxu1 }
 0x15d   : > { %v1927_v15 = vpop.f32.mrb[1].mxu0  ;;  %v542_v16 = vsel %vm332_vm0, %v1923_v13, -inf  ;;  %v1931_v17 = vpop.f32.mrb[1].mxu1  ;;  %v554_v27 = vsel %vm332_vm0, %v1925_v14, -inf }
 0x15e   : > { %543 = vmax.xlane.f32.xlu0 %v542_v16  ;;  %v1933_v18 = vpop.f32.mrb[2].mxu0  ;;  %v548_v19 = vsel %vm332_vm0, %v1931_v17, -inf  ;;  %v1939_v21 = vpop.f32.mrb[2].mxu1  ;;  %v536_v23 = vsel %vm332_vm0, %v1927_v15, -inf }
 0x15f   : > { %v1937_v20 = vpop.f32.mrb[3].mxu0  ;;  %549 = vmax.xlane.f32.xlu1 %v548_v19  ;;  %v1941_v22 = vpop.f32.mrb[3].mxu1  ;;  %v545_v24 = vsel %vm332_vm0, %v1933_v18, -inf  ;;  %v557_v28 = vsel %vm332_vm0, %v1939_v21, -inf }
 0x160   : > { %v539_v25 = vsel %vm332_vm0, %v1937_v20, -inf  ;;  %v551_v26 = vsel %vm332_vm0, %v1941_v22, -inf }
 0x162   : > { %537 = vmax.xlane.f32.xlu0 %v536_v23 }
 0x163   : > { %546 = vmax.xlane.f32.xlu1 %v545_v24 }
 0x166   : > { %540 = vmax.xlane.f32.xlu0 %v539_v25 }
 0x167   : > { %552 = vmax.xlane.f32.xlu1 %v551_v26 }
 0x16a   : > { %555 = vmax.xlane.f32.xlu0 %v554_v27 }
 0x16b   : > { %558 = vmax.xlane.f32.xlu1 %v557_v28 }
 0x1eb   : > { %v544_v32 = vpop.xlane.xlu0 %543 }
 0x1ec   : > { %v1976_v34 = vmax.f32 %v1971_v31, %v544_v32  ;;  %v550_v35 = vpop.xlane.xlu1 %549 }
 0x1ed   : > { %v1985_v38 = vmax.f32 %v1973_v33, %v550_v35 }
 0x1ee   : > { %v570_v37 = vsub.f32 %v1971_v31, %v1976_v34  ;;  %925 = vst.msk [vmem:[#allocation2 + $0x10] sm:$0xff] %vm315_vm1, %v1976_v34  ;;  %604 = vperm.xlu1 %1406, %v1976_v34  }
 0x1ef   : > { %v538_v39 = vpop.xlane.xlu0 %537  ;;  %v572_v41 = vsub.f32 %v1973_v33, %v1985_v38  ;;  %927 = vst.msk [vmem:[#allocation2 + $0x20] sm:$0xff] %vm315_vm1, %v1985_v38 }
 0x1f0   : > { %v1995_v42 = vmax.f32 %v1978_v36, %v538_v39  ;;  %v547_v43 = vpop.xlane.xlu1 %546 }
 0x1f1   : > { %v2004_v46 = vmax.f32 %v1988_v40, %v547_v43 }
 0x1f2   : > { %v568_v45 = vsub.f32 %v1978_v36, %v1995_v42  ;;  %923 = vst.msk [vmem:[#allocation2] sm:$0xff] %vm315_vm1, %v1995_v42  ;;  %594 = vperm.xlu0 %1405, %v1995_v42  }
 0x1f3   : > { %v541_v47 = vpop.xlane.xlu0 %540  ;;  %v571_v49 = vsub.f32 %v1988_v40, %v2004_v46  ;;  %926 = vst.msk [vmem:[#allocation2 + $0x18] sm:$0xff] %vm315_vm1, %v2004_v46 }
 0x1f4   : > { %v2014_v50 = vmax.f32 %v1997_v44, %v541_v47  ;;  %v553_v51 = vpop.xlane.xlu1 %552 }
 0x1f5   : > { %v2023_v54 = vmax.f32 %v2007_v48, %v553_v51 }
 0x1f6   : > { %v569_v53 = vsub.f32 %v1997_v44, %v2014_v50  ;;  %924 = vst.msk [vmem:[#allocation2 + $0x8] sm:$0xff] %vm315_vm1, %v2014_v50  ;;  %v584_v44 = vmul.f32 1.442695, %v572_v41 }
 0x1f7   : > { %v556_v55 = vpop.xlane.xlu0 %555  ;;  %v573_v57 = vsub.f32 %v2007_v48, %v2023_v54  ;;  %928 = vst.msk [vmem:[#allocation2 + $0x28] sm:$0xff] %vm315_vm1, %v2023_v54  ;;  %v658_v48 = vld [vmem:[#allocation3 + $0x10] sm:$0xff] }
 0x1f8   : > { %v2032_v58 = vmax.f32 %v2016_v52, %v556_v55  ;;  %v559_v59 = vpop.xlane.xlu1 %558 }
 0x1f9   : > { %v2039_v61 = vmax.f32 %v2025_v56, %v559_v59  ;;  %v586_v36 = vmul.f32 1.442695, %v573_v57 }
 0x1fa   : > { %v574_v60 = vsub.f32 %v2016_v52, %v2032_v58  ;;  %929 = vst.msk [vmem:[#allocation2 + $0x30] sm:$0xff] %vm315_vm1, %v2032_v58  ;;  %624 = vperm.xlu1 %1406, %v2032_v58   ;;  %v656_v52 = vld [vmem:[#allocation3] sm:$0xff] }
 0x1fb   : > { %v575_v62 = vsub.f32 %v2025_v56, %v2039_v61  ;;  %930 = vst.msk [vmem:[#allocation2 + $0x38] sm:$0xff] %vm315_vm1, %v2039_v61 }
 0x1fc   : > { %v588_v31 = vmul.f32 1.442695, %v574_v60  ;;  %v660_v60 = vld [vmem:[#allocation3 + $0x20] sm:$0xff] }
 0x1fd   : > { %v590_v34 = vmul.f32 1.442695, %v575_v62 }
 0x1fe   : > { %614 = vperm.xlu1 %1406, %v1985_v38  }
 0x202   : > { %609 = vperm.xlu1 %1406, %v2004_v46  }
 0x206   : > { %599 = vperm.xlu1 %1406, %v2014_v50  }
 0x20a   : > { %619 = vperm.xlu1 %1406, %v2023_v54  }
 0x20e   : > { %629 = vperm.xlu1 %1406, %v2039_v61  }
 0x26d   : > { %v605_v3 = vpop.permute.xlu1 %604 }
 0x26e   : > { %v634_v4 = vsub.f32 %v1923_v13, %v605_v3 }
 0x270   : > { %v644_v5 = vmul.f32 1.442695, %v634_v4 }
 0x271   : > { %v595_v6 = vpop.permute.xlu0 %594 }
 0x272   : > { %1419 = vpow2.f32 %v644_v5  ;;  %v632_v7 = vsub.f32 %v1927_v15, %v595_v6 }
 0x274   : > { %v640_v8 = vmul.f32 1.442695, %v632_v7  ;;  %v578_v7 = vmul.f32 1.442695, %v569_v53 }
 0x276   : > { %1421 = vpow2.f32 %v640_v8  ;;  %v576_v8 = vmul.f32 1.442695, %v568_v45 }
 0x279   : > { %v625_v9 = vpop.permute.xlu1 %624 }
 0x27a   : > { %v638_v15 = vsub.f32 %v1925_v14, %v625_v9  ;;  %v580_v9 = vmul.f32 1.442695, %v570_v37 }
 0x27c   : > { %v1420_v10 = vpop.eup %1419  ;;  %v652_v29 = vmul.f32 1.442695, %v638_v15 }
 0x27d   : > { %v615_v11 = vpop.permute.xlu1 %614  ;;  %v678_v12 = vsel %vm332_vm0, %v1420_v10, 0.0 }
 0x27e   : > { %v636_v16 = vsub.f32 %v1931_v17, %v615_v11  ;;  %679 = vadd.xlane.f32.xlu0 %v678_v12  ;;  %v659_v12 = vld [vmem:[#allocation3 + $0x18] sm:$0xff] }
 0x280   : > { %v1422_v19 = vpop.eup %1421  ;;  %v648_v23 = vmul.f32 1.442695, %v636_v16 }
 0x281   : > { %v610_v24 = vpop.permute.xlu1 %609  ;;  %v672_v13 = vsel %vm332_vm0, %v1422_v19, 0.0 }
 0x282   : > { %1423 = vpow2.f32 %v648_v23  ;;  %v635_v25 = vsub.f32 %v1933_v18, %v610_v24  ;;  %673 = vadd.xlane.f32.xlu1 %v672_v13  ;;  %v657_v24 = vld [vmem:[#allocation3 + $0x8] sm:$0xff] }
 0x284   : > { %v646_v26 = vmul.f32 1.442695, %v635_v25 }
 0x285   : > { %v600_v27 = vpop.permute.xlu1 %599 }
 0x286   : > { %1425 = vpow2.f32 %v646_v26  ;;  %v633_v28 = vsub.f32 %v1937_v20, %v600_v27  ;;  %v661_v27 = vld [vmem:[#allocation3 + $0x28] sm:$0xff] }
 0x288   : > { %v642_v30 = vmul.f32 1.442695, %v633_v28  ;;  %v662_v28 = vld [vmem:[#allocation3 + $0x30] sm:$0xff] }
 0x289   : > { %v620_v17 = vpop.permute.xlu1 %619 }
 0x28a   : > { %1427 = vpow2.f32 %v642_v30  ;;  %v637_v32 = vsub.f32 %v1941_v22, %v620_v17 }
 0x28b   : > { %1429 = vpow2.f32 %v652_v29 }
 0x28c   : > { %v1424_v35 = vpop.eup %1423  ;;  %v650_v39 = vmul.f32 1.442695, %v637_v32 }
 0x28d   : > { %v630_v43 = vpop.permute.xlu1 %629  ;;  %v684_v18 = vsel %vm332_vm0, %v1424_v35, 0.0 }
 0x28e   : > { %1431 = vpow2.f32 %v650_v39  ;;  %v639_v14 = vsub.f32 %v1939_v21, %v630_v43  ;;  %685 = vadd.xlane.f32.xlu0 %v684_v18  ;;  %v663_v18 = vld [vmem:[#allocation3 + $0x38] sm:$0xff] }
 0x290   : > { %v1426_v47 = vpop.eup %1425  ;;  %v654_v51 = vmul.f32 1.442695, %v639_v14 }
 0x291   : > { %v681_v20 = vsel %vm332_vm0, %v1426_v47, 0.0  ;;  %v770_v55 = vpack.c.bf16 %v1426_v47, %v1420_v10  ;;  %v582_v10 = vmul.f32 1.442695, %v571_v49 }
 0x292   : > { %1433 = vpow2.f32 %v654_v51  ;;  %682 = vadd.xlane.f32.xlu1 %v681_v20 }
 0x293   : > { %1435 = vpow2.f32 %v578_v7 }
 0x294   : > { %v1428_v59 = vpop.eup %1427  ;;  %1437 = vpow2.f32 %v576_v8 }
 0x295   : > { %v675_v22 = vsel %vm332_vm0, %v1428_v59, 0.0  ;;  %v769_v63 = vpack.c.bf16 %v1428_v59, %v1422_v19  ;;  %v1430_v0 = vpop.eup %1429  ;;  %1439 = vpow2.f32 %v580_v9 }
 0x296   : > { %676 = vadd.xlane.f32.xlu0 %v675_v22  ;;  %v690_v21 = vsel %vm332_vm0, %v1430_v0, 0.0  ;;  %1441 = vpow2.f32 %v582_v10 }
 0x297   : > { %1310 = vmatprep.mubr.msk.bf16.mxu0 %vm332_vm0, %v769_v63  ;;  %1443 = vpow2.f32 %v584_v44  ;;  %v715_v44 = vld [vmem:[#allocation4 + $0x10] sm:$0xff] }
 0x298   : > { %v1432_v1 = vpop.eup %1431  ;;  %1311 = vmatmul.mubr.msk.bf16.vlgmr.msra.gmra.mrb[4].mxu0 %vm332_vm0, %v770_v55  ;;  %1445 = vpow2.f32 %v586_v36  ;;  %v713_v36 = vld [vmem:[#allocation4] sm:$0xff] }
 0x299   : > { %v687_v2 = vsel %vm332_vm0, %v1432_v1, 0.0  ;;  %v771_v3 = vpack.c.bf16 %v1432_v1, %v1424_v35  ;;  %1447 = vpow2.f32 %v588_v31 }
 0x29a   : > { %691 = vadd.xlane.f32.xlu0 %v690_v21  ;;  %688 = vadd.xlane.f32.xlu1 %v687_v2  ;;  %1449 = vpow2.f32 %v590_v34  ;;  %v716_v34 = vld [vmem:[#allocation4 + $0x18] sm:$0xff] }
 0x29b   : > { %1318 = vmatprep.mubr.msk.bf16.mxu1 %vm332_vm0, %v771_v3 }
 0x29c   : > { %v1434_v4 = vpop.eup %1433 }
 0x29d   : > { %v693_v5 = vsel %vm332_vm0, %v1434_v4, 0.0  ;;  %v772_v6 = vpack.c.bf16 %v1434_v4, %v1430_v0  ;;  %v1436_v37 = vpop.eup %1435 }
 0x29e   : > { %694 = vadd.xlane.f32.xlu1 %v693_v5  ;;  %v1438_v40 = vpop.eup %1437  ;;  %v665_v15 = vmul.f32 %v1436_v37, %v657_v24 }
 0x29f   : > { %1319 = vmatmul.mubr.msk.bf16.vlgmr.msra.gmra.mrb[4].mxu1 %vm332_vm0, %v772_v6  ;;  %v1440_v33 = vpop.eup %1439  ;;  %v664_v54 = vmul.f32 %v1438_v40, %v656_v52  ;;  %v719_v52 = vld [vmem:[#allocation4 + $0x30] sm:$0xff] }
 0x2a0   : > { %v1442_v38 = vpop.eup %1441  ;;  %v666_v49 = vmul.f32 %v1440_v33, %v658_v48 }
 0x2a1   : > { %v1444_v41 = vpop.eup %1443  ;;  %v667_v19 = vmul.f32 %v1442_v38, %v659_v12 }
 0x2a2   : > { %v1446_v42 = vpop.eup %1445  ;;  %v668_v62 = vmul.f32 %v1444_v41, %v660_v60  ;;  %v720_v60 = vld [vmem:[#allocation4 + $0x38] sm:$0xff] }
 0x2a3   : > { %v1448_v45 = vpop.eup %1447  ;;  %v669_v32 = vmul.f32 %v1446_v42, %v661_v27 }
 0x2a4   : > { %v1450_v46 = vpop.eup %1449  ;;  %v670_v35 = vmul.f32 %v1448_v45, %v662_v28 }
 0x2a5   : > { %v671_v20 = vmul.f32 %v1450_v46, %v663_v18 }
 0x2af   : > { %728 = vperm.xlu1 %1406, %v1436_v37   ;;  %v714_v37 = vld [vmem:[#allocation4 + $0x8] sm:$0xff] }
 0x2b0   : > { %723 = vperm.xlu0 %1405, %v1438_v40  }
 0x2b3   : > { %733 = vperm.xlu1 %1406, %v1440_v33  }
 0x2b4   : > { %738 = vperm.xlu0 %1405, %v1442_v38  }
 0x2b7   : > { %743 = vperm.xlu1 %1406, %v1444_v41  }
 0x2b8   : > { %748 = vperm.xlu0 %1405, %v1446_v42  }
 0x2bb   : > { %753 = vperm.xlu1 %1406, %v1448_v45  }
 0x2bc   : > { %758 = vperm.xlu0 %1405, %v1450_v46  }
 0x30b   : > { %v680_v50 = vpop.xlane.xlu0 %679 }
 0x30c   : > { %v698_v53 = vadd.f32 %v680_v50, %v666_v49 }
 0x30e   : > { %707 = vst.msk [vmem:[#allocation3 + $0x10] sm:$0xff] %vm315_vm1, %v698_v53 }
 0x30f   : > { %v674_v56 = vpop.xlane.xlu1 %673 }
 0x310   : > { %v696_v57 = vadd.f32 %v674_v56, %v664_v54 }
 0x312   : > { %705 = vst.msk [vmem:[#allocation3] sm:$0xff] %vm315_vm1, %v696_v57  ;;  %v717_v57 = vld [vmem:[#allocation4 + $0x20] sm:$0xff] }
 0x315   : > { %v936_v58 = vld [vmem:[#allocation3 + $0x10] sm:$0xff] }
 0x316   : > { %1451 = vrcp.f32 %v936_v58 }
 0x319   : > { %v934_v61 = vld [vmem:[#allocation3] sm:$0xff] }
 0x31a   : > { %1453 = vrcp.f32 %v934_v61 }
 0x31b   : > { %v686_v11 = vpop.xlane.xlu0 %685 }
 0x31c   : > { %v700_v16 = vadd.f32 %v686_v11, %v668_v62  ;;  %v718_v62 = vld [vmem:[#allocation4 + $0x28] sm:$0xff] }
 0x31e   : > { %709 = vst.msk [vmem:[#allocation3 + $0x20] sm:$0xff] %vm315_vm1, %v700_v16 }
 0x31f   : > { %v683_v23 = vpop.xlane.xlu1 %682 }
 0x320   : > { %v1452_v13 = vpop.eup %1451  ;;  %v699_v25 = vadd.f32 %v683_v23, %v667_v19 }
 0x321   : > { %970 = vperm.xlu1 %1406, %v1452_v13  }
 0x322   : > { %708 = vst.msk [vmem:[#allocation3 + $0x18] sm:$0xff] %vm315_vm1, %v699_v25 }
 0x323   : > { %v677_v26 = vpop.xlane.xlu0 %676 }
 0x324   : > { %v1454_v29 = vpop.eup %1453  ;;  %v697_v30 = vadd.f32 %v677_v26, %v665_v15 }
 0x325   : > { %960 = vperm.xlu1 %1406, %v1454_v29   ;;  %v938_v17 = vld [vmem:[#allocation3 + $0x20] sm:$0xff] }
 0x326   : > { %706 = vst.msk [vmem:[#allocation3 + $0x8] sm:$0xff] %vm315_vm1, %v697_v30  ;;  %1455 = vrcp.f32 %v938_v17 }
 0x327   : > { %v689_v39 = vpop.xlane.xlu1 %688  ;;  %v692_v43 = vpop.xlane.xlu0 %691 }
 0x328   : > { %v701_v14 = vadd.f32 %v689_v39, %v669_v32  ;;  %v702_v47 = vadd.f32 %v692_v43, %v670_v35 }
 0x329   : > { %v937_v51 = vld [vmem:[#allocation3 + $0x18] sm:$0xff] }
 0x32a   : > { %710 = vst.msk [vmem:[#allocation3 + $0x28] sm:$0xff] %vm315_vm1, %v701_v14  ;;  %711 = vst.msk [vmem:[#allocation3 + $0x30] sm:$0xff] %vm315_vm1, %v702_v47  ;;  %1457 = vrcp.f32 %v937_v51 }
 0x32b   : > { %v695_v55 = vpop.xlane.xlu1 %694 }
 0x32c   : > { %v703_v59 = vadd.f32 %v695_v55, %v671_v20 }
 0x32d   : > { %v935_v22 = vld [vmem:[#allocation3 + $0x8] sm:$0xff] }
 0x32e   : > { %712 = vst.msk [vmem:[#allocation3 + $0x38] sm:$0xff] %vm315_vm1, %v703_v59  ;;  %1459 = vrcp.f32 %v935_v22 }
 0x32f   : > { %v729_v7 = vpop.permute.xlu1 %728  ;;  %v724_v8 = vpop.permute.xlu0 %723 }
 0x330   : > { %v1456_v63 = vpop.eup %1455  ;;  %v761_v38 = vmul.f32 %v724_v8, %v713_v36  ;;  %v762_v48 = vmul.f32 %v729_v7, %v714_v37 }
 0x331   : > { %980 = vperm.xlu1 %1406, %v1456_v63   ;;  %v939_v0 = vld [vmem:[#allocation3 + $0x28] sm:$0xff]  ;;  %v940_v1 = vld [vmem:[#allocation3 + $0x30] sm:$0xff] }
 0x332   : > { %1461 = vrcp.f32 %v939_v0 }
 0x333   : > { %1463 = vrcp.f32 %v940_v1  ;;  %v734_v9 = vpop.permute.xlu1 %733  ;;  %v739_v10 = vpop.permute.xlu0 %738 }
 0x334   : > { %v1458_v21 = vpop.eup %1457  ;;  %v763_v40 = vmul.f32 %v734_v9, %v715_v44  ;;  %v764_v42 = vmul.f32 %v739_v10, %v716_v34 }
 0x335   : > { %975 = vperm.xlu0 %1405, %v1458_v21   ;;  %v941_v2 = vld [vmem:[#allocation3 + $0x38] sm:$0xff] }
 0x336   : > { %1465 = vrcp.f32 %v941_v2 }
 0x337   : > { %v744_v31 = vpop.permute.xlu1 %743  ;;  %v749_v33 = vpop.permute.xlu0 %748 }
 0x338   : > { %v1460_v3 = vpop.eup %1459  ;;  %v765_v12 = vmul.f32 %v744_v31, %v717_v57  ;;  %v766_v13 = vmul.f32 %v749_v33, %v718_v62 }
 0x339   : > { %965 = vperm.xlu0 %1405, %v1460_v3  }
 0x33b   : > { %v754_v53 = vpop.permute.xlu1 %753  ;;  %v759_v61 = vpop.permute.xlu0 %758 }
 0x33c   : > { %v1462_v4 = vpop.eup %1461  ;;  %v767_v11 = vmul.f32 %v754_v53, %v719_v52  ;;  %v768_v19 = vmul.f32 %v759_v61, %v720_v60 }
 0x33d   : > { %v1464_v5 = vpop.eup %1463  ;;  %985 = vperm.xlu0 %1405, %v1462_v4  }
 0x33e   : > { %990 = vperm.xlu1 %1406, %v1464_v5  }
 0x340   : > { %v1466_v6 = vpop.eup %1465 }
 0x341   : > { %995 = vperm.xlu0 %1405, %v1466_v6  }
 0x36b   : > { %v1312_v41 = vpop.f32.mrb[4].mxu0 }
 0x36c   : > { %v909_v45 = vadd.f32 %v1312_v41, %v763_v40  ;;  %v825_v46 = vpop.f32.mrb[5].mxu0 }
 0x36d   : > { %v907_v49 = vadd.f32 %v825_v46, %v761_v38  ;;  %v1313_v50 = vpop.f32.mrb[6].mxu0 }
 0x36e   : > { %917 = vst.msk [vmem:[#allocation4 + $0x10] sm:$0xff] %vm332_vm0, %v909_v45  ;;  %v910_v54 = vadd.f32 %v1313_v50, %v764_v42  ;;  %v828_v56 = vpop.f32.mrb[7].mxu0 }
 0x36f   : > { %915 = vst.msk [vmem:[#allocation4] sm:$0xff] %vm332_vm0, %v907_v49  ;;  %v908_v58 = vadd.f32 %v828_v56, %v762_v48 }
 0x370   : > { %918 = vst.msk [vmem:[#allocation4 + $0x18] sm:$0xff] %vm332_vm0, %v910_v54 }
 0x371   : > { %916 = vst.msk [vmem:[#allocation4 + $0x8] sm:$0xff] %vm332_vm0, %v908_v58 }
 0x372   : > { %v1320_v16 = vpop.f32.mrb[4].mxu1 }
 0x373   : > { %v913_v23 = vadd.f32 %v1320_v16, %v767_v11  ;;  %v892_v24 = vpop.f32.mrb[5].mxu1 }
 0x374   : > { %v911_v25 = vadd.f32 %v892_v24, %v765_v12  ;;  %v1321_v15 = vpop.f32.mrb[6].mxu1 }
 0x375   : > { %921 = vst.msk [vmem:[#allocation4 + $0x30] sm:$0xff] %vm332_vm0, %v913_v23  ;;  %v914_v26 = vadd.f32 %v1321_v15, %v768_v19  ;;  %v895_v27 = vpop.f32.mrb[7].mxu1  ;;  %v952_v29 = vld [vmem:[#allocation4 + $0x10] sm:$0xff] }
 0x376   : > { %919 = vst.msk [vmem:[#allocation4 + $0x20] sm:$0xff] %vm332_vm0, %v911_v25  ;;  %v912_v28 = vadd.f32 %v895_v27, %v766_v13  ;;  %v950_v35 = vld [vmem:[#allocation4] sm:$0xff] }
 0x377   : > { %922 = vst.msk [vmem:[#allocation4 + $0x38] sm:$0xff] %vm332_vm0, %v914_v26  ;;  %v953_v55 = vld [vmem:[#allocation4 + $0x18] sm:$0xff] }
 0x378   : > { %920 = vst.msk [vmem:[#allocation4 + $0x28] sm:$0xff] %vm332_vm0, %v912_v28  ;;  %v951_v0 = vld [vmem:[#allocation4 + $0x8] sm:$0xff] }
 0x37c   : > { %v956_v6 = vld [vmem:[#allocation4 + $0x30] sm:$0xff] }
 0x37d   : > { %v954_v14 = vld [vmem:[#allocation4 + $0x20] sm:$0xff] }
 0x37e   : > { %v957_v44 = vld [vmem:[#allocation4 + $0x38] sm:$0xff] }
 0x37f   : > { %v955_v3 = vld [vmem:[#allocation4 + $0x28] sm:$0xff] }
 0x3a0   : > { %v971_v30 = vpop.permute.xlu1 %970 }
 0x3a1   : > { %v1000_v17 = vmul.f32 %v971_v30, %v952_v29 }
 0x3a3   : > { %v1266_v32 = vpack.c.bf16 %v1000_v17, %v1000_v17 }
 0x3a4   : > { %v961_v39 = vpop.permute.xlu1 %960 }
 0x3a5   : > { %1041 = vst.msk [vmem:[%s2113_s24 + $0x8] sm:$0xf] %vm1038_vm2, %v1266_v32  ;;  %v998_v43 = vmul.f32 %v961_v39, %v950_v35 }
 0x3a7   : > { %v1264_v18 = vpack.c.bf16 %v998_v43, %v998_v43 }
 0x3a9   : > { %1039 = vst.msk [vmem:[%s2113_s24] sm:$0xf] %vm1038_vm2, %v1264_v18 }
 0x3b0   : > { %v981_v47 = vpop.permute.xlu1 %980 }
 0x3b1   : > { %v1002_v51 = vmul.f32 %v981_v47, %v954_v14 }
 0x3b3   : > { %v1268_v20 = vpack.c.bf16 %v1002_v51, %v1002_v51 }
 0x3b4   : > { %v976_v59 = vpop.permute.xlu0 %975 }
 0x3b5   : > { %1043 = vst.msk [vmem:[%s2113_s24 + $0x10] sm:$0xf] %vm1038_vm2, %v1268_v20  ;;  %v1001_v22 = vmul.f32 %v976_v59, %v953_v55 }
 0x3b7   : > { %v1267_v63 = vpack.c.bf16 %v1001_v22, %v1001_v22 }
 0x3b8   : > { %v966_v1 = vpop.permute.xlu0 %965 }
 0x3b9   : > { %1042 = vst.msk [vmem:[%s2113_s24 + $0xc] sm:$0xf] %vm1038_vm2, %v1267_v63  ;;  %v999_v21 = vmul.f32 %v966_v1, %v951_v0 }
 0x3bb   : > { %v1265_v2 = vpack.c.bf16 %v999_v21, %v999_v21 }
 0x3bc   : > { %v986_v4 = vpop.permute.xlu0 %985 }
 0x3bd   : > { %1040 = vst.msk [vmem:[%s2113_s24 + $0x4] sm:$0xf] %vm1038_vm2, %v1265_v2  ;;  %v1003_v5 = vmul.f32 %v986_v4, %v955_v3  ;;  %v991_v7 = vpop.permute.xlu1 %990 }
 0x3be   : > { %v1004_v8 = vmul.f32 %v991_v7, %v956_v6 }
 0x3bf   : > { %v1269_v9 = vpack.c.bf16 %v1003_v5, %v1003_v5 }
 0x3c0   : > { %v1270_v10 = vpack.c.bf16 %v1004_v8, %v1004_v8  ;;  %v996_v36 = vpop.permute.xlu0 %995 }
 0x3c1   : > { %1044 = vst.msk [vmem:[%s2113_s24 + $0x14] sm:$0xf] %vm1038_vm2, %v1269_v9  ;;  %v1005_v31 = vmul.f32 %v996_v36, %v957_v44 }
 0x3c2   : > { %1045 = vst.msk [vmem:[%s2113_s24 + $0x18] sm:$0xf] %vm1038_vm2, %v1270_v10 }
 0x3c3   : > { %v1271_v34 = vpack.c.bf16 %v1005_v31, %v1005_v31 }
 0x3c5   : > { %1046 = vst.msk [vmem:[%s2113_s24 + $0x1c] sm:$0xf] %vm1038_vm2, %v1271_v34 }
 0x3c6   : > { %1570 = shalt.err (!%p1567_p13)
}
 0x3c7   : > { %s1571_s28 = scalar_lea.hbm %s2134_s30, 512  ;;  %s1575_s10 = scalar_lea.hbm %s2190_s3, 1024 }
 0x3c8   : > { %p1572_p11 = scmp.ne.s32.totalorder %s2134_s30, %s1571_s28  ;;  %p1576_p7 = scmp.lt.u32.totalorder %s2134_s30, %s2190_s3 }
 0x3c9   : > { %p1577_p4 = scmp.lt.u32.totalorder %s1575_s10, %s1571_s28  ;;  %p1579_p0 = scmp.lt.u32.totalorder %s1571_s28, %s2134_s30 }
 0x3ca   : > { %p1573_p2 = pnand %p1572_p11, %p2219_p10 }
 0x3cb   : > { %p1578_p3 = por %p1577_p4, %p1576_p7 }
 0x3cc   : > { %p1574_p5 = pneg %p1573_p2 }
 0x3cd   : > { %p1580_p8 = por %p1579_p0, %p1578_p3 }
 0x3cf   : > { %p1581_p9 = pnand %p1580_p8, %p1574_p5 }
 0x3d1   : > { %1584 = shalt.err (!%p1581_p9)
}
 0x3d2   : > { %s1654_s11 = smov 64   ;;  %s1655_s19 = smov 4  }
 0x3d3   : > { %1332 = dma.vmem_to_hbm [thread:$0]  (%p2219_p10), %s2136_s20, 512, %s2134_s30, %s1048_s15, %s1654_s11, %s1654_s11, %s1655_s19  }
 0x3d4 PF: > { %s1079_s9 = sand.u32 1, %s1623_s12   ;;  %p2220_p12 = scmp.ne.s32.totalorder %s2207_s27, 0 }
 0x3d5   : > { %p2221_p1 = scmp.ge.s32.totalorder %s1643_s17, 2  ;;  %s1080_s18 = scalar_lea.sflag [#allocation7], %s1079_s9 }
 0x3d7   : > { %p1345_p6 = pnand %p2221_p1, %p2220_p12 }
 0x3d9   : > { %1618 = dma.done.wait (!%p1345_p6), %s1080_s18, 512  }
 0x3da   : > { %1620 = vsyncadd (!%p1345_p6), %s1080_s18, 4294966784  ;;  %s22_s17 = sadd.s32 1, %s1643_s17   ;;  %s2222_s24 = sld [smem:[#allocation17_spill]] }
 0x3db   : > { %p19_p13 = scmp.ge.s32.totalorder %s22_s17, 4   ;;  %s2223_s15 = sld [smem:[#allocation15_spill]] }
 0x3dc   : > { %s2224_s16 = sld [smem:[#allocation16_spill]]  ;;  %s2225_s12 = smov %s1627_s13 }
 0x3dd   : > { %s2226_s13 = smov %s1631_s14  ;;  %21 = sbr.rel (!%p19_p13) target bundleno = 10 (0xa), region = 109 }
 0x3e0   : > { %s2227_s14 = smov %s2222_s24 }
 0x3e4   :  { %1085 = vsyncpa [#allocation6], 1 }
 0x3e5   :  { %1087 = vsyncpa [#allocation6 + $0x1], 1 }
 0x3e6   :  { %1088 = vsyncpa [#allocation9], 1 }
 0x3e7   :  { %1090 = vsyncpa [#allocation9 + $0x1], 1 }
 0x3e8   :  { %1091 = vsyncpa [#allocation7], 1 }
 0x3e9   :  { %1093 = vsyncpa [#allocation7 + $0x1], 1 }

// kernel: flux_transformer_block.18
= control target key start
LH: loop header
LB: loop body
LE: loop exit
PB: predicated region body
PF: predicated region fallthrough
CT: control target
= control target key end

     0   :  { %s1535_s0 = inlined_call_operand.hbm [shape: bf16[2,24,64], index: 0, kind: input, shape index: {}]   ;;  %s1536_s1 = inlined_call_operand.hbm [shape: bf16[64,64], index: 1, kind: input, shape index: {}]   ;;  %s1537_s2 = inlined_call_operand.hbm [shape: bf16[1,64], index: 2, kind: input, shape index: {}]   ;;  %s1538_s3 = inlined_call_operand.hbm [shape: bf16[2,1,64], index: 3, kind: input, shape index: {}]   ;;  %s1539_s4 = inlined_call_operand.hbm [shape: bf16[2,24,64], index: 4, kind: input, shape index: {}]   ;;  %s1540_s5 = inlined_call_operand.hbm [shape: bf16[2,24,64], index: 5, kind: output, shape index: {}]  }
   0x1   :  { %1560 = sst [smem:[#allocation21_spill]] %s1536_s1 }
   0x2   :  { %1561 = sst [smem:[#allocation22_spill]] %s1538_s3 }
   0x3   :  { %10 = vsyncpa [#allocation4], 0 }
   0x4   :  { %12 = vsyncpa [#allocation4 + $0x1], 0 }
   0x5   :  { %13 = vsyncpa [#allocation7], 0 }
   0x6   :  { %14 = vsyncpa [#allocation10], 0 }
   0x7   :  { %16 = vsyncpa [#allocation10 + $0x1], 0 }
   0x8   :  { %17 = vsyncpa [#allocation5], 0 }
   0x9   :  { %19 = vsyncpa [#allocation5 + $0x1], 0  ;;  %s1198_s18 = smov 0   ;;  %s1200_s19 = smov 0  }
   0xa   :  { %s1202_s20 = smov 0   ;;  %s1204_s21 = smov 0  }
   0xb   :  { %s1206_s22 = smov 0   ;;  %s1208_s23 = smov 0  }
   0xc LB: > { %1562 = sst [smem:[#allocation17_spill]] %s1143_s20  ;;  %s1229_s24 = sadd.s32 4294967295, %s1155_s23   ;;  %s1155_s23 = sphi %s1208_s23, %s25_s23   ;;  %s1151_s22 = sphi %s1206_s22, %s1599_s22   ;;  %s1147_s21 = sphi %s1204_s21, %s1598_s21   ;;  %s1143_s20 = sphi %s1202_s20, %s1594_s20   ;;  %s1139_s19 = sphi %s1200_s19, %s1597_s19   ;;  %s1135_s18 = sphi %s1198_s18, %s1596_s18  }
   0xd   : > { %1563 = sst [smem:[#allocation18_spill]] %s1155_s23  ;;  %s759_s25 = sadd.s32 4294967294, %s1155_s23  }
   0xe   : > { %p75_p0 = scmp.ne.s32.totalorder %s1139_s19, %s1135_s18  ;;  %p1541_p1 = scmp.eq.s32.totalorder %s1229_s24, 0 }
   0xf   : > { %p221_p3 = scmp.eq.s32.totalorder %s759_s25, 1  ;;  %p760_p5 = scmp.ge.s32.totalorder %s1155_s23, 1 }
  0x10   : > { %p1238_p4 = por %p1541_p1, %p75_p0  ;;  %p228_p7 = scmp.lt.s32.totalorder %s1155_s23, 3 }
  0x11   : > { %p1243_p6 = por %p221_p3, %p75_p0  ;;  %s1157_s29 = smov [#allocation6]  }
  0x12   : > { %s1564_s26 = scalar_select %p1238_p4, 1, 0 }
  0x13   : > { %s1565_s27 = scalar_select %p1243_p6, 1, 0 }
  0x14   : > { %p1248_p8 = pnand %p760_p5, %p228_p7  ;;  %s244_s30 = sshll.u32 %s1157_s29, 4  ;;  %s245_s30 = int_to_ptr.vmem [resolvable:$true] %s244_s30 }
  0x15   : > { %s51_s7 = sadd.s32 1, %s1151_s22  ;;  %s1568_s1 = sld [smem:[#allocation21_spill]] }
  0x16   : > { %s1566_s28 = scalar_select %p1248_p8, 1, 0 }
  0x17   : > { %p831_p9 = pneg %p1248_p8 }
  0x19   : > { %p1257_p11 = pnand %p831_p9, %p1541_p1 }
  0x1b   : > { %s1567_s6 = scalar_select %p1257_p11, 1, 0 }
  0x1c   : > { %s919_s10 = scalar_lea.hbm %s1568_s1, 512  ;;  %p1549_p13 = pneg %p1257_p11 }
  0x1d   : > { %p920_p12 = scmp.ne.s32.totalorder %s1568_s1, %s919_s10  ;;  %p926_p5 = scmp.lt.u32.totalorder %s919_s10, %s1568_s1 }
  0x1f   : > { %p922_p0 = pnand %p1549_p13, %p920_p12 }
  0x21   : > { %p923_p3 = pneg %p922_p0 }
  0x23   : > { %p928_p7 = pnand %p926_p5, %p923_p3 }
  0x25   : > { %931 = shalt.err (!%p928_p7)
}
  0x26   : > { %s932_s15 = scalar_lea.vmem %s245_s30, 512  ;;  %p940_p2 = scmp.lt.s32.totalorder %s245_s30, %s245_s30 }
  0x27   : > { %p933_p9 = scmp.ne.s32.totalorder %s245_s30, %s932_s15  ;;  %p941_p6 = scmp.lt.s32.totalorder %s932_s15, %s932_s15 }
  0x29   : > { %p935_p10 = pnand %p933_p9, %p1549_p13  ;;  %p942_p4 = por %p941_p6, %p940_p2 }
  0x2b   : > { %p936_p1 = pneg %p935_p10 }
  0x2d   : > { %p943_p8 = pnand %p942_p4, %p936_p1 }
  0x2f   : > { %946 = shalt.err (!%p943_p8)
}
  0x30   : > { %s1544_s16 = smov 64   ;;  %s1546_s17 = smov 4  }
  0x31   : > { %834 = dma.hbm_to_vmem [thread:$0]  (!%p1257_p11), %s1568_s1, 512, %s245_s30, [#allocation7], %s1544_s16, %s1544_s16, %s1546_s17  }
  0x32   : > { %p53_p1 = scmp.ge.s32.totalorder %s51_s7, 2  ;;  %s62_s8 = sadd.s32 1, %s1143_s20 }
  0x33   : > { %p69_p2 = scmp.ne.s32.totalorder %s1143_s20, %s1139_s19  ;;  %p70_p4 = scmp.eq.s32.totalorder %s1155_s23, 0 }
  0x34   : > { %s1601_s7 = smov (%p53_p1, %s51_s7), 0  ;;  %p1570_p8 = scmp.eq.s32.totalorder %s1229_s24, 1 }
  0x35   : > { %1569 = sst [smem:[#allocation19_spill]] %s1601_s7  ;;  %p71_p6 = por %p70_p4, %p69_p2 }
  0x36   : > { %p1295_p10 = por %p1570_p8, %p69_p2  ;;  %s55_s10 = ssub.s32 %s1151_s22, %s1601_s7 }
  0x37   : > { %p854_p12 = scmp.lt.s32.totalorder %s1155_s23, 2  ;;  %p60_p0 = scmp.eq.s32.totalorder %s55_s10, 0 }
  0x38   : > { %s1571_s9 = scalar_select %p1295_p10, 1, 0 }
  0x39   : > { %s1303_s11 = sand.u32 1, %s1143_s20   ;;  %p1306_p3 = pnand %p854_p12, %p71_p6 }
  0x3a   : > { %s1311_s13 = scalar_select %p60_p0, %s1143_s20, %s62_s8  }
  0x3b   : > { %s1572_s12 = scalar_select %p1306_p3, 1, 0 }
  0x3c   : > { %1573 = sst [smem:[#allocation20_spill]] %s1311_s13  ;;  %s295_s14 = sand.u32 1, %s1155_s23  }
  0x3d   : > { %s765_s15 = sshll.u32 %s1151_s22, 4  ;;  %s298_s25 = scalar_lea.vmem [#allocation9], %s1303_s11 }
  0x3e   : > { %s306_s29 = sshll.u32 %s298_s25, 4  ;;  %s1574_s3 = sld [smem:[#allocation22_spill]]  ;;  %s1321_s29 = int_to_ptr.vmem [resolvable:$true] %s306_s29 }
  0x3f   : > { %s1323_s30 = scalar_lea.sflag [#allocation10], %s295_s14  ;;  %p1329_p7 = pneg %p1306_p3 }
  0x41   : > { %s1575_s8 = scalar_select %p1329_p7, 1, 0 }
  0x44   : > { %s1319_s10 = scalar_lea.hbm %s1574_s3, %s765_s15  ;;  %s952_s15 = scalar_lea.hbm %s1574_s3, 32 }
  0x45   : > { %s947_s1 = scalar_lea.hbm %s1319_s10, 16  ;;  %p953_p2 = scmp.lt.u32.totalorder %s1319_s10, %s1574_s3 }
  0x46   : > { %p948_p5 = scmp.ne.s32.totalorder %s1319_s10, %s947_s1  ;;  %p954_p4 = scmp.lt.u32.totalorder %s952_s15, %s947_s1 }
  0x47   : > { %p956_p8 = scmp.lt.u32.totalorder %s947_s1, %s1319_s10 }
  0x48   : > { %p950_p9 = pnand %p1329_p7, %p948_p5  ;;  %p955_p6 = por %p954_p4, %p953_p2 }
  0x4a   : > { %p951_p1 = pneg %p950_p9  ;;  %p957_p12 = por %p956_p8, %p955_p6 }
  0x4c   : > { %p958_p0 = pnand %p957_p12, %p951_p1 }
  0x4e   : > { %961 = shalt.err (!%p958_p0)
}
  0x4f   : > { %s962_s14 = scalar_lea.vmem %s1321_s29, 16  ;;  %s1160_s16 = smov [#allocation9]  }
  0x50   : > { %p963_p5 = scmp.ne.s32.totalorder %s1321_s29, %s962_s14  ;;  %s967_s17 = sshll.u32 %s1160_s16, 4  ;;  %s968_s17 = int_to_ptr.vmem [resolvable:$false] %s967_s17 }
  0x51   : > { %s969_s7 = scalar_lea.vmem %s968_s17, 32  ;;  %p970_p10 = scmp.lt.s32.totalorder %s1321_s29, %s968_s17 }
  0x52   : > { %p965_p9 = pnand %p963_p5, %p1329_p7  ;;  %p971_p11 = scmp.lt.s32.totalorder %s969_s7, %s962_s14 }
  0x54   : > { %p966_p13 = pneg %p965_p9  ;;  %p972_p2 = por %p971_p11, %p970_p10 }
  0x56   : > { %p973_p4 = pnand %p972_p2, %p966_p13 }
  0x58   : > { %976 = shalt.err (!%p973_p4)
}
  0x59   : > { %844 = dma.hbm_to_vmem [thread:$0]  (!%p1306_p3), %s1319_s10, 16, %s1321_s29, %s1323_s30  }
  0x5a   : > { %s1161_s1 = smov [#allocation8]   ;;  %s1576_s25 = smul.u32 12, %s1303_s11 }
  0x5b   : > { %s260_s15 = sshll.u32 %s1161_s1, 4  ;;  %s977_s14 = scalar_lea.hbm %s1537_s2, 16  ;;  %s261_s15 = int_to_ptr.vmem [resolvable:$true] %s260_s15 }
  0x5c   : > { %s317_s3 = scalar_lea.vmem [#allocation11], %s1576_s25  ;;  %p978_p11 = scmp.ne.s32.totalorder %s1537_s2, %s977_s14 }
  0x5d   : > { %s327_s16 = sshll.u32 %s317_s3, 4  ;;  %p1577_p13 = scmp.ne.s32.totalorder %s1567_s6, 0  ;;  %s1378_s16 = int_to_ptr.vmem [resolvable:$true] %s327_s16 }
  0x5e   : > { %p984_p8 = scmp.lt.u32.totalorder %s977_s14, %s1537_s2 }
  0x5f   : > { %p1578_p10 = pneg %p1577_p13 }
  0x61   : > { %p980_p1 = pnand %p978_p11, %p1578_p10 }
  0x63   : > { %p981_p6 = pneg %p980_p1 }
  0x65   : > { %p986_p12 = pnand %p984_p8, %p981_p6 }
  0x67   : > { %989 = shalt.err (!%p986_p12)
}
  0x68   : > { %s990_s3 = scalar_lea.vmem %s261_s15, 16  ;;  %p1579_p5 = pmov %p1578_p10 }
  0x69   : > { %p991_p0 = scmp.ne.s32.totalorder %s261_s15, %s990_s3  ;;  %s997_s13 = scalar_lea.vmem %s261_s15, 32 }
  0x6a   : > { %p998_p4 = scmp.lt.s32.totalorder %s261_s15, %s261_s15  ;;  %p999_p3 = scmp.lt.s32.totalorder %s997_s13, %s990_s3 }
  0x6b   : > { %p993_p9 = pnand %p991_p0, %p1579_p5 }
  0x6c   : > { %p1000_p7 = por %p999_p3, %p998_p4 }
  0x6d   : > { %p994_p2 = pneg %p993_p9 }
  0x6f   : > { %p1001_p10 = pnand %p1000_p7, %p994_p2 }
  0x71   : > { %1004 = shalt.err (!%p1001_p10)
}
  0x72   : > { %837 = dma.hbm_to_vmem [thread:$0]  (!%p1577_p13), %s1537_s2, 16, %s261_s15, [#allocation7]  }
  0x73   : > { %s810_s10 = smul.u32 192, %s1151_s22  ;;  %s1580_s1 = smov %s1576_s25 }
  0x74   : > { %s275_s25 = scalar_lea.vmem [#allocation3], %s1580_s1  ;;  %s272_s13 = scalar_lea.sflag [#allocation4], %s1303_s11 }
  0x75   : > { %s285_s17 = sshll.u32 %s275_s25, 4  ;;  %s1385_s6 = scalar_lea.hbm %s1535_s0, %s810_s10  ;;  %s1380_s17 = int_to_ptr.vmem [resolvable:$true] %s285_s17 }
  0x76   : > { %s1390_s15 = scalar_lea.hbm %s1539_s4, %s810_s10  ;;  %s1005_s20 = scalar_lea.hbm %s1385_s6, 192 }
  0x77   : > { %p1006_p3 = scmp.ne.s32.totalorder %s1385_s6, %s1005_s20  ;;  %p1581_p7 = scmp.ne.s32.totalorder %s1575_s8, 0 }
  0x78   : > { %s1010_s25 = scalar_lea.hbm %s1535_s0, 384  ;;  %p1011_p1 = scmp.lt.u32.totalorder %s1385_s6, %s1535_s0 }
  0x79   : > { %p1008_p11 = pnand %p1006_p3, %p1581_p7  ;;  %p1012_p6 = scmp.lt.u32.totalorder %s1010_s25, %s1005_s20 }
  0x7a   : > { %p1014_p12 = scmp.lt.u32.totalorder %s1005_s20, %s1385_s6 }
  0x7b   : > { %p1009_p13 = pneg %p1008_p11  ;;  %p1013_p8 = por %p1012_p6, %p1011_p1 }
  0x7d   : > { %p1015_p0 = por %p1014_p12, %p1013_p8 }
  0x7f   : > { %p1016_p5 = pnand %p1015_p0, %p1009_p13 }
  0x81   : > { %1019 = shalt.err (!%p1016_p5)
}
  0x82   : > { %s1020_s10 = scalar_lea.vmem %s1380_s17, 192  ;;  %s1162_s29 = smov [#allocation3]  }
  0x83   : > { %p1021_p9 = scmp.ne.s32.totalorder %s1380_s17, %s1020_s10  ;;  %s1025_s3 = sshll.u32 %s1162_s29, 4  ;;  %s1026_s3 = int_to_ptr.vmem [resolvable:$false] %s1025_s3 }
  0x84   : > { %s1027_s23 = scalar_lea.vmem %s1026_s3, 384  ;;  %p1028_p10 = scmp.lt.s32.totalorder %s1380_s17, %s1026_s3 }
  0x85   : > { %p1023_p2 = pnand %p1021_p9, %p1581_p7  ;;  %p1029_p3 = scmp.lt.s32.totalorder %s1027_s23, %s1020_s10 }
  0x87   : > { %p1024_p4 = pneg %p1023_p2  ;;  %p1030_p11 = por %p1029_p3, %p1028_p10 }
  0x89   : > { %p1031_p1 = pnand %p1030_p11, %p1024_p4 }
  0x8b   : > { %1034 = shalt.err (!%p1031_p1)
}
  0x8c   : > { %p1582_p13 = scmp.ne.s32.totalorder %s1572_s12, 0  ;;  %s1583_s20 = smov 4  }
  0x8d   : > { %s1584_s1 = smov 64   ;;  %s1035_s25 = scalar_lea.hbm %s1390_s15, 192 }
  0x8e   : > { %841 = dma.hbm_to_vmem [thread:$0]  (!%p1582_p13), %s1385_s6, 192, %s1380_s17, %s272_s13, %s1584_s1, %s1584_s1, %s1583_s20  }
  0x8f   : > { %p1036_p6 = scmp.ne.s32.totalorder %s1390_s15, %s1035_s25  ;;  %s1040_s10 = scalar_lea.hbm %s1539_s4, 384 }
  0x90   : > { %p1041_p0 = scmp.lt.u32.totalorder %s1390_s15, %s1539_s4  ;;  %p1042_p5 = scmp.lt.u32.totalorder %s1040_s10, %s1035_s25 }
  0x91   : > { %p1038_p8 = pnand %p1036_p6, %p1581_p7  ;;  %p1044_p2 = scmp.lt.u32.totalorder %s1035_s25, %s1390_s15 }
  0x92   : > { %p1043_p9 = por %p1042_p5, %p1041_p0 }
  0x93   : > { %p1039_p12 = pneg %p1038_p8 }
  0x94   : > { %p1045_p4 = por %p1044_p2, %p1043_p9 }
  0x96   : > { %p1046_p10 = pnand %p1045_p4, %p1039_p12 }
  0x98   : > { %1049 = shalt.err (!%p1046_p10)
}
  0x99   : > { %s1050_s11 = scalar_lea.vmem %s1378_s16, 192  ;;  %s1163_s17 = smov [#allocation11]  }
  0x9a   : > { %p1051_p3 = scmp.ne.s32.totalorder %s1378_s16, %s1050_s11  ;;  %s1055_s6 = sshll.u32 %s1163_s17, 4  ;;  %s1056_s6 = int_to_ptr.vmem [resolvable:$false] %s1055_s6 }
  0x9b   : > { %s1057_s13 = scalar_lea.vmem %s1056_s6, 384  ;;  %p1058_p6 = scmp.lt.s32.totalorder %s1378_s16, %s1056_s6 }
  0x9c   : > { %p1053_p11 = pnand %p1051_p3, %p1581_p7  ;;  %p1059_p8 = scmp.lt.s32.totalorder %s1057_s13, %s1050_s11 }
  0x9e   : > { %p1054_p1 = pneg %p1053_p11  ;;  %p1060_p0 = por %p1059_p8, %p1058_p6 }
  0xa0   : > { %p1061_p5 = pnand %p1060_p0, %p1054_p1 }
  0xa2   : > { %1064 = shalt.err (!%p1061_p5)
}
  0xa3   : > { %847 = dma.hbm_to_vmem [thread:$0]  (!%p1582_p13), %s1390_s15, 192, %s1378_s16, %s1323_s30, %s1584_s1, %s1584_s1, %s1583_s20  }
  0xa4   : > { %p1585_p7 = scmp.ne.s32.totalorder %s1566_s28, 0 }
  0xa5   : > { %s1447_s8 = sand.u32 (!%p1585_p7), 1, %s1139_s19   ;;  %p1586_p12 = scmp.ne.s32.totalorder (!%p1585_p7), %s1564_s26, 0 }
  0xa6   : > { %339 = sbr.rel (%p1585_p7) target bundleno = 445 (0x1bd), region = 40  ;;  %s342_s12 = scalar_lea.sflag (!%p1585_p7), [#allocation4], %s1447_s8 }
  0xa7   : > { %s1450_s23 = smul.u32 (!%p1585_p7), 12, %s1447_s8 }
  0xa9   : > { %s345_s25 = scalar_lea.vmem (!%p1585_p7), [#allocation3], %s1450_s23 }
  0xad   : > { %1118 = dma.done.wait (%p1586_p12), %s342_s12, 192  }
  0xae   : > { %1120 = vsyncadd (%p1586_p12), %s342_s12, 4294967104  ;;  %p1587_p13 = scmp.eq.s32.totalorder %s1229_s24, 0 }
  0xb0   : > { %1122 = dma.done.wait (%p1587_p13), [#allocation7], 528   ;;  %p1588_p9 = pmov %p1587_p13 }
  0xb1   : > { %s358_s28 = sand.u32 1, %s1229_s24   ;;  %s361_s16 = scalar_lea.vmem [#allocation9], %s1447_s8 }
  0xb2   : > { %1124 = vsyncadd (%p1588_p9), [#allocation7], 4294966768  ;;  %s359_s30 = scalar_lea.sflag [#allocation10], %s358_s28 }
  0xb3   : > { %1126 = dma.done.wait (%p1586_p12), %s359_s30, 208  }
  0xb4   : > { %1128 = vsyncadd (%p1586_p12), %s359_s30, 4294967088  ;;  %vm415_vm0 = vcmask 523264   ;;  %v1164_v0 = vmov 0.0   ;;  %v913_v1 = vld [vmem:[#allocation6] sm:$0xff]   ;;  %v914_v2 = vld [vmem:[#allocation6 + $0x8] sm:$0xff]   ;;  %v534_v7 = vlaneseq  ;;  %s370_s24 = scalar_lea.vmem [#allocation11], %s1450_s23 }
  0xb5   : > { %418 = vst.msk [vmem:[#allocation2 + $0x10] sm:$0xff] %vm415_vm0, %v1164_v0  ;;  %416 = vst.msk [vmem:[#allocation2] sm:$0xff] %vm415_vm0, %v1164_v0  ;;  %797 = vmatprep.subr.bf16.mxu0 %v913_v1  ;;  %v915_v3 = vld [vmem:[#allocation6 + $0x10] sm:$0xff]   ;;  %v916_v5 = vld [vmem:[#allocation6 + $0x18] sm:$0xff]   ;;  %s814_s26 = smul.u32 192, %s1147_s21  ;;  %vm572_vm1 = vcmask 519168  }
  0xb6   : > { %417 = vst.msk [vmem:[#allocation2 + $0x8] sm:$0xff] %vm415_vm0, %v1164_v0  ;;  %798 = vmatpush3.bf16.msra.mxu0 %v913_v1  ;;  %v917_v4 = vld [vmem:[%s345_s25] sm:$0xff]   ;;  %v918_v6 = vld [vmem:[%s345_s25 + $0x8] ss:$0 sps:$4 sm:$0xff]   ;;  %v535_v10 = vshrl.u32 %v534_v7, 7  ;;  %s405_s15 = scalar_lea.vmem [#allocation12], %s1450_s23 }
  0xb7   : > { %799 = vmatprep.subr.bf16.mxu0 %v914_v2  ;;  %805 = vmatprep.mubr.msk.bf16.mxu0 %vm415_vm0, %v917_v4  ;;  %v532_v12 = vld [vmem:[#allocation8] sm:$0x1]  ;;  %v547_v18 = vld [vmem:[%s361_s16] sm:$0x1]  ;;  %v543_v25 = vld [vmem:[%s370_s24 + $0x8] sm:$0xf]  ;;  %s1484_s7 = scalar_lea.hbm %s1540_s5, %s814_s26 }
  0xb8   : > { %v533_v20 = vunpack.c.l.bf16 %v532_v12  ;;  %v536_v21 = vsub.s32 0, %v535_v10  ;;  %v548_v23 = vunpack.c.l.bf16 %v547_v18  ;;  %v788_v26 = vld [vmem:[%s370_s24] sm:$0xff]   ;;  %v546_v31 = vunpack.c.l.bf16 %v543_v25  ;;  %s593_s20 = sshll.u32 %s405_s15, 4  ;;  %s577_s21 = scalar_lea.sflag [#allocation5], %s1447_s8  ;;  %s1486_s20 = int_to_ptr.vmem [resolvable:$true] %s593_s20 }
  0xb9   : > { %v789_v33 = vunpack.c.l.bf16 %v788_v26  ;;  %v790_v37 = vunpack.c.h.bf16 %v788_v26  ;;  %s1065_s10 = scalar_lea.vmem %s1486_s20, 192  ;;  %p1589_p4 = scmp.ne.s32.totalorder %s1571_s9, 0 }
  0xba   : > { %800 = vmatpush3.bf16.msra.mxu0 %v914_v2  ;;  %v537_v24 = vrot.slane %v533_v20, %v536_v21  ;;  %v552_v27 = vrot.slane %v548_v23, %v536_v21  ;;  %p1066_p2 = scmp.ne.s32.totalorder %s1486_s20, %s1065_s10  ;;  %s1165_s29 = smov [#allocation12]  }
  0xbb   : > { %801 = vmatprep.subr.bf16.mxu0 %v915_v3  ;;  %s1069_s3 = sshll.u32 %s1165_s29, 4  ;;  %s1070_s3 = int_to_ptr.vmem [resolvable:$false] %s1069_s3 }
  0xbc   : > { %v421_v8 = vld [vmem:[#allocation2 + $0x10] sm:$0xff]  ;;  %v419_v9 = vld [vmem:[#allocation2] sm:$0xff]  ;;  %p1067_p10 = pnand %p1066_p2, %p1589_p4  ;;  %s1071_s11 = scalar_lea.vmem %s1070_s3, 384 }
  0xbd   : > { %v420_v15 = vld [vmem:[#allocation2 + $0x8] sm:$0xff]  ;;  %p1072_p11 = scmp.lt.s32.totalorder %s1486_s20, %s1070_s3  ;;  %p1073_p1 = scmp.lt.s32.totalorder %s1071_s11, %s1065_s10 }
  0xbe   : > { %802 = vmatpush3.bf16.msra.mxu0 %v915_v3  ;;  %p1068_p3 = pneg %p1067_p10 }
  0xbf   : > { %803 = vmatprep.subr.bf16.mxu0 %v916_v5  ;;  %p1074_p6 = por %p1073_p1, %p1072_p11 }
  0xc1   : > { %p1075_p8 = pnand %p1074_p6, %p1068_p3 }
  0xc2   : > { %804 = vmatpush3.bf16.msra.mxu0 %v916_v5 }
  0xc5   : > { %806 = vmatmul.mubr.msk.bf16.vlgmr.msra.gmra.mrb[0].mxu0 %vm415_vm0, %v918_v6 }
 0x198   : > { %v807_v11 = vpop.f32.mrb[0].mxu0 }
 0x199   : > { %v522_v13 = vadd.f32 %v807_v11, %v421_v8  ;;  %v506_v14 = vpop.f32.mrb[1].mxu0 }
 0x19a   : > { %v520_v16 = vadd.f32 %v506_v14, %v419_v9  ;;  %v808_v17 = vpop.f32.mrb[2].mxu0 }
 0x19b   : > { %525 = vst.msk [vmem:[#allocation2 + $0x10] sm:$0xff] %vm415_vm0, %v522_v13  ;;  %v509_v19 = vpop.f32.mrb[3].mxu0 }
 0x19c   : > { %523 = vst.msk [vmem:[#allocation2] sm:$0xff] %vm415_vm0, %v520_v16  ;;  %v521_v22 = vadd.f32 %v509_v19, %v420_v15 }
 0x19e   : > { %524 = vst.msk [vmem:[#allocation2 + $0x8] sm:$0xff] %vm415_vm0, %v521_v22 }
 0x1a2   : > { %v531_v28 = vld [vmem:[#allocation2 + $0x10] sm:$0xff] }
 0x1a3   : > { %v529_v29 = vld [vmem:[#allocation2] sm:$0xff]  ;;  %v540_v30 = vadd.f32 %v537_v24, %v531_v28 }
 0x1a4   : > { %v538_v32 = vadd.f32 %v537_v24, %v529_v29 }
 0x1a5   : > { %v530_v34 = vld [vmem:[#allocation2 + $0x8] sm:$0xff]  ;;  %v555_v35 = vmul.f32 %v552_v27, %v540_v30 }
 0x1a6   : > { %v539_v36 = vadd.f32 %v537_v24, %v530_v34  ;;  %v553_v38 = vmul.f32 %v552_v27, %v538_v32 }
 0x1a7   : > { %v558_v39 = vadd.f32 %v555_v35, %v546_v31 }
 0x1a8   : > { %v554_v40 = vmul.f32 %v552_v27, %v539_v36  ;;  %v556_v41 = vadd.f32 %v789_v33, %v553_v38 }
 0x1a9   : > { %v786_v42 = vpack.c.bf16 %v558_v39, %v558_v39 }
 0x1aa   : > { %v557_v43 = vadd.f32 %v790_v37, %v554_v40  ;;  %v784_v44 = vpack.c.bf16 %v556_v41, %v556_v41 }
 0x1ab   : > { %575 = vst.msk [vmem:[%s405_s15 + $0x8] sm:$0xf] %vm572_vm1, %v786_v42 }
 0x1ac   : > { %v785_v45 = vpack.c.bf16 %v557_v43, %v557_v43  ;;  %573 = vst.msk [vmem:[%s405_s15] sm:$0xf] %vm572_vm1, %v784_v44 }
 0x1ae   : > { %574 = vst.msk [vmem:[%s405_s15 + $0x4] sm:$0xf] %vm572_vm1, %v785_v45 }
 0x1af   : > { %1078 = shalt.err (!%p1075_p8)
}
 0x1b0   : > { %s1079_s17 = scalar_lea.hbm %s1484_s7, 192  ;;  %s1083_s23 = scalar_lea.hbm %s1540_s5, 384 }
 0x1b1   : > { %p1080_p0 = scmp.ne.s32.totalorder %s1484_s7, %s1079_s17  ;;  %p1084_p12 = scmp.lt.u32.totalorder %s1484_s7, %s1540_s5 }
 0x1b2   : > { %p1085_p13 = scmp.lt.u32.totalorder %s1083_s23, %s1079_s17  ;;  %p1087_p2 = scmp.lt.u32.totalorder %s1079_s17, %s1484_s7 }
 0x1b3   : > { %p1081_p5 = pnand %p1080_p0, %p1589_p4 }
 0x1b4   : > { %p1086_p9 = por %p1085_p13, %p1084_p12 }
 0x1b5   : > { %p1082_p7 = pneg %p1081_p5 }
 0x1b6   : > { %p1088_p10 = por %p1087_p2, %p1086_p9 }
 0x1b8   : > { %p1089_p3 = pnand %p1088_p10, %p1082_p7 }
 0x1ba   : > { %1092 = shalt.err (!%p1089_p3)
}
 0x1bb   : > { %s1166_s28 = smov 64   ;;  %s1167_s30 = smov 4  }
 0x1bc   : > { %829 = dma.vmem_to_hbm [thread:$0]  (%p1589_p4), %s1486_s20, 192, %s1484_s7, %s577_s21, %s1166_s28, %s1166_s28, %s1167_s30  }
 0x1bd PF: > { %s1590_s16 = sld [smem:[#allocation18_spill]]  ;;  %s608_s24 = sand.u32 1, %s1135_s18  }
 0x1be   : > { %p1591_p11 = scmp.ne.s32.totalorder %s1565_s27, 0  ;;  %s609_s26 = scalar_lea.sflag [#allocation5], %s608_s24 }
 0x1c3   : > { %p1592_p1 = scmp.ge.s32.totalorder %s1590_s16, 2 }
 0x1c5   : > { %p849_p6 = pnand %p1592_p1, %p1591_p11 }
 0x1c7   : > { %1130 = dma.done.wait (!%p849_p6), %s609_s26, 192  }
 0x1c8   : > { %1132 = vsyncadd (!%p849_p6), %s609_s26, 4294967104  ;;  %s25_s23 = sadd.s32 1, %s1590_s16   ;;  %s1593_s15 = sld [smem:[#allocation17_spill]] }
 0x1c9   : > { %p22_p8 = scmp.ge.s32.totalorder %s25_s23, 4   ;;  %s1594_s20 = sld [smem:[#allocation20_spill]] }
 0x1ca   : > { %s1595_s9 = sld [smem:[#allocation19_spill]]  ;;  %s1596_s18 = smov %s1139_s19 }
 0x1cb   : > { %s1598_s21 = smov %s1151_s22  ;;  %24 = sbr.rel (!%p22_p8) target bundleno = 12 (0xc), region = 127 }
 0x1ce   : > { %s1597_s19 = smov %s1593_s15 }
 0x1d0   : > { %s1599_s22 = smov %s1595_s9 }
 0x1d2   :  { %614 = vsyncpa [#allocation4], 1 }
 0x1d3   :  { %616 = vsyncpa [#allocation4 + $0x1], 1 }
 0x1d4   :  { %617 = vsyncpa [#allocation7], 1 }
 0x1d5   :  { %618 = vsyncpa [#allocation10], 1 }
 0x1d6   :  { %620 = vsyncpa [#allocation10 + $0x1], 1 }
 0x1d7   :  { %621 = vsyncpa [#allocation5], 1 }
 0x1d8   :  { %623 = vsyncpa [#allocation5 + $0x1], 1 }

// kernel: flux_transformer_block.20
= control target key start
LH: loop header
LB: loop body
LE: loop exit
PB: predicated region body
PF: predicated region fallthrough
CT: control target
= control target key end

     0   :  { %s1663_s0 = inlined_call_operand.hbm [shape: bf16[2,24,64], index: 0, kind: input, shape index: {}]   ;;  %s1664_s1 = inlined_call_operand.hbm [shape: bf16[2,1,64], index: 1, kind: input, shape index: {}]   ;;  %s1665_s2 = inlined_call_operand.hbm [shape: bf16[2,1,64], index: 2, kind: input, shape index: {}]   ;;  %s1666_s3 = inlined_call_operand.hbm [shape: bf16[64,256], index: 3, kind: input, shape index: {}]   ;;  %s1667_s4 = inlined_call_operand.hbm [shape: bf16[1,256], index: 4, kind: input, shape index: {}]   ;;  %s1668_s5 = inlined_call_operand.hbm [shape: bf16[2,24,256], index: 5, kind: output, shape index: {}]  }
   0x1   :  { %1685 = sst [smem:[#allocation21_spill]] %s1664_s1 }
   0x2   :  { %1686 = sst [smem:[#allocation22_spill]] %s1666_s3 }
   0x3   :  { %10 = vsyncpa [#allocation4], 0 }
   0x4   :  { %12 = vsyncpa [#allocation4 + $0x1], 0 }
   0x5   :  { %13 = vsyncpa [#allocation7], 0 }
   0x6   :  { %15 = vsyncpa [#allocation7 + $0x1], 0 }
   0x7   :  { %16 = vsyncpa [#allocation10], 0 }
   0x8   :  { %17 = vsyncpa [#allocation5], 0 }
   0x9   :  { %19 = vsyncpa [#allocation5 + $0x1], 0  ;;  %s1326_s18 = smov 0   ;;  %s1328_s19 = smov 0  }
   0xa   :  { %s1330_s20 = smov 0   ;;  %s1332_s21 = smov 0  }
   0xb   :  { %s1334_s22 = smov 0   ;;  %s1336_s23 = smov 0  }
   0xc LB: > { %1687 = sst [smem:[#allocation17_spill]] %s1269_s20  ;;  %s1357_s24 = sadd.s32 4294967295, %s1281_s23   ;;  %s1281_s23 = sphi %s1336_s23, %s25_s23   ;;  %s1277_s22 = sphi %s1334_s22, %s1722_s22   ;;  %s1273_s21 = sphi %s1332_s21, %s1721_s21   ;;  %s1269_s20 = sphi %s1330_s20, %s1717_s20   ;;  %s1265_s19 = sphi %s1328_s19, %s1720_s19   ;;  %s1261_s18 = sphi %s1326_s18, %s1719_s18  }
   0xd   : > { %1688 = sst [smem:[#allocation18_spill]] %s1281_s23  ;;  %s858_s25 = sadd.s32 4294967294, %s1281_s23  }
   0xe   : > { %p66_p0 = scmp.ne.s32.totalorder %s1265_s19, %s1261_s18  ;;  %p1669_p1 = scmp.eq.s32.totalorder %s1357_s24, 0 }
   0xf   : > { %p204_p3 = scmp.eq.s32.totalorder %s858_s25, 1  ;;  %p859_p5 = scmp.ge.s32.totalorder %s1281_s23, 1 }
  0x10   : > { %p1366_p4 = por %p1669_p1, %p66_p0  ;;  %p211_p7 = scmp.lt.s32.totalorder %s1281_s23, 3 }
  0x11   : > { %p1371_p6 = por %p204_p3, %p66_p0  ;;  %s1283_s29 = smov [#allocation9]  }
  0x12   : > { %s1689_s26 = scalar_select %p1366_p4, 1, 0 }
  0x13   : > { %s1690_s27 = scalar_select %p1371_p6, 1, 0 }
  0x14   : > { %p1376_p8 = pnand %p859_p5, %p211_p7  ;;  %s226_s30 = sshll.u32 %s1283_s29, 4  ;;  %s227_s30 = int_to_ptr.vmem [resolvable:$true] %s226_s30 }
  0x15   : > { %s44_s7 = sadd.s32 1, %s1277_s22  ;;  %s1693_s3 = sld [smem:[#allocation22_spill]] }
  0x16   : > { %s1691_s28 = scalar_select %p1376_p8, 1, 0 }
  0x17   : > { %p929_p9 = pneg %p1376_p8 }
  0x19   : > { %p1385_p11 = pnand %p929_p9, %p1669_p1 }
  0x1b   : > { %s1692_s6 = scalar_select %p1385_p11, 1, 0 }
  0x1c   : > { %s1045_s10 = scalar_lea.hbm %s1693_s3, 1024  ;;  %p1674_p13 = pneg %p1385_p11 }
  0x1d   : > { %p1046_p12 = scmp.ne.s32.totalorder %s1693_s3, %s1045_s10  ;;  %p1052_p5 = scmp.lt.u32.totalorder %s1045_s10, %s1693_s3 }
  0x1f   : > { %p1048_p0 = pnand %p1674_p13, %p1046_p12 }
  0x21   : > { %p1049_p3 = pneg %p1048_p0 }
  0x23   : > { %p1054_p7 = pnand %p1052_p5, %p1049_p3 }
  0x25   : > { %1057 = shalt.err (!%p1054_p7)
}
  0x26   : > { %s1058_s15 = scalar_lea.vmem %s227_s30, 1024  ;;  %p1066_p2 = scmp.lt.s32.totalorder %s227_s30, %s227_s30 }
  0x27   : > { %p1059_p9 = scmp.ne.s32.totalorder %s227_s30, %s1058_s15  ;;  %p1067_p6 = scmp.lt.s32.totalorder %s1058_s15, %s1058_s15 }
  0x29   : > { %p1061_p10 = pnand %p1059_p9, %p1674_p13  ;;  %p1068_p4 = por %p1067_p6, %p1066_p2 }
  0x2b   : > { %p1062_p1 = pneg %p1061_p10 }
  0x2d   : > { %p1069_p8 = pnand %p1068_p4, %p1062_p1 }
  0x2f   : > { %1072 = shalt.err (!%p1069_p8)
}
  0x30   : > { %s1284_s16 = smov 128   ;;  %s1285_s17 = smov 8  }
  0x31   : > { %932 = dma.hbm_to_vmem [thread:$0]  (!%p1385_p11), %s1693_s3, 1024, %s227_s30, [#allocation10], %s1284_s16, %s1284_s16, %s1285_s17  }
  0x32   : > { %p46_p1 = scmp.ge.s32.totalorder %s44_s7, 2  ;;  %s53_s8 = sadd.s32 1, %s1269_s20 }
  0x33   : > { %p60_p2 = scmp.ne.s32.totalorder %s1269_s20, %s1265_s19  ;;  %p61_p4 = scmp.eq.s32.totalorder %s1281_s23, 0 }
  0x34   : > { %s1724_s7 = smov (%p46_p1, %s44_s7), 0  ;;  %p1695_p8 = scmp.eq.s32.totalorder %s1357_s24, 1 }
  0x35   : > { %1694 = sst [smem:[#allocation19_spill]] %s1724_s7  ;;  %p62_p6 = por %p61_p4, %p60_p2 }
  0x36   : > { %p1420_p10 = por %p1695_p8, %p60_p2  ;;  %s48_s10 = ssub.s32 %s1277_s22, %s1724_s7 }
  0x37   : > { %p952_p12 = scmp.lt.s32.totalorder %s1281_s23, 2  ;;  %p51_p0 = scmp.eq.s32.totalorder %s48_s10, 0 }
  0x38   : > { %s1696_s9 = scalar_select %p1420_p10, 1, 0 }
  0x39   : > { %s1428_s11 = sand.u32 1, %s1269_s20   ;;  %p1430_p3 = pnand %p952_p12, %p62_p6 }
  0x3a   : > { %s277_s12 = sand.u32 1, %s1281_s23   ;;  %s1672_s14 = sshll.u32 %s1277_s22, 4 }
  0x3b   : > { %s1697_s30 = scalar_select %p1430_p3, 1, 0 }
  0x3c   : > { %s1436_s13 = scalar_select %p51_p0, %s1269_s20, %s53_s8  }
  0x3d   : > { %s1699_s1 = sld [smem:[#allocation21_spill]]  ;;  %s280_s25 = scalar_lea.vmem [#allocation6], %s1428_s11 }
  0x3e   : > { %1698 = sst [smem:[#allocation20_spill]] %s1436_s13  ;;  %s287_s29 = sshll.u32 %s280_s25, 4  ;;  %s1447_s29 = int_to_ptr.vmem [resolvable:$true] %s287_s29 }
  0x3f   : > { %s1449_s10 = scalar_lea.sflag [#allocation7], %s277_s12  ;;  %p1455_p7 = pneg %p1430_p3 }
  0x41   : > { %s1700_s8 = scalar_select %p1455_p7, 1, 0 }
  0x43   : > { %s1444_s17 = scalar_lea.hbm %s1699_s1, %s1672_s14  ;;  %s1078_s14 = scalar_lea.hbm %s1699_s1, 32 }
  0x44   : > { %s1073_s3 = scalar_lea.hbm %s1444_s17, 16  ;;  %p1079_p2 = scmp.lt.u32.totalorder %s1444_s17, %s1699_s1 }
  0x45   : > { %p1074_p5 = scmp.ne.s32.totalorder %s1444_s17, %s1073_s3  ;;  %p1080_p4 = scmp.lt.u32.totalorder %s1078_s14, %s1073_s3 }
  0x46   : > { %p1082_p8 = scmp.lt.u32.totalorder %s1073_s3, %s1444_s17 }
  0x47   : > { %p1076_p9 = pnand %p1455_p7, %p1074_p5  ;;  %p1081_p6 = por %p1080_p4, %p1079_p2 }
  0x49   : > { %p1077_p1 = pneg %p1076_p9  ;;  %p1083_p12 = por %p1082_p8, %p1081_p6 }
  0x4b   : > { %p1084_p0 = pnand %p1083_p12, %p1077_p1 }
  0x4d   : > { %1087 = shalt.err (!%p1084_p0)
}
  0x4e   : > { %s1088_s12 = scalar_lea.vmem %s1447_s29, 16  ;;  %s1286_s15 = smov [#allocation6]  }
  0x4f   : > { %p1089_p5 = scmp.ne.s32.totalorder %s1447_s29, %s1088_s12  ;;  %s1093_s16 = sshll.u32 %s1286_s15, 4  ;;  %s1094_s16 = int_to_ptr.vmem [resolvable:$false] %s1093_s16 }
  0x50   : > { %s1095_s7 = scalar_lea.vmem %s1094_s16, 32  ;;  %p1096_p10 = scmp.lt.s32.totalorder %s1447_s29, %s1094_s16 }
  0x51   : > { %p1091_p9 = pnand %p1089_p5, %p1455_p7  ;;  %p1097_p11 = scmp.lt.s32.totalorder %s1095_s7, %s1088_s12 }
  0x53   : > { %p1092_p13 = pneg %p1091_p9  ;;  %p1098_p2 = por %p1097_p11, %p1096_p10 }
  0x55   : > { %p1099_p4 = pnand %p1098_p2, %p1092_p13 }
  0x57   : > { %1102 = shalt.err (!%p1099_p4)
}
  0x58   : > { %942 = dma.hbm_to_vmem [thread:$0]  (!%p1430_p3), %s1444_s17, 16, %s1447_s29, %s1449_s10  }
  0x59   : > { %s1287_s3 = smov [#allocation11]   ;;  %s908_s25 = smul.u32 12, %s1428_s11 }
  0x5a   : > { %s243_s14 = sshll.u32 %s1287_s3, 4  ;;  %s909_s15 = smul.u32 192, %s1277_s22  ;;  %s244_s14 = int_to_ptr.vmem [resolvable:$true] %s243_s14 }
  0x5b   : > { %s1103_s12 = scalar_lea.hbm %s1667_s4, 32  ;;  %p1701_p13 = scmp.ne.s32.totalorder %s1692_s6, 0 }
  0x5c   : > { %p1104_p11 = scmp.ne.s32.totalorder %s1667_s4, %s1103_s12  ;;  %p1110_p8 = scmp.lt.u32.totalorder %s1103_s12, %s1667_s4 }
  0x5d   : > { %p1702_p10 = pneg %p1701_p13 }
  0x5f   : > { %p1106_p1 = pnand %p1104_p11, %p1702_p10 }
  0x61   : > { %p1107_p6 = pneg %p1106_p1 }
  0x63   : > { %p1112_p12 = pnand %p1110_p8, %p1107_p6 }
  0x65   : > { %1115 = shalt.err (!%p1112_p12)
}
  0x66   : > { %s1116_s17 = scalar_lea.vmem %s244_s14, 32  ;;  %p1703_p5 = pmov %p1702_p10 }
  0x67   : > { %p1117_p0 = scmp.ne.s32.totalorder %s244_s14, %s1116_s17  ;;  %p1124_p4 = scmp.lt.s32.totalorder %s244_s14, %s244_s14 }
  0x68   : > { %p1125_p3 = scmp.lt.s32.totalorder %s1116_s17, %s1116_s17 }
  0x69   : > { %p1119_p9 = pnand %p1117_p0, %p1703_p5 }
  0x6a   : > { %p1126_p7 = por %p1125_p3, %p1124_p4 }
  0x6b   : > { %p1120_p2 = pneg %p1119_p9 }
  0x6d   : > { %p1127_p10 = pnand %p1126_p7, %p1120_p2 }
  0x6f   : > { %1130 = shalt.err (!%p1127_p10)
}
  0x70   : > { %935 = dma.hbm_to_vmem [thread:$0]  (!%p1701_p13), %s1667_s4, 32, %s244_s14, [#allocation10]  }
  0x71   : > { %s1504_s29 = scalar_lea.hbm %s1663_s0, %s909_s15  ;;  %s258_s3 = scalar_lea.vmem [#allocation3], %s908_s25 }
  0x72   : > { %s267_s16 = sshll.u32 %s258_s3, 4  ;;  %s255_s6 = scalar_lea.sflag [#allocation4], %s1428_s11  ;;  %s1506_s16 = int_to_ptr.vmem [resolvable:$true] %s267_s16 }
  0x73   : > { %s1131_s12 = scalar_lea.hbm %s1504_s29, 192  ;;  %p1704_p7 = scmp.ne.s32.totalorder %s1700_s8, 0 }
  0x74   : > { %p1132_p3 = scmp.ne.s32.totalorder %s1504_s29, %s1131_s12  ;;  %s1136_s17 = scalar_lea.hbm %s1663_s0, 384 }
  0x75   : > { %p1137_p13 = scmp.lt.u32.totalorder %s1504_s29, %s1663_s0  ;;  %p1138_p6 = scmp.lt.u32.totalorder %s1136_s17, %s1131_s12 }
  0x76   : > { %p1134_p11 = pnand %p1132_p3, %p1704_p7  ;;  %p1140_p12 = scmp.lt.u32.totalorder %s1131_s12, %s1504_s29 }
  0x77   : > { %p1139_p8 = por %p1138_p6, %p1137_p13 }
  0x78   : > { %p1135_p1 = pneg %p1134_p11 }
  0x79   : > { %p1141_p0 = por %p1140_p12, %p1139_p8 }
  0x7b   : > { %p1142_p5 = pnand %p1141_p0, %p1135_p1 }
  0x7d   : > { %1145 = shalt.err (!%p1142_p5)
}
  0x7e   : > { %s1146_s25 = scalar_lea.vmem %s1506_s16, 192  ;;  %s1288_s13 = smov [#allocation3]  }
  0x7f   : > { %p1147_p9 = scmp.ne.s32.totalorder %s1506_s16, %s1146_s25  ;;  %s1151_s20 = sshll.u32 %s1288_s13, 4  ;;  %s1152_s20 = int_to_ptr.vmem [resolvable:$false] %s1151_s20 }
  0x80   : > { %s1153_s23 = scalar_lea.vmem %s1152_s20, 384  ;;  %p1154_p10 = scmp.lt.s32.totalorder %s1506_s16, %s1152_s20 }
  0x81   : > { %p1149_p2 = pnand %p1147_p9, %p1704_p7  ;;  %p1155_p3 = scmp.lt.s32.totalorder %s1153_s23, %s1146_s25 }
  0x83   : > { %p1150_p4 = pneg %p1149_p2  ;;  %p1156_p11 = por %p1155_p3, %p1154_p10 }
  0x85   : > { %p1157_p13 = pnand %p1156_p11, %p1150_p4 }
  0x87   : > { %1160 = shalt.err (!%p1157_p13)
}
  0x88   : > { %s1289_s3 = smov 64   ;;  %s1290_s12 = smov 4  }
  0x89   : > { %p1705_p1 = scmp.ne.s32.totalorder %s1697_s30, 0  ;;  %s1706_s14 = sshll.u32 %s1277_s22, 4 }
  0x8a   : > { %s1537_s15 = scalar_lea.hbm %s1665_s2, %s1706_s14  ;;  %s297_s1 = scalar_lea.vmem [#allocation8], %s1428_s11 }
  0x8b   : > { %939 = dma.hbm_to_vmem [thread:$0]  (!%p1705_p1), %s1504_s29, 192, %s1506_s16, %s255_s6, %s1289_s3, %s1289_s3, %s1290_s12  }
  0x8c   : > { %s304_s25 = sshll.u32 %s297_s1, 4  ;;  %s1161_s13 = scalar_lea.hbm %s1537_s15, 16  ;;  %s305_s25 = int_to_ptr.vmem [resolvable:$true] %s304_s25 }
  0x8d   : > { %p1162_p6 = scmp.ne.s32.totalorder %s1537_s15, %s1161_s13  ;;  %s1166_s16 = scalar_lea.hbm %s1665_s2, 32 }
  0x8e   : > { %p1167_p0 = scmp.lt.u32.totalorder %s1537_s15, %s1665_s2  ;;  %p1168_p5 = scmp.lt.u32.totalorder %s1166_s16, %s1161_s13 }
  0x8f   : > { %p1164_p8 = pnand %p1162_p6, %p1704_p7  ;;  %p1170_p2 = scmp.lt.u32.totalorder %s1161_s13, %s1537_s15 }
  0x90   : > { %p1169_p9 = por %p1168_p5, %p1167_p0 }
  0x91   : > { %p1165_p12 = pneg %p1164_p8 }
  0x92   : > { %p1171_p4 = por %p1170_p2, %p1169_p9 }
  0x94   : > { %p1172_p10 = pnand %p1171_p4, %p1165_p12 }
  0x96   : > { %1175 = shalt.err (!%p1172_p10)
}
  0x97   : > { %s1176_s11 = scalar_lea.vmem %s305_s25, 16  ;;  %s1291_s3 = smov [#allocation8]  }
  0x98   : > { %p1177_p3 = scmp.ne.s32.totalorder %s305_s25, %s1176_s11  ;;  %s1181_s12 = sshll.u32 %s1291_s3, 4  ;;  %s1182_s12 = int_to_ptr.vmem [resolvable:$false] %s1181_s12 }
  0x99   : > { %s1183_s14 = scalar_lea.vmem %s1182_s12, 32  ;;  %p1184_p6 = scmp.lt.s32.totalorder %s305_s25, %s1182_s12 }
  0x9a   : > { %p1179_p11 = pnand %p1177_p3, %p1704_p7  ;;  %p1185_p8 = scmp.lt.s32.totalorder %s1183_s14, %s1176_s11 }
  0x9c   : > { %p1180_p13 = pneg %p1179_p11  ;;  %p1186_p1 = por %p1185_p8, %p1184_p6 }
  0x9e   : > { %p1187_p0 = pnand %p1186_p1, %p1180_p13 }
  0xa0   : > { %1190 = shalt.err (!%p1187_p0)
}
  0xa1   : > { %p1707_p5 = scmp.ne.s32.totalorder %s1697_s30, 0  ;;  %p1708_p12 = scmp.ne.s32.totalorder %s1691_s28, 0 }
  0xa2   : > { %s1561_s8 = sand.u32 (!%p1708_p12), 1, %s1265_s19   ;;  %p1709_p7 = scmp.ne.s32.totalorder (!%p1708_p12), %s1689_s26, 0 }
  0xa3   : > { %945 = dma.hbm_to_vmem [thread:$0]  (!%p1707_p5), %s1537_s15, 16, %s305_s25, %s1449_s10  }
  0xa4   : > { %313 = sbr.rel (%p1708_p12) target bundleno = 769 (0x301), region = 40  ;;  %s316_s17 = scalar_lea.sflag (!%p1708_p12), [#allocation4], %s1561_s8 }
  0xa5   : > { %s910_s7 = smul.u32 (!%p1708_p12), 12, %s1561_s8 }
  0xa7   : > { %s319_s1 = scalar_lea.vmem (!%p1708_p12), [#allocation3], %s910_s7 }
  0xab   : > { %1244 = dma.done.wait (%p1709_p7), %s316_s17, 192  }
  0xac   : > { %1246 = vsyncadd (%p1709_p7), %s316_s17, 4294967104  ;;  %s324_s30 = sand.u32 1, %s1357_s24   ;;  %s327_s10 = scalar_lea.vmem [#allocation6], %s1561_s8 }
  0xad   : > { %s325_s28 = scalar_lea.sflag [#allocation7], %s324_s30 }
  0xae   : > { %1248 = dma.done.wait (%p1709_p7), %s325_s28, 32  }
  0xaf   : > { %1250 = vsyncadd (%p1709_p7), %s325_s28, 4294967264  ;;  %s335_s15 = scalar_lea.vmem [#allocation8], %s1561_s8  ;;  %p1710_p1 = scmp.eq.s32.totalorder %s1357_s24, 0 }
  0xb1   : > { %1252 = dma.done.wait (%p1710_p1), [#allocation10], 1056   ;;  %p1711_p9 = pmov %p1710_p1 }
  0xb2   : > { %v897_v0 = vld [vmem:[%s319_s1] sm:$0xff]   ;;  %vm394_vm0 = vcmask 523264   ;;  %v390_v1 = vld [vmem:[%s319_s1 + $0x8] sm:$0xf]  ;;  %v1292_v31 = vmov 0   ;;  %v438_v34 = vlaneseq  ;;  %vm467_vm1 = vcmask 519168  }
  0xb3   : > { %1254 = vsyncadd (%p1711_p9), [#allocation10], 4294966240  ;;  %v898_v2 = vunpack.c.l.bf16 %v897_v0  ;;  %v393_v3 = vunpack.c.l.bf16 %v390_v1  ;;  %v899_v4 = vunpack.c.h.bf16 %v897_v0  ;;  %v1013_v23 = vld [vmem:[#allocation9 + $0x4] ss:$8 sps:$4 sm:$0xff]   ;;  %v1015_v24 = vld [vmem:[#allocation9] ss:$8 sps:$4 sm:$0xff]   ;;  %590 = vmatprep.mubr.bf16.mxu0 %v1292_v31  ;;  %600 = vmatprep.mubr.bf16.mxu1 %v1292_v31 }
  0xb4   : > { %558 = vmatprep.subr.bf16.mxu0 %v1013_v23  ;;  %900 = vmatprep.subr.bf16.mxu1 %v1013_v23  ;;  %v1016_v25 = vld [vmem:[#allocation9 + $0x14] ss:$8 sps:$4 sm:$0xff]   ;;  %v1018_v26 = vld [vmem:[#allocation9 + $0x10] ss:$8 sps:$4 sm:$0xff]   ;;  %v1019_v27 = vld [vmem:[#allocation9 + $0x24] ss:$8 sps:$4 sm:$0xff]  }
  0xb5   : > { %v395_v5 = vsel %vm394_vm0, %v898_v2, 0.0  ;;  %v401_v6 = vsel %vm394_vm0, %v393_v3, 0.0  ;;  %v398_v7 = vsel %vm394_vm0, %v899_v4, 0.0  ;;  %559 = vmatpush1.bf16.msra.mxu0 %v1015_v24  ;;  %904 = vmatpush1.bf16.msra.mxu1 %v1015_v24  ;;  %v1021_v28 = vld [vmem:[#allocation9 + $0x20] ss:$8 sps:$4 sm:$0xff]   ;;  %v439_v42 = vshrl.u32 %v438_v34, 7 }
  0xb6   : > { %396 = vadd.xlane.f32.xlu0 %v395_v5  ;;  %402 = vadd.xlane.f32.xlu1 %v401_v6  ;;  %v1022_v29 = vld [vmem:[#allocation9 + $0x34] ss:$8 sps:$4 sm:$0xff]   ;;  %v1024_v30 = vld [vmem:[#allocation9 + $0x30] ss:$8 sps:$4 sm:$0xff]   ;;  %s911_s24 = smul.u32 24, %s1561_s8  ;;  %p1712_p4 = scmp.ne.s32.totalorder %s1696_s9, 0 }
  0xb7   : > { %560 = vmatprep.subr.bf16.mxu0 %v1016_v25  ;;  %901 = vmatprep.subr.bf16.mxu1 %v1016_v25  ;;  %v435_v35 = vld [vmem:[%s335_s15] sm:$0x1]  ;;  %v440_v47 = vsub.s32 0, %v439_v42  ;;  %v491_v6 = vsub.s32 2, %v439_v42  ;;  %s912_s26 = smul.u32 384, %s1273_s21  ;;  %s687_s21 = scalar_lea.sflag [#allocation5], %s1561_s8 }
  0xb8   : > { %v436_v41 = vunpack.c.l.bf16 %v435_v35  ;;  %v445_v45 = vld [vmem:[%s327_s10] sm:$0x1]  ;;  %s377_s25 = scalar_lea.vmem [#allocation12], %s911_s24  ;;  %s1293_s23 = smov [#allocation12]  }
  0xb9   : > { %561 = vmatpush1.bf16.msra.mxu0 %v1018_v26  ;;  %905 = vmatpush1.bf16.msra.mxu1 %v1018_v26  ;;  %v446_v48 = vunpack.c.l.bf16 %v445_v45  ;;  %s705_s13 = sshll.u32 %s377_s25, 4  ;;  %s1612_s16 = scalar_lea.hbm %s1668_s5, %s912_s26  ;;  %s1614_s13 = int_to_ptr.vmem [resolvable:$true] %s705_s13 }
  0xba   : > { %399 = vadd.xlane.f32.xlu0 %v398_v7  ;;  %562 = vmatprep.subr.bf16.mxu0 %v1019_v27  ;;  %v437_v46 = vadd.f32 1.0, %v436_v41  ;;  %s1191_s6 = scalar_lea.vmem %s1614_s13, 384  ;;  %s1195_s11 = sshll.u32 %s1293_s23, 4  ;;  %s1196_s11 = int_to_ptr.vmem [resolvable:$false] %s1195_s11 }
  0xbb   : > { %902 = vmatprep.subr.bf16.mxu1 %v1019_v27  ;;  %v450_v51 = vrot.slane %v446_v48, %v440_v47  ;;  %p1192_p2 = scmp.ne.s32.totalorder %s1614_s13, %s1191_s6  ;;  %s1197_s3 = scalar_lea.vmem %s1196_s11, 768 }
  0xbc   : > { %v441_v49 = vrot.slane %v437_v46, %v440_v47  ;;  %p1198_p11 = scmp.lt.s32.totalorder %s1614_s13, %s1196_s11  ;;  %p1199_p13 = scmp.lt.s32.totalorder %s1197_s3, %s1191_s6 }
  0xbd   : > { %563 = vmatpush1.bf16.msra.mxu0 %v1021_v28  ;;  %906 = vmatpush1.bf16.msra.mxu1 %v1021_v28  ;;  %p1193_p10 = pnand %p1192_p2, %p1712_p4 }
  0xbe   : > { %564 = vmatprep.subr.bf16.mxu0 %v1022_v29  ;;  %903 = vmatprep.subr.bf16.mxu1 %v1022_v29  ;;  %p1200_p6 = por %p1199_p13, %p1198_p11 }
  0xbf   : > { %p1194_p3 = pneg %p1193_p10 }
  0xc1   : > { %565 = vmatpush1.bf16.msra.mxu0 %v1024_v30  ;;  %907 = vmatpush1.bf16.msra.mxu1 %v1024_v30  ;;  %p1201_p8 = pnand %p1200_p6, %p1194_p3 }
 0x143   : > { %v397_v8 = vpop.xlane.xlu0 %396  ;;  %v403_v9 = vpop.xlane.xlu1 %402 }
 0x144   : > { %v405_v10 = vmul.f32 0.015625, %v397_v8  ;;  %v407_v11 = vmul.f32 0.015625, %v403_v9 }
 0x146   : > { %v1583_v12 = vsub.f32 %v898_v2, %v405_v10  ;;  %v1585_v13 = vsub.f32 %v393_v3, %v407_v11 }
 0x147   : > { %v400_v14 = vpop.xlane.xlu0 %399 }
 0x148   : > { %v406_v15 = vmul.f32 0.015625, %v400_v14  ;;  %v411_v16 = vmul.f32 %v1583_v12, %v1583_v12  ;;  %v413_v17 = vmul.f32 %v1585_v13, %v1585_v13 }
 0x14a   : > { %v1591_v18 = vsub.f32 %v899_v4, %v406_v15  ;;  %v414_v19 = vsel %vm394_vm0, %v411_v16, 0.0  ;;  %v420_v20 = vsel %vm394_vm0, %v413_v17, 0.0  ;;  %v482_v4 = vld [vmem:[#allocation11] sm:$0x3] }
 0x14b   : > { %415 = vadd.xlane.f32.xlu1 %v414_v19  ;;  %v483_v5 = vunpack.c.l.bf16 %v482_v4 }
 0x14c   : > { %v412_v21 = vmul.f32 %v1591_v18, %v1591_v18 }
 0x14d   : > { %v488_v7 = vrot.slane %v483_v5, %v440_v47  ;;  %v492_v8 = vrot.slane %v483_v5, %v491_v6 }
 0x14e   : > { %v417_v22 = vsel %vm394_vm0, %v412_v21, 0.0 }
 0x14f   : > { %421 = vadd.xlane.f32.xlu1 %v420_v20  ;;  %418 = vadd.xlane.f32.xlu0 %v417_v22  ;;  %v498_v9 = vrot.slane %v488_v7, %v440_v47  ;;  %v502_v10 = vrot.slane %v492_v8, %v440_v47 }
 0x1d8   : > { %v416_v32 = vpop.xlane.xlu1 %415 }
 0x1d9   : > { %v423_v33 = vmul.f32 0.015625, %v416_v32 }
 0x1db   : > { %v426_v36 = vadd.f32 1e-06, %v423_v33 }
 0x1dc   : > { %v422_v37 = vpop.xlane.xlu1 %421  ;;  %v419_v38 = vpop.xlane.xlu0 %418 }
 0x1dd   : > { %1027 = vrsqrt.f32 %v426_v36  ;;  %v425_v39 = vmul.f32 0.015625, %v422_v37  ;;  %v424_v40 = vmul.f32 0.015625, %v419_v38 }
 0x1df   : > { %v428_v43 = vadd.f32 1e-06, %v425_v39  ;;  %v427_v44 = vadd.f32 1e-06, %v424_v40 }
 0x1e1   : > { %1029 = vrsqrt.f32 %v428_v43 }
 0x1e2   : > { %1031 = vrsqrt.f32 %v427_v44 }
 0x1e7   : > { %v1028_v50 = vpop.eup %1027 }
 0x1e8   : > { %v432_v52 = vmul.f32 %v1028_v50, %v1583_v12 }
 0x1ea   : > { %v442_v53 = vmul.f32 %v441_v49, %v432_v52 }
 0x1eb   : > { %v1030_v54 = vpop.eup %1029 }
 0x1ec   : > { %v1032_v55 = vpop.eup %1031  ;;  %v451_v56 = vadd.f32 %v450_v51, %v442_v53  ;;  %v434_v57 = vmul.f32 %v1030_v54, %v1585_v13 }
 0x1ed   : > { %v433_v58 = vmul.f32 %v1032_v55, %v1591_v18 }
 0x1ee   : > { %v890_v59 = vpack.c.bf16 %v451_v56, %v451_v56  ;;  %v444_v60 = vmul.f32 %v441_v49, %v434_v57 }
 0x1ef   : > { %v443_v61 = vmul.f32 %v441_v49, %v433_v58 }
 0x1f0   : > { %468 = vst.msk [vmem:[#allocation2] sm:$0xf] %vm467_vm1, %v890_v59  ;;  %v453_v62 = vadd.f32 %v450_v51, %v444_v60 }
 0x1f1   : > { %v452_v63 = vadd.f32 %v450_v51, %v443_v61 }
 0x1f2   : > { %v892_v0 = vpack.c.bf16 %v453_v62, %v453_v62 }
 0x1f3   : > { %v891_v1 = vpack.c.bf16 %v452_v63, %v452_v63 }
 0x1f4   : > { %470 = vst.msk [vmem:[#allocation2 + $0x8] sm:$0xf] %vm467_vm1, %v892_v0 }
 0x1f5   : > { %469 = vst.msk [vmem:[#allocation2 + $0x4] sm:$0xf] %vm467_vm1, %v891_v1 }
 0x1fb   : > { %v1026_v2 = vld [vmem:[#allocation2 + $0x8] ss:$0 sps:$4 sm:$0xff]  }
 0x1fc   : > { %v1025_v3 = vld [vmem:[#allocation2] sm:$0xff]   ;;  %883 = vmatmul.mubr.msk.bf16.vlgmr.msra.gmra.mrb[0].mxu1 %vm394_vm0, %v1026_v2 }
 0x1fd   : > { %882 = vmatmul.mubr.msk.bf16.vlgmr.msra.gmra.mrb[0].mxu0 %vm394_vm0, %v1025_v3 }
 0x2cf   : > { %v602_v11 = vpop.f32.mrb[0].mxu1 }
 0x2d0   : > { %v592_v12 = vpop.f32.mrb[0].mxu0  ;;  %v603_v13 = vadd.f32 %v602_v11, %v498_v9  ;;  %v604_v14 = vpop.f32.mrb[1].mxu1 }
 0x2d1   : > { %v593_v15 = vadd.f32 %v592_v12, %v498_v9  ;;  %v594_v16 = vpop.f32.mrb[1].mxu0  ;;  %v605_v17 = vadd.f32 %v604_v14, %v502_v10  ;;  %v606_v18 = vpop.f32.mrb[2].mxu1 }
 0x2d2   : > { %v619_v19 = vmul.f32 0.044715, %v603_v13  ;;  %v595_v20 = vadd.f32 %v594_v16, %v502_v10  ;;  %v596_v21 = vpop.f32.mrb[2].mxu0  ;;  %v607_v22 = vpop.f32.mrb[3].mxu1  ;;  %v613_v61 = vmul.f32 0.5, %v603_v13 }
 0x2d3   : > { %v615_v23 = vmul.f32 0.044715, %v593_v15  ;;  %v620_v24 = vmul.f32 0.044715, %v605_v17  ;;  %v597_v27 = vadd.f32 %v596_v21, %v498_v9  ;;  %v598_v28 = vpop.f32.mrb[3].mxu0  ;;  %v609_v59 = vmul.f32 0.5, %v593_v15 }
 0x2d4   : > { %v625_v25 = vmul.f32 %v619_v19, %v603_v13  ;;  %v616_v26 = vmul.f32 0.044715, %v595_v20  ;;  %v599_v31 = vadd.f32 %v598_v28, %v502_v10  ;;  %v610_v63 = vmul.f32 0.5, %v595_v20 }
 0x2d5   : > { %v621_v29 = vmul.f32 %v615_v23, %v593_v15  ;;  %v626_v30 = vmul.f32 %v620_v24, %v605_v17  ;;  %v617_v34 = vmul.f32 0.044715, %v597_v27  ;;  %v614_v4 = vmul.f32 0.5, %v605_v17 }
 0x2d6   : > { %v631_v32 = vmul.f32 %v625_v25, %v603_v13  ;;  %v622_v33 = vmul.f32 %v616_v26, %v595_v20  ;;  %v618_v37 = vmul.f32 0.044715, %v599_v31  ;;  %v611_v8 = vmul.f32 0.5, %v597_v27 }
 0x2d7   : > { %v627_v35 = vmul.f32 %v621_v29, %v593_v15  ;;  %v632_v36 = vmul.f32 %v626_v30, %v605_v17  ;;  %v623_v40 = vmul.f32 %v617_v34, %v597_v27  ;;  %v612_v11 = vmul.f32 0.5, %v599_v31 }
 0x2d8   : > { %v637_v38 = vadd.f32 %v631_v32, %v603_v13  ;;  %v628_v39 = vmul.f32 %v622_v33, %v595_v20  ;;  %v624_v43 = vmul.f32 %v618_v37, %v599_v31 }
 0x2d9   : > { %v633_v41 = vadd.f32 %v627_v35, %v593_v15  ;;  %v638_v42 = vadd.f32 %v632_v36, %v605_v17  ;;  %v629_v46 = vmul.f32 %v623_v40, %v597_v27 }
 0x2da   : > { %v643_v44 = vmul.f32 0.7978846, %v637_v38  ;;  %v634_v45 = vadd.f32 %v628_v39, %v595_v20  ;;  %v630_v49 = vmul.f32 %v624_v43, %v599_v31 }
 0x2db   : > { %v639_v47 = vmul.f32 0.7978846, %v633_v41  ;;  %v644_v48 = vmul.f32 0.7978846, %v638_v42  ;;  %v635_v51 = vadd.f32 %v629_v46, %v597_v27 }
 0x2dc   : > { %1033 = vtanh.f32 %v643_v44  ;;  %v640_v50 = vmul.f32 0.7978846, %v634_v45  ;;  %v636_v52 = vadd.f32 %v630_v49, %v599_v31 }
 0x2dd   : > { %1035 = vtanh.f32 %v639_v47  ;;  %v641_v53 = vmul.f32 0.7978846, %v635_v51 }
 0x2de   : > { %1037 = vtanh.f32 %v640_v50  ;;  %v642_v54 = vmul.f32 0.7978846, %v636_v52 }
 0x2df   : > { %1039 = vtanh.f32 %v644_v48 }
 0x2e0   : > { %1041 = vtanh.f32 %v641_v53 }
 0x2e1   : > { %1043 = vtanh.f32 %v642_v54 }
 0x2e6   : > { %v1034_v55 = vpop.eup %1033 }
 0x2e7   : > { %v1036_v56 = vpop.eup %1035  ;;  %v655_v57 = vadd.f32 1.0, %v1034_v55 }
 0x2e8   : > { %v1038_v58 = vpop.eup %1037  ;;  %v651_v60 = vadd.f32 1.0, %v1036_v56 }
 0x2e9   : > { %v1040_v62 = vpop.eup %1039  ;;  %v652_v0 = vadd.f32 1.0, %v1038_v58  ;;  %v661_v3 = vmul.f32 %v655_v57, %v613_v61 }
 0x2ea   : > { %v1042_v1 = vpop.eup %1041  ;;  %v657_v2 = vmul.f32 %v651_v60, %v609_v59  ;;  %v656_v5 = vadd.f32 1.0, %v1040_v62 }
 0x2eb   : > { %v1044_v6 = vpop.eup %1043  ;;  %v658_v7 = vmul.f32 %v652_v0, %v610_v63  ;;  %v653_v9 = vadd.f32 1.0, %v1042_v1 }
 0x2ec   : > { %v662_v10 = vmul.f32 %v656_v5, %v614_v4  ;;  %v654_v12 = vadd.f32 1.0, %v1044_v6 }
 0x2ed   : > { %v893_v13 = vpack.c.bf16 %v658_v7, %v657_v2  ;;  %v659_v14 = vmul.f32 %v653_v9, %v611_v8 }
 0x2ee   : > { %v895_v15 = vpack.c.bf16 %v662_v10, %v661_v3  ;;  %v660_v16 = vmul.f32 %v654_v12, %v612_v11 }
 0x2ef   : > { %683 = vst [vmem:[%s377_s25] sm:$0xff] %v893_v13 }
 0x2f0   : > { %v894_v17 = vpack.c.bf16 %v660_v16, %v659_v14  ;;  %685 = vst [vmem:[%s377_s25 + $0x10] sm:$0xff] %v895_v15 }
 0x2f2   : > { %684 = vst [vmem:[%s377_s25 + $0x8] sm:$0xff] %v894_v17 }
 0x2f3   : > { %1204 = shalt.err (!%p1201_p8)
}
 0x2f4   : > { %s1205_s12 = scalar_lea.hbm %s1612_s16, 384  ;;  %s1209_s17 = scalar_lea.hbm %s1668_s5, 768 }
 0x2f5   : > { %p1206_p0 = scmp.ne.s32.totalorder %s1612_s16, %s1205_s12  ;;  %p1210_p7 = scmp.lt.u32.totalorder %s1612_s16, %s1668_s5 }
 0x2f6   : > { %p1211_p1 = scmp.lt.u32.totalorder %s1209_s17, %s1205_s12  ;;  %p1213_p2 = scmp.lt.u32.totalorder %s1205_s12, %s1612_s16 }
 0x2f7   : > { %p1207_p5 = pnand %p1206_p0, %p1712_p4 }
 0x2f8   : > { %p1212_p9 = por %p1211_p1, %p1210_p7 }
 0x2f9   : > { %p1208_p12 = pneg %p1207_p5 }
 0x2fa   : > { %p1214_p10 = por %p1213_p2, %p1212_p9 }
 0x2fc   : > { %p1215_p3 = pnand %p1214_p10, %p1208_p12 }
 0x2fe   : > { %1218 = shalt.err (!%p1215_p3)
}
 0x2ff   : > { %s1294_s28 = smov 128   ;;  %s1295_s10 = smov 8  }
 0x300   : > { %927 = dma.vmem_to_hbm [thread:$0]  (%p1712_p4), %s1614_s13, 384, %s1612_s16, %s687_s21, %s1294_s28, %s1294_s28, %s1295_s10  }
 0x301 PF: > { %s1713_s15 = sld [smem:[#allocation18_spill]]  ;;  %s720_s24 = sand.u32 1, %s1261_s18  }
 0x302   : > { %p1714_p11 = scmp.ne.s32.totalorder %s1690_s27, 0  ;;  %s721_s26 = scalar_lea.sflag [#allocation5], %s720_s24 }
 0x307   : > { %p1715_p13 = scmp.ge.s32.totalorder %s1713_s15, 2 }
 0x309   : > { %p947_p6 = pnand %p1715_p13, %p1714_p11 }
 0x30b   : > { %1256 = dma.done.wait (!%p947_p6), %s721_s26, 384  }
 0x30c   : > { %1258 = vsyncadd (!%p947_p6), %s721_s26, 4294966912  ;;  %s25_s23 = sadd.s32 1, %s1713_s15   ;;  %s1716_s25 = sld [smem:[#allocation17_spill]] }
 0x30d   : > { %p22_p8 = scmp.ge.s32.totalorder %s25_s23, 4   ;;  %s1717_s20 = sld [smem:[#allocation20_spill]] }
 0x30e   : > { %s1718_s9 = sld [smem:[#allocation19_spill]]  ;;  %s1719_s18 = smov %s1265_s19 }
 0x30f   : > { %s1721_s21 = smov %s1277_s22  ;;  %24 = sbr.rel (!%p22_p8) target bundleno = 12 (0xc), region = 123 }
 0x312   : > { %s1720_s19 = smov %s1716_s25 }
 0x314   : > { %s1722_s22 = smov %s1718_s9 }
 0x316   :  { %726 = vsyncpa [#allocation4], 1 }
 0x317   :  { %728 = vsyncpa [#allocation4 + $0x1], 1 }
 0x318   :  { %729 = vsyncpa [#allocation7], 1 }
 0x319   :  { %731 = vsyncpa [#allocation7 + $0x1], 1 }
 0x31a   :  { %732 = vsyncpa [#allocation10], 1 }
 0x31b   :  { %733 = vsyncpa [#allocation5], 1 }
 0x31c   :  { %735 = vsyncpa [#allocation5 + $0x1], 1 }

// kernel: flux_transformer_block.21
= control target key start
LH: loop header
LB: loop body
LE: loop exit
PB: predicated region body
PF: predicated region fallthrough
CT: control target
= control target key end

     0   :  { %s1692_s0 = inlined_call_operand.hbm [shape: bf16[2,24,256], index: 0, kind: input, shape index: {}]   ;;  %s1693_s1 = inlined_call_operand.hbm [shape: bf16[256,64], index: 1, kind: input, shape index: {}]   ;;  %s1694_s2 = inlined_call_operand.hbm [shape: bf16[1,64], index: 2, kind: input, shape index: {}]   ;;  %s1695_s3 = inlined_call_operand.hbm [shape: bf16[2,1,64], index: 3, kind: input, shape index: {}]   ;;  %s1696_s4 = inlined_call_operand.hbm [shape: bf16[2,24,64], index: 4, kind: input, shape index: {}]   ;;  %s1697_s5 = inlined_call_operand.hbm [shape: bf16[2,24,64], index: 5, kind: output, shape index: {}]  }
   0x1   :  { %1715 = sst [smem:[#allocation21_spill]] %s1693_s1 }
   0x2   :  { %1716 = sst [smem:[#allocation22_spill]] %s1695_s3 }
   0x3   :  { %10 = vsyncpa [#allocation4], 0 }
   0x4   :  { %12 = vsyncpa [#allocation4 + $0x1], 0 }
   0x5   :  { %13 = vsyncpa [#allocation7], 0 }
   0x6   :  { %14 = vsyncpa [#allocation10], 0 }
   0x7   :  { %16 = vsyncpa [#allocation10 + $0x1], 0 }
   0x8   :  { %17 = vsyncpa [#allocation5], 0 }
   0x9   :  { %19 = vsyncpa [#allocation5 + $0x1], 0  ;;  %s1359_s18 = smov 0   ;;  %s1361_s19 = smov 0  }
   0xa   :  { %s1363_s20 = smov 0   ;;  %s1365_s21 = smov 0  }
   0xb   :  { %s1367_s22 = smov 0   ;;  %s1369_s23 = smov 0  }
   0xc LB: > { %1717 = sst [smem:[#allocation17_spill]] %s1302_s20  ;;  %s1390_s24 = sadd.s32 4294967295, %s1314_s23   ;;  %s1314_s23 = sphi %s1369_s23, %s25_s23   ;;  %s1310_s22 = sphi %s1367_s22, %s1754_s22   ;;  %s1306_s21 = sphi %s1365_s21, %s1753_s21   ;;  %s1302_s20 = sphi %s1363_s20, %s1752_s20   ;;  %s1298_s19 = sphi %s1361_s19, %s1751_s19   ;;  %s1294_s18 = sphi %s1359_s18, %s1750_s18  }
   0xd   : > { %1718 = sst [smem:[#allocation18_spill]] %s1314_s23  ;;  %s862_s25 = sadd.s32 4294967294, %s1314_s23  }
   0xe   : > { %p75_p0 = scmp.ne.s32.totalorder %s1298_s19, %s1294_s18  ;;  %p1698_p1 = scmp.eq.s32.totalorder %s1390_s24, 0 }
   0xf   : > { %p221_p3 = scmp.eq.s32.totalorder %s862_s25, 1  ;;  %p863_p5 = scmp.ge.s32.totalorder %s1314_s23, 1 }
  0x10   : > { %p1399_p4 = por %p1698_p1, %p75_p0  ;;  %p228_p7 = scmp.lt.s32.totalorder %s1314_s23, 3 }
  0x11   : > { %p1404_p6 = por %p221_p3, %p75_p0  ;;  %s1316_s29 = smov [#allocation6]  }
  0x12   : > { %s1719_s26 = scalar_select %p1399_p4, 1, 0 }
  0x13   : > { %s1720_s27 = scalar_select %p1404_p6, 1, 0 }
  0x14   : > { %p1409_p8 = pnand %p863_p5, %p228_p7  ;;  %s244_s30 = sshll.u32 %s1316_s29, 4  ;;  %s245_s30 = int_to_ptr.vmem [resolvable:$true] %s244_s30 }
  0x15   : > { %s51_s7 = sadd.s32 1, %s1310_s22  ;;  %s1723_s1 = sld [smem:[#allocation21_spill]] }
  0x16   : > { %s1721_s28 = scalar_select %p1409_p8, 1, 0 }
  0x17   : > { %p973_p9 = pneg %p1409_p8 }
  0x19   : > { %p1418_p11 = pnand %p973_p9, %p1698_p1 }
  0x1b   : > { %s1722_s6 = scalar_select %p1418_p11, 1, 0 }
  0x1c   : > { %s1078_s10 = scalar_lea.hbm %s1723_s1, 2048  ;;  %p1704_p13 = pneg %p1418_p11 }
  0x1d   : > { %p1079_p12 = scmp.ne.s32.totalorder %s1723_s1, %s1078_s10  ;;  %p1085_p5 = scmp.lt.u32.totalorder %s1078_s10, %s1723_s1 }
  0x1f   : > { %p1081_p0 = pnand %p1704_p13, %p1079_p12 }
  0x21   : > { %p1082_p3 = pneg %p1081_p0 }
  0x23   : > { %p1087_p7 = pnand %p1085_p5, %p1082_p3 }
  0x25   : > { %1090 = shalt.err (!%p1087_p7)
}
  0x26   : > { %s1091_s15 = scalar_lea.vmem %s245_s30, 2048  ;;  %p1099_p2 = scmp.lt.s32.totalorder %s245_s30, %s245_s30 }
  0x27   : > { %p1092_p9 = scmp.ne.s32.totalorder %s245_s30, %s1091_s15  ;;  %p1100_p6 = scmp.lt.s32.totalorder %s1091_s15, %s1091_s15 }
  0x29   : > { %p1094_p10 = pnand %p1092_p9, %p1704_p13  ;;  %p1101_p4 = por %p1100_p6, %p1099_p2 }
  0x2b   : > { %p1095_p1 = pneg %p1094_p10 }
  0x2d   : > { %p1102_p8 = pnand %p1101_p4, %p1095_p1 }
  0x2f   : > { %1105 = shalt.err (!%p1102_p8)
}
  0x30   : > { %s1701_s16 = smov 64   ;;  %s1702_s17 = smov 4  }
  0x31   : > { %976 = dma.hbm_to_vmem [thread:$0]  (!%p1418_p11), %s1723_s1, 2048, %s245_s30, [#allocation7], %s1701_s16, %s1701_s16, %s1702_s17  }
  0x32   : > { %p53_p1 = scmp.ge.s32.totalorder %s51_s7, 2  ;;  %s62_s8 = sadd.s32 1, %s1302_s20 }
  0x33   : > { %p69_p2 = scmp.ne.s32.totalorder %s1302_s20, %s1298_s19  ;;  %p70_p4 = scmp.eq.s32.totalorder %s1314_s23, 0 }
  0x34   : > { %s1756_s7 = smov (%p53_p1, %s51_s7), 0  ;;  %p1725_p8 = scmp.eq.s32.totalorder %s1390_s24, 1 }
  0x35   : > { %1724 = sst [smem:[#allocation19_spill]] %s1756_s7  ;;  %p71_p6 = por %p70_p4, %p69_p2 }
  0x36   : > { %p1456_p10 = por %p1725_p8, %p69_p2  ;;  %s55_s10 = ssub.s32 %s1310_s22, %s1756_s7 }
  0x37   : > { %p996_p12 = scmp.lt.s32.totalorder %s1314_s23, 2  ;;  %p60_p0 = scmp.eq.s32.totalorder %s55_s10, 0 }
  0x38   : > { %s1726_s9 = scalar_select %p1456_p10, 1, 0 }
  0x39   : > { %s1464_s11 = sand.u32 1, %s1302_s20   ;;  %p1466_p3 = pnand %p996_p12, %p71_p6 }
  0x3a   : > { %s297_s12 = sand.u32 1, %s1314_s23   ;;  %s868_s14 = sshll.u32 %s1310_s22, 4 }
  0x3b   : > { %s1727_s30 = scalar_select %p1466_p3, 1, 0 }
  0x3c   : > { %s1472_s13 = scalar_select %p60_p0, %s1302_s20, %s62_s8  }
  0x3d   : > { %s1729_s3 = sld [smem:[#allocation22_spill]]  ;;  %s300_s10 = scalar_lea.vmem [#allocation9], %s1464_s11 }
  0x3e   : > { %1728 = sst [smem:[#allocation20_spill]] %s1472_s13  ;;  %s308_s16 = sshll.u32 %s300_s10, 4  ;;  %s1481_s16 = int_to_ptr.vmem [resolvable:$true] %s308_s16 }
  0x3f   : > { %s1484_s1 = scalar_lea.sflag [#allocation10], %s297_s12  ;;  %p1490_p7 = pneg %p1466_p3 }
  0x41   : > { %s1730_s8 = scalar_select %p1490_p7, 1, 0 }
  0x43   : > { %s1478_s29 = scalar_lea.hbm %s1729_s3, %s868_s14  ;;  %s1111_s25 = scalar_lea.hbm %s1729_s3, 32 }
  0x44   : > { %s1106_s7 = scalar_lea.hbm %s1478_s29, 16  ;;  %p1112_p2 = scmp.lt.u32.totalorder %s1478_s29, %s1729_s3 }
  0x45   : > { %p1107_p5 = scmp.ne.s32.totalorder %s1478_s29, %s1106_s7  ;;  %p1113_p4 = scmp.lt.u32.totalorder %s1111_s25, %s1106_s7 }
  0x46   : > { %p1115_p8 = scmp.lt.u32.totalorder %s1106_s7, %s1478_s29 }
  0x47   : > { %p1109_p9 = pnand %p1490_p7, %p1107_p5  ;;  %p1114_p6 = por %p1113_p4, %p1112_p2 }
  0x49   : > { %p1110_p1 = pneg %p1109_p9  ;;  %p1116_p12 = por %p1115_p8, %p1114_p6 }
  0x4b   : > { %p1117_p0 = pnand %p1116_p12, %p1110_p1 }
  0x4d   : > { %1120 = shalt.err (!%p1117_p0)
}
  0x4e   : > { %s1121_s12 = scalar_lea.vmem %s1481_s16, 16  ;;  %s1319_s14 = smov [#allocation9]  }
  0x4f   : > { %p1122_p5 = scmp.ne.s32.totalorder %s1481_s16, %s1121_s12  ;;  %s1126_s15 = sshll.u32 %s1319_s14, 4  ;;  %s1127_s15 = int_to_ptr.vmem [resolvable:$false] %s1126_s15 }
  0x50   : > { %s1128_s13 = scalar_lea.vmem %s1127_s15, 32  ;;  %p1129_p10 = scmp.lt.s32.totalorder %s1481_s16, %s1127_s15 }
  0x51   : > { %p1124_p9 = pnand %p1122_p5, %p1490_p7  ;;  %p1130_p11 = scmp.lt.s32.totalorder %s1128_s13, %s1121_s12 }
  0x53   : > { %p1125_p13 = pneg %p1124_p9  ;;  %p1131_p2 = por %p1130_p11, %p1129_p10 }
  0x55   : > { %p1132_p4 = pnand %p1131_p2, %p1125_p13 }
  0x57   : > { %1135 = shalt.err (!%p1132_p4)
}
  0x58   : > { %986 = dma.hbm_to_vmem [thread:$0]  (!%p1466_p3), %s1478_s29, 16, %s1481_s16, %s1484_s1  }
  0x59   : > { %s1320_s7 = smov [#allocation8]   ;;  %s950_s10 = smul.u32 24, %s1464_s11 }
  0x5a   : > { %s260_s25 = sshll.u32 %s1320_s7, 4  ;;  %s951_s14 = smul.u32 384, %s1310_s22  ;;  %s261_s25 = int_to_ptr.vmem [resolvable:$true] %s260_s25 }
  0x5b   : > { %s1136_s12 = scalar_lea.hbm %s1694_s2, 16  ;;  %p1731_p13 = scmp.ne.s32.totalorder %s1722_s6, 0 }
  0x5c   : > { %p1137_p11 = scmp.ne.s32.totalorder %s1694_s2, %s1136_s12  ;;  %p1143_p8 = scmp.lt.u32.totalorder %s1136_s12, %s1694_s2 }
  0x5d   : > { %p1732_p10 = pneg %p1731_p13 }
  0x5f   : > { %p1139_p1 = pnand %p1137_p11, %p1732_p10 }
  0x61   : > { %p1140_p6 = pneg %p1139_p1 }
  0x63   : > { %p1145_p12 = pnand %p1143_p8, %p1140_p6 }
  0x65   : > { %1148 = shalt.err (!%p1145_p12)
}
  0x66   : > { %s1149_s16 = scalar_lea.vmem %s261_s25, 16  ;;  %p1733_p5 = pmov %p1732_p10 }
  0x67   : > { %p1150_p0 = scmp.ne.s32.totalorder %s261_s25, %s1149_s16  ;;  %s1156_s17 = scalar_lea.vmem %s261_s25, 32 }
  0x68   : > { %p1157_p4 = scmp.lt.s32.totalorder %s261_s25, %s261_s25  ;;  %p1158_p3 = scmp.lt.s32.totalorder %s1156_s17, %s1149_s16 }
  0x69   : > { %p1152_p9 = pnand %p1150_p0, %p1733_p5 }
  0x6a   : > { %p1159_p7 = por %p1158_p3, %p1157_p4 }
  0x6b   : > { %p1153_p2 = pneg %p1152_p9 }
  0x6d   : > { %p1160_p10 = pnand %p1159_p7, %p1153_p2 }
  0x6f   : > { %1163 = shalt.err (!%p1160_p10)
}
  0x70   : > { %979 = dma.hbm_to_vmem [thread:$0]  (!%p1731_p13), %s1694_s2, 16, %s261_s25, [#allocation7]  }
  0x71   : > { %s1539_s7 = scalar_lea.hbm %s1692_s0, %s951_s14  ;;  %s275_s15 = scalar_lea.vmem [#allocation3], %s950_s10 }
  0x72   : > { %s287_s12 = sshll.u32 %s275_s15, 4  ;;  %s272_s6 = scalar_lea.sflag [#allocation4], %s1464_s11  ;;  %s1541_s12 = int_to_ptr.vmem [resolvable:$true] %s287_s12 }
  0x73   : > { %s1164_s13 = scalar_lea.hbm %s1539_s7, 384  ;;  %p1734_p7 = scmp.ne.s32.totalorder %s1730_s8, 0 }
  0x74   : > { %p1165_p3 = scmp.ne.s32.totalorder %s1539_s7, %s1164_s13  ;;  %s1169_s17 = scalar_lea.hbm %s1692_s0, 768 }
  0x75   : > { %p1170_p13 = scmp.lt.u32.totalorder %s1539_s7, %s1692_s0  ;;  %p1171_p6 = scmp.lt.u32.totalorder %s1169_s17, %s1164_s13 }
  0x76   : > { %p1167_p11 = pnand %p1165_p3, %p1734_p7  ;;  %p1173_p12 = scmp.lt.u32.totalorder %s1164_s13, %s1539_s7 }
  0x77   : > { %p1172_p8 = por %p1171_p6, %p1170_p13 }
  0x78   : > { %p1168_p1 = pneg %p1167_p11 }
  0x79   : > { %p1174_p0 = por %p1173_p12, %p1172_p8 }
  0x7b   : > { %p1175_p5 = pnand %p1174_p0, %p1168_p1 }
  0x7d   : > { %1178 = shalt.err (!%p1175_p5)
}
  0x7e   : > { %s1179_s10 = scalar_lea.vmem %s1541_s12, 384  ;;  %s1321_s20 = smov [#allocation3]  }
  0x7f   : > { %p1180_p9 = scmp.ne.s32.totalorder %s1541_s12, %s1179_s10  ;;  %s1184_s23 = sshll.u32 %s1321_s20, 4  ;;  %s1185_s23 = int_to_ptr.vmem [resolvable:$false] %s1184_s23 }
  0x80   : > { %s1186_s29 = scalar_lea.vmem %s1185_s23, 768  ;;  %p1187_p10 = scmp.lt.s32.totalorder %s1541_s12, %s1185_s23 }
  0x81   : > { %p1182_p2 = pnand %p1180_p9, %p1734_p7  ;;  %p1188_p3 = scmp.lt.s32.totalorder %s1186_s29, %s1179_s10 }
  0x83   : > { %p1183_p4 = pneg %p1182_p2  ;;  %p1189_p11 = por %p1188_p3, %p1187_p10 }
  0x85   : > { %p1190_p13 = pnand %p1189_p11, %p1183_p4 }
  0x87   : > { %1193 = shalt.err (!%p1190_p13)
}
  0x88   : > { %s1322_s15 = smov 128   ;;  %s1323_s13 = smov 8  }
  0x89   : > { %p1735_p1 = scmp.ne.s32.totalorder %s1727_s30, 0  ;;  %s953_s25 = smul.u32 192, %s1310_s22 }
  0x8a   : > { %s1736_s16 = smul.u32 12, %s1464_s11 }
  0x8b   : > { %983 = dma.hbm_to_vmem [thread:$0]  (!%p1735_p1), %s1539_s7, 384, %s1541_s12, %s272_s6, %s1322_s15, %s1322_s15, %s1323_s13  }
  0x8c   : > { %s319_s17 = scalar_lea.vmem [#allocation11], %s1736_s16  ;;  %s1573_s20 = scalar_lea.hbm %s1696_s4, %s953_s25 }
  0x8d   : > { %s329_s14 = sshll.u32 %s319_s17, 4  ;;  %s1194_s23 = scalar_lea.hbm %s1573_s20, 192  ;;  %s1575_s14 = int_to_ptr.vmem [resolvable:$true] %s329_s14 }
  0x8e   : > { %p1195_p6 = scmp.ne.s32.totalorder %s1573_s20, %s1194_s23  ;;  %s1199_s12 = scalar_lea.hbm %s1696_s4, 384 }
  0x8f   : > { %p1200_p0 = scmp.lt.u32.totalorder %s1573_s20, %s1696_s4  ;;  %p1201_p5 = scmp.lt.u32.totalorder %s1199_s12, %s1194_s23 }
  0x90   : > { %p1197_p8 = pnand %p1195_p6, %p1734_p7  ;;  %p1203_p2 = scmp.lt.u32.totalorder %s1194_s23, %s1573_s20 }
  0x91   : > { %p1202_p9 = por %p1201_p5, %p1200_p0 }
  0x92   : > { %p1198_p12 = pneg %p1197_p8 }
  0x93   : > { %p1204_p4 = por %p1203_p2, %p1202_p9 }
  0x95   : > { %p1205_p10 = pnand %p1204_p4, %p1198_p12 }
  0x97   : > { %1208 = shalt.err (!%p1205_p10)
}
  0x98   : > { %s1209_s15 = scalar_lea.vmem %s1575_s14, 192  ;;  %s1324_s13 = smov [#allocation11]  }
  0x99   : > { %p1210_p3 = scmp.ne.s32.totalorder %s1575_s14, %s1209_s15  ;;  %s1214_s25 = sshll.u32 %s1324_s13, 4  ;;  %s1215_s25 = int_to_ptr.vmem [resolvable:$false] %s1214_s25 }
  0x9a   : > { %s1216_s16 = scalar_lea.vmem %s1215_s25, 384  ;;  %p1217_p6 = scmp.lt.s32.totalorder %s1575_s14, %s1215_s25 }
  0x9b   : > { %p1212_p11 = pnand %p1210_p3, %p1734_p7  ;;  %p1218_p8 = scmp.lt.s32.totalorder %s1216_s16, %s1209_s15 }
  0x9d   : > { %p1213_p13 = pneg %p1212_p11  ;;  %p1219_p0 = por %p1218_p8, %p1217_p6 }
  0x9f   : > { %p1220_p5 = pnand %p1219_p0, %p1213_p13 }
  0xa1   : > { %1223 = shalt.err (!%p1220_p5)
}
  0xa2   : > { %s1737_s17 = smov 4   ;;  %s1738_s3 = smov 64  }
  0xa3   : > { %989 = dma.hbm_to_vmem [thread:$0]  (!%p1735_p1), %s1573_s20, 192, %s1575_s14, %s1484_s1, %s1738_s3, %s1738_s3, %s1737_s17  }
  0xa4   : > { %p1739_p7 = scmp.ne.s32.totalorder %s1721_s28, 0 }
  0xa5   : > { %s1605_s8 = sand.u32 (!%p1739_p7), 1, %s1298_s19   ;;  %p1740_p12 = scmp.ne.s32.totalorder (!%p1739_p7), %s1719_s26, 0 }
  0xa6   : > { %341 = sbr.rel (%p1739_p7) target bundleno = 463 (0x1cf), region = 40  ;;  %s344_s23 = scalar_lea.sflag (!%p1739_p7), [#allocation4], %s1605_s8 }
  0xa7   : > { %s954_s10 = smul.u32 (!%p1739_p7), 24, %s1605_s8 }
  0xa9   : > { %s1609_s7 = scalar_lea.vmem (!%p1739_p7), [#allocation3], %s954_s10 }
  0xad   : > { %1277 = dma.done.wait (%p1740_p12), %s344_s23, 384  }
  0xae   : > { %1279 = vsyncadd (%p1740_p12), %s344_s23, 4294966912  ;;  %p1741_p1 = scmp.eq.s32.totalorder %s1390_s24, 0 }
  0xb0   : > { %1281 = dma.done.wait (%p1741_p1), [#allocation7], 2064   ;;  %p1742_p9 = pmov %p1741_p1 }
  0xb1   : > { %s360_s1 = sand.u32 1, %s1390_s24   ;;  %s363_s30 = scalar_lea.vmem [#allocation9], %s1605_s8 }
  0xb2   : > { %1283 = vsyncadd (%p1742_p9), [#allocation7], 4294965232  ;;  %s361_s28 = scalar_lea.sflag [#allocation10], %s360_s1 }
  0xb3   : > { %1285 = dma.done.wait (%p1740_p12), %s361_s28, 208  }
  0xb4   : > { %1287 = vsyncadd (%p1740_p12), %s361_s28, 4294967088  ;;  %v1057_v0 = vld [vmem:[#allocation6 + $0x40] sm:$0xff]   ;;  %v1059_v2 = vld [vmem:[#allocation6 + $0x48] sm:$0xff]   ;;  %vm418_vm0 = vcmask 523264   ;;  %v1325_v21 = vmov 0.0   ;;  %v636_v22 = vlaneseq  ;;  %s955_s24 = smul.u32 12, %s1605_s8 }
  0xb5   : > { %v1058_v1 = vld [vmem:[#allocation6] sm:$0xff]   ;;  %906 = vmatprep.subr.bf16.mxu0 %v1057_v0  ;;  %934 = vmatprep.subr.bf16.mxu1 %v1057_v0  ;;  %v1060_v3 = vld [vmem:[#allocation6 + $0x8] sm:$0xff]   ;;  %v1061_v4 = vld [vmem:[#allocation6 + $0x50] sm:$0xff]   ;;  %419 = vst.msk [vmem:[#allocation2] sm:$0xff] %vm418_vm0, %v1325_v21  ;;  %s956_s14 = smul.u32 192, %s1306_s21  ;;  %vm674_vm1 = vcmask 519168  }
  0xb6   : > { %907 = vmatpush3.bf16.msra.mxu0 %v1058_v1  ;;  %942 = vmatpush3.bf16.msra.mxu1 %v1058_v1  ;;  %v1062_v5 = vld [vmem:[#allocation6 + $0x10] sm:$0xff]   ;;  %v1063_v6 = vld [vmem:[#allocation6 + $0x58] sm:$0xff]   ;;  %v1065_v8 = vld [vmem:[#allocation6 + $0x60] sm:$0xff]   ;;  %420 = vst.msk [vmem:[#allocation2 + $0x8] sm:$0xff] %vm418_vm0, %v1325_v21  ;;  %v637_v33 = vshrl.u32 %v636_v22, 7  ;;  %s372_s26 = scalar_lea.vmem [#allocation11], %s955_s24 }
  0xb7   : > { %908 = vmatprep.subr.bf16.mxu0 %v1059_v2  ;;  %935 = vmatprep.subr.bf16.mxu1 %v1059_v2  ;;  %v1064_v7 = vld [vmem:[#allocation6 + $0x18] sm:$0xff]   ;;  %v1066_v9 = vld [vmem:[#allocation6 + $0x20] sm:$0xff]   ;;  %v1067_v10 = vld [vmem:[#allocation6 + $0x68] sm:$0xff]   ;;  %421 = vst.msk [vmem:[#allocation2 + $0x10] sm:$0xff] %vm418_vm0, %v1325_v21  ;;  %s407_s20 = scalar_lea.vmem [#allocation12], %s955_s24  ;;  %s1641_s29 = scalar_lea.hbm %s1697_s5, %s956_s14 }
  0xb8   : > { %v1075_v11 = vld [vmem:[%s1609_s7 + $0x4] ss:$8 sps:$4 sm:$0xff]   ;;  %v427_v12 = vld [vmem:[%s1609_s7 + $0x10] sm:$0xff]  ;;  %v1073_v19 = vld [vmem:[%s1609_s7] ss:$8 sps:$4 sm:$0xff]   ;;  %v638_v44 = vsub.s32 0, %v637_v33 }
  0xb9   : > { %v876_v13 = vcombine.high %v427_v12, %v427_v12  ;;  %v1068_v14 = vld [vmem:[#allocation6 + $0x28] sm:$0xff]   ;;  %v1069_v15 = vld [vmem:[#allocation6 + $0x70] sm:$0xff]   ;;  %605 = vmatprep.mubr.bf16.mxu0 %v1075_v11  ;;  %v1071_v17 = vld [vmem:[#allocation6 + $0x78] sm:$0xff]   ;;  %v875_v20 = vcombine.low %v427_v12, %v427_v12  ;;  %s695_s11 = sshll.u32 %s407_s20, 4  ;;  %s679_s21 = scalar_lea.sflag [#allocation5], %s1605_s8  ;;  %s1643_s11 = int_to_ptr.vmem [resolvable:$true] %s695_s11 }
  0xba   : > { %909 = vmatpush3.bf16.msra.mxu0 %v1060_v3  ;;  %943 = vmatpush3.bf16.msra.mxu1 %v1060_v3  ;;  %v1070_v16 = vld [vmem:[#allocation6 + $0x30] sm:$0xff]   ;;  %v1072_v18 = vld [vmem:[#allocation6 + $0x38] sm:$0xff]   ;;  %v634_v37 = vld [vmem:[#allocation8] sm:$0x1]  ;;  %s1224_s15 = scalar_lea.vmem %s1643_s11, 192  ;;  %p1743_p4 = scmp.ne.s32.totalorder %s1726_s9, 0 }
  0xbb   : > { %910 = vmatprep.subr.bf16.mxu0 %v1061_v4  ;;  %936 = vmatprep.subr.bf16.mxu1 %v1061_v4  ;;  %v649_v41 = vld [vmem:[%s363_s30] sm:$0x1]  ;;  %v635_v43 = vunpack.c.l.bf16 %v634_v37  ;;  %v903_v47 = vld [vmem:[%s372_s26] sm:$0xff]   ;;  %p1225_p2 = scmp.ne.s32.totalorder %s1643_s11, %s1224_s15  ;;  %s1326_s13 = smov [#allocation12]  }
  0xbc   : > { %613 = vmatprep.mubr.bf16.mxu1 %v876_v13  ;;  %v422_v25 = vld [vmem:[#allocation2] sm:$0xff]  ;;  %v650_v45 = vunpack.c.l.bf16 %v649_v41  ;;  %v904_v54 = vunpack.c.l.bf16 %v903_v47  ;;  %v905_v58 = vunpack.c.h.bf16 %v903_v47  ;;  %s1228_s25 = sshll.u32 %s1326_s13, 4  ;;  %s1229_s25 = int_to_ptr.vmem [resolvable:$false] %s1228_s25 }
  0xbd   : > { %v423_v34 = vld [vmem:[#allocation2 + $0x8] sm:$0xff]  ;;  %v639_v46 = vrot.slane %v635_v43, %v638_v44  ;;  %v645_v48 = vld [vmem:[%s372_s26 + $0x8] sm:$0xf]  ;;  %p1226_p10 = pnand %p1225_p2, %p1743_p4  ;;  %s1230_s16 = scalar_lea.vmem %s1229_s25, 384 }
  0xbe   : > { %911 = vmatpush3.bf16.msra.mxu0 %v1062_v5  ;;  %944 = vmatpush3.bf16.msra.mxu1 %v1062_v5  ;;  %v424_v27 = vld [vmem:[#allocation2 + $0x10] sm:$0xff]  ;;  %v654_v49 = vrot.slane %v650_v45, %v638_v44  ;;  %v648_v55 = vunpack.c.l.bf16 %v645_v48  ;;  %p1231_p11 = scmp.lt.s32.totalorder %s1643_s11, %s1229_s25  ;;  %p1232_p13 = scmp.lt.s32.totalorder %s1230_s16, %s1224_s15 }
  0xbf   : > { %912 = vmatprep.subr.bf16.mxu0 %v1063_v6  ;;  %937 = vmatprep.subr.bf16.mxu1 %v1063_v6  ;;  %p1227_p3 = pneg %p1226_p10 }
  0xc0   : > { %p1233_p6 = por %p1232_p13, %p1231_p11 }
  0xc2   : > { %913 = vmatpush3.bf16.msra.mxu0 %v1064_v7  ;;  %945 = vmatpush3.bf16.msra.mxu1 %v1064_v7  ;;  %p1234_p8 = pnand %p1233_p6, %p1227_p3 }
  0xc3   : > { %914 = vmatprep.subr.bf16.mxu0 %v1065_v8  ;;  %938 = vmatprep.subr.bf16.mxu1 %v1065_v8 }
  0xc6   : > { %915 = vmatpush3.bf16.msra.mxu0 %v1066_v9  ;;  %946 = vmatpush3.bf16.msra.mxu1 %v1066_v9 }
  0xc7   : > { %916 = vmatprep.subr.bf16.mxu0 %v1067_v10  ;;  %939 = vmatprep.subr.bf16.mxu1 %v1067_v10 }
  0xca   : > { %917 = vmatpush3.bf16.msra.mxu0 %v1068_v14  ;;  %947 = vmatpush3.bf16.msra.mxu1 %v1068_v14 }
  0xcb   : > { %918 = vmatprep.subr.bf16.mxu0 %v1069_v15  ;;  %940 = vmatprep.subr.bf16.mxu1 %v1069_v15 }
  0xce   : > { %919 = vmatpush3.bf16.msra.mxu0 %v1070_v16  ;;  %948 = vmatpush3.bf16.msra.mxu1 %v1070_v16 }
  0xcf   : > { %920 = vmatprep.subr.bf16.mxu0 %v1071_v17  ;;  %941 = vmatprep.subr.bf16.mxu1 %v1071_v17 }
  0xd2   : > { %921 = vmatpush3.bf16.msra.mxu0 %v1072_v18  ;;  %949 = vmatpush3.bf16.msra.mxu1 %v1072_v18 }
  0xd5   : > { %606 = vmatmul.mubr.bf16.vlgmr.msra.gmra.mrb[0].mxu0 %v1073_v19  ;;  %614 = vmatmul.mubr.bf16.vlgmr.msra.gmra.mrb[0].mxu1 %v875_v20 }
 0x1a8   : > { %v922_v23 = vpop.f32.mrb[0].mxu0  ;;  %v928_v24 = vpop.f32.mrb[0].mxu1 }
 0x1a9   : > { %v923_v26 = vpop.f32.mrb[1].mxu0  ;;  %v929_v28 = vpop.f32.mrb[1].mxu1 }
 0x1aa   : > { %v924_v29 = vadd.f32 %v923_v26, %v922_v23  ;;  %v930_v30 = vadd.f32 %v929_v28, %v928_v24  ;;  %v925_v31 = vpop.f32.mrb[2].mxu0  ;;  %v931_v32 = vpop.f32.mrb[2].mxu1 }
 0x1ab   : > { %v926_v35 = vpop.f32.mrb[3].mxu0  ;;  %v932_v36 = vpop.f32.mrb[3].mxu1 }
 0x1ac   : > { %v621_v38 = vadd.f32 %v924_v29, %v422_v25  ;;  %v623_v39 = vadd.f32 %v930_v30, %v424_v27  ;;  %v927_v40 = vadd.f32 %v926_v35, %v925_v31 }
 0x1ae   : > { %625 = vst.msk [vmem:[#allocation2] sm:$0xff] %vm418_vm0, %v621_v38  ;;  %627 = vst.msk [vmem:[#allocation2 + $0x10] sm:$0xff] %vm418_vm0, %v623_v39  ;;  %v622_v42 = vadd.f32 %v927_v40, %v423_v34 }
 0x1b0   : > { %626 = vst.msk [vmem:[#allocation2 + $0x8] sm:$0xff] %vm418_vm0, %v622_v42 }
 0x1b5   : > { %v631_v50 = vld [vmem:[#allocation2] sm:$0xff]  ;;  %v633_v51 = vld [vmem:[#allocation2 + $0x10] sm:$0xff] }
 0x1b6   : > { %v640_v52 = vadd.f32 %v639_v46, %v631_v50  ;;  %v642_v53 = vadd.f32 %v639_v46, %v633_v51 }
 0x1b7   : > { %v632_v56 = vld [vmem:[#allocation2 + $0x8] sm:$0xff] }
 0x1b8   : > { %v641_v57 = vadd.f32 %v639_v46, %v632_v56  ;;  %v655_v59 = vmul.f32 %v654_v49, %v640_v52  ;;  %v657_v60 = vmul.f32 %v654_v49, %v642_v53 }
 0x1ba   : > { %v656_v61 = vmul.f32 %v654_v49, %v641_v57  ;;  %v658_v62 = vadd.f32 %v904_v54, %v655_v59  ;;  %v660_v63 = vadd.f32 %v657_v60, %v648_v55 }
 0x1bc   : > { %v659_v0 = vadd.f32 %v905_v58, %v656_v61  ;;  %v899_v1 = vpack.c.bf16 %v658_v62, %v658_v62  ;;  %v901_v2 = vpack.c.bf16 %v660_v63, %v660_v63 }
 0x1be   : > { %v900_v3 = vpack.c.bf16 %v659_v0, %v659_v0  ;;  %675 = vst.msk [vmem:[%s407_s20] sm:$0xf] %vm674_vm1, %v899_v1  ;;  %677 = vst.msk [vmem:[%s407_s20 + $0x8] sm:$0xf] %vm674_vm1, %v901_v2 }
 0x1c0   : > { %676 = vst.msk [vmem:[%s407_s20 + $0x4] sm:$0xf] %vm674_vm1, %v900_v3 }
 0x1c1   : > { %1237 = shalt.err (!%p1234_p8)
}
 0x1c2   : > { %s1238_s17 = scalar_lea.hbm %s1641_s29, 192  ;;  %s1242_s23 = scalar_lea.hbm %s1697_s5, 384 }
 0x1c3   : > { %p1239_p0 = scmp.ne.s32.totalorder %s1641_s29, %s1238_s17  ;;  %p1243_p12 = scmp.lt.u32.totalorder %s1641_s29, %s1697_s5 }
 0x1c4   : > { %p1244_p1 = scmp.lt.u32.totalorder %s1242_s23, %s1238_s17  ;;  %p1246_p2 = scmp.lt.u32.totalorder %s1238_s17, %s1641_s29 }
 0x1c5   : > { %p1240_p5 = pnand %p1239_p0, %p1743_p4 }
 0x1c6   : > { %p1245_p9 = por %p1244_p1, %p1243_p12 }
 0x1c7   : > { %p1241_p7 = pneg %p1240_p5 }
 0x1c8   : > { %p1247_p10 = por %p1246_p2, %p1245_p9 }
 0x1ca   : > { %p1248_p3 = pnand %p1247_p10, %p1241_p7 }
 0x1cc   : > { %1251 = shalt.err (!%p1248_p3)
}
 0x1cd   : > { %s1327_s28 = smov 64   ;;  %s1328_s30 = smov 4  }
 0x1ce   : > { %971 = dma.vmem_to_hbm [thread:$0]  (%p1743_p4), %s1643_s11, 192, %s1641_s29, %s679_s21, %s1327_s28, %s1327_s28, %s1328_s30  }
 0x1cf PF: > { %s1744_s24 = sld [smem:[#allocation18_spill]]  ;;  %s710_s26 = sand.u32 1, %s1294_s18  }
 0x1d0   : > { %p1745_p11 = scmp.ne.s32.totalorder %s1720_s27, 0  ;;  %s711_s14 = scalar_lea.sflag [#allocation5], %s710_s26 }
 0x1d5   : > { %p1746_p13 = scmp.ge.s32.totalorder %s1744_s24, 2 }
 0x1d7   : > { %p991_p6 = pnand %p1746_p13, %p1745_p11 }
 0x1d9   : > { %1289 = dma.done.wait (!%p991_p6), %s711_s14, 192  }
 0x1da   : > { %1291 = vsyncadd (!%p991_p6), %s711_s14, 4294967104  ;;  %s25_s23 = sadd.s32 1, %s1744_s24   ;;  %s1747_s20 = sld [smem:[#allocation17_spill]] }
 0x1db   : > { %p22_p8 = scmp.ge.s32.totalorder %s25_s23, 4   ;;  %s1748_s12 = sld [smem:[#allocation20_spill]] }
 0x1dc   : > { %s1749_s9 = sld [smem:[#allocation19_spill]]  ;;  %s1750_s18 = smov %s1298_s19 }
 0x1dd   : > { %s1753_s21 = smov %s1310_s22  ;;  %24 = sbr.rel (!%p22_p8) target bundleno = 12 (0xc), region = 127 }
 0x1e0   : > { %s1751_s19 = smov %s1747_s20 }
 0x1e1   : > { %s1752_s20 = smov %s1748_s12 }
 0x1e2   : > { %s1754_s22 = smov %s1749_s9 }
 0x1e4   :  { %716 = vsyncpa [#allocation4], 1 }
 0x1e5   :  { %718 = vsyncpa [#allocation4 + $0x1], 1 }
 0x1e6   :  { %719 = vsyncpa [#allocation7], 1 }
 0x1e7   :  { %720 = vsyncpa [#allocation10], 1 }
 0x1e8   :  { %722 = vsyncpa [#allocation10 + $0x1], 1 }
 0x1e9   :  { %723 = vsyncpa [#allocation5], 1 }
 0x1ea   :  { %725 = vsyncpa [#allocation5 + $0x1], 1 }

// kernel: flux_transformer_block.22
= control target key start
LH: loop header
LB: loop body
LE: loop exit
PB: predicated region body
PF: predicated region fallthrough
CT: control target
= control target key end

     0   :  { %s1455_s0 = inlined_call_operand.hbm [shape: bf16[2,8,64], index: 0, kind: input, shape index: {}]   ;;  %s1456_s1 = inlined_call_operand.hbm [shape: bf16[2,1,64], index: 1, kind: input, shape index: {}]   ;;  %s1457_s2 = inlined_call_operand.hbm [shape: bf16[2,1,64], index: 2, kind: input, shape index: {}]   ;;  %s1458_s3 = inlined_call_operand.hbm [shape: bf16[64,256], index: 3, kind: input, shape index: {}]   ;;  %s1459_s4 = inlined_call_operand.hbm [shape: bf16[1,256], index: 4, kind: input, shape index: {}]   ;;  %s1460_s5 = inlined_call_operand.hbm [shape: bf16[2,8,256], index: 5, kind: output, shape index: {}]  }
   0x1   :  { %1475 = sst [smem:[#allocation20_spill]] %s1456_s1 }
   0x2   :  { %1476 = sst [smem:[#allocation21_spill]] %s1458_s3 }
   0x3   :  { %10 = vsyncpa [#allocation4], 0 }
   0x4   :  { %12 = vsyncpa [#allocation4 + $0x1], 0 }
   0x5   :  { %13 = vsyncpa [#allocation7], 0 }
   0x6   :  { %15 = vsyncpa [#allocation7 + $0x1], 0 }
   0x7   :  { %16 = vsyncpa [#allocation10], 0 }
   0x8   :  { %17 = vsyncpa [#allocation5], 0 }
   0x9   :  { %19 = vsyncpa [#allocation5 + $0x1], 0  ;;  %s1148_s18 = smov 0   ;;  %s1150_s19 = smov 0  }
   0xa   :  { %s1152_s20 = smov 0   ;;  %s1154_s21 = smov 0  }
   0xb   :  { %s1156_s22 = smov 0   ;;  %s1158_s23 = smov 0  }
   0xc LB: > { %1477 = sst [smem:[#allocation17_spill]] %s1095_s20  ;;  %s1179_s24 = sadd.s32 4294967295, %s1107_s23   ;;  %s1107_s23 = sphi %s1158_s23, %s25_s23   ;;  %s1103_s22 = sphi %s1156_s22, %s1510_s22   ;;  %s1099_s21 = sphi %s1154_s21, %s1509_s21   ;;  %s1095_s20 = sphi %s1152_s20, %s1505_s20   ;;  %s1091_s19 = sphi %s1150_s19, %s1508_s19   ;;  %s1087_s18 = sphi %s1148_s18, %s1507_s18  }
   0xd   : > { %s726_s25 = sadd.s32 4294967294, %s1107_s23   ;;  %p66_p0 = scmp.ne.s32.totalorder %s1091_s19, %s1087_s18 }
   0xe   : > { %p1461_p1 = scmp.eq.s32.totalorder %s1179_s24, 0  ;;  %p204_p3 = scmp.eq.s32.totalorder %s726_s25, 1 }
   0xf   : > { %p727_p5 = scmp.ge.s32.totalorder %s1107_s23, 1  ;;  %p211_p7 = scmp.lt.s32.totalorder %s1107_s23, 3 }
  0x10   : > { %p1188_p4 = por %p1461_p1, %p66_p0  ;;  %p1193_p6 = por %p204_p3, %p66_p0 }
  0x11   : > { %p1198_p8 = pnand %p727_p5, %p211_p7  ;;  %s1109_s29 = smov [#allocation9]  }
  0x12   : > { %s1478_s26 = scalar_select %p1188_p4, 1, 0 }
  0x13   : > { %s1479_s27 = scalar_select %p1193_p6, 1, 0 }
  0x14   : > { %s1480_s28 = scalar_select %p1198_p8, 1, 0 }
  0x15   : > { %s226_s30 = sshll.u32 %s1109_s29, 4  ;;  %p773_p9 = pneg %p1198_p8  ;;  %s227_s30 = int_to_ptr.vmem [resolvable:$true] %s226_s30 }
  0x16   : > { %s44_s7 = sadd.s32 1, %s1103_s22  ;;  %s1482_s3 = sld [smem:[#allocation21_spill]] }
  0x17   : > { %p1207_p11 = pnand %p773_p9, %p1461_p1 }
  0x19   : > { %s1481_s6 = scalar_select %p1207_p11, 1, 0 }
  0x1a   : > { %p1466_p13 = pneg %p1207_p11 }
  0x1c   : > { %s871_s10 = scalar_lea.hbm %s1482_s3, 1024 }
  0x1d   : > { %p872_p12 = scmp.ne.s32.totalorder %s1482_s3, %s871_s10  ;;  %p878_p5 = scmp.lt.u32.totalorder %s871_s10, %s1482_s3 }
  0x1f   : > { %p874_p0 = pnand %p1466_p13, %p872_p12 }
  0x21   : > { %p875_p3 = pneg %p874_p0 }
  0x23   : > { %p880_p7 = pnand %p878_p5, %p875_p3 }
  0x25   : > { %883 = shalt.err (!%p880_p7)
}
  0x26   : > { %s884_s15 = scalar_lea.vmem %s227_s30, 1024  ;;  %p892_p2 = scmp.lt.s32.totalorder %s227_s30, %s227_s30 }
  0x27   : > { %p885_p9 = scmp.ne.s32.totalorder %s227_s30, %s884_s15  ;;  %p893_p6 = scmp.lt.s32.totalorder %s884_s15, %s884_s15 }
  0x29   : > { %p887_p10 = pnand %p885_p9, %p1466_p13  ;;  %p894_p4 = por %p893_p6, %p892_p2 }
  0x2b   : > { %p888_p1 = pneg %p887_p10 }
  0x2d   : > { %p895_p8 = pnand %p894_p4, %p888_p1 }
  0x2f   : > { %898 = shalt.err (!%p895_p8)
}
  0x30   : > { %s1110_s16 = smov 128   ;;  %s1111_s17 = smov 8  }
  0x31   : > { %776 = dma.hbm_to_vmem [thread:$0]  (!%p1207_p11), %s1482_s3, 1024, %s227_s30, [#allocation10], %s1110_s16, %s1110_s16, %s1111_s17  }
  0x32   : > { %p46_p1 = scmp.ge.s32.totalorder %s44_s7, 2  ;;  %s53_s8 = sadd.s32 1, %s1095_s20 }
  0x33   : > { %p60_p2 = scmp.ne.s32.totalorder %s1095_s20, %s1091_s19  ;;  %p61_p4 = scmp.eq.s32.totalorder %s1107_s23, 0 }
  0x34   : > { %s1512_s7 = smov (%p46_p1, %s44_s7), 0  ;;  %p1484_p8 = scmp.eq.s32.totalorder %s1179_s24, 1 }
  0x35   : > { %1483 = sst [smem:[#allocation18_spill]] %s1512_s7  ;;  %p62_p6 = por %p61_p4, %p60_p2 }
  0x36   : > { %p1242_p10 = por %p1484_p8, %p60_p2  ;;  %s48_s10 = ssub.s32 %s1103_s22, %s1512_s7 }
  0x37   : > { %p796_p12 = scmp.lt.s32.totalorder %s1107_s23, 2  ;;  %p51_p0 = scmp.eq.s32.totalorder %s48_s10, 0 }
  0x38   : > { %s1485_s9 = scalar_select %p1242_p10, 1, 0 }
  0x39   : > { %s1250_s11 = sand.u32 1, %s1095_s20   ;;  %p1252_p3 = pnand %p796_p12, %p62_p6 }
  0x3a   : > { %s273_s12 = sand.u32 1, %s1107_s23   ;;  %s1464_s14 = sshll.u32 %s1103_s22, 4 }
  0x3b   : > { %s1486_s30 = scalar_select %p1252_p3, 1, 0 }
  0x3c   : > { %s1258_s13 = scalar_select %p51_p0, %s1095_s20, %s53_s8  }
  0x3d   : > { %s1488_s1 = sld [smem:[#allocation20_spill]]  ;;  %s276_s25 = scalar_lea.vmem [#allocation6], %s1250_s11 }
  0x3e   : > { %1487 = sst [smem:[#allocation19_spill]] %s1258_s13  ;;  %s283_s29 = sshll.u32 %s276_s25, 4  ;;  %s1269_s29 = int_to_ptr.vmem [resolvable:$true] %s283_s29 }
  0x3f   : > { %s1271_s10 = scalar_lea.sflag [#allocation7], %s273_s12  ;;  %p1277_p7 = pneg %p1252_p3 }
  0x41   : > { %s1489_s8 = scalar_select %p1277_p7, 1, 0 }
  0x43   : > { %s1266_s17 = scalar_lea.hbm %s1488_s1, %s1464_s14  ;;  %s904_s14 = scalar_lea.hbm %s1488_s1, 32 }
  0x44   : > { %s899_s3 = scalar_lea.hbm %s1266_s17, 16  ;;  %p905_p2 = scmp.lt.u32.totalorder %s1266_s17, %s1488_s1 }
  0x45   : > { %p900_p5 = scmp.ne.s32.totalorder %s1266_s17, %s899_s3  ;;  %p906_p4 = scmp.lt.u32.totalorder %s904_s14, %s899_s3 }
  0x46   : > { %p908_p8 = scmp.lt.u32.totalorder %s899_s3, %s1266_s17 }
  0x47   : > { %p902_p9 = pnand %p1277_p7, %p900_p5  ;;  %p907_p6 = por %p906_p4, %p905_p2 }
  0x49   : > { %p903_p1 = pneg %p902_p9  ;;  %p909_p12 = por %p908_p8, %p907_p6 }
  0x4b   : > { %p910_p0 = pnand %p909_p12, %p903_p1 }
  0x4d   : > { %913 = shalt.err (!%p910_p0)
}
  0x4e   : > { %s914_s12 = scalar_lea.vmem %s1269_s29, 16  ;;  %s1112_s15 = smov [#allocation6]  }
  0x4f   : > { %p915_p5 = scmp.ne.s32.totalorder %s1269_s29, %s914_s12  ;;  %s919_s16 = sshll.u32 %s1112_s15, 4  ;;  %s920_s16 = int_to_ptr.vmem [resolvable:$false] %s919_s16 }
  0x50   : > { %s921_s7 = scalar_lea.vmem %s920_s16, 32  ;;  %p922_p10 = scmp.lt.s32.totalorder %s1269_s29, %s920_s16 }
  0x51   : > { %p917_p9 = pnand %p915_p5, %p1277_p7  ;;  %p923_p11 = scmp.lt.s32.totalorder %s921_s7, %s914_s12 }
  0x53   : > { %p918_p13 = pneg %p917_p9  ;;  %p924_p2 = por %p923_p11, %p922_p10 }
  0x55   : > { %p925_p4 = pnand %p924_p2, %p918_p13 }
  0x57   : > { %928 = shalt.err (!%p925_p4)
}
  0x58   : > { %786 = dma.hbm_to_vmem [thread:$0]  (!%p1252_p3), %s1266_s17, 16, %s1269_s29, %s1271_s10  }
  0x59   : > { %s1113_s3 = smov [#allocation11]   ;;  %s731_s25 = sshll.u32 %s1250_s11, 2 }
  0x5a   : > { %s243_s14 = sshll.u32 %s1113_s3, 4  ;;  %s929_s16 = scalar_lea.hbm %s1459_s4, 32  ;;  %s244_s14 = int_to_ptr.vmem [resolvable:$true] %s243_s14 }
  0x5b   : > { %p930_p11 = scmp.ne.s32.totalorder %s1459_s4, %s929_s16  ;;  %p1490_p13 = scmp.ne.s32.totalorder %s1481_s6, 0 }
  0x5c   : > { %p936_p8 = scmp.lt.u32.totalorder %s929_s16, %s1459_s4 }
  0x5d   : > { %p1491_p10 = pneg %p1490_p13 }
  0x5f   : > { %p932_p1 = pnand %p930_p11, %p1491_p10 }
  0x61   : > { %p933_p6 = pneg %p932_p1 }
  0x63   : > { %p938_p12 = pnand %p936_p8, %p933_p6 }
  0x65   : > { %941 = shalt.err (!%p938_p12)
}
  0x66   : > { %s942_s17 = scalar_lea.vmem %s244_s14, 32  ;;  %p1492_p5 = pmov %p1491_p10 }
  0x67   : > { %p943_p0 = scmp.ne.s32.totalorder %s244_s14, %s942_s17  ;;  %p950_p4 = scmp.lt.s32.totalorder %s244_s14, %s244_s14 }
  0x68   : > { %p951_p3 = scmp.lt.s32.totalorder %s942_s17, %s942_s17 }
  0x69   : > { %p945_p9 = pnand %p943_p0, %p1492_p5 }
  0x6a   : > { %p952_p7 = por %p951_p3, %p950_p4 }
  0x6b   : > { %p946_p2 = pneg %p945_p9 }
  0x6d   : > { %p953_p10 = pnand %p952_p7, %p946_p2 }
  0x6f   : > { %956 = shalt.err (!%p953_p10)
}
  0x70   : > { %779 = dma.hbm_to_vmem [thread:$0]  (!%p1490_p13), %s1459_s4, 32, %s244_s14, [#allocation10]  }
  0x71   : > { %s732_s20 = sshll.u32 %s1103_s22, 6  ;;  %s258_s13 = scalar_lea.vmem [#allocation3], %s731_s25 }
  0x72   : > { %s266_s3 = sshll.u32 %s258_s13, 4  ;;  %s1326_s12 = scalar_lea.hbm %s1455_s0, %s732_s20  ;;  %s267_s3 = int_to_ptr.vmem [resolvable:$true] %s266_s3 }
  0x73   : > { %s255_s6 = scalar_lea.sflag [#allocation4], %s1250_s11  ;;  %s957_s7 = scalar_lea.hbm %s1326_s12, 64 }
  0x74   : > { %p958_p3 = scmp.ne.s32.totalorder %s1326_s12, %s957_s7  ;;  %p1493_p7 = scmp.ne.s32.totalorder %s1489_s8, 0 }
  0x75   : > { %s962_s25 = scalar_lea.hbm %s1455_s0, 128  ;;  %p963_p13 = scmp.lt.u32.totalorder %s1326_s12, %s1455_s0 }
  0x76   : > { %p960_p11 = pnand %p958_p3, %p1493_p7  ;;  %p964_p6 = scmp.lt.u32.totalorder %s962_s25, %s957_s7 }
  0x77   : > { %p966_p12 = scmp.lt.u32.totalorder %s957_s7, %s1326_s12 }
  0x78   : > { %p961_p1 = pneg %p960_p11  ;;  %p965_p8 = por %p964_p6, %p963_p13 }
  0x7a   : > { %p967_p0 = por %p966_p12, %p965_p8 }
  0x7c   : > { %p968_p5 = pnand %p967_p0, %p961_p1 }
  0x7e   : > { %971 = shalt.err (!%p968_p5)
}
  0x7f   : > { %s972_s20 = scalar_lea.vmem %s267_s3, 64  ;;  %s1114_s13 = smov [#allocation3]  }
  0x80   : > { %p973_p9 = scmp.ne.s32.totalorder %s267_s3, %s972_s20  ;;  %s977_s15 = sshll.u32 %s1114_s13, 4  ;;  %s978_s15 = int_to_ptr.vmem [resolvable:$false] %s977_s15 }
  0x81   : > { %s979_s16 = scalar_lea.vmem %s978_s15, 128  ;;  %p980_p10 = scmp.lt.s32.totalorder %s267_s3, %s978_s15 }
  0x82   : > { %p975_p2 = pnand %p973_p9, %p1493_p7  ;;  %p981_p3 = scmp.lt.s32.totalorder %s979_s16, %s972_s20 }
  0x84   : > { %p976_p4 = pneg %p975_p2  ;;  %p982_p11 = por %p981_p3, %p980_p10 }
  0x86   : > { %p983_p6 = pnand %p982_p11, %p976_p4 }
  0x88   : > { %986 = shalt.err (!%p983_p6)
}
  0x89   : > { %p1494_p13 = scmp.ne.s32.totalorder %s1486_s30, 0  ;;  %s1495_s7 = sshll.u32 %s1103_s22, 4 }
  0x8a   : > { %s1351_s25 = scalar_lea.hbm %s1457_s2, %s1495_s7  ;;  %s293_s1 = scalar_lea.vmem [#allocation8], %s1250_s11 }
  0x8b   : > { %783 = dma.hbm_to_vmem [thread:$0]  (!%p1494_p13), %s1326_s12, 64, %s267_s3, %s255_s6  }
  0x8c   : > { %s300_s29 = sshll.u32 %s293_s1, 4  ;;  %s987_s20 = scalar_lea.hbm %s1351_s25, 16  ;;  %s301_s29 = int_to_ptr.vmem [resolvable:$true] %s300_s29 }
  0x8d   : > { %p988_p1 = scmp.ne.s32.totalorder %s1351_s25, %s987_s20  ;;  %s992_s12 = scalar_lea.hbm %s1457_s2, 32 }
  0x8e   : > { %p993_p0 = scmp.lt.u32.totalorder %s1351_s25, %s1457_s2  ;;  %p994_p5 = scmp.lt.u32.totalorder %s992_s12, %s987_s20 }
  0x8f   : > { %p990_p8 = pnand %p988_p1, %p1493_p7  ;;  %p996_p2 = scmp.lt.u32.totalorder %s987_s20, %s1351_s25 }
  0x90   : > { %p995_p9 = por %p994_p5, %p993_p0 }
  0x91   : > { %p991_p12 = pneg %p990_p8 }
  0x92   : > { %p997_p4 = por %p996_p2, %p995_p9 }
  0x94   : > { %p998_p10 = pnand %p997_p4, %p991_p12 }
  0x96   : > { %1001 = shalt.err (!%p998_p10)
}
  0x97   : > { %s1002_s11 = scalar_lea.vmem %s301_s29, 16  ;;  %s1115_s16 = smov [#allocation8]  }
  0x98   : > { %p1003_p3 = scmp.ne.s32.totalorder %s301_s29, %s1002_s11  ;;  %s1007_s7 = sshll.u32 %s1115_s16, 4  ;;  %s1008_s7 = int_to_ptr.vmem [resolvable:$false] %s1007_s7 }
  0x99   : > { %s1009_s14 = scalar_lea.vmem %s1008_s7, 32  ;;  %p1010_p1 = scmp.lt.s32.totalorder %s301_s29, %s1008_s7 }
  0x9a   : > { %p1005_p11 = pnand %p1003_p3, %p1493_p7  ;;  %p1011_p8 = scmp.lt.s32.totalorder %s1009_s14, %s1002_s11 }
  0x9c   : > { %p1006_p6 = pneg %p1005_p11  ;;  %p1012_p13 = por %p1011_p8, %p1010_p1 }
  0x9e   : > { %p1013_p0 = pnand %p1012_p13, %p1006_p6 }
  0xa0   : > { %1016 = shalt.err (!%p1013_p0)
}
  0xa1   : > { %p1496_p5 = scmp.ne.s32.totalorder %s1486_s30, 0  ;;  %p1497_p12 = scmp.ne.s32.totalorder %s1480_s28, 0 }
  0xa2   : > { %s1375_s8 = sand.u32 (!%p1497_p12), 1, %s1091_s19   ;;  %p1498_p7 = scmp.ne.s32.totalorder (!%p1497_p12), %s1478_s26, 0 }
  0xa3   : > { %789 = dma.hbm_to_vmem [thread:$0]  (!%p1496_p5), %s1351_s25, 16, %s301_s29, %s1271_s10  }
  0xa4   : > { %309 = sbr.rel (%p1497_p12) target bundleno = 760 (0x2f8), region = 40  ;;  %s736_s17 = sshll.u32 (!%p1497_p12), %s1375_s8, 2 }
  0xa5   : > { %s312_s1 = scalar_lea.sflag (!%p1497_p12), [#allocation4], %s1375_s8  ;;  %s315_s20 = scalar_lea.vmem (!%p1497_p12), [#allocation3], %s736_s17 }
  0xab   : > { %1070 = dma.done.wait (%p1498_p7), %s312_s1, 64  }
  0xac   : > { %1072 = vsyncadd (%p1498_p7), %s312_s1, 4294967232  ;;  %s320_s30 = sand.u32 1, %s1179_s24   ;;  %s323_s10 = scalar_lea.vmem [#allocation6], %s1375_s8 }
  0xad   : > { %s321_s28 = scalar_lea.sflag [#allocation7], %s320_s30 }
  0xae   : > { %1074 = dma.done.wait (%p1498_p7), %s321_s28, 32  }
  0xaf   : > { %1076 = vsyncadd (%p1498_p7), %s321_s28, 4294967264  ;;  %s331_s25 = scalar_lea.vmem [#allocation8], %s1375_s8  ;;  %p1499_p13 = scmp.eq.s32.totalorder %s1179_s24, 0 }
  0xb1   : > { %1078 = dma.done.wait (%p1499_p13), [#allocation10], 1056   ;;  %p1500_p9 = pmov %p1499_p13 }
  0xb2   : > { %v382_v0 = vld [vmem:[%s315_s20] sm:$0xf]  ;;  %vm384_vm0 = vcmask 523264   ;;  %v853_v8 = vld [vmem:[#allocation9 + $0x4] ss:$8 sps:$4 sm:$0xff]   ;;  %v1116_v16 = vmov 0   ;;  %v402_v19 = vlaneseq }
  0xb3   : > { %1080 = vsyncadd (%p1500_p9), [#allocation10], 4294966240  ;;  %v383_v1 = vunpack.c.l.bf16 %v382_v0  ;;  %v855_v9 = vld [vmem:[#allocation9] ss:$8 sps:$4 sm:$0xff]   ;;  %491 = vmatprep.subr.bf16.mxu0 %v853_v8  ;;  %v856_v10 = vld [vmem:[#allocation9 + $0x14] ss:$8 sps:$4 sm:$0xff]   ;;  %523 = vmatprep.mubr.bf16.mxu0 %v1116_v16 }
  0xb4   : > { %492 = vmatpush1.bf16.msra.mxu0 %v855_v9  ;;  %v858_v11 = vld [vmem:[#allocation9 + $0x10] ss:$8 sps:$4 sm:$0xff]   ;;  %v859_v12 = vld [vmem:[#allocation9 + $0x24] ss:$8 sps:$4 sm:$0xff]   ;;  %v861_v13 = vld [vmem:[#allocation9 + $0x20] ss:$8 sps:$4 sm:$0xff]  }
  0xb5   : > { %v385_v2 = vsel %vm384_vm0, %v383_v1, 0.0  ;;  %493 = vmatprep.subr.bf16.mxu0 %v856_v10  ;;  %v862_v14 = vld [vmem:[#allocation9 + $0x34] ss:$8 sps:$4 sm:$0xff]   ;;  %v864_v15 = vld [vmem:[#allocation9 + $0x30] ss:$8 sps:$4 sm:$0xff]   ;;  %v403_v23 = vshrl.u32 %v402_v19, 7 }
  0xb6   : > { %386 = vadd.xlane.f32.xlu0 %v385_v2  ;;  %v399_v20 = vld [vmem:[%s331_s25] sm:$0x1]  ;;  %vm415_vm1 = vcmask 519168   ;;  %v426_v36 = vld [vmem:[#allocation11] sm:$0x3]  ;;  %s739_s24 = sshll.u32 %s1375_s8, 3 }
  0xb7   : > { %v400_v22 = vunpack.c.l.bf16 %v399_v20  ;;  %v407_v24 = vld [vmem:[%s323_s10] sm:$0x1]  ;;  %v404_v26 = vsub.s32 0, %v403_v23  ;;  %v427_v37 = vunpack.c.l.bf16 %v426_v36  ;;  %v435_v38 = vsub.s32 2, %v403_v23  ;;  %s756_s26 = sshll.u32 %s1099_s21, 7  ;;  %s373_s29 = scalar_lea.vmem [#allocation12], %s739_s24 }
  0xb8   : > { %494 = vmatpush1.bf16.msra.mxu0 %v858_v11  ;;  %v408_v27 = vunpack.c.l.bf16 %v407_v24  ;;  %s578_s13 = sshll.u32 %s373_s29, 4  ;;  %s1406_s6 = scalar_lea.hbm %s1460_s5, %s756_s26  ;;  %s1408_s13 = int_to_ptr.vmem [resolvable:$true] %s578_s13 }
  0xb9   : > { %495 = vmatprep.subr.bf16.mxu0 %v859_v12  ;;  %v401_v25 = vadd.f32 1.0, %v400_v22  ;;  %v432_v39 = vrot.slane %v427_v37, %v404_v26  ;;  %v436_v40 = vrot.slane %v427_v37, %v435_v38  ;;  %s560_s15 = scalar_lea.sflag [#allocation5], %s1375_s8  ;;  %s1017_s11 = scalar_lea.vmem %s1408_s13, 128 }
  0xba   : > { %v412_v30 = vrot.slane %v408_v27, %v404_v26  ;;  %p1018_p2 = scmp.ne.s32.totalorder %s1408_s13, %s1017_s11  ;;  %p1501_p4 = scmp.ne.s32.totalorder %s1485_s9, 0 }
  0xbb   : > { %v405_v28 = vrot.slane %v401_v25, %v404_v26  ;;  %v442_v41 = vrot.slane %v432_v39, %v404_v26  ;;  %v446_v42 = vrot.slane %v436_v40, %v404_v26  ;;  %s1117_s21 = smov [#allocation12]  }
  0xbc   : > { %496 = vmatpush1.bf16.msra.mxu0 %v861_v13  ;;  %p1019_p10 = pnand %p1018_p2, %p1501_p4  ;;  %s1021_s16 = sshll.u32 %s1117_s21, 4  ;;  %s1022_s16 = int_to_ptr.vmem [resolvable:$false] %s1021_s16 }
  0xbd   : > { %497 = vmatprep.subr.bf16.mxu0 %v862_v14  ;;  %s1023_s7 = scalar_lea.vmem %s1022_s16, 256  ;;  %p1024_p11 = scmp.lt.s32.totalorder %s1408_s13, %s1022_s16 }
  0xbe   : > { %p1020_p3 = pneg %p1019_p10  ;;  %p1025_p6 = scmp.lt.s32.totalorder %s1023_s7, %s1017_s11 }
  0xc0   : > { %498 = vmatpush1.bf16.msra.mxu0 %v864_v15  ;;  %p1026_p1 = por %p1025_p6, %p1024_p11 }
  0xc2   : > { %p1027_p8 = pnand %p1026_p1, %p1020_p3 }
 0x143   : > { %v387_v3 = vpop.xlane.xlu0 %386 }
 0x144   : > { %v389_v4 = vmul.f32 0.015625, %v387_v3 }
 0x146   : > { %v390_v5 = vsub.f32 %v383_v1, %v389_v4 }
 0x148   : > { %v391_v6 = vmul.f32 %v390_v5, %v390_v5 }
 0x14a   : > { %v392_v7 = vsel %vm384_vm0, %v391_v6, 0.0 }
 0x14b   : > { %393 = vadd.xlane.f32.xlu0 %v392_v7 }
 0x1d8   : > { %v394_v17 = vpop.xlane.xlu0 %393 }
 0x1d9   : > { %v395_v18 = vmul.f32 0.015625, %v394_v17 }
 0x1db   : > { %v396_v21 = vadd.f32 1e-06, %v395_v18 }
 0x1dd   : > { %865 = vrsqrt.f32 %v396_v21 }
 0x1e7   : > { %v866_v29 = vpop.eup %865 }
 0x1e8   : > { %v398_v31 = vmul.f32 %v866_v29, %v390_v5 }
 0x1ea   : > { %v406_v32 = vmul.f32 %v405_v28, %v398_v31 }
 0x1ec   : > { %v413_v33 = vadd.f32 %v412_v30, %v406_v32 }
 0x1ee   : > { %v414_v34 = vpack.c.bf16 %v413_v33, %v413_v33 }
 0x1f0   : > { %416 = vst.msk [vmem:[#allocation2] sm:$0xf] %vm415_vm1, %v414_v34 }
 0x1f7   : > { %v417_v35 = vld [vmem:[#allocation2] sm:$0xf] }
 0x1f8   : > { %748 = vmatmul.mubr.msk.bf16.vlgmr.msra.gmra.mrb[0].mxu0 %vm384_vm0, %v417_v35 }
 0x2cb   : > { %v525_v43 = vpop.f32.mrb[0].mxu0 }
 0x2cc   : > { %v526_v44 = vadd.f32 %v525_v43, %v442_v41  ;;  %v527_v45 = vpop.f32.mrb[1].mxu0 }
 0x2cd   : > { %v528_v46 = vadd.f32 %v527_v45, %v446_v42  ;;  %v529_v47 = vpop.f32.mrb[2].mxu0 }
 0x2ce   : > { %v534_v48 = vmul.f32 0.044715, %v526_v44  ;;  %v530_v49 = vpop.f32.mrb[3].mxu0  ;;  %v532_v61 = vmul.f32 0.5, %v526_v44 }
 0x2cf   : > { %v535_v50 = vmul.f32 0.044715, %v528_v46  ;;  %v533_v63 = vmul.f32 0.5, %v528_v46 }
 0x2d0   : > { %v536_v51 = vmul.f32 %v534_v48, %v526_v44 }
 0x2d1   : > { %v537_v52 = vmul.f32 %v535_v50, %v528_v46 }
 0x2d2   : > { %v538_v53 = vmul.f32 %v536_v51, %v526_v44 }
 0x2d3   : > { %v539_v54 = vmul.f32 %v537_v52, %v528_v46 }
 0x2d4   : > { %v540_v55 = vadd.f32 %v538_v53, %v526_v44 }
 0x2d5   : > { %v541_v56 = vadd.f32 %v539_v54, %v528_v46 }
 0x2d6   : > { %v542_v57 = vmul.f32 0.7978846, %v540_v55 }
 0x2d7   : > { %v543_v58 = vmul.f32 0.7978846, %v541_v56 }
 0x2d8   : > { %867 = vtanh.f32 %v542_v57 }
 0x2d9   : > { %869 = vtanh.f32 %v543_v58 }
 0x2e2   : > { %v868_v59 = vpop.eup %867 }
 0x2e3   : > { %v870_v60 = vpop.eup %869  ;;  %v546_v62 = vadd.f32 1.0, %v868_v59 }
 0x2e4   : > { %v547_v0 = vadd.f32 1.0, %v870_v60 }
 0x2e5   : > { %v548_v1 = vmul.f32 %v546_v62, %v532_v61 }
 0x2e6   : > { %v549_v2 = vmul.f32 %v547_v0, %v533_v63 }
 0x2e8   : > { %v755_v3 = vpack.c.bf16 %v549_v2, %v548_v1 }
 0x2ea   : > { %558 = vst [vmem:[%s373_s29] sm:$0xff] %v755_v3 }
 0x2eb   : > { %1030 = shalt.err (!%p1027_p8)
}
 0x2ec   : > { %s1031_s14 = scalar_lea.hbm %s1406_s6, 128  ;;  %s1035_s1 = scalar_lea.hbm %s1460_s5, 256 }
 0x2ed   : > { %p1032_p0 = scmp.ne.s32.totalorder %s1406_s6, %s1031_s14  ;;  %p1036_p7 = scmp.lt.u32.totalorder %s1406_s6, %s1460_s5 }
 0x2ee   : > { %p1037_p13 = scmp.lt.u32.totalorder %s1035_s1, %s1031_s14  ;;  %p1039_p2 = scmp.lt.u32.totalorder %s1031_s14, %s1406_s6 }
 0x2ef   : > { %p1033_p5 = pnand %p1032_p0, %p1501_p4 }
 0x2f0   : > { %p1038_p9 = por %p1037_p13, %p1036_p7 }
 0x2f1   : > { %p1034_p12 = pneg %p1033_p5 }
 0x2f2   : > { %p1040_p10 = por %p1039_p2, %p1038_p9 }
 0x2f4   : > { %p1041_p3 = pnand %p1040_p10, %p1034_p12 }
 0x2f6   : > { %1044 = shalt.err (!%p1041_p3)
}
 0x2f7   : > { %771 = dma.vmem_to_hbm [thread:$0]  (%p1501_p4), %s1408_s13, 128, %s1406_s6, %s560_s15  }
 0x2f8 PF: > { %s590_s28 = sand.u32 1, %s1087_s18   ;;  %p1502_p11 = scmp.ne.s32.totalorder %s1479_s27, 0 }
 0x2f9   : > { %p1503_p6 = scmp.ge.s32.totalorder %s1107_s23, 2  ;;  %s591_s10 = scalar_lea.sflag [#allocation5], %s590_s28 }
 0x2fb   : > { %p791_p1 = pnand %p1503_p6, %p1502_p11 }
 0x2fd   : > { %1082 = dma.done.wait (!%p791_p1), %s591_s10, 128  }
 0x2fe   : > { %1084 = vsyncadd (!%p791_p1), %s591_s10, 4294967168  ;;  %s25_s23 = sadd.s32 1, %s1107_s23   ;;  %s1504_s25 = sld [smem:[#allocation17_spill]] }
 0x2ff   : > { %p22_p8 = scmp.ge.s32.totalorder %s25_s23, 4   ;;  %s1505_s20 = sld [smem:[#allocation19_spill]] }
 0x300   : > { %s1506_s9 = sld [smem:[#allocation18_spill]]  ;;  %s1507_s18 = smov %s1091_s19 }
 0x301   : > { %s1509_s21 = smov %s1103_s22  ;;  %24 = sbr.rel (!%p22_p8) target bundleno = 12 (0xc), region = 123 }
 0x304   : > { %s1508_s19 = smov %s1504_s25 }
 0x306   : > { %s1510_s22 = smov %s1506_s9 }
 0x308   :  { %596 = vsyncpa [#allocation4], 1 }
 0x309   :  { %598 = vsyncpa [#allocation4 + $0x1], 1 }
 0x30a   :  { %599 = vsyncpa [#allocation7], 1 }
 0x30b   :  { %601 = vsyncpa [#allocation7 + $0x1], 1 }
 0x30c   :  { %602 = vsyncpa [#allocation10], 1 }
 0x30d   :  { %603 = vsyncpa [#allocation5], 1 }
 0x30e   :  { %605 = vsyncpa [#allocation5 + $0x1], 1 }

// kernel: flux_transformer_block.19
= control target key start
LH: loop header
LB: loop body
LE: loop exit
PB: predicated region body
PF: predicated region fallthrough
CT: control target
= control target key end

     0   :  { %s1413_s0 = inlined_call_operand.hbm [shape: bf16[2,8,64], index: 0, kind: input, shape index: {}]   ;;  %s1414_s1 = inlined_call_operand.hbm [shape: bf16[64,64], index: 1, kind: input, shape index: {}]   ;;  %s1415_s2 = inlined_call_operand.hbm [shape: bf16[1,64], index: 2, kind: input, shape index: {}]   ;;  %s1416_s3 = inlined_call_operand.hbm [shape: bf16[2,1,64], index: 3, kind: input, shape index: {}]   ;;  %s1417_s4 = inlined_call_operand.hbm [shape: bf16[2,8,64], index: 4, kind: input, shape index: {}]   ;;  %s1418_s5 = inlined_call_operand.hbm [shape: bf16[2,8,64], index: 5, kind: output, shape index: {}]  }
   0x1   :  { %1433 = sst [smem:[#allocation20_spill]] %s1414_s1 }
   0x2   :  { %1434 = sst [smem:[#allocation21_spill]] %s1416_s3 }
   0x3   :  { %10 = vsyncpa [#allocation4], 0 }
   0x4   :  { %12 = vsyncpa [#allocation4 + $0x1], 0 }
   0x5   :  { %13 = vsyncpa [#allocation7], 0 }
   0x6   :  { %14 = vsyncpa [#allocation10], 0 }
   0x7   :  { %16 = vsyncpa [#allocation10 + $0x1], 0 }
   0x8   :  { %17 = vsyncpa [#allocation5], 0 }
   0x9   :  { %19 = vsyncpa [#allocation5 + $0x1], 0  ;;  %s1104_s18 = smov 0   ;;  %s1106_s19 = smov 0  }
   0xa   :  { %s1108_s20 = smov 0   ;;  %s1110_s21 = smov 0  }
   0xb   :  { %s1112_s22 = smov 0   ;;  %s1114_s23 = smov 0  }
   0xc LB: > { %1435 = sst [smem:[#allocation17_spill]] %s1050_s20  ;;  %s1135_s24 = sadd.s32 4294967295, %s1062_s23   ;;  %s1062_s23 = sphi %s1114_s23, %s25_s23   ;;  %s1058_s22 = sphi %s1112_s22, %s1468_s22   ;;  %s1054_s21 = sphi %s1110_s21, %s1467_s21   ;;  %s1050_s20 = sphi %s1108_s20, %s1463_s20   ;;  %s1046_s19 = sphi %s1106_s19, %s1466_s19   ;;  %s1042_s18 = sphi %s1104_s18, %s1465_s18  }
   0xd   : > { %s683_s25 = sadd.s32 4294967294, %s1062_s23   ;;  %p75_p0 = scmp.ne.s32.totalorder %s1046_s19, %s1042_s18 }
   0xe   : > { %p1419_p1 = scmp.eq.s32.totalorder %s1135_s24, 0  ;;  %p221_p3 = scmp.eq.s32.totalorder %s683_s25, 1 }
   0xf   : > { %p684_p5 = scmp.ge.s32.totalorder %s1062_s23, 1  ;;  %p228_p7 = scmp.lt.s32.totalorder %s1062_s23, 3 }
  0x10   : > { %p1144_p4 = por %p1419_p1, %p75_p0  ;;  %p1149_p6 = por %p221_p3, %p75_p0 }
  0x11   : > { %p1154_p8 = pnand %p684_p5, %p228_p7  ;;  %s1064_s29 = smov [#allocation6]  }
  0x12   : > { %s1436_s26 = scalar_select %p1144_p4, 1, 0 }
  0x13   : > { %s1437_s27 = scalar_select %p1149_p6, 1, 0 }
  0x14   : > { %s1438_s28 = scalar_select %p1154_p8, 1, 0 }
  0x15   : > { %s244_s30 = sshll.u32 %s1064_s29, 4  ;;  %p741_p9 = pneg %p1154_p8  ;;  %s245_s30 = int_to_ptr.vmem [resolvable:$true] %s244_s30 }
  0x16   : > { %s51_s7 = sadd.s32 1, %s1058_s22  ;;  %s1440_s1 = sld [smem:[#allocation20_spill]] }
  0x17   : > { %p1163_p11 = pnand %p741_p9, %p1419_p1 }
  0x19   : > { %s1439_s6 = scalar_select %p1163_p11, 1, 0 }
  0x1a   : > { %p1423_p13 = pneg %p1163_p11 }
  0x1c   : > { %s826_s10 = scalar_lea.hbm %s1440_s1, 512 }
  0x1d   : > { %p827_p12 = scmp.ne.s32.totalorder %s1440_s1, %s826_s10  ;;  %p833_p5 = scmp.lt.u32.totalorder %s826_s10, %s1440_s1 }
  0x1f   : > { %p829_p0 = pnand %p1423_p13, %p827_p12 }
  0x21   : > { %p830_p3 = pneg %p829_p0 }
  0x23   : > { %p835_p7 = pnand %p833_p5, %p830_p3 }
  0x25   : > { %838 = shalt.err (!%p835_p7)
}
  0x26   : > { %s839_s15 = scalar_lea.vmem %s245_s30, 512  ;;  %p847_p2 = scmp.lt.s32.totalorder %s245_s30, %s245_s30 }
  0x27   : > { %p840_p9 = scmp.ne.s32.totalorder %s245_s30, %s839_s15  ;;  %p848_p6 = scmp.lt.s32.totalorder %s839_s15, %s839_s15 }
  0x29   : > { %p842_p10 = pnand %p840_p9, %p1423_p13  ;;  %p849_p4 = por %p848_p6, %p847_p2 }
  0x2b   : > { %p843_p1 = pneg %p842_p10 }
  0x2d   : > { %p850_p8 = pnand %p849_p4, %p843_p1 }
  0x2f   : > { %853 = shalt.err (!%p850_p8)
}
  0x30   : > { %s1065_s16 = smov 64   ;;  %s1066_s17 = smov 4  }
  0x31   : > { %744 = dma.hbm_to_vmem [thread:$0]  (!%p1163_p11), %s1440_s1, 512, %s245_s30, [#allocation7], %s1065_s16, %s1065_s16, %s1066_s17  }
  0x32   : > { %p53_p1 = scmp.ge.s32.totalorder %s51_s7, 2  ;;  %s62_s8 = sadd.s32 1, %s1050_s20 }
  0x33   : > { %p69_p2 = scmp.ne.s32.totalorder %s1050_s20, %s1046_s19  ;;  %p70_p4 = scmp.eq.s32.totalorder %s1062_s23, 0 }
  0x34   : > { %s1470_s7 = smov (%p53_p1, %s51_s7), 0  ;;  %p1442_p8 = scmp.eq.s32.totalorder %s1135_s24, 1 }
  0x35   : > { %1441 = sst [smem:[#allocation18_spill]] %s1470_s7  ;;  %p71_p6 = por %p70_p4, %p69_p2 }
  0x36   : > { %p1198_p10 = por %p1442_p8, %p69_p2  ;;  %s55_s10 = ssub.s32 %s1058_s22, %s1470_s7 }
  0x37   : > { %p764_p12 = scmp.lt.s32.totalorder %s1062_s23, 2  ;;  %p60_p0 = scmp.eq.s32.totalorder %s55_s10, 0 }
  0x38   : > { %s1443_s9 = scalar_select %p1198_p10, 1, 0 }
  0x39   : > { %s1206_s11 = sand.u32 1, %s1050_s20   ;;  %p1208_p3 = pnand %p764_p12, %p71_p6 }
  0x3a   : > { %s291_s12 = sand.u32 1, %s1062_s23   ;;  %s690_s14 = sshll.u32 %s1058_s22, 4 }
  0x3b   : > { %s1444_s30 = scalar_select %p1208_p3, 1, 0 }
  0x3c   : > { %s1214_s13 = scalar_select %p60_p0, %s1050_s20, %s62_s8  }
  0x3d   : > { %s1446_s3 = sld [smem:[#allocation21_spill]]  ;;  %s294_s25 = scalar_lea.vmem [#allocation9], %s1206_s11 }
  0x3e   : > { %1445 = sst [smem:[#allocation19_spill]] %s1214_s13  ;;  %s302_s29 = sshll.u32 %s294_s25, 4  ;;  %s1223_s29 = int_to_ptr.vmem [resolvable:$true] %s302_s29 }
  0x3f   : > { %s1225_s10 = scalar_lea.sflag [#allocation10], %s291_s12  ;;  %p1231_p7 = pneg %p1208_p3 }
  0x41   : > { %s1447_s8 = scalar_select %p1231_p7, 1, 0 }
  0x43   : > { %s1220_s17 = scalar_lea.hbm %s1446_s3, %s690_s14  ;;  %s859_s16 = scalar_lea.hbm %s1446_s3, 32 }
  0x44   : > { %s854_s1 = scalar_lea.hbm %s1220_s17, 16  ;;  %p860_p2 = scmp.lt.u32.totalorder %s1220_s17, %s1446_s3 }
  0x45   : > { %p855_p5 = scmp.ne.s32.totalorder %s1220_s17, %s854_s1  ;;  %p861_p4 = scmp.lt.u32.totalorder %s859_s16, %s854_s1 }
  0x46   : > { %p863_p8 = scmp.lt.u32.totalorder %s854_s1, %s1220_s17 }
  0x47   : > { %p857_p9 = pnand %p1231_p7, %p855_p5  ;;  %p862_p6 = por %p861_p4, %p860_p2 }
  0x49   : > { %p858_p1 = pneg %p857_p9  ;;  %p864_p12 = por %p863_p8, %p862_p6 }
  0x4b   : > { %p865_p0 = pnand %p864_p12, %p858_p1 }
  0x4d   : > { %868 = shalt.err (!%p865_p0)
}
  0x4e   : > { %s869_s12 = scalar_lea.vmem %s1223_s29, 16  ;;  %s1067_s14 = smov [#allocation9]  }
  0x4f   : > { %p870_p5 = scmp.ne.s32.totalorder %s1223_s29, %s869_s12  ;;  %s874_s15 = sshll.u32 %s1067_s14, 4  ;;  %s875_s15 = int_to_ptr.vmem [resolvable:$false] %s874_s15 }
  0x50   : > { %s876_s7 = scalar_lea.vmem %s875_s15, 32  ;;  %p877_p10 = scmp.lt.s32.totalorder %s1223_s29, %s875_s15 }
  0x51   : > { %p872_p9 = pnand %p870_p5, %p1231_p7  ;;  %p878_p11 = scmp.lt.s32.totalorder %s876_s7, %s869_s12 }
  0x53   : > { %p873_p13 = pneg %p872_p9  ;;  %p879_p2 = por %p878_p11, %p877_p10 }
  0x55   : > { %p880_p4 = pnand %p879_p2, %p873_p13 }
  0x57   : > { %883 = shalt.err (!%p880_p4)
}
  0x58   : > { %754 = dma.hbm_to_vmem [thread:$0]  (!%p1208_p3), %s1220_s17, 16, %s1223_s29, %s1225_s10  }
  0x59   : > { %s1068_s1 = smov [#allocation8]   ;;  %s1432_s25 = sshll.u32 %s1206_s11, 2 }
  0x5a   : > { %s260_s16 = sshll.u32 %s1068_s1, 4  ;;  %s884_s15 = scalar_lea.hbm %s1415_s2, 16  ;;  %s261_s16 = int_to_ptr.vmem [resolvable:$true] %s260_s16 }
  0x5b   : > { %p885_p11 = scmp.ne.s32.totalorder %s1415_s2, %s884_s15  ;;  %p1448_p13 = scmp.ne.s32.totalorder %s1439_s6, 0 }
  0x5c   : > { %p891_p8 = scmp.lt.u32.totalorder %s884_s15, %s1415_s2 }
  0x5d   : > { %p1449_p10 = pneg %p1448_p13 }
  0x5f   : > { %p887_p1 = pnand %p885_p11, %p1449_p10 }
  0x61   : > { %p888_p6 = pneg %p887_p1 }
  0x63   : > { %p893_p12 = pnand %p891_p8, %p888_p6 }
  0x65   : > { %896 = shalt.err (!%p893_p12)
}
  0x66   : > { %s897_s17 = scalar_lea.vmem %s261_s16, 16  ;;  %p1450_p5 = pmov %p1449_p10 }
  0x67   : > { %p898_p0 = scmp.ne.s32.totalorder %s261_s16, %s897_s17  ;;  %s904_s3 = scalar_lea.vmem %s261_s16, 32 }
  0x68   : > { %p905_p4 = scmp.lt.s32.totalorder %s261_s16, %s261_s16  ;;  %p906_p3 = scmp.lt.s32.totalorder %s904_s3, %s897_s17 }
  0x69   : > { %p900_p9 = pnand %p898_p0, %p1450_p5 }
  0x6a   : > { %p907_p7 = por %p906_p3, %p905_p4 }
  0x6b   : > { %p901_p2 = pneg %p900_p9 }
  0x6d   : > { %p908_p10 = pnand %p907_p7, %p901_p2 }
  0x6f   : > { %911 = shalt.err (!%p908_p10)
}
  0x70   : > { %747 = dma.hbm_to_vmem [thread:$0]  (!%p1448_p13), %s1415_s2, 16, %s261_s16, [#allocation7]  }
  0x71   : > { %s689_s13 = sshll.u32 %s1058_s22, 6  ;;  %s275_s6 = scalar_lea.vmem [#allocation3], %s1432_s25 }
  0x72   : > { %s1282_s15 = scalar_lea.hbm %s1413_s0, %s689_s13  ;;  %s284_s12 = sshll.u32 %s275_s6, 4  ;;  %s285_s12 = int_to_ptr.vmem [resolvable:$true] %s284_s12 }
  0x73   : > { %s272_s7 = scalar_lea.sflag [#allocation4], %s1206_s11  ;;  %s912_s17 = scalar_lea.hbm %s1282_s15, 64 }
  0x74   : > { %p913_p3 = scmp.ne.s32.totalorder %s1282_s15, %s912_s17  ;;  %p1451_p7 = scmp.ne.s32.totalorder %s1447_s8, 0 }
  0x75   : > { %s917_s29 = scalar_lea.hbm %s1413_s0, 128  ;;  %p918_p1 = scmp.lt.u32.totalorder %s1282_s15, %s1413_s0 }
  0x76   : > { %p915_p11 = pnand %p913_p3, %p1451_p7  ;;  %p919_p6 = scmp.lt.u32.totalorder %s917_s29, %s912_s17 }
  0x77   : > { %p921_p12 = scmp.lt.u32.totalorder %s912_s17, %s1282_s15 }
  0x78   : > { %p916_p13 = pneg %p915_p11  ;;  %p920_p8 = por %p919_p6, %p918_p1 }
  0x7a   : > { %p922_p0 = por %p921_p12, %p920_p8 }
  0x7c   : > { %p923_p5 = pnand %p922_p0, %p916_p13 }
  0x7e   : > { %926 = shalt.err (!%p923_p5)
}
  0x7f   : > { %s927_s14 = scalar_lea.vmem %s285_s12, 64  ;;  %s1069_s6 = smov [#allocation3]  }
  0x80   : > { %p928_p9 = scmp.ne.s32.totalorder %s285_s12, %s927_s14  ;;  %s932_s25 = sshll.u32 %s1069_s6, 4  ;;  %s933_s25 = int_to_ptr.vmem [resolvable:$false] %s932_s25 }
  0x81   : > { %s934_s16 = scalar_lea.vmem %s933_s25, 128  ;;  %p935_p10 = scmp.lt.s32.totalorder %s285_s12, %s933_s25 }
  0x82   : > { %p930_p2 = pnand %p928_p9, %p1451_p7  ;;  %p936_p3 = scmp.lt.s32.totalorder %s934_s16, %s927_s14 }
  0x84   : > { %p931_p4 = pneg %p930_p2  ;;  %p937_p11 = por %p936_p3, %p935_p10 }
  0x86   : > { %p938_p1 = pnand %p937_p11, %p931_p4 }
  0x88   : > { %941 = shalt.err (!%p938_p1)
}
  0x89   : > { %p1452_p6 = scmp.ne.s32.totalorder %s1444_s30, 0  ;;  %s1309_s29 = scalar_lea.hbm %s1417_s4, %s689_s13 }
  0x8a   : > { %s1453_s20 = sshll.u32 %s1206_s11, 2  ;;  %s942_s14 = scalar_lea.hbm %s1309_s29, 64 }
  0x8b   : > { %751 = dma.hbm_to_vmem [thread:$0]  (!%p1452_p6), %s1282_s15, 64, %s285_s12, %s272_s7  }
  0x8c   : > { %s313_s25 = scalar_lea.vmem [#allocation11], %s1453_s20  ;;  %p943_p13 = scmp.ne.s32.totalorder %s1309_s29, %s942_s14 }
  0x8d   : > { %s322_s1 = sshll.u32 %s313_s25, 4  ;;  %s947_s7 = scalar_lea.hbm %s1417_s4, 128  ;;  %s323_s1 = int_to_ptr.vmem [resolvable:$true] %s322_s1 }
  0x8e   : > { %p945_p8 = pnand %p943_p13, %p1451_p7  ;;  %p948_p0 = scmp.lt.u32.totalorder %s1309_s29, %s1417_s4 }
  0x8f   : > { %p949_p5 = scmp.lt.u32.totalorder %s947_s7, %s942_s14  ;;  %p951_p2 = scmp.lt.u32.totalorder %s942_s14, %s1309_s29 }
  0x90   : > { %p946_p12 = pneg %p945_p8 }
  0x91   : > { %p950_p9 = por %p949_p5, %p948_p0 }
  0x93   : > { %p952_p4 = por %p951_p2, %p950_p9 }
  0x95   : > { %p953_p10 = pnand %p952_p4, %p946_p12 }
  0x97   : > { %956 = shalt.err (!%p953_p10)
}
  0x98   : > { %s957_s11 = scalar_lea.vmem %s323_s1, 64  ;;  %s1070_s16 = smov [#allocation11]  }
  0x99   : > { %p958_p3 = scmp.ne.s32.totalorder %s323_s1, %s957_s11  ;;  %s962_s17 = sshll.u32 %s1070_s16, 4  ;;  %s963_s17 = int_to_ptr.vmem [resolvable:$false] %s962_s17 }
  0x9a   : > { %s964_s3 = scalar_lea.vmem %s963_s17, 128  ;;  %p965_p13 = scmp.lt.s32.totalorder %s323_s1, %s963_s17 }
  0x9b   : > { %p960_p11 = pnand %p958_p3, %p1451_p7  ;;  %p966_p8 = scmp.lt.s32.totalorder %s964_s3, %s957_s11 }
  0x9d   : > { %p961_p1 = pneg %p960_p11  ;;  %p967_p6 = por %p966_p8, %p965_p13 }
  0x9f   : > { %p968_p0 = pnand %p967_p6, %p961_p1 }
  0xa1   : > { %971 = shalt.err (!%p968_p0)
}
  0xa2   : > { %p1454_p5 = scmp.ne.s32.totalorder %s1444_s30, 0  ;;  %p1455_p12 = scmp.ne.s32.totalorder %s1438_s28, 0 }
  0xa3   : > { %s1334_s8 = sand.u32 (!%p1455_p12), 1, %s1046_s19   ;;  %p1456_p7 = scmp.ne.s32.totalorder (!%p1455_p12), %s1436_s26, 0 }
  0xa4   : > { %757 = dma.hbm_to_vmem [thread:$0]  (!%p1454_p5), %s1309_s29, 64, %s323_s1, %s1225_s10  }
  0xa5   : > { %331 = sbr.rel (%p1455_p12) target bundleno = 440 (0x1b8), region = 40  ;;  %s1337_s20 = sshll.u32 (!%p1455_p12), %s1334_s8, 2 }
  0xa6   : > { %s334_s25 = scalar_lea.sflag (!%p1455_p12), [#allocation4], %s1334_s8  ;;  %s337_s14 = scalar_lea.vmem (!%p1455_p12), [#allocation3], %s1337_s20 }
  0xac   : > { %1025 = dma.done.wait (%p1456_p7), %s334_s25, 64  }
  0xad   : > { %1027 = vsyncadd (%p1456_p7), %s334_s25, 4294967232  ;;  %p1457_p6 = scmp.eq.s32.totalorder %s1135_s24, 0 }
  0xaf   : > { %1029 = dma.done.wait (%p1457_p6), [#allocation7], 528   ;;  %p1458_p9 = pmov %p1457_p6 }
  0xb0   : > { %s350_s28 = sand.u32 1, %s1135_s24   ;;  %s353_s10 = scalar_lea.vmem [#allocation9], %s1334_s8 }
  0xb1   : > { %1031 = vsyncadd (%p1458_p9), [#allocation7], 4294966768  ;;  %s351_s30 = scalar_lea.sflag [#allocation10], %s350_s28 }
  0xb2   : > { %1033 = dma.done.wait (%p1456_p7), %s351_s30, 80  }
  0xb3   : > { %1035 = vsyncadd (%p1456_p7), %s351_s30, 4294967216  ;;  %vm404_vm0 = vcmask 523264   ;;  %v1071_v0 = vmov 0.0   ;;  %vm1072_vm1 = vmmov 0   ;;  %v822_v1 = vld [vmem:[#allocation6] sm:$0xff]   ;;  %v823_v2 = vld [vmem:[#allocation6 + $0x8] sm:$0xff]   ;;  %v492_v6 = vlaneseq }
  0xb4   : > { %713 = vmatprep.subr.bf16.mxu0 %v1071_v0  ;;  %721 = vmatprep.mubr.msk.bf16.mxu0 %vm1072_vm1, %v1071_v0  ;;  %405 = vst.msk [vmem:[#allocation2] sm:$0xff] %vm404_vm0, %v1071_v0  ;;  %v824_v3 = vld [vmem:[#allocation6 + $0x10] sm:$0xff]   ;;  %v825_v4 = vld [vmem:[#allocation6 + $0x18] sm:$0xff]   ;;  %v490_v10 = vld [vmem:[#allocation8] sm:$0x1]  ;;  %s362_s24 = scalar_lea.vmem [#allocation11], %s1337_s20 }
  0xb5   : > { %714 = vmatpush3.bf16.msra.mxu0 %v822_v1  ;;  %v407_v5 = vld [vmem:[%s337_s14] sm:$0xf]  ;;  %v493_v8 = vshrl.u32 %v492_v6, 7  ;;  %v499_v14 = vld [vmem:[%s353_s10] sm:$0x1]  ;;  %v491_v16 = vunpack.c.l.bf16 %v490_v10  ;;  %s705_s26 = sshll.u32 %s1054_s21, 6 }
  0xb6   : > { %715 = vmatprep.subr.bf16.mxu0 %v1071_v0  ;;  %v500_v18 = vunpack.c.l.bf16 %v499_v14  ;;  %v497_v20 = vld [vmem:[%s362_s24] sm:$0xf]  ;;  %s397_s29 = scalar_lea.vmem [#allocation12], %s1337_s20  ;;  %vm508_vm2 = vcmask 519168   ;;  %s1364_s7 = scalar_lea.hbm %s1418_s5, %s705_s26 }
  0xb7   : > { %v494_v17 = vsub.s32 0, %v493_v8  ;;  %v498_v24 = vunpack.c.l.bf16 %v497_v20  ;;  %s526_s1 = sshll.u32 %s397_s29, 4  ;;  %s511_s6 = scalar_lea.sflag [#allocation5], %s1334_s8  ;;  %s1366_s1 = int_to_ptr.vmem [resolvable:$true] %s526_s1 }
  0xb8   : > { %s972_s13 = scalar_lea.vmem %s1366_s1, 64  ;;  %p1459_p4 = scmp.ne.s32.totalorder %s1443_s9, 0 }
  0xb9   : > { %716 = vmatpush3.bf16.msra.mxu0 %v823_v2  ;;  %v495_v19 = vrot.slane %v491_v16, %v494_v17  ;;  %v504_v21 = vrot.slane %v500_v18, %v494_v17  ;;  %p973_p2 = scmp.ne.s32.totalorder %s1366_s1, %s972_s13  ;;  %s1073_s21 = smov [#allocation12]  }
  0xba   : > { %717 = vmatprep.subr.bf16.mxu0 %v1071_v0  ;;  %s976_s11 = sshll.u32 %s1073_s21, 4  ;;  %s977_s11 = int_to_ptr.vmem [resolvable:$false] %s976_s11 }
  0xbb   : > { %v406_v7 = vld [vmem:[#allocation2] sm:$0xff]  ;;  %p974_p10 = pnand %p973_p2, %p1459_p4  ;;  %s978_s16 = scalar_lea.vmem %s977_s11, 128 }
  0xbc   : > { %p979_p11 = scmp.lt.s32.totalorder %s1366_s1, %s977_s11  ;;  %p980_p1 = scmp.lt.s32.totalorder %s978_s16, %s972_s13 }
  0xbd   : > { %718 = vmatpush3.bf16.msra.mxu0 %v824_v3  ;;  %p975_p3 = pneg %p974_p10 }
  0xbe   : > { %719 = vmatprep.subr.bf16.mxu0 %v1071_v0  ;;  %p981_p13 = por %p980_p1, %p979_p11 }
  0xc0   : > { %p982_p8 = pnand %p981_p13, %p975_p3 }
  0xc1   : > { %720 = vmatpush3.bf16.msra.mxu0 %v825_v4 }
  0xc4   : > { %722 = vmatmul.mubr.msk.bf16.vlgmr.msra.gmra.mrb[0].mxu0 %vm404_vm0, %v407_v5 }
 0x197   : > { %v478_v9 = vpop.f32.mrb[0].mxu0 }
 0x198   : > { %v484_v11 = vadd.f32 %v478_v9, %v406_v7  ;;  %v723_v12 = vpop.f32.mrb[1].mxu0 }
 0x199   : > { %v481_v13 = vpop.f32.mrb[2].mxu0 }
 0x19a   : > { %485 = vst.msk [vmem:[#allocation2] sm:$0xff] %vm404_vm0, %v484_v11  ;;  %v724_v15 = vpop.f32.mrb[3].mxu0 }
 0x1a1   : > { %v489_v22 = vld [vmem:[#allocation2] sm:$0xff] }
 0x1a2   : > { %v496_v23 = vadd.f32 %v495_v19, %v489_v22 }
 0x1a4   : > { %v505_v25 = vmul.f32 %v504_v21, %v496_v23 }
 0x1a6   : > { %v506_v26 = vadd.f32 %v505_v25, %v498_v24 }
 0x1a8   : > { %v507_v27 = vpack.c.bf16 %v506_v26, %v506_v26 }
 0x1aa   : > { %509 = vst.msk [vmem:[%s397_s29] sm:$0xf] %vm508_vm2, %v507_v27 }
 0x1ab   : > { %985 = shalt.err (!%p982_p8)
}
 0x1ac   : > { %s986_s17 = scalar_lea.hbm %s1364_s7, 64  ;;  %s990_s20 = scalar_lea.hbm %s1418_s5, 128 }
 0x1ad   : > { %p987_p0 = scmp.ne.s32.totalorder %s1364_s7, %s986_s17  ;;  %p991_p7 = scmp.lt.u32.totalorder %s1364_s7, %s1418_s5 }
 0x1ae   : > { %p992_p6 = scmp.lt.u32.totalorder %s990_s20, %s986_s17  ;;  %p994_p2 = scmp.lt.u32.totalorder %s986_s17, %s1364_s7 }
 0x1af   : > { %p988_p5 = pnand %p987_p0, %p1459_p4 }
 0x1b0   : > { %p993_p9 = por %p992_p6, %p991_p7 }
 0x1b1   : > { %p989_p12 = pneg %p988_p5 }
 0x1b2   : > { %p995_p10 = por %p994_p2, %p993_p9 }
 0x1b4   : > { %p996_p3 = pnand %p995_p10, %p989_p12 }
 0x1b6   : > { %999 = shalt.err (!%p996_p3)
}
 0x1b7   : > { %739 = dma.vmem_to_hbm [thread:$0]  (%p1459_p4), %s1366_s1, 64, %s1364_s7, %s511_s6  }
 0x1b8 PF: > { %s538_s28 = sand.u32 1, %s1042_s18   ;;  %p1460_p11 = scmp.ne.s32.totalorder %s1437_s27, 0 }
 0x1b9   : > { %p1461_p1 = scmp.ge.s32.totalorder %s1062_s23, 2  ;;  %s539_s30 = scalar_lea.sflag [#allocation5], %s538_s28 }
 0x1bb   : > { %p759_p13 = pnand %p1461_p1, %p1460_p11 }
 0x1bd   : > { %1037 = dma.done.wait (!%p759_p13), %s539_s30, 64  }
 0x1be   : > { %1039 = vsyncadd (!%p759_p13), %s539_s30, 4294967232  ;;  %s25_s23 = sadd.s32 1, %s1062_s23   ;;  %s1462_s10 = sld [smem:[#allocation17_spill]] }
 0x1bf   : > { %p22_p8 = scmp.ge.s32.totalorder %s25_s23, 4   ;;  %s1463_s20 = sld [smem:[#allocation19_spill]] }
 0x1c0   : > { %s1464_s9 = sld [smem:[#allocation18_spill]]  ;;  %s1465_s18 = smov %s1046_s19 }
 0x1c1   : > { %s1467_s21 = smov %s1058_s22  ;;  %24 = sbr.rel (!%p22_p8) target bundleno = 12 (0xc), region = 127 }
 0x1c4   : > { %s1466_s19 = smov %s1462_s10 }
 0x1c6   : > { %s1468_s22 = smov %s1464_s9 }
 0x1c8   :  { %544 = vsyncpa [#allocation4], 1 }
 0x1c9   :  { %546 = vsyncpa [#allocation4 + $0x1], 1 }
 0x1ca   :  { %547 = vsyncpa [#allocation7], 1 }
 0x1cb   :  { %548 = vsyncpa [#allocation10], 1 }
 0x1cc   :  { %550 = vsyncpa [#allocation10 + $0x1], 1 }
 0x1cd   :  { %551 = vsyncpa [#allocation5], 1 }
 0x1ce   :  { %553 = vsyncpa [#allocation5 + $0x1], 1 }

// kernel: flux_transformer_block.23
= control target key start
LH: loop header
LB: loop body
LE: loop exit
PB: predicated region body
PF: predicated region fallthrough
CT: control target
= control target key end

     0   :  { %s1549_s0 = inlined_call_operand.hbm [shape: bf16[2,8,256], index: 0, kind: input, shape index: {}]   ;;  %s1550_s1 = inlined_call_operand.hbm [shape: bf16[256,64], index: 1, kind: input, shape index: {}]   ;;  %s1551_s2 = inlined_call_operand.hbm [shape: bf16[1,64], index: 2, kind: input, shape index: {}]   ;;  %s1552_s3 = inlined_call_operand.hbm [shape: bf16[2,1,64], index: 3, kind: input, shape index: {}]   ;;  %s1553_s4 = inlined_call_operand.hbm [shape: bf16[2,8,64], index: 4, kind: input, shape index: {}]   ;;  %s1554_s5 = inlined_call_operand.hbm [shape: bf16[2,8,64], index: 5, kind: output, shape index: {}]  }
   0x1   :  { %1568 = sst [smem:[#allocation20_spill]] %s1550_s1 }
   0x2   :  { %1569 = sst [smem:[#allocation21_spill]] %s1552_s3 }
   0x3   :  { %10 = vsyncpa [#allocation4], 0 }
   0x4   :  { %12 = vsyncpa [#allocation4 + $0x1], 0 }
   0x5   :  { %13 = vsyncpa [#allocation7], 0 }
   0x6   :  { %14 = vsyncpa [#allocation10], 0 }
   0x7   :  { %16 = vsyncpa [#allocation10 + $0x1], 0 }
   0x8   :  { %17 = vsyncpa [#allocation5], 0 }
   0x9   :  { %19 = vsyncpa [#allocation5 + $0x1], 0  ;;  %s1243_s18 = smov 0   ;;  %s1245_s19 = smov 0  }
   0xa   :  { %s1247_s20 = smov 0   ;;  %s1249_s21 = smov 0  }
   0xb   :  { %s1251_s22 = smov 0   ;;  %s1253_s23 = smov 0  }
   0xc LB: > { %1570 = sst [smem:[#allocation17_spill]] %s1190_s20  ;;  %s1274_s24 = sadd.s32 4294967295, %s1202_s23   ;;  %s1202_s23 = sphi %s1253_s23, %s25_s23   ;;  %s1198_s22 = sphi %s1251_s22, %s1602_s22   ;;  %s1194_s21 = sphi %s1249_s21, %s1601_s21   ;;  %s1190_s20 = sphi %s1247_s20, %s1597_s20   ;;  %s1186_s19 = sphi %s1245_s19, %s1600_s19   ;;  %s1182_s18 = sphi %s1243_s18, %s1599_s18  }
   0xd   : > { %s790_s25 = sadd.s32 4294967294, %s1202_s23   ;;  %p75_p0 = scmp.ne.s32.totalorder %s1186_s19, %s1182_s18 }
   0xe   : > { %p1555_p1 = scmp.eq.s32.totalorder %s1274_s24, 0  ;;  %p221_p3 = scmp.eq.s32.totalorder %s790_s25, 1 }
   0xf   : > { %p791_p5 = scmp.ge.s32.totalorder %s1202_s23, 1  ;;  %p228_p7 = scmp.lt.s32.totalorder %s1202_s23, 3 }
  0x10   : > { %p1283_p4 = por %p1555_p1, %p75_p0  ;;  %p1288_p6 = por %p221_p3, %p75_p0 }
  0x11   : > { %p1293_p8 = pnand %p791_p5, %p228_p7  ;;  %s1204_s29 = smov [#allocation6]  }
  0x12   : > { %s1571_s26 = scalar_select %p1283_p4, 1, 0 }
  0x13   : > { %s1572_s27 = scalar_select %p1288_p6, 1, 0 }
  0x14   : > { %s1573_s28 = scalar_select %p1293_p8, 1, 0 }
  0x15   : > { %s244_s30 = sshll.u32 %s1204_s29, 4  ;;  %p868_p9 = pneg %p1293_p8  ;;  %s245_s30 = int_to_ptr.vmem [resolvable:$true] %s244_s30 }
  0x16   : > { %s51_s7 = sadd.s32 1, %s1198_s22  ;;  %s1575_s1 = sld [smem:[#allocation20_spill]] }
  0x17   : > { %p1302_p11 = pnand %p868_p9, %p1555_p1 }
  0x19   : > { %s1574_s6 = scalar_select %p1302_p11, 1, 0 }
  0x1a   : > { %p1559_p13 = pneg %p1302_p11 }
  0x1c   : > { %s966_s10 = scalar_lea.hbm %s1575_s1, 2048 }
  0x1d   : > { %p967_p12 = scmp.ne.s32.totalorder %s1575_s1, %s966_s10  ;;  %p973_p5 = scmp.lt.u32.totalorder %s966_s10, %s1575_s1 }
  0x1f   : > { %p969_p0 = pnand %p1559_p13, %p967_p12 }
  0x21   : > { %p970_p3 = pneg %p969_p0 }
  0x23   : > { %p975_p7 = pnand %p973_p5, %p970_p3 }
  0x25   : > { %978 = shalt.err (!%p975_p7)
}
  0x26   : > { %s979_s15 = scalar_lea.vmem %s245_s30, 2048  ;;  %p987_p2 = scmp.lt.s32.totalorder %s245_s30, %s245_s30 }
  0x27   : > { %p980_p9 = scmp.ne.s32.totalorder %s245_s30, %s979_s15  ;;  %p988_p6 = scmp.lt.s32.totalorder %s979_s15, %s979_s15 }
  0x29   : > { %p982_p10 = pnand %p980_p9, %p1559_p13  ;;  %p989_p4 = por %p988_p6, %p987_p2 }
  0x2b   : > { %p983_p1 = pneg %p982_p10 }
  0x2d   : > { %p990_p8 = pnand %p989_p4, %p983_p1 }
  0x2f   : > { %993 = shalt.err (!%p990_p8)
}
  0x30   : > { %s1205_s16 = smov 64   ;;  %s1206_s17 = smov 4  }
  0x31   : > { %871 = dma.hbm_to_vmem [thread:$0]  (!%p1302_p11), %s1575_s1, 2048, %s245_s30, [#allocation7], %s1205_s16, %s1205_s16, %s1206_s17  }
  0x32   : > { %p53_p1 = scmp.ge.s32.totalorder %s51_s7, 2  ;;  %s62_s8 = sadd.s32 1, %s1190_s20 }
  0x33   : > { %p69_p2 = scmp.ne.s32.totalorder %s1190_s20, %s1186_s19  ;;  %p70_p4 = scmp.eq.s32.totalorder %s1202_s23, 0 }
  0x34   : > { %s1604_s7 = smov (%p53_p1, %s51_s7), 0  ;;  %p1577_p8 = scmp.eq.s32.totalorder %s1274_s24, 1 }
  0x35   : > { %1576 = sst [smem:[#allocation18_spill]] %s1604_s7  ;;  %p71_p6 = por %p70_p4, %p69_p2 }
  0x36   : > { %p1337_p10 = por %p1577_p8, %p69_p2  ;;  %s55_s10 = ssub.s32 %s1198_s22, %s1604_s7 }
  0x37   : > { %p891_p12 = scmp.lt.s32.totalorder %s1202_s23, 2  ;;  %p60_p0 = scmp.eq.s32.totalorder %s55_s10, 0 }
  0x38   : > { %s1578_s9 = scalar_select %p1337_p10, 1, 0 }
  0x39   : > { %s1345_s11 = sand.u32 1, %s1190_s20   ;;  %p1347_p3 = pnand %p891_p12, %p71_p6 }
  0x3a   : > { %s294_s12 = sand.u32 1, %s1202_s23   ;;  %s798_s14 = sshll.u32 %s1198_s22, 4 }
  0x3b   : > { %s1579_s30 = scalar_select %p1347_p3, 1, 0 }
  0x3c   : > { %s1353_s13 = scalar_select %p60_p0, %s1190_s20, %s62_s8  }
  0x3d   : > { %s1581_s3 = sld [smem:[#allocation21_spill]]  ;;  %s297_s25 = scalar_lea.vmem [#allocation9], %s1345_s11 }
  0x3e   : > { %1580 = sst [smem:[#allocation19_spill]] %s1353_s13  ;;  %s305_s29 = sshll.u32 %s297_s25, 4  ;;  %s1362_s29 = int_to_ptr.vmem [resolvable:$true] %s305_s29 }
  0x3f   : > { %s1364_s10 = scalar_lea.sflag [#allocation10], %s294_s12  ;;  %p1370_p7 = pneg %p1347_p3 }
  0x41   : > { %s1582_s8 = scalar_select %p1370_p7, 1, 0 }
  0x43   : > { %s1359_s17 = scalar_lea.hbm %s1581_s3, %s798_s14  ;;  %s999_s16 = scalar_lea.hbm %s1581_s3, 32 }
  0x44   : > { %s994_s1 = scalar_lea.hbm %s1359_s17, 16  ;;  %p1000_p2 = scmp.lt.u32.totalorder %s1359_s17, %s1581_s3 }
  0x45   : > { %p995_p5 = scmp.ne.s32.totalorder %s1359_s17, %s994_s1  ;;  %p1001_p4 = scmp.lt.u32.totalorder %s999_s16, %s994_s1 }
  0x46   : > { %p1003_p8 = scmp.lt.u32.totalorder %s994_s1, %s1359_s17 }
  0x47   : > { %p997_p9 = pnand %p1370_p7, %p995_p5  ;;  %p1002_p6 = por %p1001_p4, %p1000_p2 }
  0x49   : > { %p998_p1 = pneg %p997_p9  ;;  %p1004_p12 = por %p1003_p8, %p1002_p6 }
  0x4b   : > { %p1005_p0 = pnand %p1004_p12, %p998_p1 }
  0x4d   : > { %1008 = shalt.err (!%p1005_p0)
}
  0x4e   : > { %s1009_s12 = scalar_lea.vmem %s1362_s29, 16  ;;  %s1207_s14 = smov [#allocation9]  }
  0x4f   : > { %p1010_p5 = scmp.ne.s32.totalorder %s1362_s29, %s1009_s12  ;;  %s1014_s15 = sshll.u32 %s1207_s14, 4  ;;  %s1015_s15 = int_to_ptr.vmem [resolvable:$false] %s1014_s15 }
  0x50   : > { %s1016_s7 = scalar_lea.vmem %s1015_s15, 32  ;;  %p1017_p10 = scmp.lt.s32.totalorder %s1362_s29, %s1015_s15 }
  0x51   : > { %p1012_p9 = pnand %p1010_p5, %p1370_p7  ;;  %p1018_p11 = scmp.lt.s32.totalorder %s1016_s7, %s1009_s12 }
  0x53   : > { %p1013_p13 = pneg %p1012_p9  ;;  %p1019_p2 = por %p1018_p11, %p1017_p10 }
  0x55   : > { %p1020_p4 = pnand %p1019_p2, %p1013_p13 }
  0x57   : > { %1023 = shalt.err (!%p1020_p4)
}
  0x58   : > { %881 = dma.hbm_to_vmem [thread:$0]  (!%p1347_p3), %s1359_s17, 16, %s1362_s29, %s1364_s10  }
  0x59   : > { %s1208_s1 = smov [#allocation8]   ;;  %s795_s25 = sshll.u32 %s1345_s11, 3 }
  0x5a   : > { %s260_s16 = sshll.u32 %s1208_s1, 4  ;;  %s1024_s15 = scalar_lea.hbm %s1551_s2, 16  ;;  %s261_s16 = int_to_ptr.vmem [resolvable:$true] %s260_s16 }
  0x5b   : > { %p1025_p11 = scmp.ne.s32.totalorder %s1551_s2, %s1024_s15  ;;  %p1583_p13 = scmp.ne.s32.totalorder %s1574_s6, 0 }
  0x5c   : > { %p1031_p8 = scmp.lt.u32.totalorder %s1024_s15, %s1551_s2 }
  0x5d   : > { %p1584_p10 = pneg %p1583_p13 }
  0x5f   : > { %p1027_p1 = pnand %p1025_p11, %p1584_p10 }
  0x61   : > { %p1028_p6 = pneg %p1027_p1 }
  0x63   : > { %p1033_p12 = pnand %p1031_p8, %p1028_p6 }
  0x65   : > { %1036 = shalt.err (!%p1033_p12)
}
  0x66   : > { %s1037_s17 = scalar_lea.vmem %s261_s16, 16  ;;  %p1585_p5 = pmov %p1584_p10 }
  0x67   : > { %p1038_p0 = scmp.ne.s32.totalorder %s261_s16, %s1037_s17  ;;  %s1044_s3 = scalar_lea.vmem %s261_s16, 32 }
  0x68   : > { %p1045_p4 = scmp.lt.s32.totalorder %s261_s16, %s261_s16  ;;  %p1046_p3 = scmp.lt.s32.totalorder %s1044_s3, %s1037_s17 }
  0x69   : > { %p1040_p9 = pnand %p1038_p0, %p1585_p5 }
  0x6a   : > { %p1047_p7 = por %p1046_p3, %p1045_p4 }
  0x6b   : > { %p1041_p2 = pneg %p1040_p9 }
  0x6d   : > { %p1048_p10 = pnand %p1047_p7, %p1041_p2 }
  0x6f   : > { %1051 = shalt.err (!%p1048_p10)
}
  0x70   : > { %874 = dma.hbm_to_vmem [thread:$0]  (!%p1583_p13), %s1551_s2, 16, %s261_s16, [#allocation7]  }
  0x71   : > { %s829_s13 = sshll.u32 %s1198_s22, 7  ;;  %s275_s12 = scalar_lea.vmem [#allocation3], %s795_s25 }
  0x72   : > { %s1419_s15 = scalar_lea.hbm %s1549_s0, %s829_s13  ;;  %s287_s6 = sshll.u32 %s275_s12, 4  ;;  %s1421_s6 = int_to_ptr.vmem [resolvable:$true] %s287_s6 }
  0x73   : > { %s799_s7 = sshll.u32 %s1345_s11, 2  ;;  %s272_s17 = scalar_lea.sflag [#allocation4], %s1345_s11 }
  0x74   : > { %s1052_s3 = scalar_lea.hbm %s1419_s15, 128  ;;  %p1586_p7 = scmp.ne.s32.totalorder %s1582_s8, 0 }
  0x75   : > { %p1053_p3 = scmp.ne.s32.totalorder %s1419_s15, %s1052_s3  ;;  %s1057_s20 = scalar_lea.hbm %s1549_s0, 256 }
  0x76   : > { %p1058_p1 = scmp.lt.u32.totalorder %s1419_s15, %s1549_s0  ;;  %p1059_p6 = scmp.lt.u32.totalorder %s1057_s20, %s1052_s3 }
  0x77   : > { %p1055_p11 = pnand %p1053_p3, %p1586_p7  ;;  %p1061_p12 = scmp.lt.u32.totalorder %s1052_s3, %s1419_s15 }
  0x78   : > { %p1060_p8 = por %p1059_p6, %p1058_p1 }
  0x79   : > { %p1056_p13 = pneg %p1055_p11 }
  0x7a   : > { %p1062_p0 = por %p1061_p12, %p1060_p8 }
  0x7c   : > { %p1063_p5 = pnand %p1062_p0, %p1056_p13 }
  0x7e   : > { %1066 = shalt.err (!%p1063_p5)
}
  0x7f   : > { %s1067_s25 = scalar_lea.vmem %s1421_s6, 128  ;;  %s1209_s14 = smov [#allocation3]  }
  0x80   : > { %p1068_p9 = scmp.ne.s32.totalorder %s1421_s6, %s1067_s25  ;;  %s1072_s12 = sshll.u32 %s1209_s14, 4  ;;  %s1073_s12 = int_to_ptr.vmem [resolvable:$false] %s1072_s12 }
  0x81   : > { %s1074_s16 = scalar_lea.vmem %s1073_s12, 256  ;;  %p1075_p10 = scmp.lt.s32.totalorder %s1421_s6, %s1073_s12 }
  0x82   : > { %p1070_p2 = pnand %p1068_p9, %p1586_p7  ;;  %p1076_p3 = scmp.lt.s32.totalorder %s1074_s16, %s1067_s25 }
  0x84   : > { %p1071_p4 = pneg %p1070_p2  ;;  %p1077_p11 = por %p1076_p3, %p1075_p10 }
  0x86   : > { %p1078_p1 = pnand %p1077_p11, %p1071_p4 }
  0x88   : > { %1081 = shalt.err (!%p1078_p1)
}
  0x89   : > { %p1587_p13 = scmp.ne.s32.totalorder %s1579_s30, 0  ;;  %s800_s3 = sshll.u32 %s1198_s22, 6 }
  0x8a   : > { %s1450_s13 = scalar_lea.hbm %s1553_s4, %s800_s3  ;;  %s316_s1 = scalar_lea.vmem [#allocation11], %s799_s7 }
  0x8b   : > { %878 = dma.hbm_to_vmem [thread:$0]  (!%p1587_p13), %s1419_s15, 128, %s1421_s6, %s272_s17  }
  0x8c   : > { %s325_s25 = sshll.u32 %s316_s1, 4  ;;  %s1082_s14 = scalar_lea.hbm %s1450_s13, 64  ;;  %s326_s25 = int_to_ptr.vmem [resolvable:$true] %s325_s25 }
  0x8d   : > { %p1083_p6 = scmp.ne.s32.totalorder %s1450_s13, %s1082_s14  ;;  %s1087_s17 = scalar_lea.hbm %s1553_s4, 128 }
  0x8e   : > { %p1088_p0 = scmp.lt.u32.totalorder %s1450_s13, %s1553_s4  ;;  %p1089_p5 = scmp.lt.u32.totalorder %s1087_s17, %s1082_s14 }
  0x8f   : > { %p1085_p8 = pnand %p1083_p6, %p1586_p7  ;;  %p1091_p2 = scmp.lt.u32.totalorder %s1082_s14, %s1450_s13 }
  0x90   : > { %p1090_p9 = por %p1089_p5, %p1088_p0 }
  0x91   : > { %p1086_p12 = pneg %p1085_p8 }
  0x92   : > { %p1092_p4 = por %p1091_p2, %p1090_p9 }
  0x94   : > { %p1093_p10 = pnand %p1092_p4, %p1086_p12 }
  0x96   : > { %1096 = shalt.err (!%p1093_p10)
}
  0x97   : > { %s1097_s11 = scalar_lea.vmem %s326_s25, 64  ;;  %s1210_s7 = smov [#allocation11]  }
  0x98   : > { %p1098_p3 = scmp.ne.s32.totalorder %s326_s25, %s1097_s11  ;;  %s1102_s3 = sshll.u32 %s1210_s7, 4  ;;  %s1103_s3 = int_to_ptr.vmem [resolvable:$false] %s1102_s3 }
  0x99   : > { %s1104_s29 = scalar_lea.vmem %s1103_s3, 128  ;;  %p1105_p6 = scmp.lt.s32.totalorder %s326_s25, %s1103_s3 }
  0x9a   : > { %p1100_p11 = pnand %p1098_p3, %p1586_p7  ;;  %p1106_p8 = scmp.lt.s32.totalorder %s1104_s29, %s1097_s11 }
  0x9c   : > { %p1101_p1 = pneg %p1100_p11  ;;  %p1107_p13 = por %p1106_p8, %p1105_p6 }
  0x9e   : > { %p1108_p0 = pnand %p1107_p13, %p1101_p1 }
  0xa0   : > { %1111 = shalt.err (!%p1108_p0)
}
  0xa1   : > { %p1588_p5 = scmp.ne.s32.totalorder %s1579_s30, 0  ;;  %p1589_p12 = scmp.ne.s32.totalorder %s1573_s28, 0 }
  0xa2   : > { %s1475_s8 = sand.u32 (!%p1589_p12), 1, %s1186_s19   ;;  %p1590_p7 = scmp.ne.s32.totalorder (!%p1589_p12), %s1571_s26, 0 }
  0xa3   : > { %884 = dma.hbm_to_vmem [thread:$0]  (!%p1588_p5), %s1450_s13, 64, %s326_s25, %s1364_s10  }
  0xa4   : > { %334 = sbr.rel (%p1589_p12) target bundleno = 458 (0x1ca), region = 40  ;;  %s802_s20 = sshll.u32 (!%p1589_p12), %s1475_s8, 3 }
  0xa5   : > { %s337_s1 = scalar_lea.sflag (!%p1589_p12), [#allocation4], %s1475_s8  ;;  %s340_s14 = scalar_lea.vmem (!%p1589_p12), [#allocation3], %s802_s20 }
  0xab   : > { %1165 = dma.done.wait (%p1590_p7), %s337_s1, 128  }
  0xac   : > { %1167 = vsyncadd (%p1590_p7), %s337_s1, 4294967168  ;;  %p1591_p13 = scmp.eq.s32.totalorder %s1274_s24, 0 }
  0xae   : > { %1169 = dma.done.wait (%p1591_p13), [#allocation7], 2064   ;;  %p1592_p9 = pmov %p1591_p13 }
  0xaf   : > { %s353_s28 = sand.u32 1, %s1274_s24   ;;  %s356_s10 = scalar_lea.vmem [#allocation9], %s1475_s8 }
  0xb0   : > { %1171 = vsyncadd (%p1592_p9), [#allocation7], 4294965232  ;;  %s354_s30 = scalar_lea.sflag [#allocation10], %s353_s28 }
  0xb1   : > { %1173 = dma.done.wait (%p1590_p7), %s354_s30, 80  }
  0xb2   : > { %1175 = vsyncadd (%p1590_p7), %s354_s30, 4294967216  ;;  %v948_v0 = vld [vmem:[#allocation6 + $0x40] sm:$0xff]   ;;  %v950_v2 = vld [vmem:[#allocation6 + $0x48] sm:$0xff]   ;;  %vm408_vm0 = vcmask 523264   ;;  %v1211_v19 = vmov 0.0   ;;  %v596_v20 = vlaneseq  ;;  %s805_s24 = sshll.u32 %s1475_s8, 2 }
  0xb3   : > { %v949_v1 = vld [vmem:[#allocation6] sm:$0xff]   ;;  %830 = vmatprep.subr.bf16.mxu0 %v948_v0  ;;  %v951_v3 = vld [vmem:[#allocation6 + $0x8] sm:$0xff]   ;;  %v952_v4 = vld [vmem:[#allocation6 + $0x50] sm:$0xff]   ;;  %409 = vst.msk [vmem:[#allocation2] sm:$0xff] %vm408_vm0, %v1211_v19  ;;  %s365_s26 = scalar_lea.vmem [#allocation11], %s805_s24  ;;  %s826_s13 = sshll.u32 %s1194_s21, 6 }
  0xb4   : > { %831 = vmatpush3.bf16.msra.mxu0 %v949_v1  ;;  %v953_v5 = vld [vmem:[#allocation6 + $0x10] sm:$0xff]   ;;  %v954_v6 = vld [vmem:[#allocation6 + $0x58] sm:$0xff]   ;;  %v956_v8 = vld [vmem:[#allocation6 + $0x60] sm:$0xff]   ;;  %v597_v26 = vshrl.u32 %v596_v20, 7  ;;  %s400_s25 = scalar_lea.vmem [#allocation12], %s805_s24  ;;  %vm612_vm1 = vcmask 519168   ;;  %s1500_s12 = scalar_lea.hbm %s1554_s5, %s826_s13 }
  0xb5   : > { %832 = vmatprep.subr.bf16.mxu0 %v950_v2  ;;  %v955_v7 = vld [vmem:[#allocation6 + $0x18] sm:$0xff]   ;;  %v957_v9 = vld [vmem:[#allocation6 + $0x20] sm:$0xff]   ;;  %v958_v10 = vld [vmem:[#allocation6 + $0x68] sm:$0xff]   ;;  %s630_s15 = sshll.u32 %s400_s25, 4  ;;  %s615_s16 = scalar_lea.sflag [#allocation5], %s1475_s8  ;;  %s1502_s15 = int_to_ptr.vmem [resolvable:$true] %s630_s15 }
  0xb6   : > { %v411_v11 = vld [vmem:[%s340_s14] sm:$0xff]  ;;  %v959_v13 = vld [vmem:[#allocation6 + $0x28] sm:$0xff]   ;;  %v594_v28 = vld [vmem:[#allocation8] sm:$0x1]  ;;  %v598_v32 = vsub.s32 0, %v597_v26  ;;  %s1112_s11 = scalar_lea.vmem %s1502_s15, 64 }
  0xb7   : > { %v808_v12 = vcombine.high %v411_v11, %v411_v11  ;;  %v960_v14 = vld [vmem:[#allocation6 + $0x70] sm:$0xff]   ;;  %v962_v16 = vld [vmem:[#allocation6 + $0x78] sm:$0xff]   ;;  %v807_v18 = vcombine.low %v411_v11, %v411_v11  ;;  %v603_v30 = vld [vmem:[%s356_s10] sm:$0x1]  ;;  %v595_v31 = vunpack.c.l.bf16 %v594_v28  ;;  %p1113_p2 = scmp.ne.s32.totalorder %s1502_s15, %s1112_s11  ;;  %p1593_p4 = scmp.ne.s32.totalorder %s1578_s9, 0 }
  0xb8   : > { %833 = vmatpush3.bf16.msra.mxu0 %v951_v3  ;;  %v961_v15 = vld [vmem:[#allocation6 + $0x30] sm:$0xff]   ;;  %v963_v17 = vld [vmem:[#allocation6 + $0x38] sm:$0xff]   ;;  %v604_v33 = vunpack.c.l.bf16 %v603_v30  ;;  %v601_v35 = vld [vmem:[%s365_s26] sm:$0xf]  ;;  %s1212_s21 = smov [#allocation12]  }
  0xb9   : > { %834 = vmatprep.subr.bf16.mxu0 %v952_v4  ;;  %579 = vmatprep.mubr.bf16.mxu0 %v808_v12  ;;  %v599_v34 = vrot.slane %v595_v31, %v598_v32  ;;  %v602_v39 = vunpack.c.l.bf16 %v601_v35  ;;  %p1114_p10 = pnand %p1113_p2, %p1593_p4  ;;  %s1116_s7 = sshll.u32 %s1212_s21, 4  ;;  %s1117_s7 = int_to_ptr.vmem [resolvable:$false] %s1116_s7 }
  0xba   : > { %v410_v22 = vld [vmem:[#allocation2] sm:$0xff]  ;;  %v608_v36 = vrot.slane %v604_v33, %v598_v32  ;;  %s1118_s3 = scalar_lea.vmem %s1117_s7, 128  ;;  %p1119_p11 = scmp.lt.s32.totalorder %s1502_s15, %s1117_s7 }
  0xbb   : > { %p1115_p3 = pneg %p1114_p10  ;;  %p1120_p1 = scmp.lt.s32.totalorder %s1118_s3, %s1112_s11 }
  0xbc   : > { %835 = vmatpush3.bf16.msra.mxu0 %v953_v5 }
  0xbd   : > { %836 = vmatprep.subr.bf16.mxu0 %v954_v6  ;;  %p1121_p6 = por %p1120_p1, %p1119_p11 }
  0xbf   : > { %p1122_p8 = pnand %p1121_p6, %p1115_p3 }
  0xc0   : > { %837 = vmatpush3.bf16.msra.mxu0 %v955_v7 }
  0xc1   : > { %838 = vmatprep.subr.bf16.mxu0 %v956_v8 }
  0xc4   : > { %839 = vmatpush3.bf16.msra.mxu0 %v957_v9 }
  0xc5   : > { %840 = vmatprep.subr.bf16.mxu0 %v958_v10 }
  0xc8   : > { %841 = vmatpush3.bf16.msra.mxu0 %v959_v13 }
  0xc9   : > { %842 = vmatprep.subr.bf16.mxu0 %v960_v14 }
  0xcc   : > { %843 = vmatpush3.bf16.msra.mxu0 %v961_v15 }
  0xcd   : > { %844 = vmatprep.subr.bf16.mxu0 %v962_v16 }
  0xd0   : > { %845 = vmatpush3.bf16.msra.mxu0 %v963_v17 }
  0xd3   : > { %580 = vmatmul.mubr.bf16.vlgmr.msra.gmra.mrb[0].mxu0 %v807_v18 }
 0x1a6   : > { %v846_v21 = vpop.f32.mrb[0].mxu0 }
 0x1a7   : > { %v847_v23 = vpop.f32.mrb[1].mxu0 }
 0x1a8   : > { %v848_v24 = vadd.f32 %v847_v23, %v846_v21  ;;  %v849_v25 = vpop.f32.mrb[2].mxu0 }
 0x1a9   : > { %v850_v27 = vpop.f32.mrb[3].mxu0 }
 0x1aa   : > { %v587_v29 = vadd.f32 %v848_v24, %v410_v22 }
 0x1ac   : > { %589 = vst.msk [vmem:[#allocation2] sm:$0xff] %vm408_vm0, %v587_v29 }
 0x1b3   : > { %v593_v37 = vld [vmem:[#allocation2] sm:$0xff] }
 0x1b4   : > { %v600_v38 = vadd.f32 %v599_v34, %v593_v37 }
 0x1b6   : > { %v609_v40 = vmul.f32 %v608_v36, %v600_v38 }
 0x1b8   : > { %v610_v41 = vadd.f32 %v609_v40, %v602_v39 }
 0x1ba   : > { %v611_v42 = vpack.c.bf16 %v610_v41, %v610_v41 }
 0x1bc   : > { %613 = vst.msk [vmem:[%s400_s25] sm:$0xf] %vm612_vm1, %v611_v42 }
 0x1bd   : > { %1125 = shalt.err (!%p1122_p8)
}
 0x1be   : > { %s1126_s29 = scalar_lea.hbm %s1500_s12, 64  ;;  %s1130_s1 = scalar_lea.hbm %s1554_s5, 128 }
 0x1bf   : > { %p1127_p0 = scmp.ne.s32.totalorder %s1500_s12, %s1126_s29  ;;  %p1131_p7 = scmp.lt.u32.totalorder %s1500_s12, %s1554_s5 }
 0x1c0   : > { %p1132_p13 = scmp.lt.u32.totalorder %s1130_s1, %s1126_s29  ;;  %p1134_p2 = scmp.lt.u32.totalorder %s1126_s29, %s1500_s12 }
 0x1c1   : > { %p1128_p5 = pnand %p1127_p0, %p1593_p4 }
 0x1c2   : > { %p1133_p9 = por %p1132_p13, %p1131_p7 }
 0x1c3   : > { %p1129_p12 = pneg %p1128_p5 }
 0x1c4   : > { %p1135_p10 = por %p1134_p2, %p1133_p9 }
 0x1c6   : > { %p1136_p3 = pnand %p1135_p10, %p1129_p12 }
 0x1c8   : > { %1139 = shalt.err (!%p1136_p3)
}
 0x1c9   : > { %866 = dma.vmem_to_hbm [thread:$0]  (%p1593_p4), %s1502_s15, 64, %s1500_s12, %s615_s16  }
 0x1ca PF: > { %s642_s30 = sand.u32 1, %s1182_s18   ;;  %p1594_p11 = scmp.ne.s32.totalorder %s1572_s27, 0 }
 0x1cb   : > { %p1595_p1 = scmp.ge.s32.totalorder %s1202_s23, 2  ;;  %s643_s10 = scalar_lea.sflag [#allocation5], %s642_s30 }
 0x1cd   : > { %p886_p6 = pnand %p1595_p1, %p1594_p11 }
 0x1cf   : > { %1177 = dma.done.wait (!%p886_p6), %s643_s10, 64  }
 0x1d0   : > { %1179 = vsyncadd (!%p886_p6), %s643_s10, 4294967232  ;;  %s25_s23 = sadd.s32 1, %s1202_s23   ;;  %s1596_s24 = sld [smem:[#allocation17_spill]] }
 0x1d1   : > { %p22_p8 = scmp.ge.s32.totalorder %s25_s23, 4   ;;  %s1597_s20 = sld [smem:[#allocation19_spill]] }
 0x1d2   : > { %s1598_s9 = sld [smem:[#allocation18_spill]]  ;;  %s1599_s18 = smov %s1186_s19 }
 0x1d3   : > { %s1601_s21 = smov %s1198_s22  ;;  %24 = sbr.rel (!%p22_p8) target bundleno = 12 (0xc), region = 127 }
 0x1d6   : > { %s1600_s19 = smov %s1596_s24 }
 0x1d8   : > { %s1602_s22 = smov %s1598_s9 }
 0x1da   :  { %648 = vsyncpa [#allocation4], 1 }
 0x1db   :  { %650 = vsyncpa [#allocation4 + $0x1], 1 }
 0x1dc   :  { %651 = vsyncpa [#allocation7], 1 }
 0x1dd   :  { %652 = vsyncpa [#allocation10], 1 }
 0x1de   :  { %654 = vsyncpa [#allocation10 + $0x1], 1 }
 0x1df   :  { %655 = vsyncpa [#allocation5], 1 }
 0x1e0   :  { %657 = vsyncpa [#allocation5 + $0x1], 1 }

</bundles_post_ra>
